<compile_context>
chip_gen: v5e
topology: v5e:2x2
jax: 0.10.0
libtpu: 0.0.40
codegen_flags: <defaults>
</compile_context>

<pallas_src>
import jax
import jax.numpy as jnp
from jax import lax
from jax.experimental import pallas as pl
from jax.experimental.pallas import tpu as pltpu


LANE = 128      # output channels are padded to this (lane-dense stores / MXU N)
SUBLANE = 8


def _round_up(x, m):
    return (x + m - 1) // m * m


def _pick_tr(h, wp, max_ch):
    """Row tile: a divisor of H (>= 2), sized so the f32 accumulator tile stays
    around 2 MiB, preferring >= 2 row blocks so both v7x TensorCores get work."""
    budget_rows = max(wp, (2 << 20) // (4 * max(max_ch, LANE)))
    divs = [d for d in range(2, h + 1) if h % d == 0]
    assert divs, "spatial height must be >= 2"
    cand = [d for d in divs if d * wp <= budget_rows and h // d >= 2]
    if not cand:
        cand = [d for d in divs if d * wp <= budget_rows] or [divs[0]]
    return max(cand)


def _vmem_limit(needed_bytes):
    try:
        cap = int(pltpu.get_tpu_info().vmem_capacity_bytes)
    except Exception:          # conservative fallback = v7x per-TensorCore VMEM
        cap = 64 << 20
    hi = (cap * 3) // 4
    return int(min(max(int(needed_bytes * 1.3) + (4 << 20), 32 << 20), hi))


def _prep_weight(w_oikk, cinp, coutp):
    """PyTorch (Cout, Cin, 3, 3) -> (9, Cinp, Coutp) bf16, zero padded."""
    cout, cin, kh, kw = w_oikk.shape
    assert kh == 3 and kw == 3, "kernel implements the 3x3/s1/p1 ConvBlock case"
    w9 = jnp.transpose(w_oikk, (2, 3, 1, 0)).reshape(kh * kw, cin, cout)
    w9 = jnp.pad(w9, ((0, 0), (0, cinp - cin), (0, coutp - cout)))
    return w9.astype(jnp.bfloat16)


# ----------------------------------------------------------------------------
# Kernel 1: fused (prev-BN + ReLU) -> 3x3 conv as 9 shifted MXU matmuls,
#           plus per-tile partial channel sum / sum-of-squares.
# ----------------------------------------------------------------------------
def _make_conv_kernel(*, tr, wp, w, h, ls, fuse_in_bn):
    """x_ref holds one batch element's full image in the flat padded layout
    (rows = (H/tr + 2) * tr * Wp, channels).  For row block b the slab starts
    at flat row (b*tr + tr - 2) * Wp and spans (tr + 4) * Wp rows, so every tap
    offset (di + 1) * Wp + dj - 1 stays in bounds.  Out-of-image taps are
    zeroed by a row/col validity mask, which realizes the conv's zero padding
    and lets the previous stage's BN+ReLU be applied here, after the load."""
    mtile = tr * wp

    def kernel(x_ref, w_ref, sin_ref, tin_ref, rowg_ref, colv_ref,
               o_ref, psum_ref, psq_ref):
        bi = pl.program_id(1)
        start = pl.multiple_of((bi * tr + (tr - 2)) * wp, SUBLANE)
        slab = x_ref[pl.ds(start, ls), :].astype(jnp.float32)       # (ls, Cin)

        if fuse_in_bn:
            # Previous stage's BatchNorm (precomputed scale/shift) + ReLU,
            # fused into this stage's load path.
            slab = jnp.maximum(slab * sin_ref[...] + tin_ref[...], 0.0)

        row = bi * tr - 2 + rowg_ref[...]                           # (ls, 1)
        valid = (row >= 0) & (row < h) & (colv_ref[...] < w)
        a = jnp.where(valid, slab, 0.0)                             # f32, clean

        acc = jnp.zeros((mtile, o_ref.shape[-1]), jnp.float32)
        for di in range(3):
            for dj in range(3):
                off = (di + 1) * wp + (dj - 1)
                lhs = a[off:off + mtile, :].astype(jnp.bfloat16)
                acc = acc + jnp.dot(lhs, w_ref[di * 3 + dj],
                                    preferred_element_type=jnp.float32)

        # Zero the junk width-padding columns so they do not pollute the BN
        # statistics and stay exactly zero for the next stage.
        acc = jnp.where(colv_ref[0:mtile, :] < w, acc, 0.0)

        o_ref[...] = acc.astype(o_ref.dtype)
        psum_ref[...] = jnp.sum(acc, axis=0, keepdims=True).reshape(1, 1, -1)
        psq_ref[...] = jnp.sum(acc * acc, axis=0, keepdims=True).reshape(1, 1, -1)

    return kernel


def _conv_stage(act, w9, scale_in, shift_in, rowg, colv, *, n, h, w, tr, wp,
                cinp, coutp, fuse_in_bn):
    rpb = h // tr                # row blocks per batch element
    g = rpb + 2                  # + one junk halo block top and bottom
    region = g * tr * wp         # flat rows per batch element
    ls = (tr + 4) * wp           # slab rows per grid step
    mtile = tr * wp              # output rows per grid step

    kernel = _make_conv_kernel(tr=tr, wp=wp, w=w, h=h, ls=ls,
                               fuse_in_bn=fuse_in_bn)

    vmem = _vmem_limit(
        2 * region * cinp * 2                      # resident per-batch image x2
        + 2 * 9 * cinp * coutp * 2                 # weights x2
        + 2 * (mtile * coutp * 2 + 2 * coutp * 4)  # raw output + stats tiles x2
        + ls * cinp * (4 + 2)                      # f32 slab + bf16 staging
        + mtile * coutp * 4)                       # f32 accumulator

    cost = pl.CostEstimate(
        flops=2 * 9 * n * rpb * mtile * cinp * coutp,
        transcendentals=0,
        bytes_accessed=act.size * 2 + w9.size * 2 + n * rpb * mtile * coutp * 2)

    return pl.pallas_call(
        kernel,
        out_shape=(
            jax.ShapeDtypeStruct((n * region, coutp), jnp.bfloat16),
            jax.ShapeDtypeStruct((n * rpb, 1, coutp), jnp.float32),
            jax.ShapeDtypeStruct((n * rpb, 1, coutp), jnp.float32),
        ),
        grid_spec=pltpu.PrefetchScalarGridSpec(
            num_scalar_prefetch=0,
            grid=(n, rpb),
            in_specs=[
                pl.BlockSpec((region, cinp), lambda ni, bi: (ni, 0)),
                pl.BlockSpec((9, cinp, coutp), lambda ni, bi: (0, 0, 0)),
                pl.BlockSpec((1, cinp), lambda ni, bi: (0, 0)),
                pl.BlockSpec((1, cinp), lambda ni, bi: (0, 0)),
                pl.BlockSpec((ls, 1), lambda ni, bi: (0, 0)),
                pl.BlockSpec((ls, 1), lambda ni, bi: (0, 0)),
            ],
            out_specs=[
                pl.BlockSpec((mtile, coutp),
                             lambda ni, bi: (ni * g + 1 + bi, 0)),
                pl.BlockSpec((1, 1, coutp),
                             lambda ni, bi: (ni * rpb + bi, 0, 0)),
                pl.BlockSpec((1, 1, coutp),
                             lambda ni, bi: (ni * rpb + bi, 0, 0)),
            ]),
        compiler_params=pltpu.CompilerParams(
            dimension_semantics=("parallel", "parallel"),
            vmem_limit_bytes=vmem),
        cost_estimate=cost,
    )(act, w9, scale_in, shift_in, rowg, colv)


# ----------------------------------------------------------------------------
# Glue: per-channel BN statistics -> scale/shift  (tiny, plain JAX)
# ----------------------------------------------------------------------------
def _bn_affine(psum, psq, gamma, beta, count, coutp, eps):
    s = jnp.sum(psum, axis=(0, 1))
    q = jnp.sum(psq, axis=(0, 1))
    mean = s / count
    var = jnp.maximum(q / count - mean * mean, 0.0)    # biased (training-mode)
    inv = lax.rsqrt(var + eps)
    # NOTE: padded gamma/beta MUST be zero -> padded channels map to exactly 0.
    gp = jnp.pad(gamma, (0, coutp - gamma.shape[0]))
    bp = jnp.pad(beta, (0, coutp - beta.shape[0]))
    scale = (gp * inv).reshape(1, coutp).astype(jnp.float32)
    shift = (bp - mean * gp * inv).reshape(1, coutp).astype(jnp.float32)
    return scale, shift


# ----------------------------------------------------------------------------
# Kernel 2: standalone BN scale/shift + ReLU (final stage only)
# ----------------------------------------------------------------------------
def _bn_relu_kernel(x_ref, s_ref, t_ref, o_ref):
    o_ref[...] = jnp.maximum(
        x_ref[...].astype(jnp.float32) * s_ref[...] + t_ref[...], 0.0)


def _bn_relu_final(act, scale, shift, *, n, h, w, tr, wp, coutp):
    rpb = h // tr
    g = rpb + 2
    mtile = tr * wp
    vmem = _vmem_limit(2 * mtile * coutp * (2 + 4) + 4 * coutp * 4)
    return pl.pallas_call(
        _bn_relu_kernel,
        out_shape=jax.ShapeDtypeStruct((n * h * wp, coutp), jnp.float32),
        grid_spec=pltpu.PrefetchScalarGridSpec(
            num_scalar_prefetch=0,
            grid=(n, rpb),
            in_specs=[
                pl.BlockSpec((mtile, coutp),
                             lambda ni, bi: (ni * g + 1 + bi, 0)),
                pl.BlockSpec((1, coutp), lambda ni, bi: (0, 0)),
                pl.BlockSpec((1, coutp), lambda ni, bi: (0, 0)),
            ],
            out_specs=pl.BlockSpec((mtile, coutp),
                                   lambda ni, bi: (ni * rpb + bi, 0)),
        ),
        compiler_params=pltpu.CompilerParams(
            dimension_semantics=("parallel", "parallel"),
            vmem_limit_bytes=vmem),
    )(act, scale, shift)


# ----------------------------------------------------------------------------
# ConvBlock parameters + forward
# ----------------------------------------------------------------------------
def init_conv_block(key, in_channels, out_channels, kernel_size=3,
                    extra_conv=False):
    """Deterministic parameter init (PyTorch-style uniform bounds)."""
    params = {}
    keys = jax.random.split(key, 6)
    chans = [(in_channels, out_channels), (out_channels, out_channels)]
    if extra_conv:
        chans.append((out_channels, out_channels))
    for idx, (cin, cout) in enumerate(chans, start=1):
        fan_in = cin * kernel_size * kernel_size
        bound = 1.0 / float(fan_in) ** 0.5
        params[f"w{idx}"] = jax.random.uniform(
            keys[2 * (idx - 1)], (cout, cin, kernel_size, kernel_size),
            jnp.float32, -bound, bound)
        params[f"b{idx}"] = jax.random.uniform(
            keys[2 * (idx - 1) + 1], (cout,), jnp.float32, -bound, bound)
        params[f"gamma{idx}"] = jnp.ones((cout,), jnp.float32)
        params[f"beta{idx}"] = jnp.zeros((cout,), jnp.float32)
    return params


def conv_block_forward(params, x_nchw, *, eps=1e-5):
    """ConvBlock.forward: NCHW in / NCHW out, matching PyTorch semantics."""
    x = jnp.transpose(x_nchw, (0, 2, 3, 1)).astype(jnp.float32)  # NCHW -> NHWC
    n, h, w, cin0 = x.shape
    stage_ids = [1, 2] + ([3] if "w3" in params else [])
    couts = [params[f"w{i}"].shape[0] for i in stage_ids]
    coutps = [_round_up(c, LANE) for c in couts]

    wp = _round_up(w + 2, SUBLANE)                 # width incl. conv halo, /8
    tr = _pick_tr(h, wp, max([cin0] + coutps))
    rpb = h // tr
    g = rpb + 2
    ls = (tr + 4) * wp
    count = float(n * h * w)

    # Stage-1 input in the flat padded layout (zero halo blocks / junk cols).
    xflat = jnp.pad(x, ((0, 0), (tr, tr), (0, wp - w), (0, 0)))
    xflat = xflat.reshape(n * g * tr * wp, cin0).astype(jnp.bfloat16)

    # Tiny per-slab index vectors, passed as kernel inputs (avoids in-kernel
    # integer div/mod and large embedded vector constants).
    rowg = (jnp.arange(ls, dtype=jnp.int32) // wp).reshape(ls, 1)
    colv = (jnp.arange(ls, dtype=jnp.int32) % wp).reshape(ls, 1)

    act = xflat
    cinp = cin0
    scale_in = jnp.ones((1, cinp), jnp.float32)    # identity for stage 1
    shift_in = jnp.zeros((1, cinp), jnp.float32)
    fuse_in_bn = False

    for sid, cout, coutp in zip(stage_ids, couts, coutps):
        w9 = _prep_weight(params[f"w{sid}"], cinp, coutp)
        # params[f"b{sid}"] is intentionally unused: a pre-BN per-channel bias
        # is cancelled exactly by training-mode BatchNorm's mean subtraction.
        raw, psum, psq = _conv_stage(
            act, w9, scale_in, shift_in, rowg, colv,
            n=n, h=h, w=w, tr=tr, wp=wp, cinp=cinp, coutp=coutp,
            fuse_in_bn=fuse_in_bn)
        scale_in, shift_in = _bn_affine(
            psum, psq, params[f"gamma{sid}"], params[f"beta{sid}"],
            count, coutp, eps)
        act, cinp, fuse_in_bn = raw, coutp, True

    y = _bn_relu_final(act, scale_in, shift_in,
                       n=n, h=h, w=w, tr=tr, wp=wp, coutp=cinp)
    # Channel/width padding is sliced off exactly once, here at the end.
    y = y.reshape(n, h, wp, cinp)[:, :, :w, :couts[-1]]
    return jnp.transpose(y, (0, 3, 1, 2))          # NHWC -> NCHW


# ----------------------------------------------------------------------------
# Pure-JAX references (for correctness checks)
# ----------------------------------------------------------------------------
def _ref_stage(x_nhwc, w_oikk, bias, gamma, beta, *, eps=1e-5,
               matmul_dtype=jnp.float32):
    w_hwio = jnp.transpose(w_oikk, (2, 3, 1, 0))
    y = lax.conv_general_dilated(
        x_nhwc.astype(matmul_dtype), w_hwio.astype(matmul_dtype),
        window_strides=(1, 1), padding=((1, 1), (1, 1)),
        dimension_numbers=("NHWC", "HWIO", "NHWC"),
        preferred_element_type=jnp.float32)
    y = y + bias.reshape(1, 1, 1, -1)
    mean = jnp.mean(y, axis=(0, 1, 2), keepdims=True)
    var = jnp.mean((y - mean) ** 2, axis=(0, 1, 2), keepdims=True)
    y = (y - mean) * lax.rsqrt(var + eps) * gamma.reshape(1, 1, 1, -1) \
        + beta.reshape(1, 1, 1, -1)
    return jnp.maximum(y, 0.0)


def _ref_forward(params, x_nchw, matmul_dtype=jnp.float32):
    x = jnp.transpose(x_nchw, (0, 2, 3, 1))
    x = _ref_stage(x, params["w1"], params["b1"], params["gamma1"],
                   params["beta1"], matmul_dtype=matmul_dtype)
    x = _ref_stage(x, params["w2"], params["b2"], params["gamma2"],
                   params["beta2"], matmul_dtype=matmul_dtype)
    if "w3" in params:
        x = _ref_stage(x, params["w3"], params["b3"], params["gamma3"],
                       params["beta3"], matmul_dtype=matmul_dtype)
    return jnp.transpose(x, (0, 3, 1, 2))


if __name__ == "__main__":
    key = jax.random.PRNGKey(0)
    k_params, k_x = jax.random.split(key)

    batch, in_ch, out_ch, spatial = 2, 4, 8, 16
    x = jax.random.normal(k_x, (batch, in_ch, spatial, spatial), jnp.float32)

    fwd = jax.jit(conv_block_forward)

    # Two-conv block.
    params = init_conv_block(k_params, in_ch, out_ch, extra_conv=False)
    out = jax.block_until_ready(fwd(params, x))
    assert out.shape == (batch, out_ch, spatial, spatial)
    assert bool(jnp.all(jnp.isfinite(out)))

    ref_bf16 = jax.block_until_ready(_ref_forward(params, x, jnp.bfloat16))
    err = float(jnp.max(jnp.abs(out - ref_bf16)))
    assert jnp.allclose(out, ref_bf16, rtol=5e-2, atol=5e-2), f"bf16 ref err {err}"

    ref_f32 = jax.block_until_ready(_ref_forward(params, x, jnp.float32))
    err = float(jnp.max(jnp.abs(out - ref_f32)))
    assert jnp.allclose(out, ref_f32, rtol=1e-1, atol=1e-1), f"f32 ref err {err}"

    # Three-conv block (extra_conv=True).
    params3 = init_conv_block(k_params, in_ch, out_ch, extra_conv=True)
    out3 = jax.block_until_ready(fwd(params3, x))
    assert out3.shape == (batch, out_ch, spatial, spatial)
    assert bool(jnp.all(jnp.isfinite(out3)))
    ref3 = jax.block_until_ready(_ref_forward(params3, x, jnp.bfloat16))
    err = float(jnp.max(jnp.abs(out3 - ref3)))
    assert jnp.allclose(out3, ref3, rtol=6e-2, atol=6e-2), f"3-conv ref err {err}"

    print("KERNEL_OK")
</pallas_src>

<mosaic_0001>
module attributes {stable_mosaic.version = 11 : i64} {
  func.func @kernel(%arg0: i32, %arg1: i32, %arg2: memref<768x4xbf16, #tpu.memory_space<vmem>>, %arg3: memref<9x4x128xbf16, #tpu.memory_space<vmem>>, %arg4: memref<1x4xf32, #tpu.memory_space<vmem>>, %arg5: memref<1x4xf32, #tpu.memory_space<vmem>>, %arg6: memref<288x1xi32, #tpu.memory_space<vmem>>, %arg7: memref<288x1xi32, #tpu.memory_space<vmem>>, %arg8: memref<192x128xbf16, #tpu.memory_space<vmem>>, %arg9: memref<1x1x128xf32, #tpu.memory_space<vmem>>, %arg10: memref<1x1x128xf32, #tpu.memory_space<vmem>>) attributes {dimension_semantics = [#tpu.dimension_semantics<parallel>, #tpu.dimension_semantics<parallel>], iteration_bounds = array<i64: 2, 2>, scalar_prefetch = 0 : i64, scratch_operands = 0 : i64, tpu.core_type = #tpu.core_type<tc>, window_params = [{transform_indices = @transform_0, window_bounds = array<i64: 768, 4>}, {pipeline_mode = #tpu.pipeline_mode<synchronous>, transform_indices = @transform_1, window_bounds = array<i64: 9, 4, 128>}, {pipeline_mode = #tpu.pipeline_mode<synchronous>, transform_indices = @transform_2, window_bounds = array<i64: 1, 4>}, {pipeline_mode = #tpu.pipeline_mode<synchronous>, transform_indices = @transform_3, window_bounds = array<i64: 1, 4>}, {pipeline_mode = #tpu.pipeline_mode<synchronous>, transform_indices = @transform_4, window_bounds = array<i64: 288, 1>}, {pipeline_mode = #tpu.pipeline_mode<synchronous>, transform_indices = @transform_5, window_bounds = array<i64: 288, 1>}, {transform_indices = @transform_6, window_bounds = array<i64: 192, 128>}, {transform_indices = @transform_7, window_bounds = array<i64: 1, 1, 128>}, {transform_indices = @transform_8, window_bounds = array<i64: 1, 1, 128>}]} {
    %c8_i32 = arith.constant 8 : i32
    %0 = arith.muli %arg1, %c8_i32 : i32
    %c6_i32 = arith.constant 6 : i32
    %1 = arith.addi %0, %c6_i32 : i32
    %c24_i32 = arith.constant 24 : i32
    %2 = arith.muli %1, %c24_i32 : i32
    %3 = tpu.assume_multiple %2, 8 : i32
    %4 = arith.index_cast %3 : i32 to index
    %c0 = arith.constant 0 : index
    %5 = vector.load %arg2[%4, %c0] : memref<768x4xbf16, #tpu.memory_space<vmem>>, vector<288x4xbf16>
    %6 = arith.extf %5 : vector<288x4xbf16> to vector<288x4xf32>
    %c8_i32_0 = arith.constant 8 : i32
    %7 = arith.muli %arg1, %c8_i32_0 : i32
    %c2_i32 = arith.constant 2 : i32
    %8 = arith.subi %7, %c2_i32 : i32
    %c0_1 = arith.constant 0 : index
    %c0_2 = arith.constant 0 : index
    %9 = vector.load %arg6[%c0_1, %c0_2] : memref<288x1xi32, #tpu.memory_space<vmem>>, vector<288x1xi32>
    %10 = vector.broadcast %8 : i32 to vector<288x1xi32>
    %11 = arith.addi %10, %9 : vector<288x1xi32>
    %c0_i32 = arith.constant 0 : i32
    %12 = vector.broadcast %c0_i32 : i32 to vector<288x1xi32>
    %13 = arith.cmpi sge, %11, %12 : vector<288x1xi32>
    %c16_i32 = arith.constant 16 : i32
    %14 = vector.broadcast %c16_i32 : i32 to vector<288x1xi32>
    %15 = arith.cmpi slt, %11, %14 : vector<288x1xi32>
    %16 = arith.andi %13, %15 : vector<288x1xi1>
    %c0_3 = arith.constant 0 : index
    %c0_4 = arith.constant 0 : index
    %17 = vector.load %arg7[%c0_3, %c0_4] : memref<288x1xi32, #tpu.memory_space<vmem>>, vector<288x1xi32>
    %c16_i32_5 = arith.constant 16 : i32
    %18 = vector.broadcast %c16_i32_5 : i32 to vector<288x1xi32>
    %19 = arith.cmpi slt, %17, %18 : vector<288x1xi32>
    %20 = arith.andi %16, %19 : vector<288x1xi1>
    %cst = arith.constant 0.000000e+00 : f32
    %21 = vector.shape_cast %20 : vector<288x1xi1> to vector<288x1xi1>
    %22 = vector.broadcast %21 : vector<288x1xi1> to vector<288x4xi1>
    %23 = vector.broadcast %cst : f32 to vector<288x4xf32>
    %24 = arith.select %22, %6, %23 : vector<288x4xi1>, vector<288x4xf32>
    %cst_6 = arith.constant 0.000000e+00 : f32
    %25 = vector.broadcast %cst_6 : f32 to vector<192x128xf32>
    %26 = vector.extract_strided_slice %24 {offsets = [23, 0], sizes = [192, 4], strides = [1, 1]} : vector<288x4xf32> to vector<192x4xf32>
    %27 = arith.truncf %26 : vector<192x4xf32> to vector<192x4xbf16>
    %c0_7 = arith.constant 0 : index
    %c0_8 = arith.constant 0 : index
    %c0_9 = arith.constant 0 : index
    %28 = vector.load %arg3[%c0_7, %c0_8, %c0_9] : memref<9x4x128xbf16, #tpu.memory_space<vmem>>, vector<1x4x128xbf16>
    %29 = vector.shape_cast %28 : vector<1x4x128xbf16> to vector<4x128xbf16>
    %cst_10 = arith.constant dense<0.000000e+00> : vector<192x128xf32>
    %30 = tpu.matmul %27, %29, %cst_10 {dimension_numbers = #tpu.dot_dimension_numbers<[1], [0], [0], [1], [0, 0, 1, 1], [], []>} : vector<192x4xbf16>, vector<4x128xbf16>, vector<192x128xf32> -> vector<192x128xf32>
    %31 = arith.addf %25, %30 : vector<192x128xf32>
    %32 = vector.extract_strided_slice %24 {offsets = [24, 0], sizes = [192, 4], strides = [1, 1]} : vector<288x4xf32> to vector<192x4xf32>
    %33 = arith.truncf %32 : vector<192x4xf32> to vector<192x4xbf16>
    %c1 = arith.constant 1 : index
    %c0_11 = arith.constant 0 : index
    %c0_12 = arith.constant 0 : index
    %34 = vector.load %arg3[%c1, %c0_11, %c0_12] : memref<9x4x128xbf16, #tpu.memory_space<vmem>>, vector<1x4x128xbf16>
    %35 = vector.shape_cast %34 : vector<1x4x128xbf16> to vector<4x128xbf16>
    %cst_13 = arith.constant dense<0.000000e+00> : vector<192x128xf32>
    %36 = tpu.matmul %33, %35, %cst_13 {dimension_numbers = #tpu.dot_dimension_numbers<[1], [0], [0], [1], [0, 0, 1, 1], [], []>} : vector<192x4xbf16>, vector<4x128xbf16>, vector<192x128xf32> -> vector<192x128xf32>
    %37 = arith.addf %31, %36 : vector<192x128xf32>
    %38 = vector.extract_strided_slice %24 {offsets = [25, 0], sizes = [192, 4], strides = [1, 1]} : vector<288x4xf32> to vector<192x4xf32>
    %39 = arith.truncf %38 : vector<192x4xf32> to vector<192x4xbf16>
    %c2 = arith.constant 2 : index
    %c0_14 = arith.constant 0 : index
    %c0_15 = arith.constant 0 : index
    %40 = vector.load %arg3[%c2, %c0_14, %c0_15] : memref<9x4x128xbf16, #tpu.memory_space<vmem>>, vector<1x4x128xbf16>
    %41 = vector.shape_cast %40 : vector<1x4x128xbf16> to vector<4x128xbf16>
    %cst_16 = arith.constant dense<0.000000e+00> : vector<192x128xf32>
    %42 = tpu.matmul %39, %41, %cst_16 {dimension_numbers = #tpu.dot_dimension_numbers<[1], [0], [0], [1], [0, 0, 1, 1], [], []>} : vector<192x4xbf16>, vector<4x128xbf16>, vector<192x128xf32> -> vector<192x128xf32>
    %43 = arith.addf %37, %42 : vector<192x128xf32>
    %44 = vector.extract_strided_slice %24 {offsets = [47, 0], sizes = [192, 4], strides = [1, 1]} : vector<288x4xf32> to vector<192x4xf32>
    %45 = arith.truncf %44 : vector<192x4xf32> to vector<192x4xbf16>
    %c3 = arith.constant 3 : index
    %c0_17 = arith.constant 0 : index
    %c0_18 = arith.constant 0 : index
    %46 = vector.load %arg3[%c3, %c0_17, %c0_18] : memref<9x4x128xbf16, #tpu.memory_space<vmem>>, vector<1x4x128xbf16>
    %47 = vector.shape_cast %46 : vector<1x4x128xbf16> to vector<4x128xbf16>
    %cst_19 = arith.constant dense<0.000000e+00> : vector<192x128xf32>
    %48 = tpu.matmul %45, %47, %cst_19 {dimension_numbers = #tpu.dot_dimension_numbers<[1], [0], [0], [1], [0, 0, 1, 1], [], []>} : vector<192x4xbf16>, vector<4x128xbf16>, vector<192x128xf32> -> vector<192x128xf32>
    %49 = arith.addf %43, %48 : vector<192x128xf32>
    %50 = vector.extract_strided_slice %24 {offsets = [48, 0], sizes = [192, 4], strides = [1, 1]} : vector<288x4xf32> to vector<192x4xf32>
    %51 = arith.truncf %50 : vector<192x4xf32> to vector<192x4xbf16>
    %c4 = arith.constant 4 : index
    %c0_20 = arith.constant 0 : index
    %c0_21 = arith.constant 0 : index
    %52 = vector.load %arg3[%c4, %c0_20, %c0_21] : memref<9x4x128xbf16, #tpu.memory_space<vmem>>, vector<1x4x128xbf16>
    %53 = vector.shape_cast %52 : vector<1x4x128xbf16> to vector<4x128xbf16>
    %cst_22 = arith.constant dense<0.000000e+00> : vector<192x128xf32>
    %54 = tpu.matmul %51, %53, %cst_22 {dimension_numbers = #tpu.dot_dimension_numbers<[1], [0], [0], [1], [0, 0, 1, 1], [], []>} : vector<192x4xbf16>, vector<4x128xbf16>, vector<192x128xf32> -> vector<192x128xf32>
    %55 = arith.addf %49, %54 : vector<192x128xf32>
    %56 = vector.extract_strided_slice %24 {offsets = [49, 0], sizes = [192, 4], strides = [1, 1]} : vector<288x4xf32> to vector<192x4xf32>
    %57 = arith.truncf %56 : vector<192x4xf32> to vector<192x4xbf16>
    %c5 = arith.constant 5 : index
    %c0_23 = arith.constant 0 : index
    %c0_24 = arith.constant 0 : index
    %58 = vector.load %arg3[%c5, %c0_23, %c0_24] : memref<9x4x128xbf16, #tpu.memory_space<vmem>>, vector<1x4x128xbf16>
    %59 = vector.shape_cast %58 : vector<1x4x128xbf16> to vector<4x128xbf16>
    %cst_25 = arith.constant dense<0.000000e+00> : vector<192x128xf32>
    %60 = tpu.matmul %57, %59, %cst_25 {dimension_numbers = #tpu.dot_dimension_numbers<[1], [0], [0], [1], [0, 0, 1, 1], [], []>} : vector<192x4xbf16>, vector<4x128xbf16>, vector<192x128xf32> -> vector<192x128xf32>
    %61 = arith.addf %55, %60 : vector<192x128xf32>
    %62 = vector.extract_strided_slice %24 {offsets = [71, 0], sizes = [192, 4], strides = [1, 1]} : vector<288x4xf32> to vector<192x4xf32>
    %63 = arith.truncf %62 : vector<192x4xf32> to vector<192x4xbf16>
    %c6 = arith.constant 6 : index
    %c0_26 = arith.constant 0 : index
    %c0_27 = arith.constant 0 : index
    %64 = vector.load %arg3[%c6, %c0_26, %c0_27] : memref<9x4x128xbf16, #tpu.memory_space<vmem>>, vector<1x4x128xbf16>
    %65 = vector.shape_cast %64 : vector<1x4x128xbf16> to vector<4x128xbf16>
    %cst_28 = arith.constant dense<0.000000e+00> : vector<192x128xf32>
    %66 = tpu.matmul %63, %65, %cst_28 {dimension_numbers = #tpu.dot_dimension_numbers<[1], [0], [0], [1], [0, 0, 1, 1], [], []>} : vector<192x4xbf16>, vector<4x128xbf16>, vector<192x128xf32> -> vector<192x128xf32>
    %67 = arith.addf %61, %66 : vector<192x128xf32>
    %68 = vector.extract_strided_slice %24 {offsets = [72, 0], sizes = [192, 4], strides = [1, 1]} : vector<288x4xf32> to vector<192x4xf32>
    %69 = arith.truncf %68 : vector<192x4xf32> to vector<192x4xbf16>
    %c7 = arith.constant 7 : index
    %c0_29 = arith.constant 0 : index
    %c0_30 = arith.constant 0 : index
    %70 = vector.load %arg3[%c7, %c0_29, %c0_30] : memref<9x4x128xbf16, #tpu.memory_space<vmem>>, vector<1x4x128xbf16>
    %71 = vector.shape_cast %70 : vector<1x4x128xbf16> to vector<4x128xbf16>
    %cst_31 = arith.constant dense<0.000000e+00> : vector<192x128xf32>
    %72 = tpu.matmul %69, %71, %cst_31 {dimension_numbers = #tpu.dot_dimension_numbers<[1], [0], [0], [1], [0, 0, 1, 1], [], []>} : vector<192x4xbf16>, vector<4x128xbf16>, vector<192x128xf32> -> vector<192x128xf32>
    %73 = arith.addf %67, %72 : vector<192x128xf32>
    %74 = vector.extract_strided_slice %24 {offsets = [73, 0], sizes = [192, 4], strides = [1, 1]} : vector<288x4xf32> to vector<192x4xf32>
    %75 = arith.truncf %74 : vector<192x4xf32> to vector<192x4xbf16>
    %c8 = arith.constant 8 : index
    %c0_32 = arith.constant 0 : index
    %c0_33 = arith.constant 0 : index
    %76 = vector.load %arg3[%c8, %c0_32, %c0_33] : memref<9x4x128xbf16, #tpu.memory_space<vmem>>, vector<1x4x128xbf16>
    %77 = vector.shape_cast %76 : vector<1x4x128xbf16> to vector<4x128xbf16>
    %cst_34 = arith.constant dense<0.000000e+00> : vector<192x128xf32>
    %78 = tpu.matmul %75, %77, %cst_34 {dimension_numbers = #tpu.dot_dimension_numbers<[1], [0], [0], [1], [0, 0, 1, 1], [], []>} : vector<192x4xbf16>, vector<4x128xbf16>, vector<192x128xf32> -> vector<192x128xf32>
    %79 = arith.addf %73, %78 : vector<192x128xf32>
    %c0_35 = arith.constant 0 : index
    %c0_36 = arith.constant 0 : index
    %80 = vector.load %arg7[%c0_35, %c0_36] : memref<288x1xi32, #tpu.memory_space<vmem>>, vector<192x1xi32>
    %c16_i32_37 = arith.constant 16 : i32
    %81 = vector.broadcast %c16_i32_37 : i32 to vector<192x1xi32>
    %82 = arith.cmpi slt, %80, %81 : vector<192x1xi32>
    %cst_38 = arith.constant 0.000000e+00 : f32
    %83 = vector.shape_cast %82 : vector<192x1xi1> to vector<192x1xi1>
    %84 = vector.broadcast %83 : vector<192x1xi1> to vector<192x128xi1>
    %85 = vector.broadcast %cst_38 : f32 to vector<192x128xf32>
    %86 = arith.select %84, %79, %85 : vector<192x128xi1>, vector<192x128xf32>
    %87 = arith.truncf %86 : vector<192x128xf32> to vector<192x128xbf16>
    %c0_39 = arith.constant 0 : index
    %c0_40 = arith.constant 0 : index
    %88 = vector.load %arg8[%c0_39, %c0_40] : memref<192x128xbf16, #tpu.memory_space<vmem>>, vector<192x128xbf16>
    tpu.vector_store %arg8[%c0_39, %c0_40], %87 {strides = array<i32>} : memref<192x128xbf16, #tpu.memory_space<vmem>>, vector<192x128xbf16>,
    %cst_41 = arith.constant dense<0.000000e+00> : vector<128xf32>
    %89 = vector.multi_reduction <add>, %86, %cst_41 [0] : vector<192x128xf32> to vector<128xf32>
    %90 = vector.shape_cast %89 : vector<128xf32> to vector<1x128xf32>
    %91 = vector.shape_cast %90 : vector<1x128xf32> to vector<1x1x128xf32>
    %c0_42 = arith.constant 0 : index
    %c0_43 = arith.constant 0 : index
    %c0_44 = arith.constant 0 : index
    %92 = vector.load %arg9[%c0_42, %c0_43, %c0_44] : memref<1x1x128xf32, #tpu.memory_space<vmem>>, vector<1x1x128xf32>
    tpu.vector_store %arg9[%c0_42, %c0_43, %c0_44], %91 {strides = array<i32>} : memref<1x1x128xf32, #tpu.memory_space<vmem>>, vector<1x1x128xf32>,
    %93 = arith.mulf %86, %86 : vector<192x128xf32>
    %cst_45 = arith.constant dense<0.000000e+00> : vector<128xf32>
    %94 = vector.multi_reduction <add>, %93, %cst_45 [0] : vector<192x128xf32> to vector<128xf32>
    %95 = vector.shape_cast %94 : vector<128xf32> to vector<1x128xf32>
    %96 = vector.shape_cast %95 : vector<1x128xf32> to vector<1x1x128xf32>
    %c0_46 = arith.constant 0 : index
    %c0_47 = arith.constant 0 : index
    %c0_48 = arith.constant 0 : index
    %97 = vector.load %arg10[%c0_46, %c0_47, %c0_48] : memref<1x1x128xf32, #tpu.memory_space<vmem>>, vector<1x1x128xf32>
    tpu.vector_store %arg10[%c0_46, %c0_47, %c0_48], %96 {strides = array<i32>} : memref<1x1x128xf32, #tpu.memory_space<vmem>>, vector<1x1x128xf32>,
    return
  }
  func.func @transform_0(%arg0: i32, %arg1: i32) -> (i32, i32) {
    %c0_i32 = arith.constant 0 : i32
    %c0_i32_0 = arith.constant 0 : i32
    return %arg0, %c0_i32 : i32, i32
  }
  func.func @transform_1(%arg0: i32, %arg1: i32) -> (i32, i32, i32) {
    %c0_i32 = arith.constant 0 : i32
    %c0_i32_0 = arith.constant 0 : i32
    %c0_i32_1 = arith.constant 0 : i32
    %c0_i32_2 = arith.constant 0 : i32
    return %c0_i32, %c0_i32_0, %c0_i32_1 : i32, i32, i32
  }
  func.func @transform_2(%arg0: i32, %arg1: i32) -> (i32, i32) {
    %c0_i32 = arith.constant 0 : i32
    %c0_i32_0 = arith.constant 0 : i32
    %c0_i32_1 = arith.constant 0 : i32
    return %c0_i32, %c0_i32_0 : i32, i32
  }
  func.func @transform_3(%arg0: i32, %arg1: i32) -> (i32, i32) {
    %c0_i32 = arith.constant 0 : i32
    %c0_i32_0 = arith.constant 0 : i32
    %c0_i32_1 = arith.constant 0 : i32
    return %c0_i32, %c0_i32_0 : i32, i32
  }
  func.func @transform_4(%arg0: i32, %arg1: i32) -> (i32, i32) {
    %c0_i32 = arith.constant 0 : i32
    %c0_i32_0 = arith.constant 0 : i32
    %c0_i32_1 = arith.constant 0 : i32
    return %c0_i32, %c0_i32_0 : i32, i32
  }
  func.func @transform_5(%arg0: i32, %arg1: i32) -> (i32, i32) {
    %c0_i32 = arith.constant 0 : i32
    %c0_i32_0 = arith.constant 0 : i32
    %c0_i32_1 = arith.constant 0 : i32
    return %c0_i32, %c0_i32_0 : i32, i32
  }
  func.func @transform_6(%arg0: i32, %arg1: i32) -> (i32, i32) {
    %c4_i32 = arith.constant 4 : i32
    %0 = arith.muli %arg0, %c4_i32 : i32
    %c1_i32 = arith.constant 1 : i32
    %1 = arith.addi %0, %c1_i32 : i32
    %2 = arith.addi %1, %arg1 : i32
    %c0_i32 = arith.constant 0 : i32
    %c0_i32_0 = arith.constant 0 : i32
    return %2, %c0_i32 : i32, i32
  }
  func.func @transform_7(%arg0: i32, %arg1: i32) -> (i32, i32, i32) {
    %c2_i32 = arith.constant 2 : i32
    %0 = arith.muli %arg0, %c2_i32 : i32
    %1 = arith.addi %0, %arg1 : i32
    %c0_i32 = arith.constant 0 : i32
    %c0_i32_0 = arith.constant 0 : i32
    %c0_i32_1 = arith.constant 0 : i32
    return %1, %c0_i32, %c0_i32_0 : i32, i32, i32
  }
  func.func @transform_8(%arg0: i32, %arg1: i32) -> (i32, i32, i32) {
    %c2_i32 = arith.constant 2 : i32
    %0 = arith.muli %arg0, %c2_i32 : i32
    %1 = arith.addi %0, %arg1 : i32
    %c0_i32 = arith.constant 0 : i32
    %c0_i32_0 = arith.constant 0 : i32
    %c0_i32_1 = arith.constant 0 : i32
    return %1, %c0_i32, %c0_i32_0 : i32, i32, i32
  }
}

module attributes {stable_mosaic.version = 11 : i64} {
  func.func @kernel(%arg0: i32, %arg1: i32, %arg2: memref<768x128xbf16, #tpu.memory_space<vmem>>, %arg3: memref<9x128x128xbf16, #tpu.memory_space<vmem>>, %arg4: memref<1x128xf32, #tpu.memory_space<vmem>>, %arg5: memref<1x128xf32, #tpu.memory_space<vmem>>, %arg6: memref<288x1xi32, #tpu.memory_space<vmem>>, %arg7: memref<288x1xi32, #tpu.memory_space<vmem>>, %arg8: memref<192x128xbf16, #tpu.memory_space<vmem>>, %arg9: memref<1x1x128xf32, #tpu.memory_space<vmem>>, %arg10: memref<1x1x128xf32, #tpu.memory_space<vmem>>) attributes {dimension_semantics = [#tpu.dimension_semantics<parallel>, #tpu.dimension_semantics<parallel>], iteration_bounds = array<i64: 2, 2>, scalar_prefetch = 0 : i64, scratch_operands = 0 : i64, tpu.core_type = #tpu.core_type<tc>, window_params = [{transform_indices = @transform_0, window_bounds = array<i64: 768, 128>}, {pipeline_mode = #tpu.pipeline_mode<synchronous>, transform_indices = @transform_1, window_bounds = array<i64: 9, 128, 128>}, {pipeline_mode = #tpu.pipeline_mode<synchronous>, transform_indices = @transform_2, window_bounds = array<i64: 1, 128>}, {pipeline_mode = #tpu.pipeline_mode<synchronous>, transform_indices = @transform_3, window_bounds = array<i64: 1, 128>}, {pipeline_mode = #tpu.pipeline_mode<synchronous>, transform_indices = @transform_4, window_bounds = array<i64: 288, 1>}, {pipeline_mode = #tpu.pipeline_mode<synchronous>, transform_indices = @transform_5, window_bounds = array<i64: 288, 1>}, {transform_indices = @transform_6, window_bounds = array<i64: 192, 128>}, {transform_indices = @transform_7, window_bounds = array<i64: 1, 1, 128>}, {transform_indices = @transform_8, window_bounds = array<i64: 1, 1, 128>}]} {
    %c8_i32 = arith.constant 8 : i32
    %0 = arith.muli %arg1, %c8_i32 : i32
    %c6_i32 = arith.constant 6 : i32
    %1 = arith.addi %0, %c6_i32 : i32
    %c24_i32 = arith.constant 24 : i32
    %2 = arith.muli %1, %c24_i32 : i32
    %3 = tpu.assume_multiple %2, 8 : i32
    %4 = arith.index_cast %3 : i32 to index
    %c0 = arith.constant 0 : index
    %5 = vector.load %arg2[%4, %c0] : memref<768x128xbf16, #tpu.memory_space<vmem>>, vector<288x128xbf16>
    %6 = arith.extf %5 : vector<288x128xbf16> to vector<288x128xf32>
    %c0_0 = arith.constant 0 : index
    %c0_1 = arith.constant 0 : index
    %7 = vector.load %arg4[%c0_0, %c0_1] : memref<1x128xf32, #tpu.memory_space<vmem>>, vector<1x128xf32>
    %8 = vector.broadcast %7 : vector<1x128xf32> to vector<288x128xf32>
    %9 = arith.mulf %6, %8 : vector<288x128xf32>
    %c0_2 = arith.constant 0 : index
    %c0_3 = arith.constant 0 : index
    %10 = vector.load %arg5[%c0_2, %c0_3] : memref<1x128xf32, #tpu.memory_space<vmem>>, vector<1x128xf32>
    %11 = vector.broadcast %10 : vector<1x128xf32> to vector<288x128xf32>
    %12 = arith.addf %9, %11 : vector<288x128xf32>
    %cst = arith.constant 0.000000e+00 : f32
    %13 = vector.broadcast %cst : f32 to vector<288x128xf32>
    %14 = arith.maximumf %12, %13 : vector<288x128xf32>
    %c8_i32_4 = arith.constant 8 : i32
    %15 = arith.muli %arg1, %c8_i32_4 : i32
    %c2_i32 = arith.constant 2 : i32
    %16 = arith.subi %15, %c2_i32 : i32
    %c0_5 = arith.constant 0 : index
    %c0_6 = arith.constant 0 : index
    %17 = vector.load %arg6[%c0_5, %c0_6] : memref<288x1xi32, #tpu.memory_space<vmem>>, vector<288x1xi32>
    %18 = vector.broadcast %16 : i32 to vector<288x1xi32>
    %19 = arith.addi %18, %17 : vector<288x1xi32>
    %c0_i32 = arith.constant 0 : i32
    %20 = vector.broadcast %c0_i32 : i32 to vector<288x1xi32>
    %21 = arith.cmpi sge, %19, %20 : vector<288x1xi32>
    %c16_i32 = arith.constant 16 : i32
    %22 = vector.broadcast %c16_i32 : i32 to vector<288x1xi32>
    %23 = arith.cmpi slt, %19, %22 : vector<288x1xi32>
    %24 = arith.andi %21, %23 : vector<288x1xi1>
    %c0_7 = arith.constant 0 : index
    %c0_8 = arith.constant 0 : index
    %25 = vector.load %arg7[%c0_7, %c0_8] : memref<288x1xi32, #tpu.memory_space<vmem>>, vector<288x1xi32>
    %c16_i32_9 = arith.constant 16 : i32
    %26 = vector.broadcast %c16_i32_9 : i32 to vector<288x1xi32>
    %27 = arith.cmpi slt, %25, %26 : vector<288x1xi32>
    %28 = arith.andi %24, %27 : vector<288x1xi1>
    %cst_10 = arith.constant 0.000000e+00 : f32
    %29 = vector.shape_cast %28 : vector<288x1xi1> to vector<288x1xi1>
    %30 = vector.broadcast %29 : vector<288x1xi1> to vector<288x128xi1>
    %31 = vector.broadcast %cst_10 : f32 to vector<288x128xf32>
    %32 = arith.select %30, %14, %31 : vector<288x128xi1>, vector<288x128xf32>
    %cst_11 = arith.constant 0.000000e+00 : f32
    %33 = vector.broadcast %cst_11 : f32 to vector<192x128xf32>
    %34 = vector.extract_strided_slice %32 {offsets = [23, 0], sizes = [192, 128], strides = [1, 1]} : vector<288x128xf32> to vector<192x128xf32>
    %35 = arith.truncf %34 : vector<192x128xf32> to vector<192x128xbf16>
    %c0_12 = arith.constant 0 : index
    %c0_13 = arith.constant 0 : index
    %c0_14 = arith.constant 0 : index
    %36 = vector.load %arg3[%c0_12, %c0_13, %c0_14] : memref<9x128x128xbf16, #tpu.memory_space<vmem>>, vector<1x128x128xbf16>
    %37 = vector.shape_cast %36 : vector<1x128x128xbf16> to vector<128x128xbf16>
    %cst_15 = arith.constant dense<0.000000e+00> : vector<192x128xf32>
    %38 = tpu.matmul %35, %37, %cst_15 {dimension_numbers = #tpu.dot_dimension_numbers<[1], [0], [0], [1], [0, 0, 1, 1], [], []>} : vector<192x128xbf16>, vector<128x128xbf16>, vector<192x128xf32> -> vector<192x128xf32>
    %39 = arith.addf %33, %38 : vector<192x128xf32>
    %40 = vector.extract_strided_slice %32 {offsets = [24, 0], sizes = [192, 128], strides = [1, 1]} : vector<288x128xf32> to vector<192x128xf32>
    %41 = arith.truncf %40 : vector<192x128xf32> to vector<192x128xbf16>
    %c1 = arith.constant 1 : index
    %c0_16 = arith.constant 0 : index
    %c0_17 = arith.constant 0 : index
    %42 = vector.load %arg3[%c1, %c0_16, %c0_17] : memref<9x128x128xbf16, #tpu.memory_space<vmem>>, vector<1x128x128xbf16>
    %43 = vector.shape_cast %42 : vector<1x128x128xbf16> to vector<128x128xbf16>
    %cst_18 = arith.constant dense<0.000000e+00> : vector<192x128xf32>
    %44 = tpu.matmul %41, %43, %cst_18 {dimension_numbers = #tpu.dot_dimension_numbers<[1], [0], [0], [1], [0, 0, 1, 1], [], []>} : vector<192x128xbf16>, vector<128x128xbf16>, vector<192x128xf32> -> vector<192x128xf32>
    %45 = arith.addf %39, %44 : vector<192x128xf32>
    %46 = vector.extract_strided_slice %32 {offsets = [25, 0], sizes = [192, 128], strides = [1, 1]} : vector<288x128xf32> to vector<192x128xf32>
    %47 = arith.truncf %46 : vector<192x128xf32> to vector<192x128xbf16>
    %c2 = arith.constant 2 : index
    %c0_19 = arith.constant 0 : index
    %c0_20 = arith.constant 0 : index
    %48 = vector.load %arg3[%c2, %c0_19, %c0_20] : memref<9x128x128xbf16, #tpu.memory_space<vmem>>, vector<1x128x128xbf16>
    %49 = vector.shape_cast %48 : vector<1x128x128xbf16> to vector<128x128xbf16>
    %cst_21 = arith.constant dense<0.000000e+00> : vector<192x128xf32>
    %50 = tpu.matmul %47, %49, %cst_21 {dimension_numbers = #tpu.dot_dimension_numbers<[1], [0], [0], [1], [0, 0, 1, 1], [], []>} : vector<192x128xbf16>, vector<128x128xbf16>, vector<192x128xf32> -> vector<192x128xf32>
    %51 = arith.addf %45, %50 : vector<192x128xf32>
    %52 = vector.extract_strided_slice %32 {offsets = [47, 0], sizes = [192, 128], strides = [1, 1]} : vector<288x128xf32> to vector<192x128xf32>
    %53 = arith.truncf %52 : vector<192x128xf32> to vector<192x128xbf16>
    %c3 = arith.constant 3 : index
    %c0_22 = arith.constant 0 : index
    %c0_23 = arith.constant 0 : index
    %54 = vector.load %arg3[%c3, %c0_22, %c0_23] : memref<9x128x128xbf16, #tpu.memory_space<vmem>>, vector<1x128x128xbf16>
    %55 = vector.shape_cast %54 : vector<1x128x128xbf16> to vector<128x128xbf16>
    %cst_24 = arith.constant dense<0.000000e+00> : vector<192x128xf32>
    %56 = tpu.matmul %53, %55, %cst_24 {dimension_numbers = #tpu.dot_dimension_numbers<[1], [0], [0], [1], [0, 0, 1, 1], [], []>} : vector<192x128xbf16>, vector<128x128xbf16>, vector<192x128xf32> -> vector<192x128xf32>
    %57 = arith.addf %51, %56 : vector<192x128xf32>
    %58 = vector.extract_strided_slice %32 {offsets = [48, 0], sizes = [192, 128], strides = [1, 1]} : vector<288x128xf32> to vector<192x128xf32>
    %59 = arith.truncf %58 : vector<192x128xf32> to vector<192x128xbf16>
    %c4 = arith.constant 4 : index
    %c0_25 = arith.constant 0 : index
    %c0_26 = arith.constant 0 : index
    %60 = vector.load %arg3[%c4, %c0_25, %c0_26] : memref<9x128x128xbf16, #tpu.memory_space<vmem>>, vector<1x128x128xbf16>
    %61 = vector.shape_cast %60 : vector<1x128x128xbf16> to vector<128x128xbf16>
    %cst_27 = arith.constant dense<0.000000e+00> : vector<192x128xf32>
    %62 = tpu.matmul %59, %61, %cst_27 {dimension_numbers = #tpu.dot_dimension_numbers<[1], [0], [0], [1], [0, 0, 1, 1], [], []>} : vector<192x128xbf16>, vector<128x128xbf16>, vector<192x128xf32> -> vector<192x128xf32>
    %63 = arith.addf %57, %62 : vector<192x128xf32>
    %64 = vector.extract_strided_slice %32 {offsets = [49, 0], sizes = [192, 128], strides = [1, 1]} : vector<288x128xf32> to vector<192x128xf32>
    %65 = arith.truncf %64 : vector<192x128xf32> to vector<192x128xbf16>
    %c5 = arith.constant 5 : index
    %c0_28 = arith.constant 0 : index
    %c0_29 = arith.constant 0 : index
    %66 = vector.load %arg3[%c5, %c0_28, %c0_29] : memref<9x128x128xbf16, #tpu.memory_space<vmem>>, vector<1x128x128xbf16>
    %67 = vector.shape_cast %66 : vector<1x128x128xbf16> to vector<128x128xbf16>
    %cst_30 = arith.constant dense<0.000000e+00> : vector<192x128xf32>
    %68 = tpu.matmul %65, %67, %cst_30 {dimension_numbers = #tpu.dot_dimension_numbers<[1], [0], [0], [1], [0, 0, 1, 1], [], []>} : vector<192x128xbf16>, vector<128x128xbf16>, vector<192x128xf32> -> vector<192x128xf32>
    %69 = arith.addf %63, %68 : vector<192x128xf32>
    %70 = vector.extract_strided_slice %32 {offsets = [71, 0], sizes = [192, 128], strides = [1, 1]} : vector<288x128xf32> to vector<192x128xf32>
    %71 = arith.truncf %70 : vector<192x128xf32> to vector<192x128xbf16>
    %c6 = arith.constant 6 : index
    %c0_31 = arith.constant 0 : index
    %c0_32 = arith.constant 0 : index
    %72 = vector.load %arg3[%c6, %c0_31, %c0_32] : memref<9x128x128xbf16, #tpu.memory_space<vmem>>, vector<1x128x128xbf16>
    %73 = vector.shape_cast %72 : vector<1x128x128xbf16> to vector<128x128xbf16>
    %cst_33 = arith.constant dense<0.000000e+00> : vector<192x128xf32>
    %74 = tpu.matmul %71, %73, %cst_33 {dimension_numbers = #tpu.dot_dimension_numbers<[1], [0], [0], [1], [0, 0, 1, 1], [], []>} : vector<192x128xbf16>, vector<128x128xbf16>, vector<192x128xf32> -> vector<192x128xf32>
    %75 = arith.addf %69, %74 : vector<192x128xf32>
    %76 = vector.extract_strided_slice %32 {offsets = [72, 0], sizes = [192, 128], strides = [1, 1]} : vector<288x128xf32> to vector<192x128xf32>
    %77 = arith.truncf %76 : vector<192x128xf32> to vector<192x128xbf16>
    %c7 = arith.constant 7 : index
    %c0_34 = arith.constant 0 : index
    %c0_35 = arith.constant 0 : index
    %78 = vector.load %arg3[%c7, %c0_34, %c0_35] : memref<9x128x128xbf16, #tpu.memory_space<vmem>>, vector<1x128x128xbf16>
    %79 = vector.shape_cast %78 : vector<1x128x128xbf16> to vector<128x128xbf16>
    %cst_36 = arith.constant dense<0.000000e+00> : vector<192x128xf32>
    %80 = tpu.matmul %77, %79, %cst_36 {dimension_numbers = #tpu.dot_dimension_numbers<[1], [0], [0], [1], [0, 0, 1, 1], [], []>} : vector<192x128xbf16>, vector<128x128xbf16>, vector<192x128xf32> -> vector<192x128xf32>
    %81 = arith.addf %75, %80 : vector<192x128xf32>
    %82 = vector.extract_strided_slice %32 {offsets = [73, 0], sizes = [192, 128], strides = [1, 1]} : vector<288x128xf32> to vector<192x128xf32>
    %83 = arith.truncf %82 : vector<192x128xf32> to vector<192x128xbf16>
    %c8 = arith.constant 8 : index
    %c0_37 = arith.constant 0 : index
    %c0_38 = arith.constant 0 : index
    %84 = vector.load %arg3[%c8, %c0_37, %c0_38] : memref<9x128x128xbf16, #tpu.memory_space<vmem>>, vector<1x128x128xbf16>
    %85 = vector.shape_cast %84 : vector<1x128x128xbf16> to vector<128x128xbf16>
    %cst_39 = arith.constant dense<0.000000e+00> : vector<192x128xf32>
    %86 = tpu.matmul %83, %85, %cst_39 {dimension_numbers = #tpu.dot_dimension_numbers<[1], [0], [0], [1], [0, 0, 1, 1], [], []>} : vector<192x128xbf16>, vector<128x128xbf16>, vector<192x128xf32> -> vector<192x128xf32>
    %87 = arith.addf %81, %86 : vector<192x128xf32>
    %c0_40 = arith.constant 0 : index
    %c0_41 = arith.constant 0 : index
    %88 = vector.load %arg7[%c0_40, %c0_41] : memref<288x1xi32, #tpu.memory_space<vmem>>, vector<192x1xi32>
    %c16_i32_42 = arith.constant 16 : i32
    %89 = vector.broadcast %c16_i32_42 : i32 to vector<192x1xi32>
    %90 = arith.cmpi slt, %88, %89 : vector<192x1xi32>
    %cst_43 = arith.constant 0.000000e+00 : f32
    %91 = vector.shape_cast %90 : vector<192x1xi1> to vector<192x1xi1>
    %92 = vector.broadcast %91 : vector<192x1xi1> to vector<192x128xi1>
    %93 = vector.broadcast %cst_43 : f32 to vector<192x128xf32>
    %94 = arith.select %92, %87, %93 : vector<192x128xi1>, vector<192x128xf32>
    %95 = arith.truncf %94 : vector<192x128xf32> to vector<192x128xbf16>
    %c0_44 = arith.constant 0 : index
    %c0_45 = arith.constant 0 : index
    %96 = vector.load %arg8[%c0_44, %c0_45] : memref<192x128xbf16, #tpu.memory_space<vmem>>, vector<192x128xbf16>
    tpu.vector_store %arg8[%c0_44, %c0_45], %95 {strides = array<i32>} : memref<192x128xbf16, #tpu.memory_space<vmem>>, vector<192x128xbf16>,
    %cst_46 = arith.constant dense<0.000000e+00> : vector<128xf32>
    %97 = vector.multi_reduction <add>, %94, %cst_46 [0] : vector<192x128xf32> to vector<128xf32>
    %98 = vector.shape_cast %97 : vector<128xf32> to vector<1x128xf32>
    %99 = vector.shape_cast %98 : vector<1x128xf32> to vector<1x1x128xf32>
    %c0_47 = arith.constant 0 : index
    %c0_48 = arith.constant 0 : index
    %c0_49 = arith.constant 0 : index
    %100 = vector.load %arg9[%c0_47, %c0_48, %c0_49] : memref<1x1x128xf32, #tpu.memory_space<vmem>>, vector<1x1x128xf32>
    tpu.vector_store %arg9[%c0_47, %c0_48, %c0_49], %99 {strides = array<i32>} : memref<1x1x128xf32, #tpu.memory_space<vmem>>, vector<1x1x128xf32>,
    %101 = arith.mulf %94, %94 : vector<192x128xf32>
    %cst_50 = arith.constant dense<0.000000e+00> : vector<128xf32>
    %102 = vector.multi_reduction <add>, %101, %cst_50 [0] : vector<192x128xf32> to vector<128xf32>
    %103 = vector.shape_cast %102 : vector<128xf32> to vector<1x128xf32>
    %104 = vector.shape_cast %103 : vector<1x128xf32> to vector<1x1x128xf32>
    %c0_51 = arith.constant 0 : index
    %c0_52 = arith.constant 0 : index
    %c0_53 = arith.constant 0 : index
    %105 = vector.load %arg10[%c0_51, %c0_52, %c0_53] : memref<1x1x128xf32, #tpu.memory_space<vmem>>, vector<1x1x128xf32>
    tpu.vector_store %arg10[%c0_51, %c0_52, %c0_53], %104 {strides = array<i32>} : memref<1x1x128xf32, #tpu.memory_space<vmem>>, vector<1x1x128xf32>,
    return
  }
  func.func @transform_0(%arg0: i32, %arg1: i32) -> (i32, i32) {
    %c0_i32 = arith.constant 0 : i32
    %c0_i32_0 = arith.constant 0 : i32
    return %arg0, %c0_i32 : i32, i32
  }
  func.func @transform_1(%arg0: i32, %arg1: i32) -> (i32, i32, i32) {
    %c0_i32 = arith.constant 0 : i32
    %c0_i32_0 = arith.constant 0 : i32
    %c0_i32_1 = arith.constant 0 : i32
    %c0_i32_2 = arith.constant 0 : i32
    return %c0_i32, %c0_i32_0, %c0_i32_1 : i32, i32, i32
  }
  func.func @transform_2(%arg0: i32, %arg1: i32) -> (i32, i32) {
    %c0_i32 = arith.constant 0 : i32
    %c0_i32_0 = arith.constant 0 : i32
    %c0_i32_1 = arith.constant 0 : i32
    return %c0_i32, %c0_i32_0 : i32, i32
  }
  func.func @transform_3(%arg0: i32, %arg1: i32) -> (i32, i32) {
    %c0_i32 = arith.constant 0 : i32
    %c0_i32_0 = arith.constant 0 : i32
    %c0_i32_1 = arith.constant 0 : i32
    return %c0_i32, %c0_i32_0 : i32, i32
  }
  func.func @transform_4(%arg0: i32, %arg1: i32) -> (i32, i32) {
    %c0_i32 = arith.constant 0 : i32
    %c0_i32_0 = arith.constant 0 : i32
    %c0_i32_1 = arith.constant 0 : i32
    return %c0_i32, %c0_i32_0 : i32, i32
  }
  func.func @transform_5(%arg0: i32, %arg1: i32) -> (i32, i32) {
    %c0_i32 = arith.constant 0 : i32
    %c0_i32_0 = arith.constant 0 : i32
    %c0_i32_1 = arith.constant 0 : i32
    return %c0_i32, %c0_i32_0 : i32, i32
  }
  func.func @transform_6(%arg0: i32, %arg1: i32) -> (i32, i32) {
    %c4_i32 = arith.constant 4 : i32
    %0 = arith.muli %arg0, %c4_i32 : i32
    %c1_i32 = arith.constant 1 : i32
    %1 = arith.addi %0, %c1_i32 : i32
    %2 = arith.addi %1, %arg1 : i32
    %c0_i32 = arith.constant 0 : i32
    %c0_i32_0 = arith.constant 0 : i32
    return %2, %c0_i32 : i32, i32
  }
  func.func @transform_7(%arg0: i32, %arg1: i32) -> (i32, i32, i32) {
    %c2_i32 = arith.constant 2 : i32
    %0 = arith.muli %arg0, %c2_i32 : i32
    %1 = arith.addi %0, %arg1 : i32
    %c0_i32 = arith.constant 0 : i32
    %c0_i32_0 = arith.constant 0 : i32
    %c0_i32_1 = arith.constant 0 : i32
    return %1, %c0_i32, %c0_i32_0 : i32, i32, i32
  }
  func.func @transform_8(%arg0: i32, %arg1: i32) -> (i32, i32, i32) {
    %c2_i32 = arith.constant 2 : i32
    %0 = arith.muli %arg0, %c2_i32 : i32
    %1 = arith.addi %0, %arg1 : i32
    %c0_i32 = arith.constant 0 : i32
    %c0_i32_0 = arith.constant 0 : i32
    %c0_i32_1 = arith.constant 0 : i32
    return %1, %c0_i32, %c0_i32_0 : i32, i32, i32
  }
}

module attributes {stable_mosaic.version = 11 : i64} {
  func.func @_bn_relu_kernel(%arg0: i32, %arg1: i32, %arg2: memref<192x128xbf16, #tpu.memory_space<vmem>>, %arg3: memref<1x128xf32, #tpu.memory_space<vmem>>, %arg4: memref<1x128xf32, #tpu.memory_space<vmem>>, %arg5: memref<192x128xf32, #tpu.memory_space<vmem>>) attributes {dimension_semantics = [#tpu.dimension_semantics<parallel>, #tpu.dimension_semantics<parallel>], iteration_bounds = array<i64: 2, 2>, scalar_prefetch = 0 : i64, scratch_operands = 0 : i64, tpu.core_type = #tpu.core_type<tc>, window_params = [{transform_indices = @transform_0, window_bounds = array<i64: 192, 128>}, {pipeline_mode = #tpu.pipeline_mode<synchronous>, transform_indices = @transform_1, window_bounds = array<i64: 1, 128>}, {pipeline_mode = #tpu.pipeline_mode<synchronous>, transform_indices = @transform_2, window_bounds = array<i64: 1, 128>}, {transform_indices = @transform_3, window_bounds = array<i64: 192, 128>}]} {
    %c0 = arith.constant 0 : index
    %c0_0 = arith.constant 0 : index
    %0 = vector.load %arg2[%c0, %c0_0] : memref<192x128xbf16, #tpu.memory_space<vmem>>, vector<192x128xbf16>
    %1 = arith.extf %0 : vector<192x128xbf16> to vector<192x128xf32>
    %c0_1 = arith.constant 0 : index
    %c0_2 = arith.constant 0 : index
    %2 = vector.load %arg3[%c0_1, %c0_2] : memref<1x128xf32, #tpu.memory_space<vmem>>, vector<1x128xf32>
    %3 = vector.broadcast %2 : vector<1x128xf32> to vector<192x128xf32>
    %4 = arith.mulf %1, %3 : vector<192x128xf32>
    %c0_3 = arith.constant 0 : index
    %c0_4 = arith.constant 0 : index
    %5 = vector.load %arg4[%c0_3, %c0_4] : memref<1x128xf32, #tpu.memory_space<vmem>>, vector<1x128xf32>
    %6 = vector.broadcast %5 : vector<1x128xf32> to vector<192x128xf32>
    %7 = arith.addf %4, %6 : vector<192x128xf32>
    %cst = arith.constant 0.000000e+00 : f32
    %8 = vector.broadcast %cst : f32 to vector<192x128xf32>
    %9 = arith.maximumf %7, %8 : vector<192x128xf32>
    %c0_5 = arith.constant 0 : index
    %c0_6 = arith.constant 0 : index
    %10 = vector.load %arg5[%c0_5, %c0_6] : memref<192x128xf32, #tpu.memory_space<vmem>>, vector<192x128xf32>
    tpu.vector_store %arg5[%c0_5, %c0_6], %9 {strides = array<i32>} : memref<192x128xf32, #tpu.memory_space<vmem>>, vector<192x128xf32>,
    return
  }
  func.func @transform_0(%arg0: i32, %arg1: i32) -> (i32, i32) {
    %c4_i32 = arith.constant 4 : i32
    %0 = arith.muli %arg0, %c4_i32 : i32
    %c1_i32 = arith.constant 1 : i32
    %1 = arith.addi %0, %c1_i32 : i32
    %2 = arith.addi %1, %arg1 : i32
    %c0_i32 = arith.constant 0 : i32
    %c0_i32_0 = arith.constant 0 : i32
    return %2, %c0_i32 : i32, i32
  }
  func.func @transform_1(%arg0: i32, %arg1: i32) -> (i32, i32) {
    %c0_i32 = arith.constant 0 : i32
    %c0_i32_0 = arith.constant 0 : i32
    %c0_i32_1 = arith.constant 0 : i32
    return %c0_i32, %c0_i32_0 : i32, i32
  }
  func.func @transform_2(%arg0: i32, %arg1: i32) -> (i32, i32) {
    %c0_i32 = arith.constant 0 : i32
    %c0_i32_0 = arith.constant 0 : i32
    %c0_i32_1 = arith.constant 0 : i32
    return %c0_i32, %c0_i32_0 : i32, i32
  }
  func.func @transform_3(%arg0: i32, %arg1: i32) -> (i32, i32) {
    %c2_i32 = arith.constant 2 : i32
    %0 = arith.muli %arg0, %c2_i32 : i32
    %1 = arith.addi %0, %arg1 : i32
    %c0_i32 = arith.constant 0 : i32
    %c0_i32_0 = arith.constant 0 : i32
    return %1, %c0_i32 : i32, i32
  }
}

</mosaic_0001>

<bundles_post_ra>
// kernel: conv_block_forward.5
= control target key start
LH: loop header
LB: loop body
LE: loop exit
PB: predicated region body
PF: predicated region fallthrough
CT: control target
= control target key end

     0   :  { %s619_s12 = smov 0   ;;  %s621_s13 = smov 0   ;;  %s771_s0 = inlined_call_operand.vmem [shape: bf16[1536,128], index: 0, kind: input, shape index: {}]   ;;  %s772_s1 = inlined_call_operand.vmem [shape: f32[1,128], index: 1, kind: input, shape index: {}]   ;;  %s773_s2 = inlined_call_operand.vmem [shape: f32[1,128], index: 2, kind: input, shape index: {}]   ;;  %s774_s3 = inlined_call_operand.vmem [shape: f32[768,128], index: 3, kind: output, shape index: {}]  }
   0x1   :  { %s623_s14 = smov 0   ;;  %s625_s15 = smov 0  }
   0x2   :  { %s627_s16 = smov 0  }
   0x3 LB: > { %s22_s17 = sadd.s32 1, %s589_s14  ;;  %s25_s18 = sadd.s32 1, %s593_s15  ;;  %s597_s16 = sphi %s627_s16, %s13_s16   ;;  %s593_s15 = sphi %s625_s15, %s778_s15   ;;  %s589_s14 = sphi %s623_s14, %s777_s14   ;;  %s585_s13 = sphi %s621_s13, %s776_s13   ;;  %s581_s12 = sphi %s619_s12, %s775_s12  }
   0x4   : > { %p23_p0 = scmp.ge.s32.totalorder %s22_s17, 2  ;;  %p451_p1 = scmp.ge.s32.totalorder %s597_s16, 1 }
   0x5   : > { %p166_p2 = scmp.lt.s32.totalorder %s597_s16, 5 }
   0x6   : > { %s780_s17 = smov (%p23_p0, %s22_s17), 0  ;;  %s782_s18 = smov (!%p23_p0, %s25_s18), %s593_s15 }
   0x7   : > { %p167_p3 = pnand %p451_p1, %p166_p2  ;;  %p27_p4 = scmp.ge.s32.totalorder %s782_s18, 2 }
   0x8   : > { %s452_s19 = sshll.u32 (!%p167_p3), %s585_s13, 2  ;;  %s454_s20 = sshll.u32 (!%p167_p3), %s585_s13, 1 }
   0x9   : > { %s784_s18 = smov (%p27_p4, %s782_s18), 0  ;;  %170 = sbr.rel (%p167_p3) target bundleno = 52 (0x34), region = 32 }
   0xa   : > { %s196_s21 = sadd.s32 (!%p167_p3), 1, %s452_s19  ;;  %s208_s22 = sadd.s32 (!%p167_p3), %s581_s12, %s454_s20 }
   0xb   : > { %s197_s23 = sadd.s32 (!%p167_p3), %s581_s12, %s196_s21  ;;  %s209_s24 = smul.u32 (!%p167_p3), 24, %s208_s22 }
   0xc   : > { %s198_s25 = smul.u32 (!%p167_p3), 24, %s197_s23 }
   0xd   : > { %p210_p5 = scmp.lt.s32.totalorder (!%p167_p3), %s209_s24, 95 }
   0xe   : > { %p199_p6 = scmp.lt.s32.totalorder %s198_s25, 191  ;;  %v659_v0 = vld [vmem:[%s772_s1] ss:$0 sm:$0xff] }
   0xf   : > { %s788_s24 = smov (!%p210_p5, %s209_s24), 95  ;;  %v667_v5 = vld [vmem:[%s773_s2] ss:$0 sm:$0xff] }
  0x10   : > { %s786_s25 = smov (!%p199_p6, %s198_s25), 191  ;;  %s455_s7 = sshll.u32 %s788_s24, 3 }
  0x11   : > { %s453_s26 = sshll.u32 %s786_s25, 2  ;;  %s686_s10 = scalar_lea.vmem %s774_s3, %s455_s7 }
  0x12   : > { %s654_s29 = scalar_lea.vmem %s771_s0, %s453_s26 }
  0x13   : > { %v459_v1 = vld [vmem:[%s654_s29] sm:$0xff]   ;;  %v506_v2 = vld [vmem:[%s654_s29 + $0x8] sm:$0xff]   ;;  %v507_v3 = vld [vmem:[%s654_s29 + $0x10] sm:$0xff]  }
  0x14   : > { %v460_v4 = vunpack.c.l.bf16 %v459_v1  ;;  %v461_v6 = vunpack.c.h.bf16 %v459_v1  ;;  %v464_v7 = vunpack.c.l.bf16 %v506_v2  ;;  %v465_v8 = vunpack.c.h.bf16 %v506_v2  ;;  %v508_v9 = vld [vmem:[%s654_s29 + $0x18] sm:$0xff]   ;;  %v509_v30 = vld [vmem:[%s654_s29 + $0x20] sm:$0xff]   ;;  %v510_v31 = vld [vmem:[%s654_s29 + $0x28] sm:$0xff]  }
  0x15   : > { %v468_v10 = vunpack.c.l.bf16 %v507_v3  ;;  %v469_v11 = vunpack.c.h.bf16 %v507_v3  ;;  %v472_v12 = vunpack.c.l.bf16 %v508_v9  ;;  %v473_v13 = vunpack.c.h.bf16 %v508_v9  ;;  %v511_v36 = vld [vmem:[%s654_s29 + $0x30] sm:$0xff]   ;;  %v512_v37 = vld [vmem:[%s654_s29 + $0x38] sm:$0xff]   ;;  %v513_v3 = vld [vmem:[%s654_s29 + $0x40] sm:$0xff]  }
  0x16   : > { %v269_v14 = vmul.f32 %v659_v0, %v460_v4  ;;  %v270_v15 = vmul.f32 %v659_v0, %v461_v6  ;;  %v271_v16 = vmul.f32 %v659_v0, %v464_v7  ;;  %v272_v17 = vmul.f32 %v659_v0, %v465_v8  ;;  %v514_v4 = vld [vmem:[%s654_s29 + $0x48] sm:$0xff]   ;;  %v515_v6 = vld [vmem:[%s654_s29 + $0x50] sm:$0xff]  }
  0x17   : > { %v273_v18 = vmul.f32 %v659_v0, %v468_v10  ;;  %v274_v19 = vmul.f32 %v659_v0, %v469_v11  ;;  %v275_v20 = vmul.f32 %v659_v0, %v472_v12  ;;  %v276_v21 = vmul.f32 %v659_v0, %v473_v13  ;;  %v516_v11 = vld [vmem:[%s654_s29 + $0x58] sm:$0xff]  }
  0x18   : > { %v297_v22 = vadd.f32 %v667_v5, %v269_v14  ;;  %v298_v23 = vadd.f32 %v667_v5, %v270_v15  ;;  %v299_v24 = vadd.f32 %v667_v5, %v271_v16  ;;  %v300_v25 = vadd.f32 %v667_v5, %v272_v17 }
  0x19   : > { %v301_v26 = vadd.f32 %v667_v5, %v273_v18  ;;  %v302_v27 = vadd.f32 %v667_v5, %v274_v19  ;;  %v303_v28 = vadd.f32 %v667_v5, %v275_v20  ;;  %v304_v29 = vadd.f32 %v667_v5, %v276_v21 }
  0x1a   : > { %v321_v32 = vmax.f32 %v297_v22, 0.0  ;;  %v322_v33 = vmax.f32 %v298_v23, 0.0  ;;  %v323_v34 = vmax.f32 %v299_v24, 0.0  ;;  %v324_v35 = vmax.f32 %v300_v25, 0.0 }
  0x1b   : > { %v325_v38 = vmax.f32 %v301_v26, 0.0  ;;  %v326_v39 = vmax.f32 %v302_v27, 0.0  ;;  %v327_v40 = vmax.f32 %v303_v28, 0.0  ;;  %v328_v41 = vmax.f32 %v304_v29, 0.0 }
  0x1c   : > { %345 = vst [vmem:[%s686_s10] sm:$0xff] %v321_v32  ;;  %v476_v42 = vunpack.c.l.bf16 %v509_v30  ;;  %v477_v43 = vunpack.c.h.bf16 %v509_v30  ;;  %v480_v44 = vunpack.c.l.bf16 %v510_v31  ;;  %v481_v45 = vunpack.c.h.bf16 %v510_v31 }
  0x1d   : > { %346 = vst [vmem:[%s686_s10 + $0x8] sm:$0xff] %v322_v33  ;;  %v484_v46 = vunpack.c.l.bf16 %v511_v36  ;;  %v485_v47 = vunpack.c.h.bf16 %v511_v36  ;;  %v488_v48 = vunpack.c.l.bf16 %v512_v37  ;;  %v489_v49 = vunpack.c.h.bf16 %v512_v37 }
  0x1e   : > { %347 = vst [vmem:[%s686_s10 + $0x10] sm:$0xff] %v323_v34  ;;  %v277_v50 = vmul.f32 %v659_v0, %v476_v42  ;;  %v278_v51 = vmul.f32 %v659_v0, %v477_v43  ;;  %v279_v52 = vmul.f32 %v659_v0, %v480_v44  ;;  %v280_v53 = vmul.f32 %v659_v0, %v481_v45 }
  0x1f   : > { %348 = vst [vmem:[%s686_s10 + $0x18] sm:$0xff] %v324_v35  ;;  %v281_v54 = vmul.f32 %v659_v0, %v484_v46  ;;  %v282_v55 = vmul.f32 %v659_v0, %v485_v47  ;;  %v283_v56 = vmul.f32 %v659_v0, %v488_v48  ;;  %v284_v57 = vmul.f32 %v659_v0, %v489_v49 }
  0x20   : > { %349 = vst [vmem:[%s686_s10 + $0x20] sm:$0xff] %v325_v38  ;;  %v305_v58 = vadd.f32 %v667_v5, %v277_v50  ;;  %v306_v59 = vadd.f32 %v667_v5, %v278_v51  ;;  %v307_v60 = vadd.f32 %v667_v5, %v279_v52  ;;  %v308_v61 = vadd.f32 %v667_v5, %v280_v53 }
  0x21   : > { %350 = vst [vmem:[%s686_s10 + $0x28] sm:$0xff] %v326_v39  ;;  %v309_v62 = vadd.f32 %v667_v5, %v281_v54  ;;  %v310_v63 = vadd.f32 %v667_v5, %v282_v55  ;;  %v311_v1 = vadd.f32 %v667_v5, %v283_v56  ;;  %v312_v2 = vadd.f32 %v667_v5, %v284_v57 }
  0x22   : > { %351 = vst [vmem:[%s686_s10 + $0x30] sm:$0xff] %v327_v40  ;;  %v329_v7 = vmax.f32 %v305_v58, 0.0  ;;  %v330_v8 = vmax.f32 %v306_v59, 0.0  ;;  %v331_v9 = vmax.f32 %v307_v60, 0.0  ;;  %v332_v10 = vmax.f32 %v308_v61, 0.0 }
  0x23   : > { %352 = vst [vmem:[%s686_s10 + $0x38] sm:$0xff] %v328_v41  ;;  %v333_v12 = vmax.f32 %v309_v62, 0.0  ;;  %v334_v13 = vmax.f32 %v310_v63, 0.0  ;;  %v335_v14 = vmax.f32 %v311_v1, 0.0  ;;  %v336_v15 = vmax.f32 %v312_v2, 0.0 }
  0x24   : > { %353 = vst [vmem:[%s686_s10 + $0x40] sm:$0xff] %v329_v7  ;;  %v492_v16 = vunpack.c.l.bf16 %v513_v3  ;;  %v493_v17 = vunpack.c.h.bf16 %v513_v3  ;;  %v496_v18 = vunpack.c.l.bf16 %v514_v4  ;;  %v497_v19 = vunpack.c.h.bf16 %v514_v4 }
  0x25   : > { %354 = vst [vmem:[%s686_s10 + $0x48] sm:$0xff] %v330_v8  ;;  %v500_v20 = vunpack.c.l.bf16 %v515_v6  ;;  %v501_v21 = vunpack.c.h.bf16 %v515_v6  ;;  %v504_v22 = vunpack.c.l.bf16 %v516_v11  ;;  %v505_v23 = vunpack.c.h.bf16 %v516_v11 }
  0x26   : > { %355 = vst [vmem:[%s686_s10 + $0x50] sm:$0xff] %v331_v9  ;;  %v285_v24 = vmul.f32 %v659_v0, %v492_v16  ;;  %v286_v25 = vmul.f32 %v659_v0, %v493_v17  ;;  %v287_v26 = vmul.f32 %v659_v0, %v496_v18  ;;  %v288_v27 = vmul.f32 %v659_v0, %v497_v19 }
  0x27   : > { %356 = vst [vmem:[%s686_s10 + $0x58] sm:$0xff] %v332_v10  ;;  %v289_v28 = vmul.f32 %v659_v0, %v500_v20  ;;  %v290_v29 = vmul.f32 %v659_v0, %v501_v21  ;;  %v291_v30 = vmul.f32 %v659_v0, %v504_v22  ;;  %v292_v31 = vmul.f32 %v659_v0, %v505_v23 }
  0x28   : > { %357 = vst [vmem:[%s686_s10 + $0x60] sm:$0xff] %v333_v12  ;;  %v313_v32 = vadd.f32 %v667_v5, %v285_v24  ;;  %v314_v33 = vadd.f32 %v667_v5, %v286_v25  ;;  %v315_v34 = vadd.f32 %v667_v5, %v287_v26  ;;  %v316_v35 = vadd.f32 %v667_v5, %v288_v27 }
  0x29   : > { %358 = vst [vmem:[%s686_s10 + $0x68] sm:$0xff] %v334_v13  ;;  %v317_v36 = vadd.f32 %v667_v5, %v289_v28  ;;  %v318_v37 = vadd.f32 %v667_v5, %v290_v29  ;;  %v319_v40 = vadd.f32 %v667_v5, %v291_v30  ;;  %v320_v42 = vadd.f32 %v667_v5, %v292_v31 }
  0x2a   : > { %359 = vst [vmem:[%s686_s10 + $0x70] sm:$0xff] %v335_v14  ;;  %v337_v0 = vmax.f32 %v313_v32, 0.0  ;;  %v338_v38 = vmax.f32 %v314_v33, 0.0  ;;  %v339_v39 = vmax.f32 %v315_v34, 0.0  ;;  %v340_v41 = vmax.f32 %v316_v35, 0.0 }
  0x2b   : > { %360 = vst [vmem:[%s686_s10 + $0x78] sm:$0xff] %v336_v15  ;;  %v341_v43 = vmax.f32 %v317_v36, 0.0  ;;  %v342_v44 = vmax.f32 %v318_v37, 0.0  ;;  %v343_v45 = vmax.f32 %v319_v40, 0.0  ;;  %v344_v46 = vmax.f32 %v320_v42, 0.0 }
  0x2c   : > { %361 = vst [vmem:[%s686_s10 + $0x80] sm:$0xff] %v337_v0 }
  0x2d   : > { %362 = vst [vmem:[%s686_s10 + $0x88] sm:$0xff] %v338_v38 }
  0x2e   : > { %363 = vst [vmem:[%s686_s10 + $0x90] sm:$0xff] %v339_v39 }
  0x2f   : > { %364 = vst [vmem:[%s686_s10 + $0x98] sm:$0xff] %v340_v41 }
  0x30   : > { %365 = vst [vmem:[%s686_s10 + $0xa0] sm:$0xff] %v341_v43 }
  0x31   : > { %366 = vst [vmem:[%s686_s10 + $0xa8] sm:$0xff] %v342_v44 }
  0x32   : > { %367 = vst [vmem:[%s686_s10 + $0xb0] sm:$0xff] %v343_v45 }
  0x33   : > { %368 = vst [vmem:[%s686_s10 + $0xb8] sm:$0xff] %v344_v46 }
  0x34 PF: > { %s13_s16 = sadd.s32 1, %s597_s16   ;;  %s775_s12 = smov %s589_s14 }
  0x35   : > { %p10_p7 = scmp.ge.s32.totalorder %s13_s16, 6   ;;  %s776_s13 = smov %s593_s15 }
  0x36   : > { %s777_s14 = smov %s780_s17  ;;  %s778_s15 = smov %s784_s18 }
  0x37   :  { %12 = sbr.rel (!%p10_p7) target bundleno = 3 (0x3), region = 62 }

// kernel: conv_block_forward.3
= control target key start
LH: loop header
LB: loop body
LE: loop exit
PB: predicated region body
PF: predicated region fallthrough
CT: control target
= control target key end

     0   :  { %s3253_s27 = smov 0   ;;  %s3255_s2 = smov 0   ;;  %s4674_s0 = inlined_call_operand.vmem [shape: bf16[1536,4], index: 0, kind: input, shape index: {}]   ;;  %s4675_s1 = inlined_call_operand.vmem [shape: bf16[9,4,128], index: 1, kind: input, shape index: {}]   ;;  %s4676_s2 = inlined_call_operand.vmem [shape: f32[1,4], index: 2, kind: input, shape index: {}]   ;;  %s4677_s3 = inlined_call_operand.vmem [shape: f32[1,4], index: 3, kind: input, shape index: {}]   ;;  %s4678_s4 = inlined_call_operand.vmem [shape: s32[288,1], index: 4, kind: input, shape index: {}]   ;;  %s4679_s5 = inlined_call_operand.vmem [shape: s32[288,1], index: 5, kind: input, shape index: {}]   ;;  %s4680_s6 = inlined_call_operand.vmem [shape: bf16[1536,128], index: 6, kind: output, shape index: {0}]   ;;  %s4681_s7 = inlined_call_operand.vmem [shape: f32[4,1,128], index: 7, kind: output, shape index: {1}]   ;;  %s4682_s8 = inlined_call_operand.vmem [shape: f32[4,1,128], index: 8, kind: output, shape index: {2}]  }
   0x1   :  { %s3257_s3 = smov 0   ;;  %s3259_s28 = smov 0  }
   0x2   :  { %s3261_s29 = smov 0  }
   0x3 LB: > { %s28_s30 = sadd.s32 1, %s3197_s3  ;;  %s31_s9 = sadd.s32 1, %s3201_s28  ;;  %s3205_s29 = sphi %s3261_s29, %s19_s29   ;;  %s3201_s28 = sphi %s3259_s28, %s4842_s28   ;;  %s3197_s3 = sphi %s3257_s3, %s4841_s3   ;;  %s3193_s2 = sphi %s3255_s2, %s4840_s2   ;;  %s3189_s27 = sphi %s3253_s27, %s4839_s27  }
   0x4   : > { %p29_p0 = scmp.ge.s32.totalorder %s28_s30, 2  ;;  %p2842_p1 = scmp.ge.s32.totalorder %s3205_s29, 1 }
   0x5   : > { %p294_p2 = scmp.lt.s32.totalorder %s3205_s29, 5 }
   0x6   : > { %s4844_s30 = smov (%p29_p0, %s28_s30), 0  ;;  %s4846_s9 = smov (!%p29_p0, %s31_s9), %s3201_s28 }
   0x7   : > { %p295_p3 = pnand %p2842_p1, %p294_p2  ;;  %p33_p4 = scmp.ge.s32.totalorder %s4846_s9, 2 }
   0x9   : > { %s4848_s9 = smov (%p33_p4, %s4846_s9), 0  ;;  %298 = sbr.rel (%p295_p3) target bundleno = 745 (0x2e9), region = 44 }
   0xe   : > { %s2848_s10 = sshll.u32 %s3189_s27, 3  ;;  %v465_v0 = vld [vmem:[%s4678_s4 + $0xa8] sm:$0xff]  ;;  %v459_v1 = vld [vmem:[%s4678_s4 + $0x78] sm:$0xff]  ;;  %v3207_v2 = vmov 0   ;;  %v466_v6 = vld [vmem:[%s4678_s4 + $0xb0] sm:$0xff]  ;;  %s341_s12 = smul.u32 96, %s3193_s2 }
   0xf   : > { %3166 = vset.pattern.permute.xlu2 %v3207_v2  ;;  %3165 = vset.pattern.permute.xlu1 %v3207_v2  ;;  %s2850_s15 = sadd.s32 4294967294, %s2848_s10  ;;  %v3301_v3 = vld [vmem:[%s4679_s5 + $0xa8] sm:$0xff]  ;;  %v3317_v9 = vld [vmem:[%s4679_s5 + $0x78] sm:$0xff]  ;;  %v460_v12 = vld [vmem:[%s4678_s4 + $0x80] sm:$0xff]  ;;  %s2844_s11 = sshll.u32 %s3193_s2, 2 }
  0x10   : > { %v453_v4 = vld [vmem:[%s4678_s4 + $0x48] sm:$0xff]  ;;  %3164 = vset.pattern.permute.xlu0 %v3207_v2  ;;  %v3307_v5 = vstv %s2850_s15  ;;  %vm4684_vm0 = vcmp.lt.s32.totalorder %v3301_v3, 16  ;;  %vm4687_vm6 = vcmp.lt.s32.totalorder %v3317_v9, 16  ;;  %v454_v14 = vld [vmem:[%s4678_s4 + $0x50] sm:$0xff]  ;;  %v3352_v19 = vld [vmem:[%s4679_s5 + $0x80] sm:$0xff]  ;;  %p342_p5 = scmp.lt.s32.totalorder %s341_s12, 191 }
  0x11   : > { %v498_v7 = vadd.s32 %v3307_v5, %v465_v0  ;;  %v492_v8 = vadd.s32 %v3307_v5, %v459_v1  ;;  %v486_v10 = vadd.s32 %v3307_v5, %v453_v4  ;;  %v499_v11 = vadd.s32 %v3307_v5, %v466_v6  ;;  %v3328_v13 = vld [vmem:[%s4679_s5 + $0x48] sm:$0xff]  ;;  %v3339_v15 = vld [vmem:[%s4679_s5 + $0xb0] sm:$0xff]  ;;  %v448_v22 = vld [vmem:[%s4678_s4 + $0x20] sm:$0xff]  ;;  %s375_s15 = sadd.s32 6, %s2848_s10 }
  0x12   : > { %v493_v16 = vadd.s32 %v3307_v5, %v460_v12  ;;  %vm4694_vm11 = vcmp.lt.s32.totalorder %v3328_v13, 16  ;;  %v461_v18 = vld [vmem:[%s4678_s4 + $0x88] sm:$0xff]  ;;  %v487_v20 = vadd.s32 %v3307_v5, %v454_v14  ;;  %v3366_v23 = vld [vmem:[%s4679_s5 + $0x50] sm:$0xff]  ;;  %v447_v26 = vld [vmem:[%s4678_s4 + $0x18] sm:$0xff]  ;;  %v481_v28 = vadd.s32 %v3307_v5, %v448_v22  ;;  %s376_s18 = smul.u32 24, %s375_s15  ;;  %s4850_s12 = smov (!%p342_p5, %s341_s12), 191 }
  0x13   : > { %vm530_vm1 = vcmp.ge.s32.totalorder %v498_v7, 0  ;;  %vm562_vm2 = vcmp.lt.s32.totalorder %v498_v7, 16  ;;  %vm524_vm3 = vcmp.ge.s32.totalorder %v492_v8, 0  ;;  %vm556_vm4 = vcmp.lt.s32.totalorder %v492_v8, 16  ;;  %v3380_v27 = vld [vmem:[%s4679_s5 + $0x88] sm:$0xff]  ;;  %v3391_v30 = vld [vmem:[%s4679_s5 + $0x20] sm:$0xff] }
  0x14   : > { %vm594_vm5 = vmand %vm530_vm1, %vm562_vm2  ;;  %vm518_vm8 = vcmp.ge.s32.totalorder %v486_v10, 0  ;;  %vm550_vm9 = vcmp.lt.s32.totalorder %v486_v10, 16  ;;  %vm531_vm13 = vcmp.ge.s32.totalorder %v499_v11, 0  ;;  %vm563_vm14 = vcmp.lt.s32.totalorder %v499_v11, 16  ;;  %v468_v32 = vld [vmem:[%s4678_s4 + $0xc0] sm:$0xff]  ;;  %v467_v34 = vld [vmem:[%s4678_s4 + $0xb8] sm:$0xff] }
  0x15   : > { %vm690_vm7 = vmand %vm594_vm5, %vm4684_vm0  ;;  %vm4683_vm1 = vcmp.lt.s32.totalorder %v3339_v15, 16  ;;  %v494_v24 = vadd.s32 %v3307_v5, %v461_v18  ;;  %v480_v31 = vadd.s32 %v3307_v5, %v447_v26  ;;  %v3407_v35 = vld [vmem:[%s4679_s5 + $0x18] sm:$0xff]  ;;  %v501_v37 = vadd.s32 %v3307_v5, %v468_v32  ;;  %v462_v38 = vld [vmem:[%s4678_s4 + $0x90] sm:$0xff]  ;;  %s2843_s10 = sshll.u32 %s4850_s12, 2  ;;  %s377_s21 = sshra.s32 %s376_s18, 3 }
  0x16   : > { %v722_v17 = vsel %vm690_vm7, 1, %v3207_v2  ;;  %vm588_vm10 = vmand %vm524_vm3, %vm556_vm4  ;;  %vm525_vm3 = vcmp.ge.s32.totalorder %v493_v16, 0  ;;  %vm557_vm4 = vcmp.lt.s32.totalorder %v493_v16, 16  ;;  %vm4685_vm7 = vcmp.lt.s32.totalorder %v3352_v19, 16  ;;  %v3429_v41 = vld [vmem:[%s4679_s5 + $0xb8] sm:$0xff]  ;;  %v456_v44 = vld [vmem:[%s4678_s4 + $0x60] sm:$0xff]  ;;  %s345_s24 = scalar_lea.vmem %s4674_s0, %s2843_s10 }
  0x17   : > { %793 = vperm.xlu1 %3165, %v722_v17   ;;  %vm684_vm12 = vmand %vm588_vm10, %vm4687_vm6  ;;  %vm551_vm10 = vcmp.lt.s32.totalorder %v487_v20, 16  ;;  %v500_v40 = vadd.s32 %v3307_v5, %v467_v34  ;;  %v495_v42 = vadd.s32 %v3307_v5, %v462_v38  ;;  %vm533_vm0 = vcmp.ge.s32.totalorder %v501_v37, 0  ;;  %v3441_v45 = vld [vmem:[%s4679_s5 + $0x90] sm:$0xff]  ;;  %v455_v47 = vld [vmem:[%s4678_s4 + $0x58] sm:$0xff]  ;;  %s2849_s25 = sshll.u32 %s377_s21, 2  ;;  %s348_s12 = sadd.s32 1, %s2844_s11 }
  0x18   : > { %v716_v21 = vsel %vm684_vm12, 1, %v3207_v2  ;;  %vm582_vm15 = vmand %vm518_vm8, %vm550_vm9  ;;  %vm519_vm9 = vcmp.ge.s32.totalorder %v487_v20, 0  ;;  %v629_v49 = vld [vmem:[%s4679_s5 + $0xc0] sm:$0xff]  ;;  %v489_v50 = vadd.s32 %v3307_v5, %v456_v44  ;;  %v449_v52 = vld [vmem:[%s4678_s4 + $0x28] sm:$0xff]  ;;  %v488_v53 = vadd.s32 %v3307_v5, %v455_v47  ;;  %s3701_s26 = scalar_lea.vmem %s345_s24, %s2849_s25  ;;  %s349_s13 = sadd.s32 %s3189_s27, %s348_s12 }
  0x19   : > { %775 = vperm.xlu0 %3164, %v716_v21   ;;  %vm678_vm2 = vmand %vm582_vm15, %vm4694_vm11  ;;  %vm526_vm15 = vcmp.ge.s32.totalorder %v494_v24, 0  ;;  %v482_v54 = vadd.s32 %v3307_v5, %v449_v52  ;;  %v3472_v55 = vld [vmem:[%s4679_s5 + $0x60] sm:$0xff]  ;;  %v463_v57 = vld [vmem:[%s4678_s4 + $0x98] sm:$0xff]  ;;  %s350_s14 = smul.u32 24, %s349_s13  ;;  %s2846_s18 = sshll.u32 %s3193_s2, 1 }
  0x1a   : > { %v710_v25 = vsel %vm678_vm2, 1, %v3207_v2  ;;  %vm595_vm5 = vmand %vm531_vm13, %vm563_vm14  ;;  %vm4688_vm13 = vcmp.lt.s32.totalorder %v3366_v23, 16  ;;  %vm558_vm2 = vcmp.lt.s32.totalorder %v494_v24, 16  ;;  %v3483_v58 = vld [vmem:[%s4679_s5 + $0x58] sm:$0xff]  ;;  %v450_v60 = vld [vmem:[%s4678_s4 + $0x30] sm:$0xff]  ;;  %v496_v62 = vadd.s32 %v3307_v5, %v463_v57  ;;  %s360_s19 = sadd.s32 %s3189_s27, %s2846_s18 }
  0x1b   : > { %757 = vperm.xlu2 %3166, %v710_v25   ;;  %vm691_vm8 = vmand %vm595_vm5, %vm4683_vm1  ;;  %vm544_vm1 = vcmp.lt.s32.totalorder %v480_v31, 16  ;;  %v3493_v61 = vld [vmem:[%s4679_s5 + $0x28] sm:$0xff]  ;;  %v464_v0 = vld [vmem:[%s4678_s4 + $0xa0] sm:$0xff]  ;;  %v483_v1 = vadd.s32 %v3307_v5, %v450_v60  ;;  %p351_p6 = scmp.lt.s32.totalorder %s350_s14, 191  ;;  %p361_p7 = scmp.lt.s32.totalorder %s360_s19, 3 }
  0x1c   : > { %v723_v29 = vsel %vm691_vm8, 1, %v3207_v2  ;;  %vm589_vm12 = vmand %vm525_vm3, %vm557_vm4  ;;  %vm4686_vm4 = vcmp.lt.s32.totalorder %v3380_v27, 16  ;;  %vm513_vm8 = vcmp.ge.s32.totalorder %v481_v28, 0  ;;  %v497_v4 = vadd.s32 %v3307_v5, %v464_v0  ;;  %v3511_v6 = vld [vmem:[%s4679_s5 + $0x98] sm:$0xff]  ;;  %v470_v8 = vld [vmem:[%s4678_s4 + $0xd0] sm:$0xff] }
  0x1d   : > { %vm685_vm14 = vmand %vm589_vm12, %vm4685_vm7  ;;  %vm545_vm12 = vcmp.lt.s32.totalorder %v481_v28, 16  ;;  %vm565_vm7 = vcmp.lt.s32.totalorder %v501_v37, 16  ;;  %v3522_v10 = vld [vmem:[%s4679_s5 + $0x30] sm:$0xff]  ;;  %v469_v12 = vld [vmem:[%s4678_s4 + $0xc8] sm:$0xff]  ;;  %v503_v16 = vadd.s32 %v3307_v5, %v470_v8  ;;  %s4852_s14 = smov (!%p351_p6, %s350_s14), 191  ;;  %s4854_s19 = smov (!%p361_p7, %s360_s19), 3 }
  0x1e   : > { %v717_v33 = vsel %vm685_vm14, 1, %v3207_v2  ;;  %vm583_vm3 = vmand %vm519_vm9, %vm551_vm10  ;;  %vm4697_vm10 = vcmp.lt.s32.totalorder %v3391_v30, 16  ;;  %v3532_v14 = vld [vmem:[%s4679_s5 + $0xa0] sm:$0xff]  ;;  %v457_v18 = vld [vmem:[%s4678_s4 + $0x68] sm:$0xff]  ;;  %v502_v20 = vadd.s32 %v3307_v5, %v469_v12  ;;  %s363_s27 = scalar_lea.vmem %s4681_s7, %s4854_s19  ;;  %s370_s22 = scalar_lea.vmem %s4682_s8, %s4854_s19 }
  0x1f   : > { %796 = vperm.xlu1 %3165, %v723_v29   ;;  %vm679_vm5 = vmand %vm583_vm3, %vm4688_vm13  ;;  %vm512_vm3 = vcmp.ge.s32.totalorder %v480_v31, 0  ;;  %v490_v21 = vadd.s32 %v3307_v5, %v457_v18  ;;  %v631_v22 = vld [vmem:[%s4679_s5 + $0xd0] sm:$0xff]  ;;  %v451_v25 = vld [vmem:[%s4678_s4 + $0x38] sm:$0xff] }
  0x20   : > { %v711_v36 = vsel %vm679_vm5, 1, %v3207_v2  ;;  %vm590_vm9 = vmand %vm526_vm15, %vm558_vm2  ;;  %vm4703_vm2 = vcmp.lt.s32.totalorder %v3407_v35, 16  ;;  %v630_v26 = vld [vmem:[%s4679_s5 + $0xc8] sm:$0xff]  ;;  %v458_v29 = vld [vmem:[%s4678_s4 + $0x70] sm:$0xff]  ;;  %v484_v32 = vadd.s32 %v3307_v5, %v451_v25 }
  0x21   : > { %778 = vperm.xlu0 %3164, %v717_v33   ;;  %vm3418_vm14 = vmand %vm590_vm9, %vm4686_vm4  ;;  %vm4690_vm4 = vcmp.lt.s32.totalorder %v3441_v45, 16  ;;  %vm554_vm11 = vcmp.lt.s32.totalorder %v490_v21, 16  ;;  %v3566_v31 = vld [vmem:[%s4679_s5 + $0x68] sm:$0xff]  ;;  %v452_v34 = vld [vmem:[%s4678_s4 + $0x40] sm:$0xff] }
  0x22   : > { %vm577_vm15 = vmand %vm513_vm8, %vm545_vm12  ;;  %vm532_vm12 = vcmp.ge.s32.totalorder %v500_v40, 0  ;;  %v718_v51 = vsel %vm3418_vm14, 1, %v3207_v2  ;;  %vm521_vm14 = vcmp.ge.s32.totalorder %v489_v50, 0  ;;  %v485_v37 = vadd.s32 %v3307_v5, %v452_v34  ;;  %v3579_v38 = vld [vmem:[%s4679_s5 + $0x38] sm:$0xff]  ;;  %v446_v44 = vld [vmem:[%s4678_s4 + $0x10] sm:$0xff] }
  0x23   : > { %760 = vperm.xlu2 %3166, %v711_v36   ;;  %vm673_vm5 = vmand %vm577_vm15, %vm4697_vm10  ;;  %vm564_vm15 = vcmp.lt.s32.totalorder %v500_v40, 16  ;;  %v491_v36 = vadd.s32 %v3307_v5, %v458_v29  ;;  %vm516_vm10 = vcmp.ge.s32.totalorder %v484_v32, 0  ;;  %v471_v40 = vld [vmem:[%s4678_s4 + $0xd8] sm:$0xff]  ;;  %v633_v60 = vld [vmem:[%s4679_s5 + $0xe0] sm:$0xff] }
  0x24   : > { %v705_v43 = vsel %vm673_vm5, 1, %v3207_v2  ;;  %vm576_vm9 = vmand %vm512_vm3, %vm544_vm1  ;;  %vm4689_vm1 = vcmp.lt.s32.totalorder %v3429_v41, 16  ;;  %vm527_vm5 = vcmp.ge.s32.totalorder %v495_v42, 0  ;;  %v504_v47 = vadd.s32 %v3307_v5, %v471_v40  ;;  %v632_v52 = vld [vmem:[%s4679_s5 + $0xd8] sm:$0xff]  ;;  %v634_v12 = vld [vmem:[%s4679_s5 + $0xe8] sm:$0xff] }
  0x25   : > { %vm672_vm8 = vmand %vm576_vm9, %vm4703_vm2  ;;  %vm559_vm9 = vcmp.lt.s32.totalorder %v495_v42, 16  ;;  %v3590_v42 = vld [vmem:[%s4679_s5 + $0x70] sm:$0xff]  ;;  %v475_v0 = vld [vmem:[%s4678_s4 + $0xf8] sm:$0xff] }
  0x26   : > { %v704_v46 = vsel %vm672_vm8, 1, %v3207_v2  ;;  %vm3448_vm3 = vmand %vm533_vm0, %vm565_vm7  ;;  %vm661_vm7 = vcmp.lt.s32.totalorder %v629_v49, 16  ;;  %v472_v49 = vld [vmem:[%s4678_s4 + $0xe0] sm:$0xff]  ;;  %v636_v18 = vld [vmem:[%s4679_s5 + $0xf8] sm:$0xff] }
  0x27   : > { %742 = vperm.xlu1 %3165, %v705_v43   ;;  %vm596_vm8 = vmand %vm532_vm12, %vm564_vm15  ;;  %vm553_vm12 = vcmp.lt.s32.totalorder %v489_v50, 16  ;;  %v479_v50 = vadd.s32 %v3307_v5, %v446_v44  ;;  %v2367_v29 = vld [vmem:[%s4679_s5] sm:$0xff] }
  0x28   : > { %vm692_vm0 = vmand %vm596_vm8, %vm4689_vm1  ;;  %vm4691_vm8 = vcmp.lt.s32.totalorder %v3472_v55, 16  ;;  %vm546_vm1 = vcmp.lt.s32.totalorder %v482_v54, 16 }
  0x29   : > { %739 = vperm.xlu0 %3164, %v704_v46   ;;  %vm591_vm6 = vmand %vm527_vm5, %vm559_vm9  ;;  %v724_v56 = vsel %vm692_vm0, 1, %v3207_v2  ;;  %vm520_vm5 = vcmp.ge.s32.totalorder %v488_v53, 0  ;;  %vm514_vm0 = vcmp.ge.s32.totalorder %v482_v54, 0  ;;  %v3600_v46 = vld [vmem:[%s4679_s5 + $0x40] sm:$0xff]  ;;  %v474_v54 = vld [vmem:[%s4678_s4 + $0xf0] sm:$0xff] }
  0x2a   : > { %vm687_vm13 = vmand %vm591_vm6, %vm4690_vm4  ;;  %vm552_vm6 = vcmp.lt.s32.totalorder %v488_v53, 16  ;;  %vm4693_vm4 = vcmp.lt.s32.totalorder %v3511_v6, 16 }
  0x2b   : > { %781 = vperm.xlu2 %3166, %v718_v51   ;;  %vm693_vm15 = vmand %vm3448_vm3, %vm661_vm7  ;;  %v719_v59 = vsel %vm687_vm13, 1, %v3207_v2  ;;  %vm4692_vm3 = vcmp.lt.s32.totalorder %v3483_v58, 16  ;;  %v505_v51 = vadd.s32 %v3307_v5, %v472_v49  ;;  %v3707_v49 = vld [vmem:[%s3701_s26 + $0x20] sm:$0xff]  }
  0x2c   : > { %vm585_vm9 = vmand %vm521_vm14, %vm553_vm12  ;;  %v725_v63 = vsel %vm693_vm15, 1, %v3207_v2  ;;  %vm4698_vm12 = vcmp.lt.s32.totalorder %v3493_v61, 16 }
  0x2d   : > { %vm584_vm13 = vmand %vm520_vm5, %vm552_vm6  ;;  %vm528_vm5 = vcmp.ge.s32.totalorder %v496_v62, 0  ;;  %vm560_vm6 = vcmp.lt.s32.totalorder %v496_v62, 16  ;;  %v507_v62 = vadd.s32 %v3307_v5, %v474_v54 }
  0x2e   : > { %vm681_vm7 = vmand %vm585_vm9, %vm4691_vm8  ;;  %vm515_vm9 = vcmp.ge.s32.totalorder %v483_v1, 0  ;;  %vm561_vm8 = vcmp.lt.s32.totalorder %v497_v4, 16 }
  0x2f   : > { %799 = vperm.xlu1 %3165, %v724_v56   ;;  %vm578_vm14 = vmand %vm514_vm0, %vm546_vm1  ;;  %v713_v7 = vsel %vm681_vm7, 1, %v3207_v2  ;;  %vm547_vm0 = vcmp.lt.s32.totalorder %v483_v1, 16  ;;  %vm529_vm7 = vcmp.ge.s32.totalorder %v497_v4, 0  ;;  %v3627_v56 = vld [vmem:[%s4679_s5 + $0x10] sm:$0xff]  ;;  %v508_v4 = vadd.s32 %v3307_v5, %v475_v0 }
  0x30   : > { %vm680_vm15 = vmand %vm584_vm13, %vm4692_vm3  ;;  %vm4695_vm3 = vcmp.lt.s32.totalorder %v3532_v14, 16 }
  0x31   : > { %784 = vperm.xlu0 %3164, %v719_v59   ;;  %vm674_vm1 = vmand %vm578_vm14, %vm4698_vm12  ;;  %v712_v11 = vsel %vm680_vm15, 1, %v3207_v2  ;;  %vm4696_vm15 = vcmp.lt.s32.totalorder %v3522_v10, 16  ;;  %vm548_vm12 = vcmp.lt.s32.totalorder %v484_v32, 16  ;;  %v473_v59 = vld [vmem:[%s4678_s4 + $0xe8] sm:$0xff] }
  0x32   : > { %vm592_vm13 = vmand %vm528_vm5, %vm560_vm6  ;;  %v706_v17 = vsel %vm674_vm1, 1, %v3207_v2  ;;  %v506_v1 = vadd.s32 %v3307_v5, %v473_v59 }
  0x33   : > { %802 = vperm.xlu2 %3166, %v725_v63   ;;  %vm579_vm14 = vmand %vm515_vm9, %vm547_vm0  ;;  %vm535_vm9 = vcmp.ge.s32.totalorder %v503_v16, 0  ;;  %vm567_vm0 = vcmp.lt.s32.totalorder %v503_v16, 16 }
  0x34   : > { %vm688_vm5 = vmand %vm592_vm13, %vm4693_vm4  ;;  %vm534_vm13 = vcmp.ge.s32.totalorder %v502_v20, 0  ;;  %vm663_vm4 = vcmp.lt.s32.totalorder %v631_v22, 16 }
  0x35   : > { %vm593_vm6 = vmand %vm529_vm7, %vm561_vm8  ;;  %v720_v24 = vsel %vm688_vm5, 1, %v3207_v2  ;;  %vm566_vm7 = vcmp.lt.s32.totalorder %v502_v20, 16  ;;  %vm522_vm5 = vcmp.ge.s32.totalorder %v490_v21, 0 }
  0x36   : > { %vm675_vm1 = vmand %vm579_vm14, %vm4696_vm15 }
  0x37   : > { %766 = vperm.xlu1 %3165, %v713_v7   ;;  %vm689_vm8 = vmand %vm593_vm6, %vm4695_vm3  ;;  %v707_v28 = vsel %vm675_vm1, 1, %v3207_v2  ;;  %vm662_vm1 = vcmp.lt.s32.totalorder %v630_v26, 16  ;;  %vm4699_vm3 = vcmp.lt.s32.totalorder %v3566_v31, 16  ;;  %v635_v7 = vld [vmem:[%s4679_s5 + $0xf0] sm:$0xff] }
  0x38   : > { %vm599_vm14 = vmand %vm535_vm9, %vm567_vm0  ;;  %v721_v33 = vsel %vm689_vm8, 1, %v3207_v2  ;;  %vm555_vm8 = vcmp.lt.s32.totalorder %v491_v36, 16 }
  0x39   : > { %763 = vperm.xlu0 %3164, %v712_v11   ;;  %vm598_vm6 = vmand %vm534_vm13, %vm566_vm7  ;;  %vm4701_vm7 = vcmp.lt.s32.totalorder %v3579_v38, 16  ;;  %v477_v11 = vld [vmem:[%s4678_s4 + $0x108] sm:$0xff] }
  0x3a   : > { %vm695_vm9 = vmand %vm599_vm14, %vm663_vm4  ;;  %vm523_vm4 = vcmp.ge.s32.totalorder %v491_v36, 0  ;;  %vm517_vm14 = vcmp.ge.s32.totalorder %v485_v37, 0  ;;  %v510_v20 = vadd.s32 %v3307_v5, %v477_v11  ;;  %v2368_v36 = vld [vmem:[%s4679_s5 + $0x8] sm:$0xff]  ;;  %v3767_v11 = vld [vmem:[%s3701_s26 + $0x58] sm:$0xff]  }
  0x3b   : > { %745 = vperm.xlu2 %3166, %v706_v17   ;;  %vm586_vm0 = vmand %vm522_vm5, %vm554_vm11  ;;  %v727_v39 = vsel %vm695_vm9, 1, %v3207_v2  ;;  %vm549_vm5 = vcmp.lt.s32.totalorder %v485_v37, 16  ;;  %v476_v17 = vld [vmem:[%s4678_s4 + $0x100] sm:$0xff] }
  0x3c   : > { %vm694_vm15 = vmand %vm598_vm6, %vm662_vm1  ;;  %vm4702_vm1 = vcmp.lt.s32.totalorder %v3600_v46, 16  ;;  %v509_v22 = vadd.s32 %v3307_v5, %v476_v17  ;;  %vm574_vm2 = vcmp.lt.s32.totalorder %v510_v20, 16  ;;  %v637_v5 = vld [vmem:[%s4679_s5 + $0x100] sm:$0xff]  ;;  %v3773_v17 = vld [vmem:[%s3701_s26 + $0x38] sm:$0xff]  }
  0x3d   : > { %vm682_vm11 = vmand %vm586_vm0, %vm4699_vm3  ;;  %v726_v43 = vsel %vm694_vm15, 1, %v3207_v2  ;;  %vm536_vm0 = vcmp.ge.s32.totalorder %v504_v47, 0  ;;  %vm665_vm3 = vcmp.lt.s32.totalorder %v633_v60, 16  ;;  %v2851_v37 = vld [vmem:[%s4675_s1 + $0x2] sm:$0x3] }
  0x3e   : > { %vm580_vm13 = vmand %vm516_vm10, %vm548_vm12  ;;  %v714_v48 = vsel %vm682_vm11, 1, %v3207_v2  ;;  %vm4700_vm10 = vcmp.lt.s32.totalorder %v3590_v42, 16  ;;  %vm568_vm11 = vcmp.lt.s32.totalorder %v504_v47, 16 }
  0x3f   : > { %787 = vperm.xlu1 %3165, %v720_v24   ;;  %vm587_vm15 = vmand %vm523_vm4, %vm555_vm8  ;;  %vm511_vm8 = vcmp.ge.s32.totalorder %v479_v50, 0  ;;  %v638_v24 = vld [vmem:[%s4679_s5 + $0x108] sm:$0xff] }
  0x40   : > { %vm676_vm12 = vmand %vm580_vm13, %vm4701_vm7  ;;  %vm543_vm13 = vcmp.lt.s32.totalorder %v479_v50, 16 }
  0x41   : > { %748 = vperm.xlu0 %3164, %v707_v28   ;;  %vm581_vm6 = vmand %vm517_vm14, %vm549_vm5  ;;  %v708_v53 = vsel %vm676_vm12, 1, %v3207_v2  ;;  %vm664_vm5 = vcmp.lt.s32.totalorder %v632_v52, 16  ;;  %vm569_vm12 = vcmp.lt.s32.totalorder %v505_v51, 16  ;;  %v2984_v52 = vunpack.c.h.bf16 %v3707_v49 }
  0x42   : > { %vm683_vm9 = vmand %vm587_vm15, %vm4700_vm10  ;;  %vm537_vm15 = vcmp.ge.s32.totalorder %v505_v51, 0  ;;  %v3716_v51 = vld [vmem:[%s3701_s26 + $0x28] sm:$0xff]  }
  0x43   : > { %790 = vperm.xlu2 %3166, %v721_v33   ;;  %vm677_vm4 = vmand %vm581_vm6, %vm4702_vm1  ;;  %v715_v57 = vsel %vm683_vm9, 1, %v3207_v2  ;;  %vm639_vm9 = vcmp.lt.s32.totalorder %v3627_v56, 16  ;;  %vm542_vm1 = vcmp.ge.s32.totalorder %v510_v20, 0 }
  0x44   : > { %vm600_vm14 = vmand %vm536_vm0, %vm568_vm11  ;;  %v709_v63 = vsel %vm677_vm4, 1, %v3207_v2  ;;  %vm539_vm4 = vcmp.ge.s32.totalorder %v507_v62, 0 }
  0x45   : > { %vm575_vm6 = vmand %vm511_vm8, %vm543_vm13  ;;  %vm571_vm8 = vcmp.lt.s32.totalorder %v507_v62, 16  ;;  %v2876_v62 = vld [vmem:[%s4675_s1 + $0x4] sm:$0x3] }
  0x46   : > { %vm696_vm0 = vmand %vm600_vm14, %vm664_vm5  ;;  %vm538_vm14 = vcmp.ge.s32.totalorder %v506_v1, 0  ;;  %vm570_vm5 = vcmp.lt.s32.totalorder %v506_v1, 16 }
  0x47   : > { %808 = vperm.xlu1 %3165, %v727_v39   ;;  %vm601_vm11 = vmand %vm537_vm15, %vm569_vm12  ;;  %v728_v8 = vsel %vm696_vm0, 1, %v3207_v2  ;;  %vm667_vm12 = vcmp.lt.s32.totalorder %v635_v7, 16  ;;  %vm572_vm0 = vcmp.lt.s32.totalorder %v508_v4, 16  ;;  %v2417_v39 = vsel %vm639_vm9, 1, %v3207_v2  ;;  %v3761_v7 = vld [vmem:[%s3701_s26 + $0x50] sm:$0xff]  }
  0x48   : > { %vm671_vm10 = vmand %vm575_vm6, %vm639_vm9  ;;  %vm540_vm6 = vcmp.ge.s32.totalorder %v508_v4, 0  ;;  %vm4740_vm9 = vcmp.lt.s32.totalorder %v3493_v61, 16  ;;  %v2987_v61 = vunpack.c.l.bf16 %v3716_v51  ;;  %v3008_v20 = vunpack.c.h.bf16 %v3761_v7 }
  0x49   : > { %805 = vperm.xlu0 %3164, %v726_v43   ;;  %vm697_vm13 = vmand %vm601_vm11, %vm665_vm3  ;;  %v703_v16 = vsel %vm671_vm10, 1, %v3207_v2  ;;  %vm666_vm11 = vcmp.lt.s32.totalorder %v634_v12, 16  ;;  %v2420_v47 = vsel %vm4740_vm9, 1, %v3207_v2  ;;  %vm4751_vm9 = vcmp.lt.s32.totalorder %v3317_v9, 16 }
  0x4a   : > { %vm603_vm15 = vmand %vm539_vm4, %vm571_vm8  ;;  %v729_v21 = vsel %vm697_vm13, 1, %v3207_v2  ;;  %vm668_vm8 = vcmp.lt.s32.totalorder %v636_v18, 16 }
  0x4b   : > { %769 = vperm.xlu2 %3166, %v714_v48   ;;  %vm602_vm3 = vmand %vm538_vm14, %vm570_vm5  ;;  %vm541_vm14 = vcmp.ge.s32.totalorder %v509_v22, 0  ;;  %vm573_vm5 = vcmp.lt.s32.totalorder %v509_v22, 16 }
  0x4c   : > { %vm699_vm10 = vmand %vm603_vm15, %vm667_vm12  ;;  %vm670_vm12 = vcmp.lt.s32.totalorder %v638_v24, 16  ;;  %v2996_v24 = vunpack.c.h.bf16 %v3773_v17 }
  0x4d   : > { %vm604_vm4 = vmand %vm540_vm6, %vm572_vm0  ;;  %v731_v25 = vsel %vm699_vm10, 1, %v3207_v2  ;;  %vm669_vm0 = vcmp.lt.s32.totalorder %v637_v5, 16  ;;  %vm4739_vm10 = vcmp.lt.s32.totalorder %v3407_v35, 16 }
  0x4e   : > { %vm698_vm7 = vmand %vm602_vm3, %vm666_vm11  ;;  %v2418_v44 = vsel %vm4739_vm10, 1, %v3207_v2 }
  0x4f   : > { %751 = vperm.xlu1 %3165, %v708_v53   ;;  %vm700_vm13 = vmand %vm604_vm4, %vm668_vm8  ;;  %v730_v26 = vsel %vm698_vm7, 1, %v3207_v2  ;;  %vm2391_vm7 = vcmp.lt.s32.totalorder %v2367_v29, 16  ;;  %vm4741_vm4 = vcmp.lt.s32.totalorder %v3391_v30, 16  ;;  %vm4742_vm8 = vcmp.lt.s32.totalorder %v3522_v10, 16 }
  0x50   : > { %vm606_vm15 = vmand %vm542_vm1, %vm574_vm2  ;;  %v732_v28 = vsel %vm700_vm13, 1, %v3207_v2  ;;  %v2415_v34 = vsel %vm2391_vm7, 1, %v3207_v2  ;;  %vm2392_vm2 = vcmp.lt.s32.totalorder %v2368_v36, 16  ;;  %vm960_vm1 = vcmask 1041408  }
  0x51   : > { %772 = vperm.xlu0 %3164, %v715_v57   ;;  %vm605_vm6 = vmand %vm541_vm14, %vm573_vm5  ;;  %v962_v40 = vsel %vm960_vm1, %v2851_v37, 0  ;;  %v2416_v43 = vsel %vm2392_vm2, 1, %v3207_v2  ;;  %v2419_v35 = vsel %vm4741_vm4, 1, %v3207_v2  ;;  %v2421_v50 = vsel %vm4742_vm8, 1, %v3207_v2 }
  0x52   : > { %vm702_vm3 = vmand %vm606_vm15, %vm670_vm12  ;;  %3120 = vmatpush.bf16.msra.mxu1 %v962_v40  ;;  %3121 = vmatpush.bf16.msra.mxu2 %v962_v40  ;;  %vm4743_vm14 = vcmp.lt.s32.totalorder %v3600_v46, 16  ;;  %vm4744_vm15 = vcmp.lt.s32.totalorder %v3579_v38, 16  ;;  %vm923_vm12 = vcmask 31744   ;;  %vm4749_vm7 = vcmp.lt.s32.totalorder %v3590_v42, 16 }
  0x53   : > { %754 = vperm.xlu2 %3166, %v709_v63   ;;  %vm701_vm11 = vmand %vm605_vm6, %vm669_vm0  ;;  %v734_v32 = vsel %vm702_vm3, 1, %v3207_v2  ;;  %3122 = vmatpush.bf16.msra.mxu3 %v962_v40  ;;  %v2423_v53 = vsel %vm4743_vm14, 1, %v3207_v2  ;;  %v2422_v10 = vsel %vm4744_vm15, 1, %v3207_v2  ;;  %vm4745_vm6 = vcmp.lt.s32.totalorder %v3328_v13, 16 }
  0x54   : > { %v733_v33 = vsel %vm701_vm11, 1, %v3207_v2  ;;  %971 = vmatpush.bf16.msra.mxu0 %v962_v40  ;;  %v2424_v46 = vsel %vm4745_vm6, 1, %v3207_v2  ;;  %vm4746_vm0 = vcmp.lt.s32.totalorder %v3483_v58, 16  ;;  %vm4747_vm3 = vcmp.lt.s32.totalorder %v3366_v23, 16  ;;  %v2889_v58 = vld [vmem:[%s4675_s1 + $0x6] sm:$0x3] }
  0x55   : > { %v2426_v38 = vsel %vm4746_vm0, 1, %v3207_v2  ;;  %v2425_v60 = vsel %vm4747_vm3, 1, %v3207_v2  ;;  %vm4748_vm11 = vcmp.lt.s32.totalorder %v3472_v55, 16  ;;  %v908_v23 = vld [vmem:[%s4675_s1] sm:$0x3]  ;;  %v1387_v63 = vsel %vm960_vm1, %v2876_v62, 0 }
  0x56   : > { %v2427_v13 = vsel %vm4748_vm11, 1, %v3207_v2  ;;  %v1584_v0 = vsel %vm960_vm1, %v2889_v58, 0  ;;  %v1187_v1 = vsel %vm960_vm1, %v908_v23, 0  ;;  %1396 = vmatpush.bf16.msrb.mxu2 %v1387_v63  ;;  %vm4750_vm2 = vcmp.lt.s32.totalorder %v3566_v31, 16 }
  0x57   : > { %811 = vperm.xlu1 %3165, %v728_v8   ;;  %1593 = vmatpush.bf16.msrb.mxu3 %v1584_v0  ;;  %v2429_v8 = vsel %vm4749_vm7, 1, %v3207_v2  ;;  %v2428_v18 = vsel %vm4750_vm2, 1, %v3207_v2  ;;  %v2430_v42 = vsel %vm4751_vm9, 1, %v3207_v2  ;;  %vm4755_vm15 = vcmp.lt.s32.totalorder %v3352_v19, 16 }
  0x58   : > { %1196 = vmatpush.bf16.msrb.mxu1 %v1187_v1  ;;  %vm4756_vm6 = vcmp.lt.s32.totalorder %v3441_v45, 16  ;;  %vm4757_vm11 = vcmp.lt.s32.totalorder %v3532_v14, 16  ;;  %vm4758_vm2 = vcmp.lt.s32.totalorder %v3511_v6, 16  ;;  %v3012_v14 = vunpack.c.h.bf16 %v3767_v11 }
  0x59   : > { %736 = vperm.xlu0 %3164, %v703_v16   ;;  %v3100_v16 = vld [vmem:[%s3701_s26 + $0x40] sm:$0xff]   ;;  %v2435_v45 = vsel %vm4757_vm11, 1, %v3207_v2  ;;  %vm4759_vm9 = vcmp.lt.s32.totalorder %v3301_v3, 16 }
  0x5a   : > { %v3000_v22 = vunpack.c.h.bf16 %v3100_v16  ;;  %v2999_v5 = vunpack.c.l.bf16 %v3100_v16  ;;  %v2436_v23 = vsel %vm4759_vm9, 1, %v3207_v2  ;;  %vm1033_vm9 = vsmask.f32 4352 }
  0x5b   : > { %814 = vperm.xlu2 %3166, %v729_v21   ;;  %v3011_v21 = vunpack.c.l.bf16 %v3767_v11 }
  0x5f   : > { %820 = vperm.xlu1 %3165, %v731_v25  }
  0x61   : > { %817 = vperm.xlu0 %3164, %v730_v26  }
  0x63   : > { %823 = vperm.xlu2 %3166, %v732_v28  }
  0x67   : > { %829 = vperm.xlu1 %3165, %v734_v32   ;;  %v2902_v32 = vld [vmem:[%s4675_s1 + $0x8] sm:$0x3] }
  0x69   : > { %826 = vperm.xlu0 %3164, %v733_v33  }
  0x6b   : > { %2440 = vperm.xlu2 %3166, %v2415_v34  }
  0x6f   : > { %2446 = vperm.xlu1 %3165, %v2417_v39   ;;  %v1710_v39 = vsel %vm960_vm1, %v2902_v32, 0 }
  0x70   : > { %1719 = vmatpush.bf16.msrb.mxu0 %v1710_v39 }
  0x71   : > { %2443 = vperm.xlu0 %3164, %v2416_v43  }
  0x73   : > { %2449 = vperm.xlu2 %3166, %v2418_v44   ;;  %v3803_v44 = vld [vmem:[%s3701_s26 + $0x10] sm:$0xff]  }
  0x75   : > { %v758_v48 = vpop.permute.xlu2 %757 }
  0x76   : > { %vm838_vm13 = vcmp.eq.s32.totalorder %v758_v48, 1  ;;  %v2975_v48 = vunpack.c.l.bf16 %v3803_v44 }
  0x77   : > { %2455 = vperm.xlu1 %3165, %v2420_v47   ;;  %v3723_v30 = vsel %vm838_vm13, %v2984_v52, 0.0  ;;  %v3811_v47 = vld [vmem:[%s3701_s26 + $0x8] sm:$0xff]   ;;  %v3007_v52 = vunpack.c.l.bf16 %v3761_v7 }
  0x78   : > { %v2972_v19 = vunpack.c.h.bf16 %v3811_v47 }
  0x79   : > { %2452 = vperm.xlu0 %3164, %v2419_v35   ;;  %v2433_v35 = vsel %vm4756_vm6, 1, %v3207_v2 }
  0x7b   : > { %2458 = vperm.xlu2 %3166, %v2421_v50  }
  0x7d   : > { %v761_v54 = vpop.permute.xlu2 %760 }
  0x7e   : > { %vm839_vm5 = vcmp.eq.s32.totalorder %v761_v54, 1  ;;  %v3824_v54 = vld [vmem:[%s3701_s26 + $0x60] sm:$0xff]  }
  0x7f   : > { %v3728_v56 = vsel %vm839_vm5, %v2987_v61, 0.0  ;;  %2464 = vperm.xlu1 %3165, %v2423_v53   ;;  %vm4753_vm5 = vcmp.lt.s32.totalorder %v3380_v27, 16  ;;  %v2431_v27 = vsel %vm4755_vm15, 1, %v3207_v2 }
  0x80   : > { %v3732_v57 = vpack.c.bf16 %v3728_v56, %v3723_v30  ;;  %v2432_v9 = vsel %vm4753_vm5, 1, %v3207_v2 }
  0x81   : > { %2461 = vperm.xlu0 %3164, %v2422_v10  }
  0x82   : > { %2855 = vmatmul.msk.bf16.vlgmr.msra.gmra.mxu1 %vm923_vm12, %v3732_v57 }
  0x83   : > { %2467 = vperm.xlu2 %3166, %v2424_v46  }
  0x85   : > { %v782_v59 = vpop.permute.xlu2 %781 }
  0x86   : > { %vm846_vm4 = vcmp.eq.s32.totalorder %v782_v59, 1  ;;  %v2434_v59 = vsel %vm4758_vm2, 1, %v3207_v2 }
  0x87   : > { %2473 = vperm.xlu1 %3165, %v2426_v38   ;;  %v878_v33 = vsel %vm846_vm4, %v3000_v22, 0.0 }
  0x89   : > { %2470 = vperm.xlu0 %3164, %v2425_v60   ;;  %v794_v55 = vpop.permute.xlu1 %793  ;;  %v3101_v60 = vld [vmem:[%s3701_s26 + $0x48] sm:$0xff]  }
  0x8a   : > { %vm850_vm10 = vcmp.eq.s32.totalorder %v794_v55, 1  ;;  %v3003_v55 = vunpack.c.l.bf16 %v3101_v60 }
  0x8b   : > { %2476 = vperm.xlu2 %3166, %v2427_v13   ;;  %v776_v4 = vpop.permute.xlu0 %775  ;;  %v882_v31 = vsel %vm850_vm10, %v3008_v20, 0.0  ;;  %v3015_v13 = vunpack.c.l.bf16 %v3824_v54 }
  0x8c   : > { %vm844_vm8 = vcmp.eq.s32.totalorder %v776_v4, 1 }
  0x8d   : > { %v3769_v12 = vpop.permute.xlu2 %802  ;;  %v3792_v34 = vsel %vm844_vm8, %v2996_v24, 0.0 }
  0x8e   : > { %vm853_vm10 = vcmp.eq.s32.totalorder %v3769_v12, 1 }
  0x8f   : > { %2482 = vperm.xlu1 %3165, %v2429_v8   ;;  %v3849_v63 = vsel %vm853_vm10, %v3015_v13, 0.0 }
  0x91   : > { %2479 = vperm.xlu0 %3164, %v2428_v18   ;;  %v797_v25 = vpop.permute.xlu1 %796  ;;  %v3098_v18 = vld [vmem:[%s3701_s26 + $0x30] sm:$0xff]  }
  0x92   : > { %vm851_vm13 = vcmp.eq.s32.totalorder %v797_v25, 1  ;;  %v2991_v20 = vunpack.c.l.bf16 %v3098_v18  ;;  %v2992_v25 = vunpack.c.h.bf16 %v3098_v18  ;;  %v2915_v18 = vld [vmem:[%s4675_s1 + $0xa] sm:$0x3] }
  0x93   : > { %2485 = vperm.xlu2 %3166, %v2430_v42   ;;  %v883_v26 = vsel %vm851_vm13, %v3011_v21, 0.0  ;;  %v779_v28 = vpop.permute.xlu0 %778  ;;  %vm4761_vm13 = vcmp.lt.s32.totalorder %v3429_v41, 16  ;;  %v2988_v21 = vunpack.c.h.bf16 %v3716_v51  ;;  %v2983_v42 = vunpack.c.l.bf16 %v3707_v49 }
  0x94   : > { %v3784_v29 = vpack.c.bf16 %v883_v26, %v882_v31  ;;  %vm845_vm14 = vcmp.eq.s32.totalorder %v779_v28, 1  ;;  %v2438_v3 = vsel %vm4761_vm13, 1, %v3207_v2  ;;  %v3004_v51 = vunpack.c.h.bf16 %v3101_v60 }
  0x95   : > { %v877_v36 = vsel %vm845_vm14, %v2999_v5, 0.0  ;;  %v3794_v37 = vpop.permute.xlu2 %745  ;;  %vm4763_vm14 = vcmp.lt.s32.totalorder %v3339_v15, 16  ;;  %vm1261_vm13 = vsmask.f32 7424 }
  0x96   : > { %4752 = vst [vmem:[#allocation2_spill] sm:$0xff] %v3784_v29  ;;  %v3797_v40 = vpack.c.bf16 %v878_v33, %v877_v36  ;;  %v3800_v43 = vpack.c.bf16 %v877_v36, %v3792_v34  ;;  %2861 = vmatmul.msk.bf16.vlgmr.msra.gmra.mxu3 %vm923_vm12, %v3784_v29  ;;  %v2437_v16 = vsel %vm4763_vm14, 1, %v3207_v2 }
  0x97   : > { %2491 = vperm.xlu1 %3165, %v2432_v9   ;;  %v2976_v9 = vunpack.c.h.bf16 %v3803_v44 }
  0x98   : > { %4754 = vst [vmem:[#allocation3_spill] sm:$0xff] %v3797_v40  ;;  %2858 = vmatmul.msk.bf16.vlgmr.msra.gmra.mxu2 %vm923_vm12, %v3800_v43 }
  0x99   : > { %2488 = vperm.xlu0 %3164, %v2431_v27   ;;  %v743_v50 = vpop.permute.xlu1 %742 }
  0x9a   : > { %vm833_vm0 = vcmp.eq.s32.totalorder %v743_v50, 1 }
  0x9b   : > { %2494 = vperm.xlu2 %3166, %v2433_v35   ;;  %v3821_v61 = vsel %vm833_vm0, %v2975_v48, 0.0  ;;  %v740_v53 = vpop.permute.xlu0 %739 }
  0x9c   : > { %vm832_vm3 = vcmp.eq.s32.totalorder %v740_v53, 1  ;;  %v3906_v53 = vld [vmem:[%s3701_s26 + $0x68] sm:$0xff]  }
  0x9d   : > { %v791_v10 = vpop.permute.xlu2 %790  ;;  %v3829_v46 = vsel %vm832_vm3, %v2972_v19, 0.0  ;;  %vm834_vm3 = vcmp.eq.s32.totalorder %v3794_v37, 1  ;;  %v3019_v60 = vunpack.c.l.bf16 %v3906_v53 }
  0x9e   : > { %vm849_vm7 = vcmp.eq.s32.totalorder %v791_v10, 1  ;;  %v3833_v38 = vpack.c.bf16 %v3821_v61, %v3829_v46  ;;  %v3901_v50 = vsel %vm834_vm3, %v2976_v9, 0.0  ;;  %v1893_v9 = vsel %vm960_vm1, %v2915_v18, 0 }
  0x9f   : > { %v881_v62 = vsel %vm849_vm7, %v3007_v52, 0.0  ;;  %2500 = vperm.xlu1 %3165, %v2435_v45   ;;  %1902 = vmatpush.bf16.msra.mxu1 %v1893_v9 }
  0xa0   : > { %v3842_v58 = vpack.c.bf16 %v882_v31, %v881_v62  ;;  %2852 = vmatmul.msk.bf16.vlgmr.msra.gmra.mxu0 %vm923_vm12, %v3833_v38  ;;  %v3875_v31 = vld [vmem:[%s3701_s26 + $0x18] sm:$0xff]  }
  0xa1   : > { %2497 = vperm.xlu0 %3164, %v2434_v59   ;;  %v800_v6 = vpop.permute.xlu1 %799 }
  0xa2   : > { %vm852_vm4 = vcmp.eq.s32.totalorder %v800_v6, 1 }
  0xa3   : > { %2503 = vperm.xlu2 %3166, %v2436_v23   ;;  %v884_v0 = vsel %vm852_vm4, %v3012_v14, 0.0  ;;  %v785_v1 = vpop.permute.xlu0 %784  ;;  %v3016_v23 = vunpack.c.h.bf16 %v3824_v54  ;;  %v2941_v54 = vld [vmem:[%s4675_s1 + $0xe] sm:$0x3] }
  0xa4   : > { %v3851_v4 = vpack.c.bf16 %v884_v0, %v883_v26  ;;  %v3854_v7 = vpack.c.bf16 %v3849_v63, %v884_v0  ;;  %vm847_vm8 = vcmp.eq.s32.totalorder %v785_v1, 1 }
  0xa5   : > { %v770_v8 = vpop.permute.xlu2 %769  ;;  %v879_v11 = vsel %vm847_vm8, %v3003_v55, 0.0 }
  0xa6   : > { %4760 = vst [vmem:[#allocation4_spill] sm:$0xff] %v3854_v7  ;;  %v3859_v12 = vpack.c.bf16 %v879_v11, %v878_v33  ;;  %2862 = vmatmul.msk.bf16.gmra.mxu3 %vm923_vm12, %v3854_v7  ;;  %vm842_vm6 = vcmp.eq.s32.totalorder %v770_v8, 1  ;;  %v2979_v33 = vunpack.c.l.bf16 %v3875_v31  ;;  %v2928_v8 = vld [vmem:[%s4675_s1 + $0xc] sm:$0x3] }
  0xa7   : > { %2509 = vperm.xlu1 %3165, %v2438_v3   ;;  %v3886_v32 = vsel %vm842_vm6, %v2992_v25, 0.0 }
  0xa8   : > { %4762 = vst [vmem:[#allocation5_spill] sm:$0xff] %v3859_v12  ;;  %2859 = vmatmul.msk.bf16.gmra.mxu2 %vm923_vm12, %v3859_v12 }
  0xa9   : > { %2506 = vperm.xlu0 %3164, %v2437_v16   ;;  %v767_v41 = vpop.permute.xlu1 %766 }
  0xaa   : > { %vm841_vm5 = vcmp.eq.s32.totalorder %v767_v41, 1 }
  0xab   : > { %v764_v22 = vpop.permute.xlu0 %763  ;;  %v873_v24 = vsel %vm841_vm5, %v2991_v20, 0.0 }
  0xac   : > { %vm840_vm15 = vcmp.eq.s32.totalorder %v764_v22, 1  ;;  %v3893_v36 = vpack.c.bf16 %v3886_v32, %v873_v24 }
  0xad   : > { %v755_v15 = vpop.permute.xlu2 %754  ;;  %v872_v2 = vsel %vm840_vm15, %v2988_v21, 0.0  ;;  %v2031_v21 = vsel %vm960_vm1, %v2928_v8, 0 }
  0xae   : > { %vm837_vm0 = vcmp.eq.s32.totalorder %v755_v15, 1  ;;  %v3872_v5 = vpack.c.bf16 %v872_v2, %v3728_v56  ;;  %v3879_v28 = vpack.c.bf16 %v873_v24, %v872_v2  ;;  %v1079_v45 = vshrl.u32 %v3893_v36, 16  ;;  %2040 = vmatpush.bf16.msra.mxu2 %v2031_v21 }
  0xaf   : > { %v3877_v26 = vsel %vm837_vm0, %v2983_v42, 0.0  ;;  %v1082_v10 = vshll.u32 %v3893_v36, 16  ;;  %v2139_v42 = vsel %vm960_vm1, %v2941_v54, 0 }
  0xb0   : > { %v3883_v49 = vpack.c.bf16 %v3723_v30, %v3877_v26  ;;  %2856 = vmatmul.msk.bf16.gmra.mxu1 %vm923_vm12, %v3879_v28  ;;  %v1070_v19 = vshrl.u32 %v3872_v5, 16  ;;  %v1073_v37 = vshll.u32 %v3872_v5, 16  ;;  %v1081_v0 = vrot.slane %v1079_v45, 3  ;;  %2148 = vmatpush.bf16.msra.mxu3 %v2139_v42 }
  0xb1   : > { %v788_v56 = vpop.permute.xlu1 %787  ;;  %v1084_v1 = vrot.slane %v1082_v10, 4 }
  0xb2   : > { %vm848_vm11 = vcmp.eq.s32.totalorder %v788_v56, 1  ;;  %v1061_v30 = vshrl.u32 %v3883_v49, 16  ;;  %v1064_v44 = vshll.u32 %v3883_v49, 16  ;;  %v1072_v6 = vrot.slane %v1070_v19, 3 }
  0xb3   : > { %v880_v39 = vsel %vm848_vm11, %v3004_v51, 0.0  ;;  %v749_v27 = vpop.permute.xlu0 %748  ;;  %v1075_v55 = vrot.slane %v1073_v37, 4  ;;  %v3950_v25 = vor.u32 %v1084_v1, %v1081_v0  ;;  %v2980_v51 = vunpack.c.h.bf16 %v3875_v31 }
  0xb4   : > { %v3897_v48 = vpack.c.bf16 %v880_v39, %v879_v11  ;;  %v3899_v35 = vpack.c.bf16 %v881_v62, %v880_v39  ;;  %vm835_vm7 = vcmp.eq.s32.totalorder %v749_v27, 1  ;;  %v1063_v13 = vrot.slane %v1061_v30, 3 }
  0xb5   : > { %v867_v52 = vsel %vm835_vm7, %v2979_v33, 0.0  ;;  %v1066_v62 = vrot.slane %v1064_v44, 4  ;;  %v1264_v11 = vshll.u32 %v3833_v38, 16  ;;  %v1076_v22 = vor.u32 %v1075_v55, %v1072_v6 }
  0xb6   : > { %4764 = vst [vmem:[#allocation6_spill] sm:$0xff] %v3899_v35  ;;  %v3911_v59 = vpack.c.bf16 %v867_v52, %v3901_v50  ;;  %v2995_v33 = vunpack.c.l.bf16 %v3773_v17 }
  0xb7   : > { %v3943_v20 = vor.u32 %v1066_v62, %v1063_v13  ;;  %v1266_v56 = vrot.slane %v1264_v11, 1  ;;  %v3968_v31 = vsel %vm1033_vm9, %v1076_v22, %v3950_v25 }
  0xb8   : > { %2853 = vmatmul.msk.bf16.gmra.mxu0 %vm923_vm12, %v3911_v59  ;;  %2860 = vmatmul.msk.bf16.gmra.mxu2 %vm923_vm12, %v3899_v35  ;;  %v1268_v15 = vshll.u32 %v3911_v59, 16  ;;  %v1272_v27 = vshrl.u32 %v3911_v59, 16  ;;  %v2954_v59 = vld [vmem:[%s4675_s1 + $0x10] sm:$0x3] }
  0xb9   : > { %v809_v14 = vpop.permute.xlu1 %808  ;;  %v3963_v39 = vsel %vm1033_vm9, %v3943_v20, %v1076_v22  ;;  %v2272_v0 = vsel %vm960_vm1, %v2954_v59, 0  ;;  %v2971_v22 = vunpack.c.l.bf16 %v3811_v47 }
  0xba   : > { %vm855_vm2 = vcmp.eq.s32.totalorder %v809_v14, 1  ;;  %v1270_v14 = vrot.slane %v1268_v15, 1  ;;  %v1486_v1 = vrot.slane %v1272_v27, 3  ;;  %2281 = vmatpush.bf16.msra.mxu0 %v2272_v0  ;;  %v1487_v18 = vrot.slane %v1268_v15, 4 }
  0xbb   : > { %v806_v3 = vpop.permute.xlu0 %805  ;;  %v3938_v16 = vsel %vm855_vm2, %v3019_v60, 0.0  ;;  %v1262_v60 = vshrl.u32 %v3833_v38, 16 }
  0xbc   : > { %vm854_vm10 = vcmp.eq.s32.totalorder %v806_v3, 1 }
  0xbd   : > { %v886_v41 = vsel %vm854_vm10, %v3016_v23, 0.0  ;;  %v1267_v55 = vor.u32 %v1266_v56, %v1262_v60 }
  0xbe   : > { %v3948_v24 = vpack.c.bf16 %v886_v41, %v3849_v63  ;;  %v3954_v2 = vpack.c.bf16 %v3938_v16, %v886_v41 }
  0xbf   : > { %v1271_v11 = vsel %vm1261_vm13, %v1267_v55, %v1270_v14 }
  0xc0   : > { %4765 = vst [vmem:[#allocation7_spill] sm:$0xff] %v3954_v2  ;;  %2863 = vmatmul.msk.bf16.gmra.mxu3 %vm923_vm12, %v3954_v2 }
  0xc1   : > { %v752_v63 = vpop.permute.xlu1 %751 }
  0xc2   : > { %vm836_vm4 = vcmp.eq.s32.totalorder %v752_v63, 1 }
  0xc3   : > { %v868_v13 = vsel %vm836_vm4, %v2980_v51, 0.0  ;;  %v773_v62 = vpop.permute.xlu0 %772 }
  0xc4   : > { %v3971_v23 = vpack.c.bf16 %v868_v13, %v867_v52  ;;  %v3974_v17 = vpack.c.bf16 %v3877_v26, %v868_v13  ;;  %vm843_vm8 = vcmp.eq.s32.totalorder %v773_v62, 1  ;;  %v3020_v52 = vunpack.c.h.bf16 %v3906_v53 }
  0xc5   : > { %v875_v6 = vsel %vm843_vm8, %v2995_v33, 0.0 }
  0xc6   : > { %v1055_v38 = vshll.u32 %v3971_v23, 16  ;;  %v1275_v3 = vshll.u32 %v3974_v17, 16  ;;  %v1279_v26 = vshrl.u32 %v3974_v17, 16  ;;  %v3985_v8 = vpack.c.bf16 %v3792_v34, %v875_v6 }
  0xc7   : > { %v3988_v54 = vpack.c.bf16 %v875_v6, %v3886_v32  ;;  %v1052_v41 = vshrl.u32 %v3971_v23, 16  ;;  %v896_v34 = vpack.c.bf16 %v3901_v50, %v3821_v61  ;;  %v1488_v50 = vor.u32 %v1487_v18, %v1486_v1 }
  0xc8   : > { %v1490_v21 = vrot.slane %v1275_v3, 4  ;;  %v1808_v42 = vrot.slane %v1055_v38, 1  ;;  %2854 = vmatmul.msk.bf16.gmra.mxu0 %vm923_vm12, %v3974_v17  ;;  %2877 = vmatmul.msk.bf16.vlgmr.msrb.gmra.mxu2 %vm923_vm12, %v1271_v11  ;;  %v1489_v32 = vrot.slane %v1279_v26, 3  ;;  %v4705_v62 = vshrl.u32 %v3985_v8, 16 }
  0xc9   : > { %2857 = vmatmul.msk.bf16.gmra.mxu1 %vm923_vm12, %v3988_v54  ;;  %v812_v53 = vpop.permute.xlu1 %811  ;;  %v1043_v63 = vshrl.u32 %v896_v34, 16  ;;  %v1046_v33 = vshll.u32 %v896_v34, 16  ;;  %v4706_v59 = vshll.u32 %v3985_v8, 16  ;;  %v1277_v1 = vrot.slane %v1275_v3, 1 }
  0xca   : > { %v4006_v15 = vor.u32 %v1808_v42, %v1052_v41  ;;  %vm856_vm1 = vcmp.eq.s32.totalorder %v812_v53, 1  ;;  %v1491_v56 = vor.u32 %v1490_v21, %v1489_v32  ;;  %v1090_v18 = vrot.slane %v4705_v62, 3 }
  0xcb   : > { %v4008_v51 = vsel %vm856_vm1, %v3020_v52, 0.0  ;;  %v737_v9 = vpop.permute.xlu0 %736  ;;  %v1045_v6 = vrot.slane %v1043_v63, 3  ;;  %v1048_v55 = vrot.slane %v1046_v33, 4  ;;  %v1093_v42 = vrot.slane %v4706_v59, 4 }
  0xcc   : > { %v4012_v61 = vpack.c.bf16 %v4008_v51, %v3938_v16  ;;  %vm831_vm14 = vcmp.eq.s32.totalorder %v737_v9, 1  ;;  %v1492_v47 = vsel %vm1033_vm9, %v1488_v50, %v1491_v56  ;;  %v1274_v32 = vor.u32 %v1272_v27, %v1270_v14 }
  0xcd   : > { %v863_v60 = vsel %vm831_vm14, %v2971_v22, 0.0  ;;  %v4704_v53 = vshrl.u32 %v3732_v57, 16  ;;  %v4708_v22 = vshrl.u32 %v3897_v48, 16  ;;  %v1282_v3 = vshll.u32 %v3732_v57, 16 }
  0xce   : > { %v895_v13 = vpack.c.bf16 %v3829_v46, %v863_v60  ;;  %v1049_v46 = vor.u32 %v1048_v55, %v1045_v6  ;;  %v1278_v50 = vsel %vm1261_vm13, %v1274_v32, %v1277_v1  ;;  %v4031_v63 = vor.u32 %v1093_v42, %v1090_v18 }
  0xcf   : > { %v1109_v33 = vshll.u32 %v3897_v48, 16  ;;  %v4707_v27 = vshrl.u32 %v3851_v4, 16  ;;  %v1127_v14 = vshll.u32 %v3851_v4, 16  ;;  %v1493_v60 = vrot.slane %v4704_v53, 3 }
  0xd0   : > { %v1035_v0 = vshrl.u32 %v895_v13, 16  ;;  %v1038_v52 = vshll.u32 %v895_v13, 16  ;;  %2890 = vmatmul.msk.bf16.vlgmr.msrb.gmra.mxu3 %vm923_vm12, %v1492_v47  ;;  %v1494_v47 = vrot.slane %v1282_v3, 4  ;;  %v1115_v13 = vshrl.u32 %v3842_v58, 16 }
  0xd1   : > { %v1118_v6 = vshll.u32 %v3842_v58, 16  ;;  %v1108_v55 = vrot.slane %v4708_v22, 3  ;;  %v1129_v18 = vrot.slane %v1127_v14, 4  ;;  %v1054_v53 = vrot.slane %v1052_v41, 3 }
  0xd2   : > { %v1037_v11 = vrot.slane %v1035_v0, 3  ;;  %v1040_v21 = vrot.slane %v1038_v52, 4  ;;  %v4046_v0 = vsel %vm1033_vm9, %v3950_v25, %v4031_v63  ;;  %v907_v52 = vpack.c.bf16 %v3938_v16, %v3938_v16 }
  0xd3   : > { %v1495_v42 = vor.u32 %v1494_v47, %v1493_v60  ;;  %v1057_v16 = vrot.slane %v1055_v38, 4  ;;  %v1133_v59 = vshrl.u32 %v3948_v24, 16  ;;  %v1136_v60 = vshll.u32 %v3948_v24, 16 }
  0xd4   : > { %v1041_v34 = vor.u32 %v1040_v21, %v1037_v11  ;;  %v1111_v11 = vrot.slane %v1109_v33, 4  ;;  %v1126_v21 = vrot.slane %v4707_v27, 3  ;;  %v1142_v62 = vshrl.u32 %v907_v52, 16 }
  0xd5   : > { %v1496_v25 = vsel %vm1033_vm9, %v1491_v56, %v1495_v42  ;;  %v1145_v47 = vshll.u32 %v907_v52, 16  ;;  %v1281_v56 = vor.u32 %v1279_v26, %v1277_v1  ;;  %v1058_v27 = vor.u32 %v1057_v16, %v1054_v53 }
  0xd6   : > { %v1050_v9 = vsel %vm1033_vm9, %v1041_v34, %v1049_v46  ;;  %v4054_v34 = vrot.slane %v1064_v44, 1  ;;  %v4056_v32 = vor.u32 %v1111_v11, %v1108_v55  ;;  %v1289_v55 = vshll.u32 %v3879_v28, 16 }
  0xd7   : > { %v1293_v11 = vshrl.u32 %v3879_v28, 16  ;;  %v1130_v38 = vor.u32 %v1129_v18, %v1126_v21  ;;  %v1813_v52 = vrot.slane %v1073_v37, 1  ;;  %v1135_v17 = vrot.slane %v1133_v59, 3 }
  0xd8   : > { %2878 = vmatmul.msk.bf16.gmra.mxu2 %vm923_vm12, %v1278_v50  ;;  %2903 = vmatmul.msk.bf16.vlgmr.msrb.gmra.mxu0 %vm923_vm12, %v3971_v23  ;;  %v1120_v50 = vrot.slane %v1118_v6, 4  ;;  %v1812_v41 = vor.u32 %v4054_v34, %v1061_v30  ;;  %v1138_v26 = vrot.slane %v1136_v60, 4  ;;  %v1147_v22 = vrot.slane %v1145_v47, 4 }
  0xd9   : > { %2864 = vmatmul.msk.bf16.vlgmr.msrb.gmra.mxu1 %vm923_vm12, %v1050_v9  ;;  %v1117_v9 = vrot.slane %v1115_v13, 3  ;;  %v1815_v30 = vor.u32 %v1813_v52, %v1070_v19  ;;  %v4101_v19 = vrot.slane %v1109_v33, 1 }
  0xda   : > { %v4085_v21 = vsel %vm1261_vm13, %v1812_v41, %v1813_v52  ;;  %v4104_v16 = vor.u32 %v1138_v26, %v1135_v17  ;;  %v1834_v17 = vrot.slane %v1136_v60, 1  ;;  %v815_v26 = vpop.permute.xlu2 %814  ;;  %v4777_v60 = vshrl.u32 %v3985_v8, 16 }
  0xdb   : > { %v1121_v44 = vor.u32 %v1120_v50, %v1117_v9  ;;  %v1816_v9 = vrot.slane %v1082_v10, 1  ;;  %v1144_v50 = vrot.slane %v1142_v62, 3  ;;  %v1497_v10 = vrot.slane %v1293_v11, 3  ;;  %4767 = vst [vmem:[#allocation9_spill] sm:$0xff] %v4101_v19 }
  0xdc   : > { %v1498_v62 = vrot.slane %v1289_v55, 4  ;;  %4768 = vst [vmem:[#allocation10_spill] sm:$0xff] %v4104_v16  ;;  %v4111_v41 = vsel %vm1033_vm9, %v1130_v38, %v4104_v16  ;;  %vm857_vm5 = vcmp.eq.s32.totalorder %v815_v26, 1 }
  0xdd   : > { %v4072_v23 = vsel %vm1033_vm9, %v4056_v32, %v1121_v44  ;;  %v4082_v1 = vsel %vm1033_vm9, %v1121_v44, %v1130_v38  ;;  %v1818_v53 = vor.u32 %v1816_v9, %v1079_v45  ;;  %v4099_v18 = vsel %vm1261_vm13, %v1815_v30, %v1816_v9  ;;  %v3106_v9 = vld [vmem:[%s3701_s26 + $0x70] sm:$0xff]  }
  0xde   : > { %4766 = vst [vmem:[#allocation8_spill] sm:$0xff] %v4072_v23  ;;  %v1828_v45 = vrot.slane %v1118_v6, 1  ;;  %v1831_v44 = vrot.slane %v1127_v14, 1  ;;  %v1148_v47 = vor.u32 %v1147_v22, %v1144_v50  ;;  %v1499_v52 = vor.u32 %v1498_v62, %v1497_v10 }
  0xdf   : > { %v4772_v14 = vshrl.u32 %v3851_v4, 16  ;;  %v4773_v38 = vshll.u32 %v3985_v8, 16  ;;  %v3023_v10 = vunpack.c.l.bf16 %v3106_v9 }
  0xe0   : > { %2891 = vmatmul.msk.bf16.gmra.mxu3 %vm923_vm12, %v1496_v25  ;;  %v1284_v25 = vrot.slane %v1282_v3, 1  ;;  %v1059_v3 = vsel %vm1033_vm9, %v1049_v46, %v1058_v27  ;;  %v4769_v46 = vshrl.u32 %v3897_v48, 16  ;;  %v4115_v33 = vsel %vm1033_vm9, %v4104_v16, %v1148_v47 }
  0xe1   : > { %v1833_v50 = vor.u32 %v1831_v44, %v4772_v14  ;;  %v1500_v62 = vsel %vm1033_vm9, %v1495_v42, %v1499_v52  ;;  %v4145_v47 = vsel %vm1261_vm13, %v4006_v15, %v4054_v34  ;;  %v818_v42 = vpop.permute.xlu0 %817  ;;  %v4709_v14 = vshll.u32 %v3954_v2, 16 }
  0xe2   : > { %v1285_v37 = vsel %vm1261_vm13, %v1281_v56, %v1284_v25  ;;  %v1827_v56 = vor.u32 %v4101_v19, %v4769_v46  ;;  %v821_v46 = vpop.permute.xlu1 %820  ;;  %vm858_vm6 = vcmp.eq.s32.totalorder %v818_v42, 1 }
  0xe3   : > { %v4129_v30 = vsel %vm1261_vm13, %v1833_v50, %v1834_v17  ;;  %v4780_v50 = vshrl.u32 %v3732_v57, 16  ;;  %vm859_vm15 = vcmp.eq.s32.totalorder %v821_v46, 1 }
  0xe4   : > { %v4118_v6 = vsel %vm1261_vm13, %v1827_v56, %v1828_v45  ;;  %4774 = vst [vmem:[#allocation13_spill] sm:$0xff] %v4129_v30  ;;  %v1296_v56 = vshll.u32 %v3988_v54, 16 }
  0xe5   : > { %4770 = vst [vmem:[#allocation11_spill] sm:$0xff] %v4118_v6  ;;  %v1288_v15 = vor.u32 %v4780_v50, %v1284_v25 }
  0xe8   : > { %2879 = vmatmul.msk.bf16.gmra.mxu2 %vm923_vm12, %v1285_v37  ;;  %2904 = vmatmul.msk.bf16.gmra.mxu0 %vm923_vm12, %v3883_v49  ;;  %v1830_v49 = vor.u32 %v1828_v45, %v1115_v13  ;;  %v1819_v13 = vrot.slane %v4773_v38, 1  ;;  %v4131_v37 = vor.u32 %v1834_v17, %v1133_v59  ;;  %v4147_v59 = vsel %vm857_vm5, %v3023_v10, 0.0 }
  0xe9   : > { %2865 = vmatmul.msk.bf16.gmra.mxu1 %vm923_vm12, %v1059_v3  ;;  %v3024_v17 = vunpack.c.h.bf16 %v3106_v9  ;;  %v1068_v38 = vsel %vm1033_vm9, %v1058_v27, %v3943_v20  ;;  %v1502_v10 = vrot.slane %v1296_v56, 4  ;;  %v4175_v9 = vrot.slane %v4709_v14, 1 }
  0xea   : > { %v4122_v22 = vsel %vm1261_vm13, %v1830_v49, %v1831_v44  ;;  %4775 = vst [vmem:[#allocation14_spill] sm:$0xff] %v4131_v37  ;;  %v4136_v3 = vsel %vm1261_vm13, %v1818_v53, %v1819_v13  ;;  %v4140_v45 = vor.u32 %v1819_v13, %v4777_v60  ;;  %v1291_v44 = vrot.slane %v1289_v55, 1  ;;  %v4152_v53 = vld [vmem:[%s3701_s26 + $0x78] sm:$0xff]  }
  0xeb   : > { %4771 = vst [vmem:[#allocation12_spill] sm:$0xff] %v4122_v22  ;;  %v1300_v49 = vshrl.u32 %v3988_v54, 16  ;;  %v4157_v55 = vpack.c.bf16 %v4147_v59, %v4008_v51  ;;  %v3027_v34 = vunpack.c.l.bf16 %v4152_v53  ;;  %v4179_v60 = vsel %vm858_vm6, %v3024_v17, 0.0 }
  0xec   : > { %4776 = vst [vmem:[#allocation15_spill] sm:$0xff] %v4136_v3  ;;  %v4163_v26 = vsel %vm1261_vm13, %v1288_v15, %v1291_v44  ;;  %v4711_v20 = vshrl.u32 %v3954_v2, 16 }
  0xed   : > { %4778 = vst [vmem:[#allocation16_spill] sm:$0xff] %v4140_v45  ;;  %v1501_v13 = vrot.slane %v1300_v49, 3  ;;  %v4710_v25 = vshll.u32 %v4157_v55, 16  ;;  %v4712_v46 = vshrl.u32 %v4157_v55, 16  ;;  %v1335_v45 = vshrl.u32 %v3854_v7, 16 }
  0xee   : > { %4779 = vst [vmem:[#allocation17_spill] sm:$0xff] %v4152_v53  ;;  %v4190_v42 = vor.u32 %v4711_v20, %v4175_v9  ;;  %v1307_v20 = vshrl.u32 %v3800_v43, 16 }
  0xef   : > { %v1503_v27 = vor.u32 %v1502_v10, %v1501_v13  ;;  %v2237_v50 = vrot.slane %v4710_v25, 1  ;;  %v1298_v13 = vrot.slane %v1296_v56, 1  ;;  %v1295_v10 = vor.u32 %v1293_v11, %v1291_v44 }
  0xf0   : > { %2892 = vmatmul.msk.bf16.gmra.mxu3 %vm923_vm12, %v1500_v62  ;;  %v4177_v62 = vsel %vm859_vm15, %v3027_v34, 0.0  ;;  %v1303_v25 = vshll.u32 %v3800_v43, 16  ;;  %v1505_v11 = vrot.slane %v1307_v20, 3 }
  0xf1   : > { %4781 = vst [vmem:[#allocation18_spill] sm:$0xff] %v4177_v62  ;;  %v4196_v15 = vsel %vm1261_vm13, %v4190_v42, %v2237_v50  ;;  %v2239_v34 = vor.u32 %v2237_v50, %v4712_v46  ;;  %v1504_v17 = vsel %vm1033_vm9, %v1499_v52, %v1503_v27  ;;  %v4210_v37 = vsel %vm1261_vm13, %v1295_v10, %v1298_v13 }
  0xf2   : > { %4783 = vst [vmem:[#allocation20_spill] sm:$0xff] %v4196_v15  ;;  %v1506_v44 = vrot.slane %v1303_v25, 4  ;;  %v1305_v10 = vrot.slane %v1303_v25, 1  ;;  %v4722_v15 = vshll.u32 %v3797_v40, 16 }
  0xf4   : > { %v1507_v56 = vor.u32 %v1506_v44, %v1505_v11  ;;  %v1102_v16 = vrot.slane %v4722_v15, 4 }
  0xf6   : > { %v1508_v50 = vsel %vm1033_vm9, %v1503_v27, %v1507_v56 }
  0xf8   : > { %2880 = vmatmul.msk.bf16.gmra.mxu2 %vm923_vm12, %v4163_v26  ;;  %2905 = vmatmul.msk.bf16.gmra.mxu0 %vm923_vm12, %v3872_v5  ;;  %v4185_v5 = vpack.c.bf16 %v4177_v62, %v4179_v60 }
  0xf9   : > { %2866 = vmatmul.msk.bf16.gmra.mxu1 %vm923_vm12, %v1068_v38 }
  0xfa   : > { %4782 = vst [vmem:[#allocation19_spill] sm:$0xff] %v4185_v5  ;;  %v2240_v38 = vshll.u32 %v4185_v5, 16  ;;  %v1321_v5 = vshrl.u32 %v3899_v35, 16 }
  0xfc   : > { %v4205_v14 = vrot.slane %v2240_v38, 1  ;;  %v1314_v38 = vshrl.u32 %v3859_v12, 16 }
  0xfe   : > { %4784 = vst [vmem:[#allocation21_spill] sm:$0xff] %v4205_v14  ;;  %v4214_v52 = vsel %vm1261_vm13, %v2239_v34, %v4205_v14  ;;  %v1310_v34 = vshll.u32 %v3859_v12, 16  ;;  %v1317_v14 = vshll.u32 %v3899_v35, 16 }
  0xff   : > { %4785 = vst [vmem:[#allocation22_spill] sm:$0xff] %v4214_v52  ;;  %v4241_v44 = vpop.f32.mrf.mxu1  ;;  %v1309_v52 = vor.u32 %v1307_v20, %v1305_v10 }
 0x100   : > { %2893 = vmatmul.msk.bf16.gmra.mxu3 %vm923_vm12, %v1504_v17  ;;  %v1302_v17 = vor.u32 %v1300_v49, %v1298_v13  ;;  %v1510_v11 = vrot.slane %v1310_v34, 4 }
 0x102   : > { %v4227_v46 = vsel %vm1261_vm13, %v1302_v17, %v1305_v10  ;;  %v4721_v10 = vshrl.u32 %v3797_v40, 16 }
 0x104   : > { %v1099_v22 = vrot.slane %v4721_v10, 3 }
 0x107   : > { %v4262_v30 = vpop.f32.mrf.mxu1 }
 0x108   : > { %2881 = vmatmul.msk.bf16.gmra.mxu2 %vm923_vm12, %v4210_v37  ;;  %2906 = vmatmul.msk.bf16.gmra.mxu0 %vm923_vm12, %v3893_v36  ;;  %v1509_v36 = vrot.slane %v1314_v38, 3 }
 0x109   : > { %2867 = vmatmul.msk.bf16.gmra.mxu1 %vm923_vm12, %v3963_v39 }
 0x10a   : > { %v1511_v27 = vor.u32 %v1510_v11, %v1509_v36 }
 0x10c   : > { %v1512_v25 = vsel %vm1033_vm9, %v1507_v56, %v1511_v27  ;;  %v1513_v56 = vrot.slane %v1321_v5, 3 }
 0x110   : > { %2894 = vmatmul.msk.bf16.gmra.mxu3 %vm923_vm12, %v1508_v50 }
 0x118   : > { %2882 = vmatmul.msk.bf16.gmra.mxu2 %vm923_vm12, %v4227_v46  ;;  %2907 = vmatmul.msk.bf16.gmra.mxu0 %vm923_vm12, %v3985_v8  ;;  %v1312_v8 = vrot.slane %v1310_v34, 1 }
 0x119   : > { %2868 = vmatmul.msk.bf16.gmra.mxu1 %vm923_vm12, %v3968_v31  ;;  %v4237_v13 = vpop.f32.mrf.mxu3 }
 0x11a   : > { %4786 = vst [vmem:[#allocation23_spill] sm:$0xff] %v4237_v13  ;;  %v4250_v36 = vsel %vm1261_vm13, %v1309_v52, %v1312_v8  ;;  %v1316_v19 = vor.u32 %v1314_v38, %v1312_v8  ;;  %v1103_v13 = vor.u32 %v1102_v16, %v1099_v22 }
 0x11b   : > { %v4235_v49 = vpop.f32.mrf.mxu2  ;;  %4787 = vst [vmem:[#allocation24_spill] sm:$0xff] %v4250_v36 }
 0x11c   : > { %v4289_v10 = vsel %vm1033_vm9, %v4031_v63, %v1103_v13 }
 0x11d   : > { %v4243_v50 = vpop.f32.mrf.mxu0 }
 0x120   : > { %2895 = vmatmul.msk.bf16.gmra.mxu3 %vm923_vm12, %v1512_v25  ;;  %v1514_v25 = vrot.slane %v1317_v14, 4 }
 0x121   : > { %v4252_v11 = vpop.f32.mrf.mxu3 }
 0x122   : > { %4788 = vst [vmem:[#allocation25_spill] sm:$0xff] %v4252_v11  ;;  %v1515_v20 = vor.u32 %v1514_v25, %v1513_v56  ;;  %v1319_v56 = vrot.slane %v1317_v14, 1 }
 0x123   : > { %v4245_v17 = vpop.f32.mrf.mxu2 }
 0x124   : > { %v1516_v62 = vsel %vm1033_vm9, %v1511_v27, %v1515_v20  ;;  %v1324_v27 = vshll.u32 %v3784_v29, 16 }
 0x125   : > { %v4264_v52 = vpop.f32.mrf.mxu0 }
 0x126   : > { %v1518_v22 = vrot.slane %v1324_v27, 4 }
 0x128   : > { %2883 = vmatmul.msk.bf16.gmra.mxu2 %vm923_vm12, %v4250_v36  ;;  %2908 = vmatmul.msk.bf16.gmra.mxu0 %vm923_vm12, %v3797_v40 }
 0x129   : > { %2869 = vmatmul.msk.bf16.gmra.mxu1 %vm923_vm12, %v4046_v0  ;;  %v4270_v53 = vpop.f32.mrf.mxu3 }
 0x12a   : > { %4789 = vst [vmem:[#allocation26_spill] sm:$0xff] %v4270_v53  ;;  %v4285_v53 = vsel %vm1261_vm13, %v1316_v19, %v1319_v56 }
 0x12b   : > { %v4260_v34 = vpop.f32.mrf.mxu2  ;;  %4791 = vst [vmem:[#allocation28_spill] sm:$0xff] %v4285_v53 }
 0x12d   : > { %v4278_v25 = vpop.f32.mrf.mxu1 }
 0x130   : > { %2896 = vmatmul.msk.bf16.gmra.mxu3 %vm923_vm12, %v1516_v62  ;;  %v1328_v62 = vshrl.u32 %v3784_v29, 16 }
 0x131   : > { %v4299_v38 = vpop.f32.mrf.mxu3 }
 0x132   : > { %v1517_v16 = vrot.slane %v1328_v62, 3  ;;  %4793 = vst [vmem:[#allocation30_spill] sm:$0xff] %v4299_v38  ;;  %v1326_v38 = vrot.slane %v1324_v27, 1 }
 0x133   : > { %v4276_v6 = vpop.f32.mrf.mxu2 }
 0x134   : > { %4790 = vst [vmem:[#allocation27_spill] sm:$0xff] %v4276_v6  ;;  %v1519_v63 = vor.u32 %v1518_v22, %v1517_v16 }
 0x135   : > { %v4280_v11 = vpop.f32.mrf.mxu0  ;;  %v4303_v8 = vpop.f32.mrf.mxu1 }
 0x136   : > { %v1520_v15 = vsel %vm1033_vm9, %v1515_v20, %v1519_v63 }
 0x138   : > { %2884 = vmatmul.msk.bf16.gmra.mxu2 %vm923_vm12, %v4285_v53  ;;  %2909 = vmatmul.msk.bf16.gmra.mxu0 %vm923_vm12, %v3897_v48  ;;  %v1323_v48 = vor.u32 %v1321_v5, %v1319_v56  ;;  %v1331_v53 = vshll.u32 %v3854_v7, 16  ;;  %v1521_v5 = vrot.slane %v1335_v45, 3 }
 0x139   : > { %2870 = vmatmul.msk.bf16.gmra.mxu1 %vm923_vm12, %v4289_v10 }
 0x13a   : > { %v4318_v16 = vsel %vm1261_vm13, %v1323_v48, %v1326_v38  ;;  %v1522_v20 = vrot.slane %v1331_v53, 4  ;;  %v1333_v7 = vrot.slane %v1331_v53, 1  ;;  %v4800_v53 = vshll.u32 %v3954_v2, 16 }
 0x13b   : > { %v4297_v14 = vpop.f32.mrf.mxu2  ;;  %4796 = vst [vmem:[#allocation33_spill] sm:$0xff] %v4318_v16 }
 0x13c   : > { %4792 = vst [vmem:[#allocation29_spill] sm:$0xff] %v4297_v14  ;;  %v1523_v22 = vor.u32 %v1522_v20, %v1521_v5  ;;  %v1526_v20 = vrot.slane %v4800_v53, 4 }
 0x13d   : > { %v4301_v19 = vpop.f32.mrf.mxu0 }
 0x140   : > { %2897 = vmatmul.msk.bf16.gmra.mxu3 %vm923_vm12, %v1520_v15  ;;  %v4322_v15 = vsel %vm1033_vm9, %v1103_v13, %v4056_v32  ;;  %v1524_v32 = vsel %vm1033_vm9, %v1519_v63, %v1523_v22  ;;  %v4799_v63 = vshrl.u32 %v3954_v2, 16 }
 0x142   : > { %v1525_v5 = vrot.slane %v4799_v63, 3 }
 0x143   : > { %v4307_v29 = vpop.f32.mrf.mxu2  ;;  %v4309_v35 = vpop.f32.mrf.mxu3 }
 0x144   : > { %4794 = vst [vmem:[#allocation31_spill] sm:$0xff] %v4307_v29  ;;  %v1330_v29 = vor.u32 %v1328_v62, %v1326_v38  ;;  %v1527_v62 = vor.u32 %v1526_v20, %v1525_v5 }
 0x145   : > { %4795 = vst [vmem:[#allocation32_spill] sm:$0xff] %v4309_v35  ;;  %v4313_v14 = vpop.f32.mrf.mxu0 }
 0x146   : > { %v4315_v40 = vpop.f32.mrf.mxu1  ;;  %v4340_v3 = vsel %vm1261_vm13, %v1330_v29, %v1333_v7  ;;  %v1528_v36 = vsel %vm1033_vm9, %v1523_v22, %v1527_v62 }
 0x147   : > { %4798 = vst [vmem:[#allocation35_spill] sm:$0xff] %v4340_v3 }
 0x148   : > { %2885 = vmatmul.msk.bf16.gmra.mxu2 %vm923_vm12, %v4318_v16  ;;  %2910 = vmatmul.msk.bf16.gmra.mxu0 %vm923_vm12, %v3842_v58 }
 0x149   : > { %2871 = vmatmul.msk.bf16.gmra.mxu1 %vm923_vm12, %v4322_v15 }
 0x14b   : > { %v1398_v56 = vpop.f32.mrf.mxu2  ;;  %v4330_v27 = vpop.f32.mrf.mxu3 }
 0x14c   : > { %4797 = vst [vmem:[#allocation34_spill] sm:$0xff] %v4330_v27 }
 0x14d   : > { %v4332_v48 = vpop.f32.mrf.mxu0 }
 0x14e   : > { %v4334_v35 = vpop.f32.mrf.mxu1 }
 0x150   : > { %2898 = vmatmul.msk.bf16.gmra.mxu3 %vm923_vm12, %v1524_v32 }
 0x153   : > { %v1400_v13 = vpop.f32.mrf.mxu2  ;;  %v1595_v58 = vpop.f32.mrf.mxu3 }
 0x155   : > { %v1721_v16 = vpop.f32.mrf.mxu0 }
 0x156   : > { %v1198_v12 = vpop.f32.mrf.mxu1 }
 0x157   : > { %v1199_v6 = vadd.f32 %v1198_v12, %v4243_v50 }
 0x158   : > { %2886 = vmatmul.msk.bf16.gmra.mxu2 %vm923_vm12, %v4340_v3  ;;  %2911 = vmatmul.msk.bf16.gmra.mxu0 %vm923_vm12, %v3851_v4 }
 0x159   : > { %v1458_v32 = vadd.f32 %v1398_v56, %v1199_v6  ;;  %2872 = vmatmul.msk.bf16.gmra.mxu1 %vm923_vm12, %v4072_v23 }
 0x15b   : > { %v1655_v12 = vadd.f32 %v1595_v58, %v1458_v32  ;;  %v1403_v50 = vpop.f32.mrf.mxu2  ;;  %v1597_v29 = vpop.f32.mrf.mxu3  ;;  %v1337_v32 = vor.u32 %v1335_v45, %v1333_v7 }
 0x15d   : > { %v4352_v38 = vadd.f32 %v1721_v16, %v1655_v12  ;;  %v1723_v27 = vpop.f32.mrf.mxu0  ;;  %v4362_v5 = vsel %vm1261_vm13, %v1337_v32, %v4175_v9 }
 0x15e   : > { %v1200_v3 = vpop.f32.mrf.mxu1 }
 0x15f   : > { %v1201_v4 = vadd.f32 %v1200_v3, %v4264_v52  ;;  %v4801_v3 = vshrl.u32 %v4157_v55, 16  ;;  %v4802_v52 = vshll.u32 %v4157_v55, 16 }
 0x160   : > { %2899 = vmatmul.msk.bf16.gmra.mxu3 %vm923_vm12, %v1528_v36 }
 0x161   : > { %v1459_v63 = vadd.f32 %v1400_v13, %v1201_v4  ;;  %v1532_v36 = vrot.slane %v4801_v3, 3 }
 0x163   : > { %v1656_v53 = vadd.f32 %v1597_v29, %v1459_v63  ;;  %v1405_v6 = vpop.f32.mrf.mxu2  ;;  %v1600_v56 = vpop.f32.mrf.mxu3 }
 0x165   : > { %v4357_v2 = vadd.f32 %v1723_v27, %v1656_v53  ;;  %v1726_v58 = vpop.f32.mrf.mxu0  ;;  %v1535_v27 = vrot.slane %v4802_v52, 4 }
 0x166   : > { %v1203_v23 = vpop.f32.mrf.mxu1 }
 0x167   : > { %v1204_v16 = vadd.f32 %v1203_v23, %v4280_v11  ;;  %v1258_v23 = vpack.c.bf16 %v4008_v51, %v4008_v51  ;;  %v1536_v22 = vor.u32 %v1535_v27, %v1532_v36 }
 0x168   : > { %2887 = vmatmul.msk.bf16.gmra.mxu2 %vm923_vm12, %v4362_v5  ;;  %2912 = vmatmul.msk.bf16.gmra.mxu0 %vm923_vm12, %v3948_v24 }
 0x169   : > { %v1460_v7 = vadd.f32 %v1403_v50, %v1204_v16  ;;  %2873 = vmatmul.msk.bf16.gmra.mxu1 %vm923_vm12, %v4082_v1  ;;  %v1346_v12 = vshll.u32 %v1258_v23, 16  ;;  %v1483_v50 = vpack.c.bf16 %v4179_v60, %v4179_v60  ;;  %v1537_v4 = vsel %vm1033_vm9, %v1527_v62, %v1536_v22 }
 0x16b   : > { %v1657_v45 = vadd.f32 %v1600_v56, %v1460_v7  ;;  %v1408_v9 = vpop.f32.mrf.mxu2  ;;  %v1602_v11 = vpop.f32.mrf.mxu3  ;;  %v1348_v51 = vrot.slane %v1346_v12, 1  ;;  %v1539_v32 = vshrl.u32 %v1483_v50, 16  ;;  %v1542_v16 = vshll.u32 %v1483_v50, 16 }
 0x16d   : > { %v4376_v13 = vadd.f32 %v1726_v58, %v1657_v45  ;;  %v1728_v24 = vpop.f32.mrf.mxu0  ;;  %v1349_v27 = vsel %vm1261_vm13, %v4190_v42, %v1348_v51  ;;  %v1541_v7 = vrot.slane %v1539_v32, 3  ;;  %v1544_v62 = vrot.slane %v1542_v16, 4 }
 0x16e   : > { %v1205_v20 = vpop.f32.mrf.mxu1  ;;  %v4402_v32 = vpack.c.bf16 %v4179_v60, %v4147_v59 }
 0x16f   : > { %v1206_v29 = vadd.f32 %v1205_v20, %v4301_v19 }
 0x170   : > { %2900 = vmatmul.msk.bf16.gmra.mxu3 %vm923_vm12, %v1537_v4 }
 0x171   : > { %v1461_v63 = vadd.f32 %v1405_v6, %v1206_v29 }
 0x173   : > { %v1658_v53 = vadd.f32 %v1602_v11, %v1461_v63  ;;  %v1410_v56 = vpop.f32.mrf.mxu2  ;;  %v1605_v58 = vpop.f32.mrf.mxu3 }
 0x175   : > { %v4383_v3 = vadd.f32 %v1728_v24, %v1658_v53  ;;  %v1731_v36 = vpop.f32.mrf.mxu0  ;;  %v1545_v24 = vor.u32 %v1544_v62, %v1541_v7 }
 0x176   : > { %v1208_v52 = vpop.f32.mrf.mxu1 }
 0x177   : > { %v1209_v19 = vadd.f32 %v1208_v52, %v4313_v14  ;;  %v1546_v29 = vsel %vm1033_vm9, %v1536_v22, %v1545_v24 }
 0x178   : > { %2888 = vmatmul.msk.bf16.gmra.mxu2 %vm923_vm12, %v1349_v27  ;;  %2913 = vmatmul.msk.bf16.gmra.mxu0 %vm923_vm12, %v4012_v61 }
 0x179   : > { %v1462_v6 = vadd.f32 %v1408_v9, %v1209_v19  ;;  %2874 = vmatmul.msk.bf16.gmra.mxu1 %vm923_vm12, %v4111_v41 }
 0x17b   : > { %v1659_v23 = vadd.f32 %v1605_v58, %v1462_v6  ;;  %v1413_v45 = vpop.f32.mrf.mxu2  ;;  %v1607_v11 = vpop.f32.mrf.mxu3 }
 0x17d   : > { %v4393_v20 = vadd.f32 %v1731_v36, %v1659_v23  ;;  %v1733_v14 = vpop.f32.mrf.mxu0 }
 0x17e   : > { %v1210_v12 = vpop.f32.mrf.mxu1 }
 0x17f   : > { %v1211_v42 = vadd.f32 %v1210_v12, %v4332_v48 }
 0x180   : > { %2901 = vmatmul.msk.bf16.gmra.mxu3 %vm923_vm12, %v1546_v29 }
 0x181   : > { %v1463_v50 = vadd.f32 %v1410_v56, %v1211_v42 }
 0x183   : > { %v1660_v4 = vadd.f32 %v1607_v11, %v1463_v50  ;;  %v1415_v9 = vpop.f32.mrf.mxu2  ;;  %v1610_v63 = vpop.f32.mrf.mxu3 }
 0x185   : > { %v4398_v51 = vadd.f32 %v1733_v14, %v1660_v4  ;;  %v1736_v53 = vpop.f32.mrf.mxu0 }
 0x186   : > { %v1213_v16 = vpop.f32.mrf.mxu1 }
 0x187   : > { %v1214_v58 = vadd.f32 %v1213_v16, %v4241_v44 }
 0x188   : > { %2914 = vmatmul.msk.bf16.gmra.mxu0 %vm923_vm12, %v4402_v32  ;;  %2929 = vmatmul.msk.bf16.vlgmr.msra.gmra.mxu2 %vm923_vm12, %v3963_v39 }
 0x189   : > { %v1464_v48 = vadd.f32 %v1413_v45, %v1214_v58  ;;  %2875 = vmatmul.msk.bf16.gmra.mxu1 %vm923_vm12, %v4115_v33 }
 0x18b   : > { %v1661_v22 = vadd.f32 %v1610_v63, %v1464_v48  ;;  %v1418_v56 = vpop.f32.mrf.mxu2  ;;  %v1612_v36 = vpop.f32.mrf.mxu3 }
 0x18d   : > { %v4411_v52 = vadd.f32 %v1736_v53, %v1661_v22  ;;  %v1738_v59 = vpop.f32.mrf.mxu0 }
 0x18e   : > { %v1215_v60 = vpop.f32.mrf.mxu1 }
 0x18f   : > { %v1216_v19 = vadd.f32 %v1215_v60, %v4262_v30 }
 0x190   : > { %2942 = vmatmul.msk.bf16.vlgmr.msra.gmra.mxu3 %vm923_vm12, %v3732_v57 }
 0x191   : > { %v1465_v44 = vadd.f32 %v1415_v9, %v1216_v19 }
 0x193   : > { %v1662_v27 = vadd.f32 %v1612_v36, %v1465_v44  ;;  %v1420_v7 = vpop.f32.mrf.mxu2  ;;  %v1615_v39 = vpop.f32.mrf.mxu3 }
 0x195   : > { %v4416_v62 = vadd.f32 %v1738_v59, %v1662_v27  ;;  %v1741_v6 = vpop.f32.mrf.mxu0 }
 0x196   : > { %v1218_v33 = vpop.f32.mrf.mxu1 }
 0x197   : > { %v1219_v23 = vadd.f32 %v1218_v33, %v4278_v25 }
 0x198   : > { %2930 = vmatmul.msk.bf16.gmra.mxu2 %vm923_vm12, %v3968_v31  ;;  %2955 = vmatmul.msk.bf16.vlgmr.msra.gmra.mxu0 %vm923_vm12, %v4163_v26 }
 0x199   : > { %v1466_v30 = vadd.f32 %v1418_v56, %v1219_v23  ;;  %2916 = vmatmul.msk.bf16.vlgmr.msra.gmra.mxu1 %vm923_vm12, %v4145_v47 }
 0x19b   : > { %v1663_v57 = vadd.f32 %v1615_v39, %v1466_v30  ;;  %v1423_v45 = vpop.f32.mrf.mxu2  ;;  %v1617_v11 = vpop.f32.mrf.mxu3 }
 0x19d   : > { %v4425_v24 = vadd.f32 %v1741_v6, %v1663_v57  ;;  %v1743_v14 = vpop.f32.mrf.mxu0 }
 0x19e   : > { %v1220_v12 = vpop.f32.mrf.mxu1 }
 0x19f   : > { %v1221_v42 = vadd.f32 %v1220_v12, %v4303_v8 }
 0x1a0   : > { %2943 = vmatmul.msk.bf16.gmra.mxu3 %vm923_vm12, %v3879_v28 }
 0x1a1   : > { %v1467_v25 = vadd.f32 %v1420_v7, %v1221_v42 }
 0x1a3   : > { %v1664_v31 = vadd.f32 %v1617_v11, %v1467_v25  ;;  %v1425_v29 = vpop.f32.mrf.mxu2  ;;  %v1620_v26 = vpop.f32.mrf.mxu3  ;;  %v4804_v11 = vld [vmem:[#allocation15_spill] sm:$0xff] }
 0x1a5   : > { %v4430_v50 = vadd.f32 %v1743_v14, %v1664_v31  ;;  %v1746_v4 = vpop.f32.mrf.mxu0 }
 0x1a6   : > { %v1223_v47 = vpop.f32.mrf.mxu1 }
 0x1a7   : > { %v1224_v9 = vadd.f32 %v1223_v47, %v4315_v40 }
 0x1a8   : > { %2931 = vmatmul.msk.bf16.gmra.mxu2 %vm923_vm12, %v4046_v0  ;;  %2956 = vmatmul.msk.bf16.gmra.mxu0 %vm923_vm12, %v4210_v37 }
 0x1a9   : > { %v1468_v8 = vadd.f32 %v1423_v45, %v1224_v9  ;;  %2917 = vmatmul.msk.bf16.gmra.mxu1 %vm923_vm12, %v4085_v21  ;;  %v4803_v45 = vld [vmem:[#allocation24_spill] sm:$0xff] }
 0x1ab   : > { %v1665_v28 = vadd.f32 %v1620_v26, %v1468_v8  ;;  %v1428_v63 = vpop.f32.mrf.mxu2  ;;  %v1622_v53 = vpop.f32.mrf.mxu3 }
 0x1ad   : > { %v4439_v16 = vadd.f32 %v1746_v4, %v1665_v28  ;;  %v1748_v58 = vpop.f32.mrf.mxu0  ;;  %v4806_v4 = vld [vmem:[#allocation5_spill] sm:$0xff] }
 0x1ae   : > { %v1225_v48 = vpop.f32.mrf.mxu1 }
 0x1af   : > { %v1226_v22 = vadd.f32 %v1225_v48, %v4334_v35 }
 0x1b0   : > { %2944 = vmatmul.msk.bf16.gmra.mxu3 %vm923_vm12, %v3988_v54 }
 0x1b1   : > { %v1469_v40 = vadd.f32 %v1425_v29, %v1226_v22  ;;  %v4805_v29 = vld [vmem:[#allocation27_spill] sm:$0xff]  ;;  %v4809_v22 = vld [vmem:[#allocation29_spill] sm:$0xff] }
 0x1b3   : > { %v1666_v0 = vadd.f32 %v1622_v53, %v1469_v40  ;;  %v1430_v56 = vpop.f32.mrf.mxu2  ;;  %v1625_v37 = vpop.f32.mrf.mxu3  ;;  %v4807_v53 = vld [vmem:[#allocation3_spill] sm:$0xff] }
 0x1b5   : > { %v4444_v36 = vadd.f32 %v1748_v58, %v1666_v0  ;;  %v1751_v59 = vpop.f32.mrf.mxu0  ;;  %v4808_v58 = vshll.u32 %v4807_v53, 16  ;;  %v4810_v0 = vld [vmem:[#allocation16_spill] sm:$0xff] }
 0x1b6   : > { %v1228_v21 = vpop.f32.mrf.mxu1 }
 0x1b7   : > { %v1229_v60 = vadd.f32 %v1228_v21, %v4235_v49  ;;  %v1822_v48 = vrot.slane %v4808_v58, 1  ;;  %v4820_v58 = vld [vmem:[#allocation2_spill] sm:$0xff] }
 0x1b8   : > { %2932 = vmatmul.msk.bf16.gmra.mxu2 %vm923_vm12, %v4289_v10  ;;  %2957 = vmatmul.msk.bf16.gmra.mxu0 %vm923_vm12, %v4227_v46 }
 0x1b9   : > { %v1470_v35 = vadd.f32 %v1428_v63, %v1229_v60  ;;  %2918 = vmatmul.msk.bf16.gmra.mxu1 %vm923_vm12, %v4099_v18 }
 0x1bb   : > { %v1667_v54 = vadd.f32 %v1625_v37, %v1470_v35  ;;  %v1433_v19 = vpop.f32.mrf.mxu2  ;;  %v1627_v44 = vpop.f32.mrf.mxu3  ;;  %v4811_v37 = vld [vmem:[#allocation8_spill] sm:$0xff] }
 0x1bd   : > { %v4453_v27 = vadd.f32 %v1751_v59, %v1667_v54  ;;  %v1753_v7 = vpop.f32.mrf.mxu0  ;;  %v4812_v59 = vld [vmem:[#allocation28_spill] sm:$0xff] }
 0x1be   : > { %v1230_v39 = vpop.f32.mrf.mxu1 }
 0x1bf   : > { %v1231_v6 = vadd.f32 %v1230_v39, %v4245_v17  ;;  %v4813_v39 = vld [vmem:[#allocation31_spill] sm:$0xff] }
 0x1c0   : > { %2945 = vmatmul.msk.bf16.gmra.mxu3 %vm923_vm12, %v3800_v43 }
 0x1c1   : > { %v1471_v49 = vadd.f32 %v1430_v56, %v1231_v6  ;;  %v1823_v56 = vsel %vm1261_vm13, %v4810_v0, %v1822_v48 }
 0x1c3   : > { %v1668_v10 = vadd.f32 %v1627_v44, %v1471_v49  ;;  %v1435_v33 = vpop.f32.mrf.mxu2  ;;  %v1630_v46 = vpop.f32.mrf.mxu3 }
 0x1c5   : > { %v4458_v23 = vadd.f32 %v1753_v7, %v1668_v10  ;;  %v1756_v30 = vpop.f32.mrf.mxu0  ;;  %v4814_v10 = vld [vmem:[#allocation6_spill] sm:$0xff] }
 0x1c6   : > { %v1233_v18 = vpop.f32.mrf.mxu1 }
 0x1c7   : > { %v1234_v57 = vadd.f32 %v1233_v18, %v4260_v34 }
 0x1c8   : > { %2933 = vmatmul.msk.bf16.gmra.mxu2 %vm923_vm12, %v4322_v15  ;;  %2958 = vmatmul.msk.bf16.gmra.mxu0 %vm923_vm12, %v4803_v45 }
 0x1c9   : > { %v1472_v17 = vadd.f32 %v1433_v19, %v1234_v57  ;;  %2919 = vmatmul.msk.bf16.gmra.mxu1 %vm923_vm12, %v4804_v11 }
 0x1cb   : > { %v1669_v43 = vadd.f32 %v1630_v46, %v1472_v17  ;;  %v1438_v14 = vpop.f32.mrf.mxu2  ;;  %v1632_v12 = vpop.f32.mrf.mxu3  ;;  %v4815_v17 = vshrl.u32 %v4807_v53, 16 }
 0x1cd   : > { %v4467_v42 = vadd.f32 %v1756_v30, %v1669_v43  ;;  %v1758_v25 = vpop.f32.mrf.mxu0  ;;  %v1824_v11 = vor.u32 %v1822_v48, %v4815_v17  ;;  %v4816_v43 = vld [vmem:[#allocation23_spill] sm:$0xff]  ;;  %v4825_v17 = vld [vmem:[#allocation4_spill] sm:$0xff] }
 0x1ce   : > { %v1235_v31 = vpop.f32.mrf.mxu1 }
 0x1cf   : > { %v1236_v26 = vadd.f32 %v1235_v31, %v4805_v29  ;;  %v4818_v31 = vld [vmem:[#allocation33_spill] sm:$0xff] }
 0x1d0   : > { %2946 = vmatmul.msk.bf16.gmra.mxu3 %vm923_vm12, %v4806_v4 }
 0x1d1   : > { %v1473_v34 = vadd.f32 %v1435_v33, %v1236_v26 }
 0x1d3   : > { %v1670_v15 = vadd.f32 %v1632_v12, %v1473_v34  ;;  %v1440_v47 = vpop.f32.mrf.mxu2  ;;  %v1635_v9 = vpop.f32.mrf.mxu3  ;;  %v4817_v12 = vld [vmem:[#allocation9_spill] sm:$0xff] }
 0x1d5   : > { %v4472_v8 = vadd.f32 %v1758_v25, %v1670_v15  ;;  %v1761_v28 = vpop.f32.mrf.mxu0  ;;  %v1826_v25 = vsel %vm1261_vm13, %v1824_v11, %v4817_v12 }
 0x1d6   : > { %v1238_v63 = vpop.f32.mrf.mxu1 }
 0x1d7   : > { %v1239_v40 = vadd.f32 %v1238_v63, %v4809_v22 }
 0x1d8   : > { %2934 = vmatmul.msk.bf16.gmra.mxu2 %vm923_vm12, %v4811_v37  ;;  %2959 = vmatmul.msk.bf16.gmra.mxu0 %vm923_vm12, %v4812_v59  ;;  %v4821_v37 = vld [vmem:[#allocation26_spill] sm:$0xff] }
 0x1d9   : > { %v1474_v21 = vadd.f32 %v1438_v14, %v1239_v40  ;;  %2920 = vmatmul.msk.bf16.gmra.mxu1 %vm923_vm12, %v1823_v56 }
 0x1db   : > { %v1671_v60 = vadd.f32 %v1635_v9, %v1474_v21  ;;  %v1443_v35 = vpop.f32.mrf.mxu2  ;;  %v1637_v54 = vpop.f32.mrf.mxu3  ;;  %v4822_v21 = vld [vmem:[#allocation35_spill] sm:$0xff] }
 0x1dd   : > { %v4484_v19 = vadd.f32 %v1761_v28, %v1671_v60  ;;  %v1763_v44 = vpop.f32.mrf.mxu0  ;;  %v4819_v28 = vld [vmem:[#allocation25_spill] sm:$0xff] }
 0x1de   : > { %v1240_v7 = vpop.f32.mrf.mxu1 }
 0x1df   : > { %v1241_v6 = vadd.f32 %v1240_v7, %v4813_v39 }
 0x1e0   : > { %2947 = vmatmul.msk.bf16.gmra.mxu3 %vm923_vm12, %v4814_v10 }
 0x1e1   : > { %v1475_v49 = vadd.f32 %v1440_v47, %v1241_v6 }
 0x1e3   : > { %v1672_v33 = vadd.f32 %v1637_v54, %v1475_v49  ;;  %v1445_v46 = vpop.f32.mrf.mxu2  ;;  %v1640_v30 = vpop.f32.mrf.mxu3  ;;  %v1837_v54 = vshll.u32 %v4012_v61, 16 }
 0x1e5   : > { %v4489_v18 = vadd.f32 %v1763_v44, %v1672_v33  ;;  %v1766_v57 = vpop.f32.mrf.mxu0  ;;  %v1841_v44 = vshrl.u32 %v4012_v61, 16 }
 0x1e6   : > { %v1243_v45 = vpop.f32.mrf.mxu1 }
 0x1e7   : > { %v1244_v14 = vadd.f32 %v1243_v45, %v4816_v43 }
 0x1e8   : > { %2935 = vmatmul.msk.bf16.gmra.mxu2 %vm923_vm12, %v4082_v1  ;;  %2960 = vmatmul.msk.bf16.gmra.mxu0 %vm923_vm12, %v4818_v31 }
 0x1e9   : > { %v1476_v29 = vadd.f32 %v1443_v35, %v1244_v14  ;;  %2921 = vmatmul.msk.bf16.gmra.mxu1 %vm923_vm12, %v1826_v25  ;;  %v4823_v35 = vld [vmem:[#allocation11_spill] sm:$0xff] }
 0x1eb   : > { %v1673_v26 = vadd.f32 %v1640_v30, %v1476_v29  ;;  %v1448_v34 = vpop.f32.mrf.mxu2  ;;  %v1642_v4 = vpop.f32.mrf.mxu3  ;;  %v1992_v30 = vrot.slane %v1841_v44, 3 }
 0x1ed   : > { %v4501_v15 = vadd.f32 %v1766_v57, %v1673_v26  ;;  %v1768_v47 = vpop.f32.mrf.mxu0  ;;  %v1993_v57 = vrot.slane %v1837_v54, 4  ;;  %v4826_v26 = vld [vmem:[#allocation32_spill] sm:$0xff] }
 0x1ee   : > { %v1245_v9 = vpop.f32.mrf.mxu1 }
 0x1ef   : > { %v1246_v63 = vadd.f32 %v1245_v9, %v4819_v28  ;;  %v1994_v14 = vor.u32 %v1993_v57, %v1992_v30  ;;  %v4828_v28 = vld [vmem:[#allocation12_spill] sm:$0xff] }
 0x1f0   : > { %2948 = vmatmul.msk.bf16.gmra.mxu3 %vm923_vm12, %v4820_v58 }
 0x1f1   : > { %v1477_v53 = vadd.f32 %v1445_v46, %v1246_v63  ;;  %v4824_v46 = vld [vmem:[#allocation30_spill] sm:$0xff]  ;;  %v1844_v63 = vshll.u32 %v4402_v32, 16 }
 0x1f3   : > { %v1674_v1 = vadd.f32 %v1642_v4, %v1477_v53  ;;  %v1450_v48 = vpop.f32.mrf.mxu2  ;;  %v1645_v22 = vpop.f32.mrf.mxu3  ;;  %v4827_v4 = vld [vmem:[#allocation10_spill] sm:$0xff]  ;;  %v1848_v53 = vshrl.u32 %v4402_v32, 16 }
 0x1f5   : > { %v4506_v40 = vadd.f32 %v1768_v47, %v1674_v1  ;;  %v1771_v0 = vpop.f32.mrf.mxu0  ;;  %v1995_v47 = vsel %vm1033_vm9, %v4827_v4, %v1994_v14  ;;  %v4834_v4 = vld [vmem:[#allocation13_spill] sm:$0xff] }
 0x1f6   : > { %v1248_v56 = vpop.f32.mrf.mxu1 }
 0x1f7   : > { %v1249_v59 = vadd.f32 %v1248_v56, %v4821_v37  ;;  %v4829_v37 = vld [vmem:[#allocation34_spill] sm:$0xff] }
 0x1f8   : > { %2936 = vmatmul.msk.bf16.gmra.mxu2 %vm923_vm12, %v4111_v41  ;;  %2961 = vmatmul.msk.bf16.gmra.mxu0 %vm923_vm12, %v4822_v21  ;;  %v1997_v21 = vrot.slane %v1844_v63, 4 }
 0x1f9   : > { %v1478_v60 = vadd.f32 %v1448_v34, %v1249_v59  ;;  %2922 = vmatmul.msk.bf16.gmra.mxu1 %vm923_vm12, %v4823_v35 }
 0x1fb   : > { %v1675_v7 = vadd.f32 %v1645_v22, %v1478_v60  ;;  %v1453_v39 = vpop.f32.mrf.mxu2  ;;  %v1647_v6 = vpop.f32.mrf.mxu3 }
 0x1fc   : > { %v824_v60 = vpop.permute.xlu2 %823 }
 0x1fd   : > { %v4517_v49 = vadd.f32 %v1771_v0, %v1675_v7  ;;  %v1773_v10 = vpop.f32.mrf.mxu0  ;;  %v4830_v7 = vld [vmem:[#allocation7_spill] sm:$0xff]  ;;  %vm860_vm0 = vcmp.eq.s32.totalorder %v824_v60, 1  ;;  %v4565_v60 = vpop.permute.xlu1 %829 }
 0x1fe   : > { %v1250_v33 = vpop.f32.mrf.mxu1  ;;  %vm862_vm4 = vcmp.eq.s32.totalorder %v4565_v60, 1 }
 0x1ff   : > { %v1251_v41 = vadd.f32 %v1250_v33, %v4824_v46 }
 0x200   : > { %2949 = vmatmul.msk.bf16.gmra.mxu3 %vm923_vm12, %v4825_v17 }
 0x201   : > { %v1479_v45 = vadd.f32 %v1450_v48, %v1251_v41 }
 0x203   : > { %v1676_v11 = vadd.f32 %v1647_v6, %v1479_v45  ;;  %v1455_v43 = vpop.f32.mrf.mxu2  ;;  %v1650_v12 = vpop.f32.mrf.mxu3 }
 0x205   : > { %v4526_v25 = vadd.f32 %v1773_v10, %v1676_v11  ;;  %v1776_v31 = vpop.f32.mrf.mxu0  ;;  %v4832_v11 = vld [vmem:[#allocation18_spill] sm:$0xff] }
 0x206   : > { %v1253_v29 = vpop.f32.mrf.mxu1 }
 0x207   : > { %v1254_v34 = vadd.f32 %v1253_v29, %v4826_v26  ;;  %v4833_v29 = vld [vmem:[#allocation20_spill] sm:$0xff]  ;;  %v827_v26 = vpop.permute.xlu0 %826 }
 0x208   : > { %2937 = vmatmul.msk.bf16.gmra.mxu2 %vm923_vm12, %v1995_v47  ;;  %2962 = vmatmul.msk.bf16.gmra.mxu0 %vm923_vm12, %v4362_v5  ;;  %v1996_v5 = vrot.slane %v1848_v53, 3  ;;  %vm861_vm3 = vcmp.eq.s32.totalorder %v827_v26, 1 }
 0x209   : > { %v1480_v9 = vadd.f32 %v1453_v39, %v1254_v34  ;;  %2923 = vmatmul.msk.bf16.gmra.mxu1 %vm923_vm12, %v4828_v28  ;;  %v4831_v39 = vld [vmem:[#allocation17_spill] sm:$0xff] }
 0x20a   : > { %v3028_v6 = vunpack.c.h.bf16 %v4831_v39  ;;  %v1998_v46 = vor.u32 %v1997_v21, %v1996_v5 }
 0x20b   : > { %v1677_v58 = vadd.f32 %v1650_v12, %v1480_v9  ;;  %v2042_v1 = vpop.f32.mrf.mxu2  ;;  %v1652_v48 = vpop.f32.mrf.mxu3 }
 0x20c   : > { %v892_v45 = vsel %vm860_vm0, %v3028_v6, 0.0 }
 0x20d   : > { %v4538_v22 = vadd.f32 %v1776_v31, %v1677_v58  ;;  %v1778_v0 = vpop.f32.mrf.mxu0  ;;  %v1999_v31 = vsel %vm1033_vm9, %v1994_v14, %v1998_v46  ;;  %v4561_v58 = vld [vmem:[%s3701_s26 + $0x80] sm:$0xff]   ;;  %s2845_s26 = sshll.u32 %s4852_s14, 2 }
 0x20e   : > { %v1255_v56 = vpop.f32.mrf.mxu1  ;;  %s4578_s17 = scalar_lea.vmem %s4680_s6, %s2845_s26 }
 0x20f   : > { %v1256_v59 = vadd.f32 %v1255_v56, %v4829_v37  ;;  %v2444_v6 = vpop.permute.xlu0 %2443 }
 0x210   : > { %2950 = vmatmul.msk.bf16.gmra.mxu3 %vm923_vm12, %v4830_v7  ;;  %v1839_v7 = vrot.slane %v1837_v54, 1  ;;  %vm2512_vm7 = vcmp.eq.s32.totalorder %v2444_v6, 1 }
 0x211   : > { %v1481_v35 = vadd.f32 %v1455_v43, %v1256_v59  ;;  %v1988_v43 = vpack.c.bf16 %v892_v45, %v4832_v11  ;;  %v3031_v59 = vunpack.c.l.bf16 %v4561_v58 }
 0x213   : > { %v1678_v10 = vadd.f32 %v1652_v48, %v1481_v35  ;;  %v2044_v33 = vpop.f32.mrf.mxu2  ;;  %v2150_v41 = vpop.f32.mrf.mxu3  ;;  %v2001_v47 = vshrl.u32 %v1988_v43, 16  ;;  %v2004_v9 = vshll.u32 %v1988_v43, 16  ;;  %v893_v39 = vsel %vm861_vm3, %v3031_v59, 0.0 }
 0x214   : > { %v2447_v59 = vpop.permute.xlu1 %2446 }
 0x215   : > { %v4549_v30 = vadd.f32 %v1778_v0, %v1678_v10  ;;  %v2283_v57 = vpop.f32.mrf.mxu0  ;;  %v2003_v56 = vrot.slane %v2001_v47, 3  ;;  %v2006_v37 = vrot.slane %v2004_v9, 4  ;;  %vm2513_vm2 = vcmp.eq.s32.totalorder %v2447_v59, 1 }
 0x216   : > { %v1904_v17 = vpop.f32.mrf.mxu1 }
 0x217   : > { %v1964_v12 = vadd.f32 %v1904_v17, %v4352_v38  ;;  %v4571_v17 = vor.u32 %v2006_v37, %v2003_v56 }
 0x218   : > { %2938 = vmatmul.msk.bf16.gmra.mxu2 %vm923_vm12, %v1999_v31  ;;  %2963 = vmatmul.msk.bf16.gmra.mxu0 %vm923_vm12, %v4833_v29  ;;  %v1989_v31 = vpack.c.bf16 %v893_v39, %v893_v39  ;;  %v4835_v29 = vld [vmem:[#allocation14_spill] sm:$0xff] }
 0x219   : > { %v2102_v34 = vadd.f32 %v2042_v1, %v1964_v12  ;;  %2924 = vmatmul.msk.bf16.gmra.mxu1 %vm923_vm12, %v4834_v4  ;;  %v2441_v1 = vpop.permute.xlu2 %2440  ;;  %v2008_v4 = vsel %vm1033_vm9, %v1998_v46, %v4571_v17 }
 0x21a   : > { %vm2511_vm11 = vcmp.eq.s32.totalorder %v2441_v1, 1  ;;  %v2010_v37 = vshrl.u32 %v1989_v31, 16 }
 0x21b   : > { %v2047_v28 = vpop.f32.mrf.mxu2  ;;  %v2210_v48 = vadd.f32 %v2150_v41, %v2102_v34  ;;  %v2152_v38 = vpop.f32.mrf.mxu3 }
 0x21d   : > { %v2285_v14 = vpop.f32.mrf.mxu0  ;;  %v2343_v21 = vadd.f32 %v2283_v57, %v2210_v48 }
 0x21e   : > { %v1906_v0 = vpop.f32.mrf.mxu1 }
 0x21f   : > { %v1965_v5 = vadd.f32 %v1906_v0, %v4357_v2  ;;  %v2535_v2 = vsel %vm2511_vm11, %v2343_v21, 0.0  ;;  %v4587_v0 = vpack.c.bf16 %v893_v39, %v892_v45 }
 0x220   : > { %2951 = vmatmul.msk.bf16.gmra.mxu3 %vm923_vm12, %v4157_v55  ;;  %v1840_v55 = vsel %vm1261_vm13, %v4835_v29, %v1839_v7  ;;  %v2637_v26 = vmul.f32 %v2535_v2, %v2535_v2 }
 0x221   : > { %v2103_v35 = vadd.f32 %v2044_v33, %v1965_v5  ;;  %v2247_v6 = vshll.u32 %v4587_v0, 16 }
 0x223   : > { %v2211_v10 = vadd.f32 %v2152_v38, %v2103_v35  ;;  %v2049_v41 = vpop.f32.mrf.mxu2  ;;  %v2155_v57 = vpop.f32.mrf.mxu3  ;;  %v4836_v38 = vld [vmem:[#allocation22_spill] sm:$0xff] }
 0x225   : > { %v2344_v43 = vadd.f32 %v2285_v14, %v2211_v10  ;;  %v2288_v12 = vpop.f32.mrf.mxu0 }
 0x226   : > { %v1909_v33 = vpop.f32.mrf.mxu1 }
 0x227   : > { %v2536_v54 = vsel %vm2512_vm7, %v2344_v43, 0.0  ;;  %v1966_v34 = vadd.f32 %v1909_v33, %v4376_v13  ;;  %v2013_v13 = vshll.u32 %v1989_v31, 16  ;;  %v2450_v31 = vpop.permute.xlu2 %2449 }
 0x228   : > { %v3036_v47 = vpack.c.bf16 %v2536_v54, %v2535_v2  ;;  %v2607_v9 = vadd.f32 %v2536_v54, %v2535_v2  ;;  %v2638_v48 = vmul.f32 %v2536_v54, %v2536_v54  ;;  %2939 = vmatmul.msk.bf16.gmra.mxu2 %vm923_vm12, %v2008_v4  ;;  %2964 = vmatmul.msk.bf16.gmra.mxu0 %vm923_vm12, %v4836_v38  ;;  %v2012_v2 = vrot.slane %v2010_v37, 3  ;;  %v4838_v38 = vld [vmem:[#allocation21_spill] sm:$0xff] }
 0x229   : > { %v2104_v14 = vadd.f32 %v2047_v28, %v1966_v34  ;;  %2925 = vmatmul.msk.bf16.gmra.mxu1 %vm923_vm12, %v1840_v55  ;;  %v2015_v28 = vrot.slane %v2013_v13, 4  ;;  %v4837_v55 = vld [vmem:[#allocation19_spill] sm:$0xff]  ;;  %v2249_v34 = vrot.slane %v2247_v6, 1  ;;  %vm2514_vm10 = vcmp.eq.s32.totalorder %v2450_v31, 1 }
 0x22a   : > { %3037 = vst [vmem:[%s4578_s17] sm:$0xff] %v3036_v47   ;;  %v2661_v56 = vadd.f32 %v2638_v48, %v2637_v26  ;;  %v2244_v26 = vshrl.u32 %v4837_v55, 16 }
 0x22b   : > { %v2212_v5 = vadd.f32 %v2155_v57, %v2104_v14  ;;  %v2052_v46 = vpop.f32.mrf.mxu2  ;;  %v2157_v1 = vpop.f32.mrf.mxu3  ;;  %v2016_v54 = vor.u32 %v2015_v28, %v2012_v2 }
 0x22c   : > { %v2246_v14 = vor.u32 %v2244_v26, %v4838_v38 }
 0x22d   : > { %v2345_v21 = vadd.f32 %v2288_v12, %v2212_v5  ;;  %v2290_v35 = vpop.f32.mrf.mxu0  ;;  %v1846_v12 = vrot.slane %v1844_v63, 1  ;;  %v2017_v61 = vsel %vm1033_vm9, %v4571_v17, %v2016_v54 }
 0x22e   : > { %v1911_v10 = vpop.f32.mrf.mxu1 }
 0x22f   : > { %v2537_v43 = vsel %vm2513_vm2, %v2345_v21, 0.0  ;;  %v1967_v45 = vadd.f32 %v1911_v10, %v4383_v3  ;;  %v1843_v3 = vor.u32 %v1841_v44, %v1839_v7  ;;  %v2250_v44 = vsel %vm1261_vm13, %v2246_v14, %v2249_v34 }
 0x230   : > { %v2608_v39 = vadd.f32 %v2607_v9, %v2537_v43  ;;  %v2639_v33 = vmul.f32 %v2537_v43, %v2537_v43  ;;  %2952 = vmatmul.msk.bf16.gmra.mxu3 %vm923_vm12, %v4837_v55 }
 0x231   : > { %v2105_v29 = vadd.f32 %v2049_v41, %v1967_v45  ;;  %v1847_v37 = vsel %vm1261_vm13, %v1843_v3, %v1846_v12 }
 0x232   : > { %v2662_v57 = vadd.f32 %v2661_v56, %v2639_v33  ;;  %v3032_v56 = vunpack.c.h.bf16 %v4561_v58 }
 0x233   : > { %v2213_v4 = vadd.f32 %v2157_v1, %v2105_v29  ;;  %v2054_v47 = vpop.f32.mrf.mxu2  ;;  %v2160_v48 = vpop.f32.mrf.mxu3 }
 0x234   : > { %v894_v60 = vsel %vm862_vm4, %v3032_v56, 0.0 }
 0x235   : > { %v2346_v9 = vadd.f32 %v2290_v35, %v2213_v4  ;;  %v2293_v41 = vpop.f32.mrf.mxu0  ;;  %v2453_v35 = vpop.permute.xlu0 %2452  ;;  %v2234_v17 = vpack.c.bf16 %v894_v60, %v894_v60 }
 0x236   : > { %v1914_v63 = vpop.f32.mrf.mxu1  ;;  %vm2515_vm9 = vcmp.eq.s32.totalorder %v2453_v35, 1  ;;  %v2456_v4 = vpop.permute.xlu1 %2455 }
 0x237   : > { %v2538_v13 = vsel %vm2514_vm10, %v2346_v9, 0.0  ;;  %v1968_v59 = vadd.f32 %v1914_v63, %v4393_v20  ;;  %v2255_v55 = vshll.u32 %v2234_v17, 16  ;;  %vm2516_vm8 = vcmp.eq.s32.totalorder %v2456_v4, 1 }
 0x238   : > { %v3041_v7 = vpack.c.bf16 %v2538_v13, %v2537_v43  ;;  %v2609_v5 = vadd.f32 %v2608_v39, %v2538_v13  ;;  %v2640_v1 = vmul.f32 %v2538_v13, %v2538_v13  ;;  %2940 = vmatmul.msk.bf16.gmra.mxu2 %vm923_vm12, %v2017_v61  ;;  %2965 = vmatmul.msk.bf16.gmra.mxu0 %vm923_vm12, %v2250_v44 }
 0x239   : > { %v2106_v58 = vadd.f32 %v2052_v46, %v1968_v59  ;;  %2926 = vmatmul.msk.bf16.gmra.mxu1 %vm923_vm12, %v1847_v37  ;;  %v1805_v43 = vpack.c.bf16 %v4832_v11, %v4832_v11 }
 0x23a   : > { %3109 = vst [vmem:[%s4578_s17 + $0x8] sm:$0xff] %v3041_v7   ;;  %v2663_v21 = vadd.f32 %v2662_v57, %v2640_v1  ;;  %v2251_v57 = vshrl.u32 %v4587_v0, 16 }
 0x23b   : > { %v2214_v20 = vadd.f32 %v2160_v48, %v2106_v58  ;;  %v2057_v6 = vpop.f32.mrf.mxu2  ;;  %v2162_v10 = vpop.f32.mrf.mxu3  ;;  %v1852_v26 = vshll.u32 %v1805_v43, 16 }
 0x23c   : > { %v2253_v11 = vor.u32 %v2251_v57, %v2249_v34 }
 0x23d   : > { %v2347_v2 = vadd.f32 %v2293_v41, %v2214_v20  ;;  %v2295_v28 = vpop.f32.mrf.mxu0  ;;  %v1850_v41 = vor.u32 %v1848_v53, %v1846_v12  ;;  %v1854_v56 = vrot.slane %v1852_v26, 1  ;;  %v2459_v12 = vpop.permute.xlu2 %2458 }
 0x23e   : > { %v1916_v45 = vpop.f32.mrf.mxu1  ;;  %vm2517_vm1 = vcmp.eq.s32.totalorder %v2459_v12, 1  ;;  %v2462_v17 = vpop.permute.xlu0 %2461 }
 0x23f   : > { %v2539_v39 = vsel %vm2515_vm9, %v2347_v2, 0.0  ;;  %v1969_v46 = vadd.f32 %v1916_v45, %v4398_v51  ;;  %v2257_v51 = vrot.slane %v2255_v55, 1  ;;  %v1855_v34 = vsel %vm1261_vm13, %v1850_v41, %v1854_v56 }
 0x240   : > { %v2610_v33 = vadd.f32 %v2609_v5, %v2539_v39  ;;  %v2641_v29 = vmul.f32 %v2539_v39, %v2539_v39  ;;  %2953 = vmatmul.msk.bf16.gmra.mxu3 %vm923_vm12, %v4587_v0 }
 0x241   : > { %v2107_v31 = vadd.f32 %v2054_v47, %v1969_v46  ;;  %v2258_v37 = vsel %vm1261_vm13, %v2253_v11, %v2257_v51 }
 0x242   : > { %v2664_v54 = vadd.f32 %v2663_v21, %v2641_v29 }
 0x243   : > { %v2215_v48 = vadd.f32 %v2162_v10, %v2107_v31  ;;  %v2059_v3 = vpop.f32.mrf.mxu2  ;;  %v2165_v9 = vpop.f32.mrf.mxu3 }
 0x245   : > { %v2348_v38 = vadd.f32 %v2295_v28, %v2215_v48  ;;  %v2298_v14 = vpop.f32.mrf.mxu0 }
 0x246   : > { %v1919_v47 = vpop.f32.mrf.mxu1 }
 0x247   : > { %v2540_v63 = vsel %vm2516_vm8, %v2348_v38, 0.0  ;;  %v1970_v0 = vadd.f32 %v1919_v47, %v4411_v52 }
 0x248   : > { %v3046_v13 = vpack.c.bf16 %v2540_v63, %v2539_v39  ;;  %v2611_v59 = vadd.f32 %v2610_v33, %v2540_v63  ;;  %v2642_v61 = vmul.f32 %v2540_v63, %v2540_v63  ;;  %2966 = vmatmul.msk.bf16.gmra.mxu0 %vm923_vm12, %v2258_v37  ;;  %v2468_v63 = vpop.permute.xlu2 %2467 }
 0x249   : > { %v2108_v32 = vadd.f32 %v2057_v6, %v1970_v0  ;;  %2927 = vmatmul.msk.bf16.gmra.mxu1 %vm923_vm12, %v1855_v34  ;;  %vm2518_vm12 = vcmp.eq.s32.totalorder %v2462_v17, 1  ;;  %vm2520_vm14 = vcmp.eq.s32.totalorder %v2468_v63, 1 }
 0x24a   : > { %3110 = vst [vmem:[%s4578_s17 + $0x10] sm:$0xff] %v3046_v13   ;;  %v2665_v53 = vadd.f32 %v2664_v54, %v2642_v61  ;;  %v2465_v54 = vpop.permute.xlu1 %2464 }
 0x24b   : > { %v2216_v44 = vadd.f32 %v2165_v9, %v2108_v32  ;;  %v2062_v7 = vpop.f32.mrf.mxu2  ;;  %v2167_v5 = vpop.f32.mrf.mxu3  ;;  %vm2519_vm13 = vcmp.eq.s32.totalorder %v2465_v54, 1 }
 0x24d   : > { %v2349_v1 = vadd.f32 %v2298_v14, %v2216_v44  ;;  %v2300_v52 = vpop.f32.mrf.mxu0 }
 0x24e   : > { %v1921_v58 = vpop.f32.mrf.mxu1 }
 0x24f   : > { %v2541_v60 = vsel %vm2517_vm1, %v2349_v1, 0.0  ;;  %v1971_v21 = vadd.f32 %v1921_v58, %v4416_v62  ;;  %v2471_v1 = vpop.permute.xlu0 %2470 }
 0x250   : > { %v2612_v35 = vadd.f32 %v2611_v59, %v2541_v60  ;;  %v2643_v20 = vmul.f32 %v2541_v60, %v2541_v60  ;;  %vm2521_vm5 = vcmp.eq.s32.totalorder %v2471_v1, 1 }
 0x251   : > { %v2109_v10 = vadd.f32 %v2059_v3, %v1971_v21 }
 0x252   : > { %v2666_v6 = vadd.f32 %v2665_v53, %v2643_v20 }
 0x253   : > { %v2217_v2 = vadd.f32 %v2167_v5, %v2109_v10  ;;  %v2064_v28 = vpop.f32.mrf.mxu2  ;;  %v2170_v43 = vpop.f32.mrf.mxu3 }
 0x255   : > { %v2350_v45 = vadd.f32 %v2300_v52, %v2217_v2  ;;  %v2303_v39 = vpop.f32.mrf.mxu0 }
 0x256   : > { %v1924_v46 = vpop.f32.mrf.mxu1 }
 0x257   : > { %v2542_v33 = vsel %vm2518_vm12, %v2350_v45, 0.0  ;;  %v1972_v29 = vadd.f32 %v1924_v46, %v4425_v24 }
 0x258   : > { %v3051_v55 = vpack.c.bf16 %v2542_v33, %v2541_v60  ;;  %v2613_v57 = vadd.f32 %v2612_v35, %v2542_v33  ;;  %v2644_v31 = vmul.f32 %v2542_v33, %v2542_v33 }
 0x259   : > { %v2110_v62 = vadd.f32 %v2062_v7, %v1972_v29 }
 0x25a   : > { %3111 = vst [vmem:[%s4578_s17 + $0x18] sm:$0xff] %v3051_v55   ;;  %v2667_v26 = vadd.f32 %v2666_v6, %v2644_v31 }
 0x25b   : > { %v2218_v4 = vadd.f32 %v2170_v43, %v2110_v62  ;;  %v2067_v48 = vpop.f32.mrf.mxu2  ;;  %v2172_v3 = vpop.f32.mrf.mxu3 }
 0x25c   : > { %v2474_v43 = vpop.permute.xlu1 %2473 }
 0x25d   : > { %v2351_v11 = vadd.f32 %v2303_v39, %v2218_v4  ;;  %v2305_v9 = vpop.f32.mrf.mxu0  ;;  %vm2522_vm15 = vcmp.eq.s32.totalorder %v2474_v43, 1 }
 0x25e   : > { %v1926_v41 = vpop.f32.mrf.mxu1 }
 0x25f   : > { %v2543_v51 = vsel %vm2519_vm13, %v2351_v11, 0.0  ;;  %v1973_v38 = vadd.f32 %v1926_v41, %v4430_v50 }
 0x260   : > { %v2614_v14 = vadd.f32 %v2613_v57, %v2543_v51  ;;  %v2645_v56 = vmul.f32 %v2543_v51, %v2543_v51 }
 0x261   : > { %v2111_v24 = vadd.f32 %v2064_v28, %v1973_v38 }
 0x262   : > { %v2668_v47 = vadd.f32 %v2667_v26, %v2645_v56 }
 0x263   : > { %v2219_v0 = vadd.f32 %v2172_v3, %v2111_v24  ;;  %v2069_v37 = vpop.f32.mrf.mxu2  ;;  %v2175_v13 = vpop.f32.mrf.mxu3 }
 0x264   : > { %v2483_v1 = vpop.permute.xlu1 %2482 }
 0x265   : > { %v2352_v59 = vadd.f32 %v2305_v9, %v2219_v0  ;;  %v2308_v61 = vpop.f32.mrf.mxu0  ;;  %v2480_v0 = vpop.permute.xlu0 %2479  ;;  %vm2525_vm3 = vcmp.eq.s32.totalorder %v2483_v1, 1 }
 0x266   : > { %v1929_v34 = vpop.f32.mrf.mxu1  ;;  %vm2524_vm0 = vcmp.eq.s32.totalorder %v2480_v0, 1 }
 0x267   : > { %v2544_v32 = vsel %vm2520_vm14, %v2352_v59, 0.0  ;;  %v1974_v53 = vadd.f32 %v1929_v34, %v4439_v16 }
 0x268   : > { %v3056_v12 = vpack.c.bf16 %v2544_v32, %v2543_v51  ;;  %v2615_v44 = vadd.f32 %v2614_v14, %v2544_v32  ;;  %v2646_v7 = vmul.f32 %v2544_v32, %v2544_v32 }
 0x269   : > { %v2112_v50 = vadd.f32 %v2067_v48, %v1974_v53  ;;  %v2477_v48 = vpop.permute.xlu2 %2476 }
 0x26a   : > { %3112 = vst [vmem:[%s4578_s17 + $0x20] sm:$0xff] %v3056_v12   ;;  %v2669_v5 = vadd.f32 %v2668_v47, %v2646_v7  ;;  %vm2523_vm6 = vcmp.eq.s32.totalorder %v2477_v48, 1 }
 0x26b   : > { %v2220_v52 = vadd.f32 %v2175_v13, %v2112_v50  ;;  %v2072_v58 = vpop.f32.mrf.mxu2  ;;  %v2177_v60 = vpop.f32.mrf.mxu3 }
 0x26d   : > { %v2353_v21 = vadd.f32 %v2308_v61, %v2220_v52  ;;  %v2310_v35 = vpop.f32.mrf.mxu0 }
 0x26e   : > { %v1931_v20 = vpop.f32.mrf.mxu1 }
 0x26f   : > { %v2545_v10 = vsel %vm2521_vm5, %v2353_v21, 0.0  ;;  %v1975_v6 = vadd.f32 %v1931_v20, %v4444_v36 }
 0x270   : > { %v2616_v17 = vadd.f32 %v2615_v44, %v2545_v10  ;;  %v2647_v2 = vmul.f32 %v2545_v10, %v2545_v10 }
 0x271   : > { %v2113_v16 = vadd.f32 %v2069_v37, %v1975_v6 }
 0x272   : > { %v2670_v28 = vadd.f32 %v2669_v5, %v2647_v2 }
 0x273   : > { %v2221_v45 = vadd.f32 %v2177_v60, %v2113_v16  ;;  %v2074_v39 = vpop.f32.mrf.mxu2  ;;  %v2180_v46 = vpop.f32.mrf.mxu3 }
 0x275   : > { %v2354_v33 = vadd.f32 %v2310_v35, %v2221_v45  ;;  %v2313_v29 = vpop.f32.mrf.mxu0 }
 0x276   : > { %v1934_v55 = vpop.f32.mrf.mxu1 }
 0x277   : > { %v2546_v57 = vsel %vm2522_vm15, %v2354_v33, 0.0  ;;  %v1976_v31 = vadd.f32 %v1934_v55, %v4453_v27 }
 0x278   : > { %v3061_v62 = vpack.c.bf16 %v2546_v57, %v2545_v10  ;;  %v2617_v26 = vadd.f32 %v2616_v17, %v2546_v57  ;;  %v2648_v54 = vmul.f32 %v2546_v57, %v2546_v57 }
 0x279   : > { %v2114_v36 = vadd.f32 %v2072_v58, %v1976_v31 }
 0x27a   : > { %3113 = vst [vmem:[%s4578_s17 + $0x28] sm:$0xff] %v3061_v62   ;;  %v2671_v4 = vadd.f32 %v2670_v28, %v2648_v54  ;;  %v2486_v28 = vpop.permute.xlu2 %2485 }
 0x27b   : > { %v2222_v3 = vadd.f32 %v2180_v46, %v2114_v36  ;;  %v2077_v11 = vpop.f32.mrf.mxu2  ;;  %v2182_v9 = vpop.f32.mrf.mxu3  ;;  %vm2526_vm11 = vcmp.eq.s32.totalorder %v2486_v28, 1 }
 0x27c   : > { %v2489_v36 = vpop.permute.xlu0 %2488 }
 0x27d   : > { %v2355_v41 = vadd.f32 %v2313_v29, %v2222_v3  ;;  %v2315_v51 = vpop.f32.mrf.mxu0  ;;  %vm2527_vm7 = vcmp.eq.s32.totalorder %v2489_v36, 1 }
 0x27e   : > { %v1936_v38 = vpop.f32.mrf.mxu1 }
 0x27f   : > { %v2547_v14 = vsel %vm2523_vm6, %v2355_v41, 0.0  ;;  %v1977_v56 = vadd.f32 %v1936_v38, %v4458_v23 }
 0x280   : > { %v2618_v24 = vadd.f32 %v2617_v26, %v2547_v14  ;;  %v2649_v47 = vmul.f32 %v2547_v14, %v2547_v14 }
 0x281   : > { %v2115_v27 = vadd.f32 %v2074_v39, %v1977_v56 }
 0x282   : > { %v2672_v63 = vadd.f32 %v2671_v4, %v2649_v47  ;;  %v2492_v47 = vpop.permute.xlu1 %2491 }
 0x283   : > { %v2223_v37 = vadd.f32 %v2182_v9, %v2115_v27  ;;  %v2079_v13 = vpop.f32.mrf.mxu2  ;;  %v2185_v59 = vpop.f32.mrf.mxu3  ;;  %vm2528_vm2 = vcmp.eq.s32.totalorder %v2492_v47, 1 }
 0x285   : > { %v2356_v61 = vadd.f32 %v2315_v51, %v2223_v37  ;;  %v2318_v34 = vpop.f32.mrf.mxu0 }
 0x286   : > { %v1939_v32 = vpop.f32.mrf.mxu1 }
 0x287   : > { %v2548_v53 = vsel %vm2524_vm0, %v2356_v61, 0.0  ;;  %v1978_v12 = vadd.f32 %v1939_v32, %v4467_v42 }
 0x288   : > { %v3066_v44 = vpack.c.bf16 %v2548_v53, %v2547_v14  ;;  %v2619_v7 = vadd.f32 %v2618_v24, %v2548_v53  ;;  %v2650_v50 = vmul.f32 %v2548_v53, %v2548_v53 }
 0x289   : > { %v2116_v23 = vadd.f32 %v2077_v11, %v1978_v12 }
 0x28a   : > { %3114 = vst [vmem:[%s4578_s17 + $0x30] sm:$0xff] %v3066_v44   ;;  %v2673_v5 = vadd.f32 %v2672_v63, %v2650_v50 }
 0x28b   : > { %v2224_v52 = vadd.f32 %v2185_v59, %v2116_v23  ;;  %v2082_v58 = vpop.f32.mrf.mxu2  ;;  %v2187_v60 = vpop.f32.mrf.mxu3 }
 0x28d   : > { %v2357_v21 = vadd.f32 %v2318_v34, %v2224_v52  ;;  %v2320_v35 = vpop.f32.mrf.mxu0 }
 0x28e   : > { %v1941_v20 = vpop.f32.mrf.mxu1 }
 0x28f   : > { %v2549_v10 = vsel %vm2525_vm3, %v2357_v21, 0.0  ;;  %v1979_v6 = vadd.f32 %v1941_v20, %v4472_v8 }
 0x290   : > { %v2620_v17 = vadd.f32 %v2619_v7, %v2549_v10  ;;  %v2651_v2 = vmul.f32 %v2549_v10, %v2549_v10  ;;  %v2495_v7 = vpop.permute.xlu2 %2494 }
 0x291   : > { %v2117_v42 = vadd.f32 %v2079_v13, %v1979_v6  ;;  %vm2529_vm10 = vcmp.eq.s32.totalorder %v2495_v7, 1  ;;  %v2498_v6 = vpop.permute.xlu0 %2497 }
 0x292   : > { %v2674_v16 = vadd.f32 %v2673_v5, %v2651_v2  ;;  %vm2530_vm4 = vcmp.eq.s32.totalorder %v2498_v6, 1 }
 0x293   : > { %v2225_v43 = vadd.f32 %v2187_v60, %v2117_v42  ;;  %v2084_v45 = vpop.f32.mrf.mxu2  ;;  %v2190_v39 = vpop.f32.mrf.mxu3 }
 0x295   : > { %v2358_v46 = vadd.f32 %v2320_v35, %v2225_v43  ;;  %v2323_v33 = vpop.f32.mrf.mxu0 }
 0x296   : > { %v1944_v29 = vpop.f32.mrf.mxu1 }
 0x297   : > { %v2550_v55 = vsel %vm2526_vm11, %v2358_v46, 0.0  ;;  %v1980_v57 = vadd.f32 %v1944_v29, %v4484_v19 }
 0x298   : > { %v3071_v31 = vpack.c.bf16 %v2550_v55, %v2549_v10  ;;  %v2621_v62 = vadd.f32 %v2620_v17, %v2550_v55  ;;  %v2652_v26 = vmul.f32 %v2550_v55, %v2550_v55  ;;  %v2501_v55 = vpop.permute.xlu1 %2500 }
 0x299   : > { %v2118_v8 = vadd.f32 %v2082_v58, %v1980_v57  ;;  %vm2531_vm9 = vcmp.eq.s32.totalorder %v2501_v55, 1 }
 0x29a   : > { %3115 = vst [vmem:[%s4578_s17 + $0x38] sm:$0xff] %v3071_v31   ;;  %v2675_v54 = vadd.f32 %v2674_v16, %v2652_v26 }
 0x29b   : > { %v2226_v4 = vadd.f32 %v2190_v39, %v2118_v8  ;;  %v2192_v48 = vpop.f32.mrf.mxu3  ;;  %v2087_v9 = vpop.f32.mrf.mxu2 }
 0x29d   : > { %v2359_v3 = vadd.f32 %v2323_v33, %v2226_v4  ;;  %v2325_v11 = vpop.f32.mrf.mxu0 }
 0x29e   : > { %v1946_v41 = vpop.f32.mrf.mxu1 }
 0x29f   : > { %v2551_v51 = vsel %vm2527_vm7, %v2359_v3, 0.0  ;;  %v1981_v38 = vadd.f32 %v1946_v41, %v4489_v18 }
 0x2a0   : > { %v2622_v14 = vadd.f32 %v2621_v62, %v2551_v51  ;;  %v2653_v56 = vmul.f32 %v2551_v51, %v2551_v51 }
 0x2a1   : > { %v2119_v19 = vadd.f32 %v2084_v45, %v1981_v38 }
 0x2a2   : > { %v2676_v24 = vadd.f32 %v2675_v54, %v2653_v56 }
 0x2a3   : > { %v2227_v27 = vadd.f32 %v2192_v48, %v2119_v19  ;;  %v2195_v63 = vpop.f32.mrf.mxu3  ;;  %v2089_v12 = vpop.f32.mrf.mxu2 }
 0x2a5   : > { %v2360_v0 = vadd.f32 %v2325_v11, %v2227_v27  ;;  %v2328_v37 = vpop.f32.mrf.mxu0 }
 0x2a6   : > { %v1949_v13 = vpop.f32.mrf.mxu1 }
 0x2a7   : > { %v2552_v59 = vsel %vm2528_vm2, %v2360_v0, 0.0  ;;  %v1982_v61 = vadd.f32 %v1949_v13, %v4501_v15  ;;  %v2507_v13 = vpop.permute.xlu0 %2506 }
 0x2a8   : > { %v3076_v34 = vpack.c.bf16 %v2552_v59, %v2551_v51  ;;  %v2623_v32 = vadd.f32 %v2622_v14, %v2552_v59  ;;  %v2654_v53 = vmul.f32 %v2552_v59, %v2552_v59  ;;  %vm2533_vm1 = vcmp.eq.s32.totalorder %v2507_v13, 1 }
 0x2a9   : > { %v2120_v18 = vadd.f32 %v2087_v9, %v1982_v61  ;;  %v2504_v9 = vpop.permute.xlu2 %2503 }
 0x2aa   : > { %3116 = vst [vmem:[%s4578_s17 + $0x40] sm:$0xff] %v3076_v34   ;;  %v2677_v44 = vadd.f32 %v2676_v24, %v2654_v53  ;;  %vm2532_vm8 = vcmp.eq.s32.totalorder %v2504_v9, 1 }
 0x2ab   : > { %v2228_v50 = vadd.f32 %v2195_v63, %v2120_v18  ;;  %v2197_v23 = vpop.f32.mrf.mxu3  ;;  %v2092_v10 = vpop.f32.mrf.mxu2 }
 0x2ad   : > { %v2361_v5 = vadd.f32 %v2328_v37, %v2228_v50  ;;  %v2330_v1 = vpop.f32.mrf.mxu0 }
 0x2ae   : > { %v1951_v52 = vpop.f32.mrf.mxu1 }
 0x2af   : > { %v2553_v58 = vsel %vm2529_vm10, %v2361_v5, 0.0  ;;  %v1983_v60 = vadd.f32 %v1951_v52, %v4506_v40 }
 0x2b0   : > { %v2624_v21 = vadd.f32 %v2623_v32, %v2553_v58  ;;  %v2655_v35 = vmul.f32 %v2553_v58, %v2553_v58 }
 0x2b1   : > { %v2121_v15 = vadd.f32 %v2089_v12, %v1983_v60 }
 0x2b2   : > { %v2678_v20 = vadd.f32 %v2677_v44, %v2655_v35 }
 0x2b3   : > { %v2229_v17 = vadd.f32 %v2197_v23, %v2121_v15  ;;  %v2200_v2 = vpop.f32.mrf.mxu3  ;;  %v2094_v31 = vpop.f32.mrf.mxu2 }
 0x2b4   : > { %v2510_v23 = vpop.permute.xlu1 %2509 }
 0x2b5   : > { %v2362_v42 = vadd.f32 %v2330_v1, %v2229_v17  ;;  %v2333_v28 = vpop.f32.mrf.mxu0  ;;  %vm2534_vm12 = vcmp.eq.s32.totalorder %v2510_v23, 1 }
 0x2b6   : > { %v1954_v16 = vpop.f32.mrf.mxu1 }
 0x2b7   : > { %v2554_v43 = vsel %vm2530_vm4, %v2362_v42, 0.0  ;;  %v1984_v45 = vadd.f32 %v1954_v16, %v4517_v49 }
 0x2b8   : > { %v3081_v39 = vpack.c.bf16 %v2554_v43, %v2553_v58  ;;  %v2625_v46 = vadd.f32 %v2624_v21, %v2554_v43  ;;  %v2656_v33 = vmul.f32 %v2554_v43, %v2554_v43 }
 0x2b9   : > { %v2122_v40 = vadd.f32 %v2092_v10, %v1984_v45 }
 0x2ba   : > { %3117 = vst [vmem:[%s4578_s17 + $0x48] sm:$0xff] %v3081_v39   ;;  %v2679_v29 = vadd.f32 %v2678_v20, %v2656_v33 }
 0x2bb   : > { %v2230_v57 = vadd.f32 %v2200_v2, %v2122_v40  ;;  %v2202_v26 = vpop.f32.mrf.mxu3  ;;  %v2097_v38 = vpop.f32.mrf.mxu2 }
 0x2bd   : > { %v2363_v62 = vadd.f32 %v2333_v28, %v2230_v57  ;;  %v2335_v3 = vpop.f32.mrf.mxu0 }
 0x2be   : > { %v1956_v8 = vpop.f32.mrf.mxu1 }
 0x2bf   : > { %v2555_v54 = vsel %vm2531_vm9, %v2363_v62, 0.0  ;;  %v1985_v36 = vadd.f32 %v1956_v8, %v4526_v25 }
 0x2c0   : > { %v2626_v4 = vadd.f32 %v2625_v46, %v2555_v54  ;;  %v2657_v48 = vmul.f32 %v2555_v54, %v2555_v54 }
 0x2c1   : > { %v2123_v49 = vadd.f32 %v2094_v31, %v1985_v36 }
 0x2c2   : > { %v2680_v11 = vadd.f32 %v2679_v29, %v2657_v48 }
 0x2c3   : > { %v2231_v41 = vadd.f32 %v2202_v26, %v2123_v49  ;;  %v2205_v63 = vpop.f32.mrf.mxu3  ;;  %v2099_v12 = vpop.f32.mrf.mxu2 }
 0x2c5   : > { %v2364_v51 = vadd.f32 %v2335_v3, %v2231_v41  ;;  %v2338_v37 = vpop.f32.mrf.mxu0 }
 0x2c6   : > { %v1959_v14 = vpop.f32.mrf.mxu1 }
 0x2c7   : > { %v2556_v56 = vsel %vm2532_vm8, %v2364_v51, 0.0  ;;  %v1986_v19 = vadd.f32 %v1959_v14, %v4538_v22 }
 0x2c8   : > { %v3086_v24 = vpack.c.bf16 %v2556_v56, %v2555_v54  ;;  %v2627_v47 = vadd.f32 %v2626_v4, %v2556_v56  ;;  %v2658_v27 = vmul.f32 %v2556_v56, %v2556_v56 }
 0x2c9   : > { %v2124_v25 = vadd.f32 %v2097_v38, %v1986_v19 }
 0x2ca   : > { %3118 = vst [vmem:[%s4578_s17 + $0x50] sm:$0xff] %v3086_v24   ;;  %v2681_v0 = vadd.f32 %v2680_v11, %v2658_v27 }
 0x2cb   : > { %v2232_v59 = vadd.f32 %v2205_v63, %v2124_v25  ;;  %v2207_v50 = vpop.f32.mrf.mxu3 }
 0x2cd   : > { %v2365_v61 = vadd.f32 %v2338_v37, %v2232_v59  ;;  %v2340_v1 = vpop.f32.mrf.mxu0 }
 0x2ce   : > { %v1961_v34 = vpop.f32.mrf.mxu1 }
 0x2cf   : > { %v2557_v32 = vsel %vm2533_vm1, %v2365_v61, 0.0  ;;  %v1987_v53 = vadd.f32 %v1961_v34, %v4549_v30 }
 0x2d0   : > { %v2628_v22 = vadd.f32 %v2627_v47, %v2557_v32  ;;  %v2659_v18 = vmul.f32 %v2557_v32, %v2557_v32 }
 0x2d1   : > { %v2125_v44 = vadd.f32 %v2099_v12, %v1987_v53 }
 0x2d2   : > { %v2682_v7 = vadd.f32 %v2681_v0, %v2659_v18 }
 0x2d3   : > { %v2233_v5 = vadd.f32 %v2207_v50, %v2125_v44 }
 0x2d5   : > { %v2366_v52 = vadd.f32 %v2340_v1, %v2233_v5 }
 0x2d7   : > { %v2558_v58 = vsel %vm2534_vm12, %v2366_v52, 0.0 }
 0x2d8   : > { %v3091_v60 = vpack.c.bf16 %v2558_v58, %v2557_v32  ;;  %v2629_v21 = vadd.f32 %v2628_v22, %v2558_v58  ;;  %v2660_v35 = vmul.f32 %v2558_v58, %v2558_v58 }
 0x2da   : > { %3119 = vst [vmem:[%s4578_s17 + $0x58] sm:$0xff] %v3091_v60   ;;  %v2630_v30 = vrot.slane %v2629_v21, 4  ;;  %v2683_v15 = vadd.f32 %v2682_v7, %v2660_v35 }
 0x2dc   : > { %v2631_v20 = vadd.f32 %v2630_v30, %v2629_v21  ;;  %v2684_v10 = vrot.slane %v2683_v15, 4 }
 0x2de   : > { %v2632_v6 = vrot.slane %v2631_v20, 2  ;;  %v2685_v17 = vadd.f32 %v2684_v10, %v2683_v15 }
 0x2e0   : > { %v2633_v2 = vadd.f32 %v2632_v6, %v2631_v20  ;;  %v2686_v42 = vrot.slane %v2685_v17, 2 }
 0x2e2   : > { %v2634_v16 = vrot.slane %v2633_v2, 1  ;;  %v2687_v28 = vadd.f32 %v2686_v42, %v2685_v17 }
 0x2e4   : > { %v2635_v43 = vadd.f32 %v2634_v16, %v2633_v2  ;;  %v2688_v45 = vrot.slane %v2687_v28, 1 }
 0x2e6   : > { %2636 = vst [vmem:[%s363_s27] sm:$0x1] %v2635_v43  ;;  %v2689_v39 = vadd.f32 %v2688_v45, %v2687_v28 }
 0x2e8   : > { %2690 = vst [vmem:[%s370_s22] sm:$0x1] %v2689_v39 }
 0x2e9 PF: > { %s19_s29 = sadd.s32 1, %s3205_s29   ;;  %s4839_s27 = smov %s3197_s3 }
 0x2ea   : > { %p16_p8 = scmp.ge.s32.totalorder %s19_s29, 6   ;;  %s4840_s2 = smov %s3201_s28 }
 0x2eb   : > { %s4841_s3 = smov %s4844_s30  ;;  %s4842_s28 = smov %s4848_s9 }
 0x2ec   :  { %18 = sbr.rel (!%p16_p8) target bundleno = 3 (0x3), region = 107 }

// kernel: conv_block_forward.4
= control target key start
LH: loop header
LB: loop body
LE: loop exit
PB: predicated region body
PF: predicated region fallthrough
CT: control target
= control target key end

     0   :  { %s4233_s27 = smov 0   ;;  %s4235_s28 = smov 0   ;;  %s6752_s0 = inlined_call_operand.vmem [shape: bf16[1536,128], index: 0, kind: input, shape index: {}]   ;;  %s6753_s1 = inlined_call_operand.vmem [shape: bf16[9,128,128], index: 1, kind: input, shape index: {}]   ;;  %s6754_s2 = inlined_call_operand.vmem [shape: f32[1,128], index: 2, kind: input, shape index: {}]   ;;  %s6755_s3 = inlined_call_operand.vmem [shape: f32[1,128], index: 3, kind: input, shape index: {}]   ;;  %s6756_s4 = inlined_call_operand.vmem [shape: s32[288,1], index: 4, kind: input, shape index: {}]   ;;  %s6757_s5 = inlined_call_operand.vmem [shape: s32[288,1], index: 5, kind: input, shape index: {}]   ;;  %s6758_s6 = inlined_call_operand.vmem [shape: bf16[1536,128], index: 6, kind: output, shape index: {0}]   ;;  %s6759_s7 = inlined_call_operand.vmem [shape: f32[4,1,128], index: 7, kind: output, shape index: {1}]   ;;  %s6760_s8 = inlined_call_operand.vmem [shape: f32[4,1,128], index: 8, kind: output, shape index: {2}]  }
   0x1   :  { %s4237_s29 = smov 0   ;;  %s4239_s30 = smov 0  }
   0x2   :  { %s4241_s9 = smov 0  }
   0x3 LB: > { %s28_s10 = sadd.s32 1, %s4177_s29  ;;  %s31_s11 = sadd.s32 1, %s4181_s30  ;;  %s4185_s9 = sphi %s4241_s9, %s19_s9   ;;  %s4181_s30 = sphi %s4239_s30, %s7290_s30   ;;  %s4177_s29 = sphi %s4237_s29, %s7289_s29   ;;  %s4173_s28 = sphi %s4235_s28, %s7288_s28   ;;  %s4169_s27 = sphi %s4233_s27, %s7287_s27  }
   0x4   : > { %p29_p0 = scmp.ge.s32.totalorder %s28_s10, 2  ;;  %p3317_p1 = scmp.ge.s32.totalorder %s4185_s9, 1 }
   0x5   : > { %p294_p2 = scmp.lt.s32.totalorder %s4185_s9, 5 }
   0x6   : > { %s7292_s10 = smov (%p29_p0, %s28_s10), 0  ;;  %s7294_s11 = smov (!%p29_p0, %s31_s11), %s4181_s30 }
   0x7   : > { %p295_p3 = pnand %p3317_p1, %p294_p2  ;;  %p33_p4 = scmp.ge.s32.totalorder %s7294_s11, 2 }
   0x9   : > { %s7296_s11 = smov (%p33_p4, %s7294_s11), 0  ;;  %298 = sbr.rel (%p295_p3) target bundleno = 751 (0x2ef), region = 44 }
   0xe   : > { %s3323_s12 = sshll.u32 %s4169_s27, 3  ;;  %v568_v0 = vld [vmem:[%s6756_s4 + $0xa8] sm:$0xff]  ;;  %v562_v1 = vld [vmem:[%s6756_s4 + $0x78] sm:$0xff]  ;;  %v6776_v2 = vmov 0   ;;  %v569_v6 = vld [vmem:[%s6756_s4 + $0xb0] sm:$0xff]  ;;  %s341_s24 = smul.u32 96, %s4173_s28 }
   0xf   : > { %4142 = vset.pattern.permute.xlu2 %v6776_v2  ;;  %4141 = vset.pattern.permute.xlu1 %v6776_v2  ;;  %s3325_s17 = sadd.s32 4294967294, %s3323_s12  ;;  %v729_v3 = vld [vmem:[%s6757_s5 + $0xa8] sm:$0xff]  ;;  %v4295_v9 = vld [vmem:[%s6757_s5 + $0x78] sm:$0xff]  ;;  %v563_v12 = vld [vmem:[%s6756_s4 + $0x80] sm:$0xff]  ;;  %s4676_s22 = sadd.s32 6, %s3323_s12 }
  0x10   : > { %v556_v4 = vld [vmem:[%s6756_s4 + $0x48] sm:$0xff]  ;;  %4140 = vset.pattern.permute.xlu0 %v6776_v2  ;;  %v4285_v5 = vstv %s3325_s17  ;;  %vm761_vm0 = vcmp.lt.s32.totalorder %v729_v3, 16  ;;  %vm6763_vm6 = vcmp.lt.s32.totalorder %v4295_v9, 16  ;;  %v557_v14 = vld [vmem:[%s6756_s4 + $0x50] sm:$0xff]  ;;  %v4325_v19 = vld [vmem:[%s6757_s5 + $0x80] sm:$0xff]  ;;  %p4670_p5 = scmp.lt.s32.totalorder %s341_s24, 191 }
  0x11   : > { %v601_v7 = vadd.s32 %v4285_v5, %v568_v0  ;;  %v595_v8 = vadd.s32 %v4285_v5, %v562_v1  ;;  %v589_v10 = vadd.s32 %v4285_v5, %v556_v4  ;;  %v602_v11 = vadd.s32 %v4285_v5, %v569_v6  ;;  %v4305_v13 = vld [vmem:[%s6757_s5 + $0x48] sm:$0xff]  ;;  %v730_v15 = vld [vmem:[%s6757_s5 + $0xb0] sm:$0xff]  ;;  %v551_v22 = vld [vmem:[%s6756_s4 + $0x20] sm:$0xff]  ;;  %s375_s25 = smul.u32 24, %s4676_s22  ;;  %s3319_s20 = sshll.u32 %s4173_s28, 2 }
  0x12   : > { %v596_v16 = vadd.s32 %v4285_v5, %v563_v12  ;;  %vm6769_vm11 = vcmp.lt.s32.totalorder %v4305_v13, 16  ;;  %v564_v18 = vld [vmem:[%s6756_s4 + $0x88] sm:$0xff]  ;;  %v590_v20 = vadd.s32 %v4285_v5, %v557_v14  ;;  %v4338_v23 = vld [vmem:[%s6757_s5 + $0x50] sm:$0xff]  ;;  %v550_v26 = vld [vmem:[%s6756_s4 + $0x18] sm:$0xff]  ;;  %v584_v28 = vadd.s32 %v4285_v5, %v551_v22  ;;  %s7298_s24 = smov (!%p4670_p5, %s341_s24), 191  ;;  %s3321_s26 = sshll.u32 %s4173_s28, 1 }
  0x13   : > { %vm633_vm1 = vcmp.ge.s32.totalorder %v601_v7, 0  ;;  %vm665_vm2 = vcmp.lt.s32.totalorder %v601_v7, 16  ;;  %vm627_vm3 = vcmp.ge.s32.totalorder %v595_v8, 0  ;;  %vm659_vm4 = vcmp.lt.s32.totalorder %v595_v8, 16  ;;  %v4350_v27 = vld [vmem:[%s6757_s5 + $0x88] sm:$0xff]  ;;  %v4359_v30 = vld [vmem:[%s6757_s5 + $0x20] sm:$0xff]  ;;  %s360_s14 = sadd.s32 %s4169_s27, %s3321_s26 }
  0x14   : > { %vm697_vm5 = vmand %vm633_vm1, %vm665_vm2  ;;  %vm621_vm8 = vcmp.ge.s32.totalorder %v589_v10, 0  ;;  %vm653_vm9 = vcmp.lt.s32.totalorder %v589_v10, 16  ;;  %vm634_vm13 = vcmp.ge.s32.totalorder %v602_v11, 0  ;;  %vm666_vm14 = vcmp.lt.s32.totalorder %v602_v11, 16  ;;  %v571_v32 = vld [vmem:[%s6756_s4 + $0xc0] sm:$0xff]  ;;  %v570_v34 = vld [vmem:[%s6756_s4 + $0xb8] sm:$0xff] }
  0x15   : > { %vm793_vm7 = vmand %vm697_vm5, %vm761_vm0  ;;  %vm762_vm0 = vcmp.lt.s32.totalorder %v730_v15, 16  ;;  %vm628_vm2 = vcmp.ge.s32.totalorder %v596_v16, 0  ;;  %v597_v24 = vadd.s32 %v4285_v5, %v564_v18  ;;  %vm6761_vm5 = vcmp.lt.s32.totalorder %v4325_v19, 16  ;;  %v4377_v35 = vld [vmem:[%s6757_s5 + $0x18] sm:$0xff]  ;;  %v565_v38 = vld [vmem:[%s6756_s4 + $0x90] sm:$0xff]  ;;  %s3318_s16 = sshll.u32 %s7298_s24, 2 }
  0x16   : > { %v825_v17 = vsel %vm793_vm7, 1, %v6776_v2  ;;  %vm691_vm10 = vmand %vm627_vm3, %vm659_vm4  ;;  %vm660_vm3 = vcmp.lt.s32.totalorder %v596_v16, 16  ;;  %v583_v31 = vadd.s32 %v4285_v5, %v550_v26  ;;  %v604_v37 = vadd.s32 %v4285_v5, %v571_v32  ;;  %v731_v41 = vld [vmem:[%s6757_s5 + $0xb8] sm:$0xff]  ;;  %v559_v44 = vld [vmem:[%s6756_s4 + $0x60] sm:$0xff]  ;;  %s376_s17 = sshra.s32 %s375_s25, 3  ;;  %s345_s24 = scalar_lea.vmem %s6752_s0, %s3318_s16 }
  0x17   : > { %896 = vperm.xlu1 %4141, %v825_v17   ;;  %vm787_vm12 = vmand %vm691_vm10, %vm6763_vm6  ;;  %v603_v40 = vadd.s32 %v4285_v5, %v570_v34  ;;  %v598_v42 = vadd.s32 %v4285_v5, %v565_v38  ;;  %v4408_v45 = vld [vmem:[%s6757_s5 + $0x90] sm:$0xff]  ;;  %v558_v47 = vld [vmem:[%s6756_s4 + $0x58] sm:$0xff]  ;;  %v592_v50 = vadd.s32 %v4285_v5, %v559_v44  ;;  %s3324_s23 = sshll.u32 %s376_s17, 2  ;;  %p361_p7 = scmp.lt.s32.totalorder %s360_s14, 3 }
  0x18   : > { %v819_v21 = vsel %vm787_vm12, 1, %v6776_v2  ;;  %vm685_vm15 = vmand %vm621_vm8, %vm653_vm9  ;;  %vm622_vm8 = vcmp.ge.s32.totalorder %v590_v20, 0  ;;  %vm654_vm9 = vcmp.lt.s32.totalorder %v590_v20, 16  ;;  %vm6764_vm12 = vcmp.lt.s32.totalorder %v4338_v23, 16  ;;  %v732_v49 = vld [vmem:[%s6757_s5 + $0xc0] sm:$0xff]  ;;  %v552_v52 = vld [vmem:[%s6756_s4 + $0x28] sm:$0xff]  ;;  %s4726_s13 = scalar_lea.vmem %s345_s24, %s3324_s23 }
  0x19   : > { %878 = vperm.xlu0 %4140, %v819_v21   ;;  %vm781_vm1 = vmand %vm685_vm15, %vm6769_vm11  ;;  %vm661_vm15 = vcmp.lt.s32.totalorder %v597_v24, 16  ;;  %v591_v53 = vadd.s32 %v4285_v5, %v558_v47  ;;  %v585_v54 = vadd.s32 %v4285_v5, %v552_v52  ;;  %v4436_v55 = vld [vmem:[%s6757_s5 + $0x60] sm:$0xff]  ;;  %v566_v57 = vld [vmem:[%s6756_s4 + $0x98] sm:$0xff]  ;;  %s7302_s14 = smov (!%p361_p7, %s360_s14), 3 }
  0x1a   : > { %v813_v25 = vsel %vm781_vm1, 1, %v6776_v2  ;;  %vm698_vm4 = vmand %vm634_vm13, %vm666_vm14  ;;  %vm629_vm14 = vcmp.ge.s32.totalorder %v597_v24, 0  ;;  %vm6762_vm1 = vcmp.lt.s32.totalorder %v4350_v27, 16  ;;  %v4447_v58 = vld [vmem:[%s6757_s5 + $0x58] sm:$0xff]  ;;  %v553_v60 = vld [vmem:[%s6756_s4 + $0x30] sm:$0xff]  ;;  %v599_v62 = vadd.s32 %v4285_v5, %v566_v57  ;;  %s370_s18 = scalar_lea.vmem %s6760_s8, %s7302_s14 }
  0x1b   : > { %860 = vperm.xlu2 %4142, %v813_v25   ;;  %vm794_vm7 = vmand %vm698_vm4, %vm762_vm0  ;;  %vm648_vm4 = vcmp.lt.s32.totalorder %v584_v28, 16  ;;  %v4457_v61 = vld [vmem:[%s6757_s5 + $0x28] sm:$0xff]  ;;  %v567_v0 = vld [vmem:[%s6756_s4 + $0xa0] sm:$0xff]  ;;  %v586_v1 = vadd.s32 %v4285_v5, %v553_v60 }
  0x1c   : > { %v826_v29 = vsel %vm794_vm7, 1, %v6776_v2  ;;  %vm692_vm10 = vmand %vm628_vm2, %vm660_vm3  ;;  %vm616_vm3 = vcmp.ge.s32.totalorder %v584_v28, 0  ;;  %v600_v3 = vadd.s32 %v4285_v5, %v567_v0  ;;  %v4475_v4 = vld [vmem:[%s6757_s5 + $0x98] sm:$0xff]  ;;  %v573_v7 = vld [vmem:[%s6756_s4 + $0xd0] sm:$0xff] }
  0x1d   : > { %vm788_vm13 = vmand %vm692_vm10, %vm6761_vm5  ;;  %vm615_vm10 = vcmp.ge.s32.totalorder %v583_v31, 0  ;;  %vm668_vm5 = vcmp.lt.s32.totalorder %v604_v37, 16  ;;  %v4486_v8 = vld [vmem:[%s6757_s5 + $0x30] sm:$0xff]  ;;  %v572_v11 = vld [vmem:[%s6756_s4 + $0xc8] sm:$0xff]  ;;  %v606_v14 = vadd.s32 %v4285_v5, %v573_v7 }
  0x1e   : > { %v820_v33 = vsel %vm788_vm13, 1, %v6776_v2  ;;  %vm686_vm0 = vmand %vm622_vm8, %vm654_vm9  ;;  %vm6772_vm8 = vcmp.lt.s32.totalorder %v4359_v30, 16  ;;  %vm647_vm13 = vcmp.lt.s32.totalorder %v583_v31, 16  ;;  %v4496_v12 = vld [vmem:[%s6757_s5 + $0xa0] sm:$0xff]  ;;  %v560_v16 = vld [vmem:[%s6756_s4 + $0x68] sm:$0xff]  ;;  %v605_v17 = vadd.s32 %v4285_v5, %v572_v11 }
  0x1f   : > { %899 = vperm.xlu1 %4141, %v826_v29   ;;  %vm782_vm2 = vmand %vm686_vm0, %vm6764_vm12  ;;  %v593_v18 = vadd.s32 %v4285_v5, %v560_v16  ;;  %v734_v20 = vld [vmem:[%s6757_s5 + $0xd0] sm:$0xff]  ;;  %v554_v22 = vld [vmem:[%s6756_s4 + $0x38] sm:$0xff] }
  0x20   : > { %v814_v36 = vsel %vm782_vm2, 1, %v6776_v2  ;;  %vm693_vm7 = vmand %vm629_vm14, %vm661_vm15  ;;  %vm743_vm15 = vcmp.lt.s32.totalorder %v4377_v35, 16  ;;  %v733_v24 = vld [vmem:[%s6757_s5 + $0xc8] sm:$0xff]  ;;  %v561_v26 = vld [vmem:[%s6756_s4 + $0x70] sm:$0xff]  ;;  %v587_v29 = vadd.s32 %v4285_v5, %v554_v22 }
  0x21   : > { %881 = vperm.xlu0 %4140, %v820_v33   ;;  %vm4387_vm9 = vmand %vm693_vm7, %vm6762_vm1  ;;  %vm636_vm7 = vcmp.ge.s32.totalorder %v604_v37, 0  ;;  %vm6765_vm1 = vcmp.lt.s32.totalorder %v4408_v45, 16  ;;  %vm657_vm11 = vcmp.lt.s32.totalorder %v593_v18, 16  ;;  %v4530_v28 = vld [vmem:[%s6757_s5 + $0x68] sm:$0xff]  ;;  %v555_v32 = vld [vmem:[%s6756_s4 + $0x40] sm:$0xff]  ;;  %v594_v33 = vadd.s32 %v4285_v5, %v561_v26 }
  0x22   : > { %vm680_vm14 = vmand %vm616_vm3, %vm648_vm4  ;;  %vm635_vm4 = vcmp.ge.s32.totalorder %v603_v40, 0  ;;  %v821_v51 = vsel %vm4387_vm9, 1, %v6776_v2  ;;  %vm624_vm9 = vcmp.ge.s32.totalorder %v592_v50, 0  ;;  %v588_v34 = vadd.s32 %v4285_v5, %v555_v32  ;;  %v574_v38 = vld [vmem:[%s6756_s4 + $0xd8] sm:$0xff]  ;;  %v4554_v39 = vld [vmem:[%s6757_s5 + $0x70] sm:$0xff] }
  0x23   : > { %863 = vperm.xlu2 %4142, %v814_v36   ;;  %vm776_vm0 = vmand %vm680_vm14, %vm6772_vm8  ;;  %vm667_vm14 = vcmp.lt.s32.totalorder %v603_v40, 16  ;;  %vm619_vm8 = vcmp.ge.s32.totalorder %v587_v29, 0  ;;  %v4543_v36 = vld [vmem:[%s6757_s5 + $0x38] sm:$0xff]  ;;  %v577_v52 = vld [vmem:[%s6756_s4 + $0xf0] sm:$0xff] }
  0x24   : > { %v808_v43 = vsel %vm776_vm0, 1, %v6776_v2  ;;  %vm679_vm2 = vmand %vm615_vm10, %vm647_vm13  ;;  %vm763_vm0 = vcmp.lt.s32.totalorder %v731_v41, 16  ;;  %vm630_vm13 = vcmp.ge.s32.totalorder %v598_v42, 0  ;;  %v549_v41 = vld [vmem:[%s6756_s4 + $0x10] sm:$0xff]  ;;  %v576_v60 = vld [vmem:[%s6756_s4 + $0xe8] sm:$0xff] }
  0x25   : > { %vm775_vm3 = vmand %vm679_vm2, %vm743_vm15  ;;  %vm662_vm2 = vcmp.lt.s32.totalorder %v598_v42, 16  ;;  %v4564_v42 = vld [vmem:[%s6757_s5 + $0x40] sm:$0xff]  ;;  %v582_v47 = vadd.s32 %v4285_v5, %v549_v41  ;;  %v738_v7 = vld [vmem:[%s6757_s5 + $0xf0] sm:$0xff] }
  0x26   : > { %v807_v46 = vsel %vm775_vm3, 1, %v6776_v2  ;;  %vm4414_vm10 = vmand %vm636_vm7, %vm668_vm5  ;;  %vm764_vm7 = vcmp.lt.s32.totalorder %v732_v49, 16  ;;  %v735_v49 = vld [vmem:[%s6757_s5 + $0xd8] sm:$0xff]  ;;  %v580_v11 = vld [vmem:[%s6756_s4 + $0x108] sm:$0xff] }
  0x27   : > { %845 = vperm.xlu1 %4141, %v808_v43   ;;  %vm699_vm3 = vmand %vm635_vm4, %vm667_vm14  ;;  %vm656_vm4 = vcmp.lt.s32.totalorder %v592_v50, 16  ;;  %v607_v43 = vadd.s32 %v4285_v5, %v574_v38  ;;  %v3867_v50 = vld [vmem:[%s6753_s1 + $0x78] sm:$0xff]  ;;  %v3865_v16 = vld [vmem:[%s6753_s1 + $0x68] sm:$0xff]  ;;  %v613_v22 = vadd.s32 %v4285_v5, %v580_v11 }
  0x28   : > { %vm795_vm5 = vmand %vm699_vm3, %vm763_vm0  ;;  %vm623_vm0 = vcmp.ge.s32.totalorder %v591_v53, 0  ;;  %vm617_vm3 = vcmp.ge.s32.totalorder %v585_v54, 0  ;;  %4075 = vmatpush.bf16.msra.mxu1 %v3867_v50  ;;  %4076 = vmatpush.bf16.msra.mxu2 %v3867_v50  ;;  %v740_v32 = vld [vmem:[%s6757_s5 + $0x100] sm:$0xff]  ;;  %v3862_v38 = vld [vmem:[%s6753_s1 + $0x50] sm:$0xff] }
  0x29   : > { %842 = vperm.xlu0 %4140, %v807_v46   ;;  %vm694_vm6 = vmand %vm630_vm13, %vm662_vm2  ;;  %v827_v56 = vsel %vm795_vm5, 1, %v6776_v2  ;;  %vm6766_vm2 = vcmp.lt.s32.totalorder %v4436_v55, 16  ;;  %vm649_vm5 = vcmp.lt.s32.totalorder %v585_v54, 16  ;;  %v575_v46 = vld [vmem:[%s6756_s4 + $0xe0] sm:$0xff]  ;;  %v4598_v54 = vld [vmem:[%s6757_s5 + $0x10] sm:$0xff]  ;;  %4077 = vmatpush.bf16.msra.mxu3 %v3867_v50 }
  0x2a   : > { %vm790_vm12 = vmand %vm694_vm6, %vm6765_vm1  ;;  %vm655_vm6 = vcmp.lt.s32.totalorder %v591_v53, 16  ;;  %vm6768_vm1 = vcmp.lt.s32.totalorder %v4475_v4, 16  ;;  %v608_v48 = vadd.s32 %v4285_v5, %v575_v46  ;;  %1104 = vmatpush.bf16.msra.mxu0 %v3867_v50  ;;  %v3860_v46 = vld [vmem:[%s6753_s1 + $0x40] sm:$0xff]  ;;  %v4739_v50 = vld [vmem:[%s4726_s13 + $0x28] sm:$0xff]  }
  0x2b   : > { %884 = vperm.xlu2 %4142, %v821_v51   ;;  %vm796_vm14 = vmand %vm4414_vm10, %vm764_vm7  ;;  %v822_v59 = vsel %vm790_vm12, 1, %v6776_v2  ;;  %vm6767_vm10 = vcmp.lt.s32.totalorder %v4447_v58, 16 }
  0x2c   : > { %vm688_vm13 = vmand %vm624_vm9, %vm656_vm4  ;;  %v828_v63 = vsel %vm796_vm14, 1, %v6776_v2  ;;  %vm6773_vm4 = vcmp.lt.s32.totalorder %v4457_v61, 16 }
  0x2d   : > { %vm687_vm12 = vmand %vm623_vm0, %vm655_vm6  ;;  %vm631_vm0 = vcmp.ge.s32.totalorder %v599_v62, 0  ;;  %vm663_vm6 = vcmp.lt.s32.totalorder %v599_v62, 16  ;;  %v736_v62 = vld [vmem:[%s6757_s5 + $0xe0] sm:$0xff] }
  0x2e   : > { %vm784_vm7 = vmand %vm688_vm13, %vm6766_vm2  ;;  %vm664_vm2 = vcmp.lt.s32.totalorder %v600_v3, 16 }
  0x2f   : > { %902 = vperm.xlu1 %4141, %v827_v56   ;;  %vm681_vm9 = vmand %vm617_vm3, %vm649_vm5  ;;  %v816_v6 = vsel %vm784_vm7, 1, %v6776_v2  ;;  %vm618_vm3 = vcmp.ge.s32.totalorder %v586_v1, 0  ;;  %vm650_vm5 = vcmp.lt.s32.totalorder %v586_v1, 16  ;;  %vm632_vm7 = vcmp.ge.s32.totalorder %v600_v3, 0  ;;  %v3866_v56 = vld [vmem:[%s6753_s1 + $0x70] sm:$0xff]  ;;  %v578_v1 = vld [vmem:[%s6756_s4 + $0xf8] sm:$0xff] }
  0x30   : > { %vm783_vm14 = vmand %vm687_vm12, %vm6767_vm10  ;;  %vm6770_vm10 = vcmp.lt.s32.totalorder %v4496_v12, 16  ;;  %v609_v3 = vadd.s32 %v4285_v5, %v576_v60  ;;  %4078 = vmatpush.bf16.msra.mxu1 %v3866_v56  ;;  %4079 = vmatpush.bf16.msra.mxu2 %v3866_v56 }
  0x31   : > { %887 = vperm.xlu0 %4140, %v822_v59   ;;  %vm777_vm13 = vmand %vm681_vm9, %vm6773_vm4  ;;  %v815_v10 = vsel %vm783_vm14, 1, %v6776_v2  ;;  %vm6771_vm14 = vcmp.lt.s32.totalorder %v4486_v8, 16  ;;  %vm651_vm4 = vcmp.lt.s32.totalorder %v587_v29, 16  ;;  %4080 = vmatpush.bf16.msra.mxu3 %v3866_v56  ;;  %v4758_v59 = vld [vmem:[%s6755_s3] ss:$0 sm:$0xff] }
  0x32   : > { %vm695_vm12 = vmand %vm631_vm0, %vm663_vm6  ;;  %v809_v15 = vsel %vm777_vm13, 1, %v6776_v2  ;;  %1105 = vmatpush.bf16.msra.mxu0 %v3866_v56  ;;  %v3942_v56 = vunpack.c.l.bf16 %v4739_v50 }
  0x33   : > { %905 = vperm.xlu2 %4142, %v828_v63   ;;  %vm682_vm9 = vmand %vm618_vm3, %vm650_vm5  ;;  %vm638_vm3 = vcmp.ge.s32.totalorder %v606_v14, 0  ;;  %vm670_vm5 = vcmp.lt.s32.totalorder %v606_v14, 16  ;;  %v610_v63 = vadd.s32 %v4285_v5, %v577_v52  ;;  %v4747_v52 = vld [vmem:[%s6754_s2] ss:$0 sm:$0xff]  ;;  %v4795_v14 = vld [vmem:[%s4726_s13 + $0x50] sm:$0xff]  }
  0x34   : > { %vm791_vm0 = vmand %vm695_vm12, %vm6768_vm1  ;;  %vm637_vm12 = vcmp.ge.s32.totalorder %v605_v17, 0  ;;  %vm766_vm1 = vcmp.lt.s32.totalorder %v734_v20, 16  ;;  %v579_v20 = vld [vmem:[%s6756_s4 + $0x100] sm:$0xff]  ;;  %4081 = vmatpush.bf16.msra.mxu1 %v3865_v16  ;;  %4082 = vmatpush.bf16.msra.mxu2 %v3865_v16 }
  0x35   : > { %vm696_vm6 = vmand %vm632_vm7, %vm664_vm2  ;;  %v823_v21 = vsel %vm791_vm0, 1, %v6776_v2  ;;  %vm669_vm7 = vcmp.lt.s32.totalorder %v605_v17, 16  ;;  %vm625_vm0 = vcmp.ge.s32.totalorder %v593_v18, 0  ;;  %4083 = vmatpush.bf16.msra.mxu3 %v3865_v16  ;;  %v612_v26 = vadd.s32 %v4285_v5, %v579_v20 }
  0x36   : > { %vm778_vm13 = vmand %vm682_vm9, %vm6771_vm14  ;;  %1106 = vmatpush.bf16.msra.mxu0 %v3865_v16  ;;  %v4055_v16 = vld [vmem:[%s4726_s13 + $0x40] sm:$0xff]   ;;  %v6917_v18 = vmov 0 }
  0x37   : > { %869 = vperm.xlu1 %4141, %v816_v6   ;;  %vm792_vm2 = vmand %vm696_vm6, %vm6770_vm10  ;;  %v810_v25 = vsel %vm778_vm13, 1, %v6776_v2  ;;  %vm765_vm13 = vcmp.lt.s32.totalorder %v733_v24, 16  ;;  %vm6774_vm10 = vcmp.lt.s32.totalorder %v4530_v28, 16  ;;  %v611_v6 = vadd.s32 %v4285_v5, %v578_v1  ;;  %v3864_v24 = vld [vmem:[%s6753_s1 + $0x60] sm:$0xff] }
  0x38   : > { %vm702_vm9 = vmand %vm638_vm3, %vm670_vm5  ;;  %v824_v31 = vsel %vm792_vm2, 1, %v6776_v2  ;;  %vm658_vm2 = vcmp.lt.s32.totalorder %v594_v33, 16  ;;  %4084 = vmatpush.bf16.msra.mxu1 %v3864_v24  ;;  %4085 = vmatpush.bf16.msra.mxu2 %v3864_v24 }
  0x39   : > { %866 = vperm.xlu0 %4140, %v815_v10   ;;  %vm701_vm6 = vmand %vm637_vm12, %vm669_vm7  ;;  %vm747_vm7 = vcmp.lt.s32.totalorder %v4543_v36, 16  ;;  %4086 = vmatpush.bf16.msra.mxu3 %v3864_v24 }
  0x3a   : > { %vm798_vm3 = vmand %vm702_vm9, %vm766_vm1  ;;  %vm626_vm1 = vcmp.ge.s32.totalorder %v594_v33, 0  ;;  %vm620_vm9 = vcmp.ge.s32.totalorder %v588_v34, 0  ;;  %v3863_v33 = vld [vmem:[%s6753_s1 + $0x58] sm:$0xff]  ;;  %1107 = vmatpush.bf16.msra.mxu0 %v3864_v24 }
  0x3b   : > { %848 = vperm.xlu2 %4142, %v809_v15   ;;  %vm689_vm5 = vmand %vm625_vm0, %vm657_vm11  ;;  %v830_v37 = vsel %vm798_vm3, 1, %v6776_v2  ;;  %vm652_vm0 = vcmp.lt.s32.totalorder %v588_v34, 16  ;;  %v737_v15 = vld [vmem:[%s6757_s5 + $0xe8] sm:$0xff] }
  0x3c   : > { %vm797_vm14 = vmand %vm701_vm6, %vm765_vm13  ;;  %vm748_vm13 = vcmp.lt.s32.totalorder %v4564_v42, 16  ;;  %4087 = vmatpush.bf16.msra.mxu1 %v3863_v33  ;;  %4088 = vmatpush.bf16.msra.mxu2 %v3863_v33  ;;  %v2897_v42 = vsel %vm747_vm7, 1, %v6776_v2 }
  0x3d   : > { %vm785_vm11 = vmand %vm689_vm5, %vm6774_vm10  ;;  %v829_v40 = vsel %vm797_vm14, 1, %v6776_v2  ;;  %vm639_vm5 = vcmp.ge.s32.totalorder %v607_v43, 0  ;;  %vm768_vm10 = vcmp.lt.s32.totalorder %v736_v62, 16  ;;  %4089 = vmatpush.bf16.msra.mxu3 %v3863_v33  ;;  %v456_v62 = vmul.f32 %v4747_v52, %v3942_v56  ;;  %v3874_v56 = vld [vmem:[%s6753_s1 + $0xb0] sm:$0xff] }
  0x3e   : > { %vm683_vm12 = vmand %vm619_vm8, %vm651_vm4  ;;  %v817_v44 = vsel %vm785_vm11, 1, %v6776_v2  ;;  %vm6775_vm8 = vcmp.lt.s32.totalorder %v4554_v39, 16  ;;  %vm671_vm11 = vcmp.lt.s32.totalorder %v607_v43, 16  ;;  %1108 = vmatpush.bf16.msra.mxu0 %v3863_v33  ;;  %v3861_v43 = vld [vmem:[%s6753_s1 + $0x48] sm:$0xff] }
  0x3f   : > { %890 = vperm.xlu1 %4141, %v823_v21   ;;  %vm690_vm14 = vmand %vm626_vm1, %vm658_vm2  ;;  %vm614_vm2 = vcmp.ge.s32.totalorder %v582_v47, 0  ;;  %v739_v21 = vld [vmem:[%s6757_s5 + $0xf8] sm:$0xff]  ;;  %v492_v35 = vadd.f32 %v4758_v59, %v456_v62 }
  0x40   : > { %vm779_vm4 = vmand %vm683_vm12, %vm747_vm7  ;;  %vm646_vm12 = vcmp.lt.s32.totalorder %v582_v47, 16  ;;  %4090 = vmatpush.bf16.msra.mxu1 %v3862_v38  ;;  %4091 = vmatpush.bf16.msra.mxu2 %v3862_v38  ;;  %vm6921_vm7 = vcmp.lt.s32.totalorder %v4305_v13, 16  ;;  %v3875_v13 = vld [vmem:[%s6753_s1 + $0xb8] sm:$0xff] }
  0x41   : > { %851 = vperm.xlu0 %4140, %v810_v25   ;;  %vm684_vm6 = vmand %vm620_vm9, %vm652_vm0  ;;  %v811_v51 = vsel %vm779_vm4, 1, %v6776_v2  ;;  %vm767_vm0 = vcmp.lt.s32.totalorder %v735_v49, 16  ;;  %vm672_vm4 = vcmp.lt.s32.totalorder %v608_v48, 16  ;;  %4092 = vmatpush.bf16.msra.mxu3 %v3862_v38  ;;  %v4736_v49 = vld [vmem:[%s4726_s13 + $0x20] sm:$0xff]   ;;  %v2899_v36 = vsel %vm6921_vm7, 1, %v6776_v2 }
  0x42   : > { %vm786_vm3 = vmand %vm690_vm14, %vm6775_vm8  ;;  %vm640_vm14 = vcmp.ge.s32.totalorder %v608_v48, 0  ;;  %vm677_vm8 = vcmp.lt.s32.totalorder %v613_v22, 16  ;;  %1109 = vmatpush.bf16.msra.mxu0 %v3862_v38  ;;  %v2843_v48 = vld [vmem:[%s6757_s5 + $0x8] sm:$0xff]  ;;  %v3939_v53 = vunpack.c.h.bf16 %v4736_v49 }
  0x43   : > { %893 = vperm.xlu2 %4142, %v824_v31   ;;  %vm4591_vm1 = vmand %vm684_vm6, %vm748_vm13  ;;  %v818_v57 = vsel %vm786_vm3, 1, %v6776_v2  ;;  %vm742_vm3 = vcmp.lt.s32.totalorder %v4598_v54, 16  ;;  %v741_v31 = vld [vmem:[%s6757_s5 + $0x108] sm:$0xff]  ;;  %v2893_v54 = vsel %vm743_vm15, 1, %v6776_v2  ;;  %vm6913_vm15 = vcmp.lt.s32.totalorder %v4359_v30, 16 }
  0x44   : > { %vm4604_vm9 = vmand %vm639_vm5, %vm671_vm11  ;;  %v812_v0 = vsel %vm4591_vm1, 1, %v6776_v2  ;;  %4093 = vmatpush.bf16.msra.mxu1 %v3861_v43  ;;  %4094 = vmatpush.bf16.msra.mxu2 %v3861_v43  ;;  %v455_v60 = vmul.f32 %v4747_v52, %v3939_v53  ;;  %v2898_v30 = vsel %vm748_vm13, 1, %v6776_v2  ;;  %v4849_v38 = vld [vmem:[%s4726_s13 + $0x8] sm:$0xff]   ;;  %v3859_v53 = vld [vmem:[%s6753_s1 + $0x38] sm:$0xff] }
  0x45   : > { %vm678_vm6 = vmand %vm614_vm2, %vm646_vm12  ;;  %vm642_vm2 = vcmp.ge.s32.totalorder %v610_v63, 0  ;;  %vm674_vm12 = vcmp.lt.s32.totalorder %v610_v63, 16  ;;  %4095 = vmatpush.bf16.msra.mxu3 %v3861_v43 }
  0x46   : > { %vm799_vm5 = vmand %vm4604_vm9, %vm767_vm0  ;;  %vm641_vm0 = vcmp.ge.s32.totalorder %v609_v3, 0  ;;  %1110 = vmatpush.bf16.msra.mxu0 %v3861_v43  ;;  %v491_v63 = vadd.f32 %v4758_v59, %v455_v60 }
  0x47   : > { %911 = vperm.xlu1 %4141, %v830_v37   ;;  %vm704_vm11 = vmand %vm640_vm14, %vm672_vm4  ;;  %v831_v10 = vsel %vm799_vm5, 1, %v6776_v2  ;;  %vm673_vm14 = vcmp.lt.s32.totalorder %v609_v3, 16  ;;  %vm675_vm5 = vcmp.lt.s32.totalorder %v611_v6, 16  ;;  %v2894_v3 = vsel %vm6913_vm15, 1, %v6776_v2 }
  0x48   : > { %vm774_vm1 = vmand %vm678_vm6, %vm742_vm3  ;;  %vm643_vm6 = vcmp.ge.s32.totalorder %v611_v6, 0  ;;  %4096 = vmatpush.bf16.msra.mxu1 %v3860_v46  ;;  %4097 = vmatpush.bf16.msra.mxu2 %v3860_v46  ;;  %v4772_v6 = vmax.f32 %v491_v63, 0.0  ;;  %v3882_v63 = vld [vmem:[%s6753_s1 + $0xf0] sm:$0xff] }
  0x49   : > { %908 = vperm.xlu0 %4140, %v829_v40   ;;  %vm4638_vm9 = vmand %vm704_vm11, %vm768_vm10  ;;  %v806_v17 = vsel %vm774_vm1, 1, %v6776_v2  ;;  %vm770_vm10 = vcmp.lt.s32.totalorder %v738_v7, 16  ;;  %vm769_vm1 = vcmp.lt.s32.totalorder %v737_v15, 16  ;;  %v2842_v40 = vld [vmem:[%s6757_s5] sm:$0xff]  ;;  %4098 = vmatpush.bf16.msra.mxu3 %v3860_v46  ;;  %v4798_v15 = vld [vmem:[%s4726_s13 + $0x58] sm:$0xff]  }
  0x4a   : > { %vm4649_vm4 = vmand %vm642_vm2, %vm674_vm12  ;;  %v832_v25 = vsel %vm4638_vm9, 1, %v6776_v2  ;;  %vm771_vm9 = vcmp.lt.s32.totalorder %v739_v21, 16  ;;  %1111 = vmatpush.bf16.msra.mxu0 %v3860_v46  ;;  %v3963_v21 = vunpack.c.h.bf16 %v4795_v14  ;;  %v3966_v24 = vunpack.c.l.bf16 %v4798_v15  ;;  %v4859_v46 = vld [vmem:[%s4726_s13 + $0x10] sm:$0xff]  }
  0x4b   : > { %872 = vperm.xlu2 %4142, %v817_v44   ;;  %vm705_vm11 = vmand %vm641_vm0, %vm673_vm14  ;;  %vm645_vm14 = vcmp.ge.s32.totalorder %v613_v22, 0  ;;  %v4827_v22 = vld [vmem:[%s4726_s13 + $0x38] sm:$0xff]  }
  0x4c   : > { %vm802_vm2 = vmand %vm4649_vm4, %vm770_vm10  ;;  %vm644_vm10 = vcmp.ge.s32.totalorder %v612_v26, 0  ;;  %v3951_v29 = vunpack.c.h.bf16 %v4827_v22  ;;  %1598 = vmatpush.bf16.msrb.mxu2 %v3875_v13  ;;  %1350 = vmatpush.bf16.msrb.mxu1 %v3859_v53  ;;  %v3967_v13 = vunpack.c.h.bf16 %v4798_v15  ;;  %v3881_v53 = vld [vmem:[%s6753_s1 + $0xe8] sm:$0xff] }
  0x4d   : > { %vm707_vm12 = vmand %vm643_vm6, %vm675_vm5  ;;  %v834_v5 = vsel %vm802_vm2, 1, %v6776_v2  ;;  %vm676_vm6 = vcmp.lt.s32.totalorder %v612_v26, 16  ;;  %vm772_vm2 = vcmp.lt.s32.totalorder %v740_v32, 16  ;;  %v3955_v26 = vunpack.c.h.bf16 %v4055_v16 }
  0x4e   : > { %vm4684_vm0 = vmand %vm705_vm11, %vm769_vm1  ;;  %vm773_vm11 = vcmp.lt.s32.totalorder %v741_v31, 16  ;;  %v468_v32 = vmul.f32 %v4747_v52, %v3966_v24 }
  0x4f   : > { %854 = vperm.xlu1 %4141, %v811_v51   ;;  %vm803_vm4 = vmand %vm707_vm12, %vm771_vm9  ;;  %v833_v34 = vsel %vm4684_vm0, 1, %v6776_v2  ;;  %vm2866_vm9 = vcmp.lt.s32.totalorder %v2842_v40, 16  ;;  %vm2867_vm0 = vcmp.lt.s32.totalorder %v2843_v48, 16  ;;  %v2892_v51 = vsel %vm742_vm3, 1, %v6776_v2 }
  0x50   : > { %vm709_vm5 = vmand %vm645_vm14, %vm677_vm8  ;;  %v835_v37 = vsel %vm803_vm4, 1, %v6776_v2  ;;  %v2890_v47 = vsel %vm2866_vm9, 1, %v6776_v2  ;;  %vm6911_vm3 = vcmp.lt.s32.totalorder %v4457_v61, 16  ;;  %vm6914_vm14 = vcmp.lt.s32.totalorder %v4486_v8, 16  ;;  %1599 = vmatpush.bf16.msrb.mxu2 %v3874_v56 }
  0x51   : > { %875 = vperm.xlu0 %4140, %v818_v57   ;;  %vm708_vm1 = vmand %vm644_vm10, %vm676_vm6  ;;  %v2891_v57 = vsel %vm2867_vm0, 1, %v6776_v2  ;;  %v2896_v7 = vsel %vm6914_vm14, 1, %v6776_v2  ;;  %v4777_v61 = vmax.f32 %v492_v35, 0.0  ;;  %vm6922_vm6 = vcmp.lt.s32.totalorder %v4447_v58, 16 }
  0x52   : > { %vm805_vm12 = vmand %vm709_vm5, %vm773_vm11  ;;  %v2901_v31 = vsel %vm6922_vm6, 1, %v6776_v2  ;;  %vm6923_vm5 = vcmp.lt.s32.totalorder %v4338_v23, 16  ;;  %v463_v40 = vmul.f32 %v4747_v52, %v3955_v26  ;;  %v461_v58 = vmul.f32 %v4747_v52, %v3951_v29  ;;  %v4908_v26 = vld [vmem:[%s4726_s13 + $0x48] sm:$0xff]  }
  0x53   : > { %857 = vperm.xlu2 %4142, %v812_v0   ;;  %vm804_vm8 = vmand %vm708_vm1, %vm772_vm2  ;;  %v837_v41 = vsel %vm805_vm12, 1, %v6776_v2  ;;  %v2895_v0 = vsel %vm6911_vm3, 1, %v6776_v2  ;;  %6915 = vst [vmem:[#allocation3_spill] sm:$0xff] %v4777_v61  ;;  %vm6924_vm11 = vcmp.lt.s32.totalorder %v4436_v55, 16  ;;  %v3930_v48 = vunpack.c.l.bf16 %v4859_v46  ;;  %v3883_v55 = vld [vmem:[%s6753_s1 + $0xf8] sm:$0xff] }
  0x54   : > { %v836_v44 = vsel %vm804_vm8, 1, %v6776_v2  ;;  %v497_v62 = vadd.f32 %v4758_v59, %v461_v58  ;;  %1831 = vmatpush.bf16.msrb.mxu3 %v3883_v55  ;;  %vm6926_vm1 = vcmp.lt.s32.totalorder %v4554_v39, 16  ;;  %vm6929_vm2 = vcmp.lt.s32.totalorder %v4530_v28, 16  ;;  %v3891_v55 = vld [vmem:[%s6753_s1 + $0x138] sm:$0xff] }
  0x55   : > { %v2904_v35 = vsel %vm6926_vm1, 1, %v6776_v2  ;;  %vm6932_vm8 = vcmp.lt.s32.totalorder %v4295_v9, 16  ;;  %v3958_v15 = vunpack.c.l.bf16 %v4908_v26  ;;  %vm6938_vm14 = vcmp.lt.s32.totalorder %v4350_v27, 16  ;;  %1991 = vmatpush.bf16.msrb.mxu0 %v3891_v55  ;;  %v3871_v55 = vld [vmem:[%s6753_s1 + $0x98] sm:$0xff] }
  0x56   : > { %v4904_v24 = vmax.f32 %v497_v62, 0.0  ;;  %v2905_v29 = vsel %vm6932_vm8, 1, %v6776_v2  ;;  %vm6940_vm6 = vcmp.lt.s32.totalorder %v4325_v19, 16  ;;  %v469_v27 = vmul.f32 %v4747_v52, %v3967_v13 }
  0x57   : > { %914 = vperm.xlu1 %4141, %v831_v10   ;;  %v4785_v10 = vpack.c.bf16 %v4777_v61, %v4772_v6  ;;  %vm6948_vm8 = vcmp.lt.s32.totalorder %v4496_v12, 16 }
  0x58   : > { %6931 = vst [vmem:[#allocation11_spill] sm:$0xff] %v4904_v24  ;;  %1832 = vmatpush.bf16.msrb.mxu3 %v3882_v63  ;;  %v6941_v63 = vmov 0 }
  0x59   : > { %839 = vperm.xlu0 %4140, %v806_v17   ;;  %6916 = vst [vmem:[#allocation4_spill] sm:$0xff] %v4785_v10 }
  0x5b   : > { %917 = vperm.xlu2 %4142, %v832_v25   ;;  %v3954_v25 = vunpack.c.l.bf16 %v4055_v16  ;;  %v450_v16 = vmul.f32 %v4747_v52, %v3930_v48  ;;  %v2906_v48 = vsel %vm6940_vm6, 1, %v6776_v2 }
  0x5c   : > { %1833 = vmatpush.bf16.msrb.mxu3 %v3881_v53 }
  0x5f   : > { %923 = vperm.xlu1 %4141, %v834_v5   ;;  %v467_v5 = vmul.f32 %v4747_v52, %v3963_v21  ;;  %v2903_v21 = vsel %vm6929_vm2, 1, %v6776_v2 }
  0x61   : > { %920 = vperm.xlu0 %4140, %v833_v34   ;;  %v462_v34 = vmul.f32 %v4747_v52, %v3954_v25  ;;  %v503_v43 = vadd.f32 %v4758_v59, %v467_v5  ;;  %v3962_v25 = vunpack.c.l.bf16 %v4795_v14 }
  0x63   : > { %926 = vperm.xlu2 %4142, %v835_v37   ;;  %v2900_v37 = vsel %vm6923_vm5, 1, %v6776_v2 }
  0x67   : > { %932 = vperm.xlu1 %4141, %v837_v41   ;;  %v2902_v41 = vsel %vm6924_vm11, 1, %v6776_v2  ;;  %vm6944_vm11 = vcmp.lt.s32.totalorder %v4408_v45, 16 }
  0x69   : > { %929 = vperm.xlu0 %4140, %v836_v44   ;;  %v504_v44 = vadd.f32 %v4758_v59, %v468_v32  ;;  %v4927_v32 = vadd.f32 %v4758_v59, %v450_v16 }
  0x6b   : > { %2915 = vperm.xlu2 %4142, %v2890_v47   ;;  %v498_v47 = vadd.f32 %v4758_v59, %v462_v34  ;;  %v3873_v34 = vld [vmem:[%s6753_s1 + $0xa8] sm:$0xff] }
  0x6c   : > { %1600 = vmatpush.bf16.msrb.mxu2 %v3873_v34  ;;  %v3890_v34 = vld [vmem:[%s6753_s1 + $0x130] sm:$0xff] }
  0x6d   : > { %1992 = vmatpush.bf16.msrb.mxu0 %v3890_v34  ;;  %v3870_v34 = vld [vmem:[%s6753_s1 + $0x90] sm:$0xff] }
  0x6f   : > { %2921 = vperm.xlu1 %4141, %v2892_v51   ;;  %v3927_v51 = vunpack.c.h.bf16 %v4849_v38 }
  0x71   : > { %2918 = vperm.xlu0 %4140, %v2891_v57   ;;  %v4876_v57 = vld [vmem:[%s4726_s13 + $0x60] sm:$0xff]  }
  0x73   : > { %2924 = vperm.xlu2 %4142, %v2893_v54   ;;  %v499_v54 = vadd.f32 %v4758_v59, %v463_v40 }
  0x75   : > { %v4767_v1 = vpop.permute.xlu2 %860  ;;  %v4902_v39 = vmax.f32 %v499_v54, 0.0 }
  0x76   : > { %6912 = vst [vmem:[#allocation2_spill] sm:$0xff] %v4767_v1  ;;  %vm6783_vm4 = vcmp.eq.s32.totalorder %v4767_v1, 1 }
  0x77   : > { %2930 = vperm.xlu1 %4141, %v2895_v0   ;;  %v4790_v8 = vsel %vm6783_vm4, %v4772_v6, 0.0  ;;  %v4885_v0 = vmax.f32 %v503_v43, 0.0  ;;  %6930 = vst [vmem:[#allocation10_spill] sm:$0xff] %v4902_v39  ;;  %v2907_v43 = vsel %vm6938_vm14, 1, %v6776_v2 }
  0x79   : > { %2927 = vperm.xlu0 %4140, %v2894_v3   ;;  %6925 = vst [vmem:[#allocation7_spill] sm:$0xff] %v4885_v0  ;;  %v4890_v3 = vmax.f32 %v504_v44, 0.0  ;;  %v466_v44 = vmul.f32 %v4747_v52, %v3962_v25  ;;  %v464_v25 = vmul.f32 %v4747_v52, %v3958_v15  ;;  %v505_v15 = vadd.f32 %v4758_v59, %v469_v27 }
  0x7a   : > { %v6945_v27 = vmax.f32 %v4927_v32, 0.0 }
  0x7b   : > { %2933 = vperm.xlu2 %4142, %v2896_v7   ;;  %6927 = vst [vmem:[#allocation8_spill] sm:$0xff] %v4890_v3  ;;  %v4916_v28 = vpack.c.bf16 %v4890_v3, %v4885_v0  ;;  %v502_v13 = vadd.f32 %v4758_v59, %v466_v44  ;;  %v3943_v44 = vunpack.c.h.bf16 %v4739_v50 }
  0x7d   : > { %v4792_v11 = vpop.permute.xlu2 %863  ;;  %6933 = vst [vmem:[#allocation12_spill] sm:$0xff] %v4916_v28  ;;  %v5053_v50 = vmax.f32 %v502_v13, 0.0  ;;  %v5070_v13 = vmax.f32 %v505_v15, 0.0  ;;  %v457_v12 = vmul.f32 %v4747_v52, %v3943_v44  ;;  %v3938_v44 = vunpack.c.l.bf16 %v4736_v49  ;;  %v2864_v49 = vld [vmem:[%s6757_s5 + $0xb0] sm:$0xff] }
  0x7e   : > { %vm942_vm10 = vcmp.eq.s32.totalorder %v4792_v11, 1 }
  0x7f   : > { %v4808_v17 = vsel %vm942_vm10, %v4777_v61, 0.0  ;;  %2939 = vperm.xlu1 %4141, %v2898_v30   ;;  %vm4814_vm13 = vmpackc.low %vm942_vm10, %vm6783_vm4  ;;  %v3970_v30 = vunpack.c.l.bf16 %v4876_v57  ;;  %6946 = vst [vmem:[#allocation17_spill] sm:$0xff] %v5053_v50 }
  0x80   : > { %v6918_v18 = vsel %vm4814_vm13, 4294967295, %v6917_v18  ;;  %v4820_v20 = vpack.c.bf16 %v4808_v17, %v4790_v8  ;;  %3385 = vmatmul.msk.bf16.vlgmr.msra.gmra.mxu1 %vm4814_vm13, %v4785_v10  ;;  %6949 = vst [vmem:[#allocation18_spill] sm:$0xff] %v5070_v13  ;;  %v3888_v10 = vld [vmem:[%s6753_s1 + $0x120] sm:$0xff] }
  0x81   : > { %6919 = vst [vmem:[#allocation5_spill] sm:$0xff] %v6918_v18  ;;  %2936 = vperm.xlu0 %4140, %v2897_v42   ;;  %v4895_v42 = vmax.f32 %v498_v47, 0.0  ;;  %v454_v18 = vmul.f32 %v4747_v52, %v3938_v44 }
  0x82   : > { %6920 = vst [vmem:[#allocation6_spill] sm:$0xff] %v4820_v20 }
  0x83   : > { %2942 = vperm.xlu2 %4142, %v2899_v36   ;;  %6928 = vst [vmem:[#allocation9_spill] sm:$0xff] %v4895_v42  ;;  %v449_v36 = vmul.f32 %v4747_v52, %v3927_v51  ;;  %v4924_v14 = vpack.c.bf16 %v4895_v42, %v4904_v24  ;;  %v3858_v51 = vld [vmem:[%s6753_s1 + $0x30] sm:$0xff] }
  0x84   : > { %1351 = vmatpush.bf16.msrb.mxu1 %v3858_v51 }
  0x85   : > { %v4842_v33 = vpop.permute.xlu2 %884  ;;  %6934 = vst [vmem:[#allocation13_spill] sm:$0xff] %v4924_v14  ;;  %v4930_v9 = vadd.f32 %v4758_v59, %v449_v36 }
  0x86   : > { %vm949_vm9 = vcmp.eq.s32.totalorder %v4842_v33, 1 }
  0x87   : > { %2948 = vperm.xlu1 %4141, %v2901_v31   ;;  %v470_v31 = vmul.f32 %v4747_v52, %v3970_v30  ;;  %v4987_v56 = vsel %vm949_vm9, %v4902_v39, 0.0  ;;  %v3872_v30 = vld [vmem:[%s6753_s1 + $0xa0] sm:$0xff] }
  0x88   : > { %1601 = vmatpush.bf16.msrb.mxu2 %v3872_v30  ;;  %v500_v30 = vadd.f32 %v4758_v59, %v464_v25  ;;  %v6947_v25 = vmov 0  }
  0x89   : > { %2945 = vperm.xlu0 %4140, %v2900_v37   ;;  %v4861_v23 = vpop.permute.xlu1 %896  ;;  %v506_v45 = vadd.f32 %v4758_v59, %v470_v31  ;;  %v3880_v31 = vld [vmem:[%s6753_s1 + $0xe0] sm:$0xff] }
  0x8a   : > { %vm6798_vm12 = vcmp.eq.s32.totalorder %v4861_v23, 1  ;;  %1834 = vmatpush.bf16.msrb.mxu3 %v3880_v31 }
  0x8b   : > { %2951 = vperm.xlu2 %4142, %v2902_v41   ;;  %v4879_v60 = vpop.permute.xlu0 %878  ;;  %v4942_v37 = vsel %vm6798_vm12, %v4885_v0, 0.0  ;;  %v6935_v41 = vmov 0  ;;  %v5083_v15 = vmax.f32 %v506_v45, 0.0  ;;  %v5101_v45 = vld [vmem:[%s4726_s13 + $0x18] sm:$0xff]  }
  0x8c   : > { %vm6792_vm0 = vcmp.eq.s32.totalorder %v4879_v60, 1  ;;  %1602 = vmatpush.bf16.msrb.mxu2 %v3871_v55 }
  0x8d   : > { %v4892_v7 = vpop.permute.xlu2 %905  ;;  %v4992_v19 = vsel %vm6792_vm0, %v4904_v24, 0.0  ;;  %6950 = vst [vmem:[#allocation19_spill] sm:$0xff] %v5083_v15 }
  0x8f   : > { %2957 = vperm.xlu1 %4141, %v2904_v35   ;;  %v5033_v35 = vld [vmem:[%s4726_s13 + $0x30] sm:$0xff]  }
  0x90   : > { %1603 = vmatpush.bf16.msrb.mxu2 %v3870_v34  ;;  %v3934_v34 = vunpack.c.l.bf16 %v5101_v45 }
  0x91   : > { %2954 = vperm.xlu0 %4140, %v2903_v21   ;;  %v4920_v5 = vpop.permute.xlu1 %899  ;;  %v6778_v21 = vmax.f32 %v4930_v9, 0.0 }
  0x92   : > { %vm6784_vm3 = vcmp.eq.s32.totalorder %v4920_v5, 1 }
  0x93   : > { %2960 = vperm.xlu2 %4142, %v2905_v29   ;;  %v4947_v40 = vsel %vm6784_vm3, %v4890_v3, 0.0  ;;  %v4949_v58 = vpop.permute.xlu0 %881  ;;  %vm4955_vm15 = vmpackc.low %vm6784_vm3, %vm6798_vm12  ;;  %v3857_v29 = vld [vmem:[%s6753_s1 + $0x28] sm:$0xff]  ;;  %v3375_v53 = vpack.c.bf16 %v6945_v27, %v6778_v21  ;;  %v3856_v27 = vld [vmem:[%s6753_s1 + $0x20] sm:$0xff]  ;;  %vm2888_vm3 = vcmp.lt.s32.totalorder %v2864_v49, 16 }
  0x94   : > { %v6936_v41 = vsel %vm4955_vm15, 4294967295, %v6935_v41  ;;  %v4965_v47 = vpack.c.bf16 %v4947_v40, %v4942_v37  ;;  %vm948_vm7 = vcmp.eq.s32.totalorder %v4949_v58, 1  ;;  %3403 = vmatmul.msk.bf16.vlgmr.msra.gmra.mxu3 %vm4955_vm15, %v4916_v28  ;;  %1352 = vmatpush.bf16.msrb.mxu1 %v3857_v29  ;;  %v3889_v21 = vld [vmem:[%s6753_s1 + $0x128] sm:$0xff]  ;;  %v2910_v29 = vsel %vm6948_vm8, 1, %v6947_v25  ;;  %v3868_v3 = vld [vmem:[%s6753_s1 + $0x80] sm:$0xff]  ;;  %v3854_v58 = vld [vmem:[%s6753_s1 + $0x10] sm:$0xff] }
  0x95   : > { %6937 = vst [vmem:[#allocation14_spill] sm:$0xff] %v6936_v41  ;;  %v980_v54 = vsel %vm948_vm7, %v4895_v42, 0.0  ;;  %v4997_v62 = vpop.permute.xlu2 %848  ;;  %vm5003_vm5 = vmpackc.low %vm948_vm7, %vm6792_vm0  ;;  %vm6951_vm8 = vcmp.lt.s32.totalorder %v4475_v4, 16  ;;  %v5089_v28 = vmax.f32 %v500_v30, 0.0  ;;  %1993 = vmatpush.bf16.msrb.mxu0 %v3889_v21  ;;  %v5112_v30 = vpack.c.bf16 %v5083_v15, %v5070_v13 }
  0x96   : > { %6939 = vst [vmem:[#allocation15_spill] sm:$0xff] %v4965_v47  ;;  %v6942_v63 = vsel %vm5003_vm5, 4294967295, %v6941_v63  ;;  %v5012_v16 = vpack.c.bf16 %v4987_v56, %v980_v54  ;;  %v5015_v36 = vpack.c.bf16 %v980_v54, %v4992_v19  ;;  %3394 = vmatmul.msk.bf16.vlgmr.msra.gmra.mxu2 %vm5003_vm5, %v4924_v14  ;;  %v2908_v54 = vsel %vm6944_vm11, 1, %v6776_v2 }
  0x97   : > { %6943 = vst [vmem:[#allocation16_spill] sm:$0xff] %v6942_v63  ;;  %2966 = vperm.xlu1 %4141, %v2907_v43   ;;  %v3946_v43 = vunpack.c.l.bf16 %v5033_v35  ;;  %v2909_v55 = vsel %vm6951_vm8, 1, %v6947_v25  ;;  %v2865_v63 = vld [vmem:[%s6757_s5 + $0xb8] sm:$0xff]  ;;  %v3931_v21 = vunpack.c.h.bf16 %v4859_v46  ;;  %v3959_v46 = vunpack.c.h.bf16 %v4908_v26 }
  0x98   : > { %6952 = vst [vmem:[#allocation20_spill] sm:$0xff] %v5089_v28  ;;  %1353 = vmatpush.bf16.msrb.mxu1 %v3856_v27  ;;  %vm2889_vm8 = vcmp.lt.s32.totalorder %v2865_v63, 16  ;;  %v3869_v27 = vld [vmem:[%s6753_s1 + $0x88] sm:$0xff]  ;;  %v6955_v26 = vmov 0  ;;  %v6959_v63 = vmov 0 }
  0x99   : > { %2963 = vperm.xlu0 %4140, %v2906_v48   ;;  %v5036_v51 = vpop.permute.xlu1 %845  ;;  %v2863_v48 = vld [vmem:[%s6757_s5 + $0xa8] sm:$0xff]  ;;  %v458_v41 = vmul.f32 %v4747_v52, %v3946_v43  ;;  %6953 = vst [vmem:[#allocation21_spill] sm:$0xff] %v5112_v30  ;;  %v2913_v44 = vsel %vm2889_vm8, 1, %v6947_v25  ;;  %1604 = vmatpush.bf16.msrb.mxu2 %v3869_v27  ;;  %vm7021_vm5 = vsmask.f32 7424 }
  0x9a   : > { %vm936_vm1 = vcmp.eq.s32.totalorder %v5036_v51, 1  ;;  %vm2887_vm6 = vcmp.lt.s32.totalorder %v2863_v48, 16  ;;  %v493_v48 = vadd.f32 %v4758_v59, %v457_v12  ;;  %1994 = vmatpush.bf16.msrb.mxu0 %v3888_v10 }
  0x9b   : > { %2969 = vperm.xlu2 %4142, %v2908_v54   ;;  %v5055_v2 = vpop.permute.xlu0 %842 }
  0x9c   : > { %vm935_vm2 = vcmp.eq.s32.totalorder %v5055_v2, 1 }
  0x9d   : > { %v5075_v54 = vpop.permute.xlu2 %893  ;;  %vm3374_vm14 = vmpackc.low %vm936_vm1, %vm935_vm2  ;;  %1605 = vmatpush.bf16.msrb.mxu2 %v3868_v3 }
  0x9e   : > { %vm6813_vm11 = vcmp.eq.s32.totalorder %v5075_v54, 1  ;;  %3376 = vmatmul.msk.bf16.vlgmr.msra.gmra.mxu0 %vm3374_vm14, %v3375_v53  ;;  %vm956_vm14 = vcmp.eq.s32.totalorder %v4892_v7, 1  ;;  %v2911_v53 = vsel %vm2887_vm6, 1, %v6947_v25 }
  0x9f   : > { %v5097_v43 = vsel %vm6813_vm11, %v5053_v50, 0.0  ;;  %2975 = vperm.xlu1 %4141, %v2910_v29   ;;  %v5128_v29 = vpack.c.bf16 %v5089_v28, %v4902_v39  ;;  %v5138_v12 = vsel %vm956_vm14, %v5083_v15, 0.0 }
  0xa0   : > { %v5106_v4 = vpack.c.bf16 %v4942_v37, %v5097_v43  ;;  %v494_v37 = vadd.f32 %v4758_v59, %v458_v41  ;;  %v3879_v41 = vld [vmem:[%s6753_s1 + $0xd8] sm:$0xff] }
  0xa1   : > { %2972 = vperm.xlu0 %4140, %v2909_v55   ;;  %v5118_v31 = vpop.permute.xlu1 %902  ;;  %6954 = vst [vmem:[#allocation22_spill] sm:$0xff] %v5128_v29  ;;  %1835 = vmatpush.bf16.msrb.mxu3 %v3879_v41  ;;  %v490_v41 = vadd.f32 %v4758_v59, %v454_v18  ;;  %v3887_v18 = vld [vmem:[%s6753_s1 + $0x118] sm:$0xff] }
  0xa2   : > { %vm6789_vm6 = vcmp.eq.s32.totalorder %v5118_v31, 1  ;;  %v5190_v27 = vmax.f32 %v494_v37, 0.0  ;;  %v452_v37 = vmul.f32 %v4747_v52, %v3934_v34  ;;  %v3971_v34 = vunpack.c.h.bf16 %v4876_v57  ;;  %1995 = vmatpush.bf16.msrb.mxu0 %v3887_v18  ;;  %v3853_v57 = vld [vmem:[%s6753_s1 + $0x8] sm:$0xff] }
  0xa3   : > { %2978 = vperm.xlu2 %4142, %v2911_v53   ;;  %v987_v55 = vsel %vm6789_vm6, %v5070_v13, 0.0  ;;  %v5143_v14 = vpop.permute.xlu0 %887  ;;  %vm5149_vm4 = vmpackc.low %vm956_vm14, %vm6789_vm6  ;;  %v3855_v53 = vld [vmem:[%s6753_s1 + $0x18] sm:$0xff]  ;;  %v5240_v49 = vmax.f32 %v490_v41, 0.0  ;;  %v6970_v41 = vmov 0 }
  0xa4   : > { %v6956_v26 = vsel %vm5149_vm4, 4294967295, %v6955_v26  ;;  %v5161_v15 = vpack.c.bf16 %v987_v55, %v4947_v40  ;;  %v5164_v13 = vpack.c.bf16 %v5138_v12, %v987_v55  ;;  %vm6797_vm6 = vcmp.eq.s32.totalorder %v5143_v14, 1  ;;  %3406 = vmatmul.msk.bf16.gmra.mxu3 %vm5149_vm4, %v5112_v30  ;;  %1354 = vmatpush.bf16.msrb.mxu1 %v3855_v53 }
  0xa5   : > { %6957 = vst [vmem:[#allocation23_spill] sm:$0xff] %v6956_v26  ;;  %v5175_v0 = vpop.permute.xlu2 %872  ;;  %v5180_v40 = vsel %vm6797_vm6, %v5089_v28, 0.0  ;;  %vm5186_vm0 = vmpackc.low %vm6797_vm6, %vm949_vm9  ;;  %v5192_v55 = vmax.f32 %v493_v48, 0.0  ;;  %v3878_v26 = vld [vmem:[%s6753_s1 + $0xd0] sm:$0xff]  ;;  %v2912_v30 = vsel %vm2888_vm3, 1, %v6947_v25  ;;  %v451_v53 = vmul.f32 %v4747_v52, %v3931_v21  ;;  %v5211_v28 = vld [vmem:[%s4726_s13 + $0x68] sm:$0xff]  }
  0xa6   : > { %6958 = vst [vmem:[#allocation24_spill] sm:$0xff] %v5161_v15  ;;  %v6960_v63 = vsel %vm5186_vm0, 4294967295, %v6959_v63  ;;  %3397 = vmatmul.msk.bf16.gmra.mxu2 %vm5186_vm0, %v5128_v29  ;;  %v465_v15 = vmul.f32 %v4747_v52, %v3959_v46  ;;  %v5206_v48 = vpack.c.bf16 %v5180_v40, %v4987_v56  ;;  %vm5217_vm3 = vmpackc.low %vm949_vm9, %vm948_vm7  ;;  %v6963_v25 = vmov 0  ;;  %1836 = vmatpush.bf16.msrb.mxu3 %v3878_v26 }
  0xa7   : > { %6961 = vst [vmem:[#allocation25_spill] sm:$0xff] %v6960_v63  ;;  %2984 = vperm.xlu1 %4141, %v2913_v44   ;;  %v6964_v25 = vsel %vm5217_vm3, 4294967295, %v6963_v25  ;;  %v5225_v56 = vpack.c.bf16 %v5190_v27, %v5192_v55  ;;  %vm6799_vm8 = vcmp.eq.s32.totalorder %v5175_v0, 1  ;;  %v488_v3 = vadd.f32 %v4758_v59, %v452_v37 }
  0xa8   : > { %6962 = vst [vmem:[#allocation26_spill] sm:$0xff] %v5192_v55  ;;  %v501_v33 = vadd.f32 %v4758_v59, %v465_v15  ;;  %v3974_v46 = vunpack.c.l.bf16 %v5211_v28  ;;  %v3886_v15 = vld [vmem:[%s6753_s1 + $0x110] sm:$0xff]  ;;  %v6967_v26 = vmov 0  ;;  %v487_v44 = vadd.f32 %v4758_v59, %v451_v53  ;;  %1355 = vmatpush.bf16.msrb.mxu1 %v3854_v58  ;;  %v3876_v58 = vld [vmem:[%s6753_s1 + $0xc0] sm:$0xff] }
  0xa9   : > { %6965 = vst [vmem:[#allocation27_spill] sm:$0xff] %v6964_v25  ;;  %2981 = vperm.xlu0 %4140, %v2912_v30   ;;  %v5221_v10 = vpop.permute.xlu1 %869  ;;  %v3877_v30 = vld [vmem:[%s6753_s1 + $0xc8] sm:$0xff]  ;;  %v5278_v18 = vmax.f32 %v488_v3, 0.0  ;;  %v471_v3 = vmul.f32 %v4747_v52, %v3971_v34  ;;  %1996 = vmatpush.bf16.msrb.mxu0 %v3886_v15  ;;  %v3947_v15 = vunpack.c.h.bf16 %v5033_v35  ;;  %v3852_v35 = vld [vmem:[%s6753_s1] sm:$0xff]  ;;  %vm6997_vm15 = vcmp.eq.s32.totalorder %v5175_v0, 1 }
  0xaa   : > { %6966 = vst [vmem:[#allocation28_spill] sm:$0xff] %v5225_v56  ;;  %vm6800_vm6 = vcmp.eq.s32.totalorder %v5221_v10, 1  ;;  %1837 = vmatpush.bf16.msrb.mxu3 %v3877_v30  ;;  %v5276_v53 = vmax.f32 %v501_v33, 0.0  ;;  %v6974_v30 = vmov 0  ;;  %v472_v33 = vmul.f32 %v4747_v52, %v3974_v46  ;;  %v3885_v25 = vld [vmem:[%s6753_s1 + $0x108] sm:$0xff] }
  0xab   : > { %v5242_v21 = vpop.permute.xlu0 %866  ;;  %vm5253_vm9 = vmpackc.low %vm6799_vm8, %vm6800_vm6  ;;  %v519_v29 = vmax.f32 %v487_v44, 0.0  ;;  %vm7019_vm0 = vsmask.f32 4352 }
  0xac   : > { %v6968_v26 = vsel %vm5253_vm9, 4294967295, %v6967_v26  ;;  %vm6806_vm7 = vcmp.eq.s32.totalorder %v5242_v21, 1  ;;  %6973 = vst [vmem:[#allocation31_spill] sm:$0xff] %v5276_v53  ;;  %1356 = vmatpush.bf16.msrb.mxu1 %v3853_v57  ;;  %v5312_v34 = vpack.c.bf16 %v5053_v50, %v5276_v53  ;;  %v6978_v57 = vmov 0  ;;  %v3884_v50 = vld [vmem:[%s6753_s1 + $0x100] sm:$0xff] }
  0xad   : > { %6969 = vst [vmem:[#allocation29_spill] sm:$0xff] %v6968_v26  ;;  %v5262_v37 = vpop.permute.xlu2 %857  ;;  %vm5268_vm12 = vmpackc.low %vm6800_vm6, %vm6806_vm7  ;;  %v3378_v46 = vpack.c.bf16 %v5278_v18, %v519_v29  ;;  %1997 = vmatpush.bf16.msrb.mxu0 %v3885_v25  ;;  %v6981_v25 = vmax.f32 %v4927_v32, 0.0  ;;  %vm6996_vm4 = vcmp.eq.s32.totalorder %v5242_v21, 1 }
  0xae   : > { %v6971_v41 = vsel %vm5268_vm12, 4294967295, %v6970_v41  ;;  %vm6808_vm8 = vcmp.eq.s32.totalorder %v5262_v37, 1  ;;  %3388 = vmatmul.msk.bf16.gmra.mxu1 %vm5268_vm12, %v5225_v56  ;;  %vm5287_vm6 = vmpackc.low %vm6806_vm7, %vm942_vm10  ;;  %v3935_v56 = vunpack.c.h.bf16 %v5101_v45  ;;  %1838 = vmatpush.bf16.msrb.mxu3 %v3876_v58  ;;  %6977 = vst [vmem:[#allocation33_spill] sm:$0xff] %v5312_v34  ;;  %v508_v58 = vadd.f32 %v4758_v59, %v472_v33 }
  0xaf   : > { %6972 = vst [vmem:[#allocation30_spill] sm:$0xff] %v6971_v41  ;;  %v6975_v30 = vsel %vm5287_vm6, 4294967295, %v6974_v30  ;;  %v5294_v63 = vsel %vm6808_vm8, %v5240_v49, 0.0  ;;  %vm937_vm8 = vcmp.eq.s32.totalorder %v4997_v62, 1  ;;  %v5349_v33 = vsel %vm936_vm1, %v6981_v25, 0.0 }
  0xb0   : > { %6976 = vst [vmem:[#allocation32_spill] sm:$0xff] %v6975_v30  ;;  %v5300_v11 = vpack.c.bf16 %v4790_v8, %v5294_v63  ;;  %v3950_v8 = vunpack.c.l.bf16 %v4827_v22  ;;  %v507_v22 = vadd.f32 %v4758_v59, %v471_v3  ;;  %v6982_v3 = vmax.f32 %v4930_v9, 0.0  ;;  %1357 = vmatpush.bf16.msrb.mxu1 %v3852_v35 }
  0xb1   : > { %v5302_v41 = vpop.permute.xlu1 %890  ;;  %v459_v9 = vmul.f32 %v4747_v52, %v3947_v15  ;;  %1998 = vmatpush.bf16.msrb.mxu0 %v3884_v50  ;;  %v1462_v35 = vshll.u32 %v4820_v20, 16  ;;  %v969_v25 = vsel %vm937_vm8, %v519_v29, 0.0  ;;  %v3907_v29 = vld [vmem:[%s6753_s1 + $0x1b8] sm:$0xff] }
  0xb2   : > { %vm6811_vm10 = vcmp.eq.s32.totalorder %v5302_v41, 1  ;;  %v5355_v42 = vsel %vm935_vm2, %v6982_v3, 0.0  ;;  %v460_v2 = vmul.f32 %v4747_v52, %v3950_v8  ;;  %2402 = vmatpush.bf16.msra.mxu2 %v3907_v29 }
  0xb3   : > { %v983_v45 = vsel %vm6811_vm10, %v5276_v53, 0.0  ;;  %v5319_v44 = vpop.permute.xlu0 %851  ;;  %vm5325_vm7 = vmpackc.low %vm6813_vm11, %vm6811_vm10  ;;  %v1718_v26 = vrot.slane %v1462_v35, 4 }
  0xb4   : > { %v6979_v57 = vsel %vm5325_vm7, 4294967295, %v6978_v57  ;;  %v5339_v53 = vpack.c.bf16 %v983_v45, %v5180_v40  ;;  %v5342_v39 = vpack.c.bf16 %v5097_v43, %v983_v45  ;;  %vm6828_vm10 = vcmp.eq.s32.totalorder %v5319_v44, 1  ;;  %v5364_v40 = vld [vmem:[%s4726_s13 + $0x70] sm:$0xff]  }
  0xb5   : > { %6980 = vst [vmem:[#allocation34_spill] sm:$0xff] %v6979_v57  ;;  %vm3377_vm11 = vmpackc.low %vm6828_vm10, %vm937_vm8  ;;  %v453_v43 = vmul.f32 %v4747_v52, %v3935_v56  ;;  %v970_v51 = vsel %vm6828_vm10, %v5278_v18, 0.0  ;;  %v5374_v45 = vmax.f32 %v508_v58, 0.0  ;;  %v5376_v56 = vmax.f32 %v507_v22, 0.0 }
  0xb6   : > { %3379 = vmatmul.msk.bf16.gmra.mxu0 %vm3377_vm11, %v3378_v46  ;;  %3400 = vmatmul.msk.bf16.gmra.mxu2 %vm5325_vm7, %v5312_v34  ;;  %v1027_v46 = vpack.c.bf16 %v5349_v33, %v5355_v42  ;;  %v3978_v8 = vunpack.c.l.bf16 %v5364_v40  ;;  %v5387_v32 = vpack.c.bf16 %v970_v51, %v969_v25  ;;  %v496_v50 = vadd.f32 %v4758_v59, %v460_v2 }
  0xb7   : > { %6983 = vst [vmem:[#allocation35_spill] sm:$0xff] %v5374_v45  ;;  %v489_v3 = vadd.f32 %v4758_v59, %v453_v43  ;;  %v3975_v58 = vunpack.c.h.bf16 %v5211_v28  ;;  %v495_v22 = vadd.f32 %v4758_v59, %v459_v9  ;;  %v5395_v62 = vpack.c.bf16 %v5374_v45, %v5376_v56  ;;  %v3915_v43 = vld [vmem:[%s6753_s1 + $0x1f8] sm:$0xff] }
  0xb8   : > { %6984 = vst [vmem:[#allocation36_spill] sm:$0xff] %v5376_v56  ;;  %v6987_v34 = vshrl.u32 %v4820_v20, 16  ;;  %v1441_v24 = vshll.u32 %v1027_v46, 16  ;;  %v3899_v9 = vld [vmem:[%s6753_s1 + $0x178] sm:$0xff]  ;;  %v474_v30 = vmul.f32 %v4747_v52, %v3978_v8  ;;  %2562 = vmatpush.bf16.msra.mxu3 %v3915_v43  ;;  %v6991_v8 = vmov 0 }
  0xb9   : > { %v5384_v15 = vpop.permute.xlu1 %911  ;;  %6986 = vst [vmem:[#allocation38_spill] sm:$0xff] %v5395_v62  ;;  %v5421_v20 = vmax.f32 %v489_v3, 0.0  ;;  %v5434_v7 = vmax.f32 %v496_v50, 0.0  ;;  %v473_v3 = vmul.f32 %v4747_v52, %v3975_v58  ;;  %2212 = vmatpush.bf16.msra.mxu1 %v3899_v9  ;;  %v5445_v43 = vmax.f32 %v495_v22, 0.0 }
  0xba   : > { %6985 = vst [vmem:[#allocation37_spill] sm:$0xff] %v5384_v15  ;;  %vm6827_vm1 = vcmp.eq.s32.totalorder %v5384_v15, 1  ;;  %v1717_v2 = vrot.slane %v6987_v34, 3  ;;  %v6988_v34 = vmov 0  ;;  %v1443_v29 = vrot.slane %v1441_v24, 1 }
  0xbb   : > { %v909_v57 = vpop.permute.xlu0 %908  ;;  %v5408_v28 = vsel %vm6827_vm1, %v5374_v45, 0.0  ;;  %v3926_v45 = vunpack.c.l.bf16 %v4849_v38  ;;  %v1439_v50 = vshrl.u32 %v1027_v46, 16  ;;  %v5460_v24 = vpack.c.bf16 %v5434_v7, %v5445_v43 }
  0xbc   : > { %vm957_vm2 = vcmp.eq.s32.totalorder %v909_v57, 1  ;;  %v1446_v57 = vshll.u32 %v5387_v32, 16  ;;  %v5447_v15 = vor.u32 %v1718_v26, %v1717_v2  ;;  %v509_v26 = vadd.f32 %v4758_v59, %v473_v3 }
  0xbd   : > { %v989_v61 = vsel %vm957_vm2, %v5376_v56, 0.0  ;;  %vm5417_vm11 = vmpackc.low %vm957_vm2, %vm956_vm14  ;;  %v448_v9 = vmul.f32 %v4747_v52, %v3926_v45  ;;  %6994 = vst [vmem:[#allocation41_spill] sm:$0xff] %v5460_v24  ;;  %vm6995_vm10 = vcmp.eq.s32.totalorder %v5262_v37, 1  ;;  %v1444_v46 = vor.u32 %v1443_v29, %v1439_v50 }
  0xbe   : > { %v6989_v34 = vsel %vm5417_vm11, 4294967295, %v6988_v34  ;;  %v5426_v1 = vpack.c.bf16 %v989_v61, %v5138_v12  ;;  %vm5430_vm8 = vmpackc.low %vm6827_vm1, %vm957_vm2  ;;  %v5438_v38 = vpack.c.bf16 %v5408_v28, %v989_v61  ;;  %v5443_v12 = vrot.slane %v1462_v35, 1 }
  0xbf   : > { %6990 = vst [vmem:[#allocation39_spill] sm:$0xff] %v6989_v34  ;;  %v6992_v8 = vsel %vm5430_vm8, 4294967295, %v6991_v8  ;;  %3409 = vmatmul.msk.bf16.gmra.mxu3 %vm5430_vm8, %v5395_v62  ;;  %v5450_v34 = vadd.f32 %v4758_v59, %v474_v30  ;;  %v3381_v61 = vpack.c.bf16 %v5240_v49, %v5421_v20  ;;  %v5462_v35 = vrot.slane %v1446_v57, 1  ;;  %v3923_v30 = vld [vmem:[%s6753_s1 + $0x238] sm:$0xff] }
  0xc0   : > { %6993 = vst [vmem:[#allocation40_spill] sm:$0xff] %v6992_v8  ;;  %v3979_v8 = vunpack.c.h.bf16 %v5364_v40  ;;  %2749 = vmatpush.bf16.msra.mxu0 %v3923_v30  ;;  %v999_v56 = vpack.c.bf16 %v969_v25, %v5349_v33  ;;  %v975_v40 = vsel %vm6996_vm4, %v5192_v55, 0.0  ;;  %vm7001_vm4 = vsmask.f32 7424  ;;  %v5506_v25 = vpop.permute.xlu2 %917 }
  0xc1   : > { %v5452_v58 = vpop.permute.xlu1 %854  ;;  %v1449_v21 = vsel %vm7001_vm4, %v1444_v46, %v5462_v35  ;;  %v5504_v33 = vmax.f32 %v509_v26, 0.0  ;;  %7003 = vst [vmem:[#allocation44_spill] sm:$0xff] %v5506_v25  ;;  %v7004_v30 = vshrl.u32 %v5387_v32, 16  ;;  %v1711_v22 = vrot.slane %v1446_v57, 4 }
  0xc2   : > { %vm6839_vm2 = vcmp.eq.s32.totalorder %v5452_v58, 1  ;;  %v475_v29 = vmul.f32 %v4747_v52, %v3979_v8  ;;  %v7008_v26 = vmov 0  ;;  %v1183_v57 = vshrl.u32 %v999_v56, 16 }
  0xc3   : > { %v971_v45 = vsel %vm6839_vm2, %v5421_v20, 0.0  ;;  %v5473_v2 = vpop.permute.xlu0 %875  ;;  %vm3380_vm14 = vmpackc.low %vm6995_vm10, %vm6839_vm2  ;;  %7002 = vst [vmem:[#allocation43_spill] sm:$0xff] %v5504_v33  ;;  %vm7007_vm10 = vcmp.eq.s32.totalorder %v4861_v23, 1  ;;  %v1186_v46 = vshll.u32 %v999_v56, 16  ;;  %vm7012_vm4 = vcmp.eq.s32.totalorder %v4879_v60, 1 }
  0xc4   : > { %v5476_v62 = vpack.c.bf16 %v971_v45, %v970_v51  ;;  %v1029_v3 = vpack.c.bf16 %v5294_v63, %v971_v45  ;;  %vm6840_vm1 = vcmp.eq.s32.totalorder %v5473_v2, 1  ;;  %v6998_v63 = vmov 0 }
  0xc5   : > { %vm5493_vm7 = vmpackc.low %vm6840_vm1, %vm6997_vm15  ;;  %v484_v51 = vadd.f32 %v4758_v59, %v448_v9  ;;  %v1710_v45 = vrot.slane %v7004_v30, 3  ;;  %vm7006_vm15 = vcmp.eq.s32.totalorder %v5075_v54, 1  ;;  %v5535_v23 = vpack.c.bf16 %v975_v40, %v4808_v17 }
  0xc6   : > { %v6999_v63 = vsel %vm5493_vm7, 4294967295, %v6998_v63  ;;  %v1454_v50 = vshll.u32 %v1029_v3, 16  ;;  %3382 = vmatmul.msk.bf16.gmra.mxu0 %vm3380_vm14, %v3381_v61  ;;  %3391 = vmatmul.msk.bf16.gmra.mxu1 %vm5493_vm7, %v5460_v24  ;;  %v1458_v9 = vshrl.u32 %v1029_v3, 16  ;;  %v6846_v61 = vshrl.u32 %v5476_v62, 16  ;;  %vm5520_vm14 = vmpackc.low %vm7007_vm10, %vm7006_vm15 }
  0xc7   : > { %7000 = vst [vmem:[#allocation42_spill] sm:$0xff] %v6999_v63  ;;  %1606 = vmatmul.bf16.vlgmr.msrb.gmra.mxu2 %v1449_v21  ;;  %v7005_v63 = vshll.u32 %v5476_v62, 16  ;;  %v7009_v26 = vsel %vm5520_vm14, 4294967295, %v7008_v26  ;;  %v516_v8 = vmax.f32 %v484_v51, 0.0  ;;  %vm5530_vm2 = vmpackc.low %vm7012_vm4, %vm6840_vm1  ;;  %vm6845_vm15 = vcmp.eq.s32.totalorder %v5506_v25, 1 }
  0xc8   : > { %v1714_v55 = vrot.slane %v1454_v50, 4  ;;  %v5514_v47 = vrot.slane %v1454_v50, 1  ;;  %7010 = vst [vmem:[#allocation45_spill] sm:$0xff] %v7009_v26  ;;  %v1713_v3 = vrot.slane %v1458_v9, 3  ;;  %v1712_v51 = vor.u32 %v1711_v22, %v1710_v45  ;;  %v7064_v26 = vld [vmem:[#allocation15_spill] sm:$0xff] }
  0xc9   : > { %v2102_v24 = vrot.slane %v7005_v63, 1  ;;  %v5524_v52 = vpop.permute.xlu1 %914  ;;  %vm7015_vm4 = vcmp.eq.s32.totalorder %v5221_v10, 1  ;;  %v7016_v30 = vmov 0  ;;  %vm7022_vm7 = vcmp.eq.s32.totalorder %v5143_v14, 1  ;;  %v3914_v14 = vld [vmem:[%s6753_s1 + $0x1f0] sm:$0xff]  ;;  %v3919_v63 = vld [vmem:[%s6753_s1 + $0x218] sm:$0xff] }
  0xca   : > { %7011 = vst [vmem:[#allocation46_spill] sm:$0xff] %v5524_v52  ;;  %vm6844_vm10 = vcmp.eq.s32.totalorder %v5524_v52, 1  ;;  %v1715_v50 = vor.u32 %v1714_v55, %v1713_v3  ;;  %v1460_v21 = vor.u32 %v1458_v9, %v5514_v47  ;;  %v976_v17 = vsel %vm7015_vm4, %v5190_v27, 0.0  ;;  %vm7020_vm4 = vmmov %vm7019_vm0  ;;  %2563 = vmatpush.bf16.msra.mxu3 %v3914_v14 }
  0xcb   : > { %v5540_v54 = vor.u32 %v2102_v24, %v6846_v61  ;;  %v5546_v56 = vsel %vm6844_vm10, %v5504_v33, 0.0  ;;  %v840_v60 = vpop.permute.xlu0 %839  ;;  %vm5560_vm1 = vmpackc.low %vm6845_vm15, %vm6844_vm10  ;;  %v511_v55 = vadd.f32 %v4758_v59, %v475_v29  ;;  %vm7023_vm10 = vcmp.eq.s32.totalorder %v5302_v41, 1 }
  0xcc   : > { %v5554_v24 = vpack.c.bf16 %v5546_v56, %v5408_v28  ;;  %v7017_v30 = vsel %vm5560_vm1, 4294967295, %v7016_v30  ;;  %vm934_vm8 = vcmp.eq.s32.totalorder %v840_v60, 1  ;;  %v1716_v45 = vsel %vm7019_vm0, %v1712_v51, %v1715_v50  ;;  %vm5578_vm15 = vmpackc.low %vm7023_vm10, %vm7022_vm7  ;;  %v3906_v51 = vld [vmem:[%s6753_s1 + $0x1b0] sm:$0xff] }
  0xcd   : > { %7018 = vst [vmem:[#allocation47_spill] sm:$0xff] %v7017_v30  ;;  %v966_v22 = vsel %vm934_vm8, %v516_v8, 0.0  ;;  %v5568_v10 = vsel %vm7020_vm4, %v1715_v50, %v5447_v15  ;;  %v5572_v9 = vsel %vm7021_vm5, %v1460_v21, %v5443_v12  ;;  %v7024_v3 = vmov 0  ;;  %v3898_v60 = vld [vmem:[%s6753_s1 + $0x170] sm:$0xff]  ;;  %2403 = vmatpush.bf16.msra.mxu2 %v3906_v51 }
  0xce   : > { %v7025_v3 = vsel %vm5578_vm15, 4294967295, %v7024_v3  ;;  %v1185_v41 = vrot.slane %v1183_v57, 3  ;;  %v1188_v50 = vrot.slane %v1186_v46, 4  ;;  %v5593_v21 = vmax.f32 %v5450_v34, 0.0  ;;  %2213 = vmatpush.bf16.msra.mxu1 %v3898_v60 }
  0xcf   : > { %7026 = vst [vmem:[#allocation48_spill] sm:$0xff] %v7025_v3  ;;  %v998_v61 = vpack.c.bf16 %v5355_v42, %v966_v22  ;;  %1839 = vmatmul.bf16.vlgmr.msrb.gmra.mxu3 %v1716_v45  ;;  %v1486_v29 = vshll.u32 %v5015_v36, 16  ;;  %v1490_v59 = vshrl.u32 %v5015_v36, 16  ;;  %v5602_v30 = vpack.c.bf16 %v976_v17, %v975_v40 }
  0xd0   : > { %7027 = vst [vmem:[#allocation49_spill] sm:$0xff] %v5593_v21  ;;  %v5604_v46 = vmax.f32 %v511_v55, 0.0  ;;  %v3587_v42 = vpack.c.bf16 %v5421_v20, %v5278_v18  ;;  %vm7029_vm0 = vcmp.eq.s32.totalorder %v4920_v5, 1  ;;  %vm7030_vm5 = vcmp.eq.s32.totalorder %v5118_v31, 1 }
  0xd1   : > { %v1175_v57 = vshrl.u32 %v998_v61, 16  ;;  %v1178_v34 = vshll.u32 %v998_v61, 16  ;;  %vm5612_vm7 = vmpackc.low %vm7030_vm5, %vm7029_vm0  ;;  %v7031_v22 = vmov 0  ;;  %v7034_v36 = vshrl.u32 %v5300_v11, 16 }
  0xd2   : > { %7028 = vst [vmem:[#allocation50_spill] sm:$0xff] %v5604_v46  ;;  %v7032_v22 = vsel %vm5612_vm7, 4294967295, %v7031_v22  ;;  %v7035_v45 = vshll.u32 %v5300_v11, 16  ;;  %v7036_v55 = vshrl.u32 %v5535_v23, 16  ;;  %v7037_v20 = vshll.u32 %v5535_v23, 16 }
  0xd3   : > { %7033 = vst [vmem:[#allocation51_spill] sm:$0xff] %v7032_v22  ;;  %v1203_v40 = vrot.slane %v7034_v36, 3  ;;  %vm7038_vm8 = vcmp.eq.s32.totalorder %v5175_v0, 1  ;;  %v1177_v31 = vrot.slane %v1175_v57, 3  ;;  %v1180_v60 = vrot.slane %v1178_v34, 4  ;;  %v5629_v14 = vpop.permute.xlu0 %920 }
  0xd4   : > { %v1206_v61 = vrot.slane %v7035_v45, 4  ;;  %v1212_v51 = vrot.slane %v7036_v55, 3  ;;  %v1215_v18 = vrot.slane %v7037_v20, 4  ;;  %v5627_v5 = vsel %vm7038_vm8, %v5445_v43, 0.0  ;;  %7039 = vst [vmem:[#allocation52_spill] sm:$0xff] %v5629_v14 }
  0xd5   : > { %v5631_v8 = vor.u32 %v1188_v50, %v1185_v41  ;;  %v1470_v36 = vshll.u32 %v5602_v30, 16  ;;  %v6848_v45 = vshrl.u32 %v5602_v30, 16  ;;  %vm961_vm10 = vcmp.eq.s32.totalorder %v5629_v14, 1 }
  0xd6   : > { %v7040_v55 = vshrl.u32 %v5387_v32, 16  ;;  %vm7041_vm4 = vcmp.eq.s32.totalorder %v5319_v44, 1  ;;  %vm7042_vm0 = vcmp.eq.s32.totalorder %v5452_v58, 1  ;;  %v5646_v0 = vsel %vm961_vm10, %v5604_v46, 0.0  ;;  %v3922_v44 = vld [vmem:[%s6753_s1 + $0x230] sm:$0xff] }
  0xd7   : > { %vm3586_vm5 = vmpackc.low %vm7042_vm0, %vm7041_vm4  ;;  %v1181_v41 = vor.u32 %v1180_v60, %v1177_v31  ;;  %v1729_v50 = vrot.slane %v1490_v59, 3  ;;  %v1730_v57 = vrot.slane %v1486_v29, 4  ;;  %vm7043_vm8 = vcmp.eq.s32.totalorder %v5506_v25, 1  ;;  %2750 = vmatpush.bf16.msra.mxu0 %v3922_v44 }
  0xd8   : > { %v1452_v20 = vor.u32 %v7040_v55, %v5462_v35  ;;  %v5651_v34 = vsel %vm7043_vm8, %v5593_v21, 0.0  ;;  %vm7044_vm1 = vsmask.f32 7424  ;;  %3588 = vmatmul.msk.bf16.vlgmr.msrb.gmra.mxu0 %vm3586_vm5, %v3587_v42  ;;  %v5658_v58 = vor.u32 %v1206_v61, %v1203_v40 }
  0xd9   : > { %v5660_v35 = vor.u32 %v1215_v18, %v1212_v51  ;;  %v5663_v31 = vpack.c.bf16 %v5627_v5, %v976_v17  ;;  %v5667_v60 = vpack.c.bf16 %v5646_v0, %v5651_v34  ;;  %vm7047_vm4 = vsmask.f32 4352 }
  0xda   : > { %v1457_v32 = vsel %vm7044_vm1, %v1452_v20, %v5514_v47  ;;  %v1190_v47 = vsel %vm7047_vm4, %v1181_v41, %v5631_v8  ;;  %v5671_v42 = vrot.slane %v1486_v29, 1  ;;  %v1498_v40 = vshrl.u32 %v5206_v48, 16  ;;  %vm7048_vm1 = vmmov %vm7047_vm4 }
  0xdb   : > { %7045 = vst [vmem:[#allocation53_spill] sm:$0xff] %v5660_v35  ;;  %1611 = vmatmul.bf16.gmra.mxu2 %v1457_v32  ;;  %1358 = vmatmul.bf16.vlgmr.msrb.gmra.mxu1 %v1190_v47  ;;  %v1721_v61 = vrot.slane %v6848_v45, 3  ;;  %v1722_v17 = vrot.slane %v1470_v36, 4  ;;  %v1494_v20 = vshll.u32 %v5206_v48, 16  ;;  %v1010_v29 = vpack.c.bf16 %v5408_v28, %v5408_v28  ;;  %vm7055_vm8 = vmmov %vm7048_vm1 }
  0xdc   : > { %7046 = vst [vmem:[#allocation54_spill] sm:$0xff] %v5667_v60  ;;  %v5687_v47 = vsel %vm7048_vm1, %v5658_v58, %v5660_v35  ;;  %v5689_v45 = vor.u32 %v1730_v57, %v1729_v50  ;;  %v7049_v44 = vshll.u32 %v5300_v11, 16  ;;  %v1492_v28 = vor.u32 %v1490_v59, %v5671_v42  ;;  %vm7056_vm4 = vmmov %vm7048_vm1 }
  0xdd   : > { %v1502_v32 = vshll.u32 %v5342_v39, 16  ;;  %v5700_v55 = vor.u32 %v1722_v17, %v1721_v61  ;;  %v1733_v14 = vrot.slane %v1498_v40, 3  ;;  %v1282_v25 = vshrl.u32 %v1010_v29, 16 }
  0xde   : > { %v5693_v51 = vrot.slane %v7049_v44, 1  ;;  %v1285_v50 = vshll.u32 %v1010_v29, 16  ;;  %v1734_v57 = vrot.slane %v1494_v20, 4  ;;  %v1496_v46 = vrot.slane %v1494_v20, 1 }
  0xdf   : > { %v6857_v44 = vshrl.u32 %v5426_v1, 16  ;;  %v7050_v48 = vshrl.u32 %v5476_v62, 16  ;;  %v7051_v59 = vshll.u32 %v5476_v62, 16  ;;  %v1506_v41 = vshrl.u32 %v5342_v39, 16  ;;  %1844 = vmatmul.bf16.gmra.mxu3 %v5568_v10 }
  0xe0   : > { %v6858_v61 = vshrl.u32 %v5438_v38, 16  ;;  %v1735_v17 = vor.u32 %v1734_v57, %v1733_v14  ;;  %vm7052_vm0 = vsmask.f32 7424  ;;  %vm7054_vm5 = vcmp.eq.s32.totalorder %v5473_v2, 1 }
  0xe1   : > { %v1194_v18 = vrot.slane %v7050_v48, 3  ;;  %v1197_v52 = vrot.slane %v7051_v59, 4  ;;  %v5712_v29 = vsel %vm7052_vm0, %v1492_v28, %v1496_v46  ;;  %v978_v21 = vsel %vm7054_vm5, %v5434_v7, 0.0 }
  0xe2   : > { %7053 = vst [vmem:[#allocation55_spill] sm:$0xff] %v5712_v29  ;;  %v5721_v62 = vsel %vm7055_vm8, %v5447_v15, %v5700_v55  ;;  %v5723_v39 = vrot.slane %v1470_v36, 1  ;;  %v5725_v48 = vrot.slane %v1282_v25, 3  ;;  %v5727_v10 = vrot.slane %v1285_v50, 4  ;;  %vm7068_vm8 = vmmov %vm7056_vm4 }
  0xe3   : > { %v5732_v28 = vsel %vm7056_vm4, %v5689_v45, %v1735_v17  ;;  %v5736_v2 = vrot.slane %v6857_v44, 3  ;;  %v7058_v57 = vshll.u32 %v5426_v1, 16  ;;  %v3590_v25 = vpack.c.bf16 %v4772_v6, %v5240_v49  ;;  %v3905_v44 = vld [vmem:[%s6753_s1 + $0x1a8] sm:$0xff] }
  0xe4   : > { %7057 = vst [vmem:[#allocation56_spill] sm:$0xff] %v5732_v28  ;;  %v5744_v36 = vor.u32 %v1197_v52, %v1194_v18  ;;  %v5748_v50 = vrot.slane %v6858_v61, 3  ;;  %v5751_v59 = vpack.c.bf16 %v4992_v19, %v978_v21  ;;  %v1737_v14 = vrot.slane %v1506_v41, 3  ;;  %v7062_v19 = vld [vmem:[#allocation2_spill] sm:$0xff]  ;;  %2404 = vmatpush.bf16.msra.mxu2 %v3905_v44 }
  0xe5   : > { %v5740_v15 = vrot.slane %v7058_v57, 4  ;;  %v1738_v20 = vrot.slane %v1502_v32, 4  ;;  %v3913_v57 = vld [vmem:[%s6753_s1 + $0x1e8] sm:$0xff]  ;;  %v1500_v6 = vor.u32 %v1498_v40, %v1496_v46  ;;  %v1504_v49 = vrot.slane %v1502_v32, 1 }
  0xe6   : > { %v7059_v52 = vshrl.u32 %v5012_v16, 16  ;;  %v7060_v61 = vshll.u32 %v5012_v16, 16  ;;  %vm7061_vm1 = vcmp.eq.s32.totalorder %v5262_v37, 1  ;;  %vm7063_vm0 = vcmp.eq.s32.totalorder %v7062_v19, 1  ;;  %2564 = vmatpush.bf16.msra.mxu3 %v3913_v57 }
  0xe7   : > { %vm3589_vm5 = vmpackc.low %vm7063_vm0, %vm7061_vm1  ;;  %v1739_v22 = vor.u32 %v1738_v20, %v1737_v14  ;;  %v7065_v3 = vshrl.u32 %v7064_v26, 16  ;;  %v7066_v28 = vshll.u32 %v7064_v26, 16  ;;  %v5774_v32 = vpack.c.bf16 %v978_v21, %v5627_v5 }
  0xe8   : > { %v1239_v18 = vrot.slane %v7059_v52, 3  ;;  %v1242_v33 = vrot.slane %v7060_v61, 4  ;;  %3591 = vmatmul.msk.bf16.gmra.mxu0 %vm3589_vm5, %v3590_v25  ;;  %v1199_v37 = vsel %vm7068_vm8, %v5631_v8, %v5744_v36  ;;  %vm7069_vm4 = vsmask.f32 7424  ;;  %vm7071_vm1 = vmmov %vm7068_vm8  ;;  %v3897_v8 = vld [vmem:[%s6753_s1 + $0x168] sm:$0xff] }
  0xe9   : > { %v1741_v29 = vrot.slane %v7065_v3, 3  ;;  %v1742_v35 = vrot.slane %v7066_v28, 4  ;;  %v7067_v46 = vmov %v7066_v28  ;;  %v5780_v61 = vsel %vm7069_vm4, %v1500_v6, %v1504_v49  ;;  %vm7076_vm0 = vmmov %vm7071_vm1  ;;  %2214 = vmatpush.bf16.msra.mxu1 %v3897_v8 }
  0xea   : > { %v1512_v40 = vrot.slane %v7067_v46, 1  ;;  %v7070_v3 = vshrl.u32 %v5339_v53, 16  ;;  %v5786_v14 = vsel %vm7071_vm1, %v1735_v17, %v1739_v22  ;;  %v5788_v21 = vor.u32 %v1242_v33, %v1239_v18  ;;  %vm7079_vm5 = vmmov %vm7069_vm4 }
  0xeb   : > { %1616 = vmatmul.bf16.gmra.mxu2 %v5572_v9  ;;  %v1743_v5 = vor.u32 %v1742_v35, %v1741_v29  ;;  %v7072_v28 = vshll.u32 %v5339_v53, 16  ;;  %1363 = vmatmul.bf16.gmra.mxu1 %v1199_v37  ;;  %v1508_v44 = vor.u32 %v1506_v41, %v1504_v49  ;;  %v7073_v6 = vshrl.u32 %v5164_v13, 16  ;;  %vm7083_vm8 = vmmov %vm7076_vm0 }
  0xec   : > { %v1248_v20 = vrot.slane %v7070_v3, 3  ;;  %v7074_v9 = vshll.u32 %v5164_v13, 16  ;;  %v7075_v17 = vshrl.u32 %v7064_v26, 16  ;;  %v7078_v46 = vshrl.u32 %v5106_v4, 16  ;;  %vm7085_vm1 = vmmov %vm7076_vm0 }
  0xed   : > { %v1251_v25 = vrot.slane %v7072_v28, 4  ;;  %v1745_v52 = vrot.slane %v7073_v6, 3  ;;  %v5802_v35 = vsel %vm7076_vm0, %v1739_v22, %v1743_v5  ;;  %v1228_v41 = vshrl.u32 %v5751_v59, 16 }
  0xee   : > { %v1746_v57 = vrot.slane %v7074_v9, 4  ;;  %v1516_v33 = vor.u32 %v7075_v17, %v1512_v40  ;;  %v7077_v18 = vmov %v7074_v9  ;;  %v1257_v37 = vrot.slane %v7078_v46, 3 }
  0xef   : > { %v1252_v29 = vor.u32 %v1251_v25, %v1248_v20  ;;  %v1520_v19 = vrot.slane %v7077_v18, 1  ;;  %v5810_v49 = vsel %vm7079_vm5, %v1508_v44, %v1512_v40  ;;  %v7081_v26 = vshll.u32 %v5106_v4, 16  ;;  %v3921_v40 = vld [vmem:[%s6753_s1 + $0x228] sm:$0xff]  ;;  %1849 = vmatmul.bf16.gmra.mxu3 %v5721_v62  ;;  %vm7094_vm5 = vmmov %vm7069_vm4 }
  0xf0   : > { %7080 = vst [vmem:[#allocation2_spill] sm:$0xff] %v5810_v49  ;;  %v1747_v3 = vor.u32 %v1746_v57, %v1745_v52  ;;  %v7082_v22 = vshll.u32 %v5438_v38, 16  ;;  %v1231_v20 = vshll.u32 %v5751_v59, 16  ;;  %v7087_v59 = vshrl.u32 %v5300_v11, 16  ;;  %2751 = vmatpush.bf16.msra.mxu0 %v3921_v40 }
  0xf1   : > { %v1260_v28 = vrot.slane %v7081_v26, 4  ;;  %v5819_v25 = vsel %vm7083_vm8, %v5788_v21, %v1252_v29  ;;  %v5822_v9 = vsel %vm7069_vm4, %v1516_v33, %v1520_v19  ;;  %v7088_v17 = vshll.u32 %v5535_v23, 16  ;;  %vm7098_vm8 = vmmov %vm7069_vm4 }
  0xf2   : > { %v1750_v6 = vrot.slane %v7082_v22, 4  ;;  %7084 = vst [vmem:[#allocation15_spill] sm:$0xff] %v5822_v9  ;;  %v5829_v44 = vsel %vm7085_vm1, %v1743_v5, %v1747_v3  ;;  %v2106_v57 = vor.u32 %v5693_v51, %v7087_v59  ;;  %v7089_v33 = vshll.u32 %v5663_v31, 16  ;;  %vm7100_vm1 = vmmov %vm7069_vm4 }
  0xf3   : > { %v5831_v52 = vor.u32 %v1260_v28, %v1257_v37  ;;  %v2107_v18 = vrot.slane %v7088_v17, 1  ;;  %v7090_v26 = vshll.u32 %v5012_v16, 16  ;;  %v7091_v8 = vshll.u32 %v5339_v53, 16 }
  0xf4   : > { %v2110_v46 = vrot.slane %v7089_v33, 1  ;;  %v1230_v37 = vrot.slane %v1228_v41, 3  ;;  %v7092_v28 = vshrl.u32 %v5164_v13, 16  ;;  %v7093_v17 = vshll.u32 %v5438_v38, 16 }
  0xf5   : > { %7086 = vst [vmem:[#allocation57_spill] sm:$0xff] %v5831_v52  ;;  %v5842_v22 = vrot.slane %v7090_v26, 1  ;;  %v2119_v5 = vrot.slane %v7091_v8, 1  ;;  %v5848_v11 = vsel %vm7076_vm0, %v1252_v29, %v5831_v52  ;;  %v5858_v33 = vsel %vm7094_vm5, %v2106_v57, %v2107_v18  ;;  %vm7109_vm5 = vmmov %vm7076_vm0 }
  0xf6   : > { %v1524_v59 = vor.u32 %v7092_v28, %v1520_v19  ;;  %v5854_v9 = vrot.slane %v7093_v17, 1  ;;  %v7095_v8 = vshrl.u32 %v5535_v23, 16  ;;  %v7096_v26 = vshrl.u32 %v5663_v31, 16  ;;  %v7104_v17 = vld [vmem:[#allocation26_spill] sm:$0xff] }
  0xf7   : > { %v7097_v52 = vshrl.u32 %v5012_v16, 16  ;;  %v1233_v19 = vrot.slane %v1231_v20, 4  ;;  %v5868_v28 = vor.u32 %v1750_v6, %v5748_v50  ;;  %v5876_v23 = vor.u32 %v5740_v15, %v5736_v2  ;;  %v5898_v15 = vld [vmem:[%s4726_s13 + $0x78] sm:$0xff]  }
  0xf8   : > { %v2109_v40 = vor.u32 %v2107_v18, %v7095_v8  ;;  %v2112_v29 = vor.u32 %v2110_v46, %v7096_v26  ;;  %v5872_v62 = vsel %vm7098_vm8, %v1524_v59, %v5854_v9  ;;  %v1288_v57 = vor.u32 %v5727_v10, %v5725_v48  ;;  %v7103_v59 = vld [vmem:[#allocation3_spill] sm:$0xff]  ;;  %vm7110_vm8 = vmmov %vm7100_vm1 }
  0xf9   : > { %v2118_v13 = vor.u32 %v5842_v22, %v7097_v52  ;;  %7099 = vst [vmem:[#allocation58_spill] sm:$0xff] %v5872_v62  ;;  %v7102_v50 = vshrl.u32 %v5339_v53, 16  ;;  %v6868_v52 = vshrl.u32 %v5774_v32, 16  ;;  %v3593_v8 = vpack.c.bf16 %v7104_v17, %v7103_v59 }
  0xfa   : > { %v5881_v18 = vsel %vm7069_vm4, %v2109_v40, %v2110_v46  ;;  %v5893_v2 = vsel %vm7076_vm0, %v1747_v3, %v5868_v28  ;;  %v7105_v48 = vshll.u32 %v5106_v4, 16  ;;  %7106 = vst [vmem:[#allocation3_spill] sm:$0xff] %v5898_v15  ;;  %v7107_v46 = vld [vmem:[#allocation6_spill] sm:$0xff]  ;;  %v5905_v53 = vsel %vm7109_vm5, %v5876_v23, %v1288_v57  ;;  %vm7116_vm4 = vmmov %vm7100_vm1 }
  0xfb   : > { %v5884_v16 = vsel %vm7100_vm1, %v2118_v13, %v2119_v5  ;;  %v2121_v6 = vor.u32 %v2119_v5, %v7102_v50  ;;  %v7108_v40 = vshrl.u32 %v7107_v46, 16  ;;  %v3982_v5 = vunpack.c.l.bf16 %v5898_v15  ;;  %3594 = vmatmul.msk.bf16.gmra.mxu0 %vm5287_vm6, %v3593_v8  ;;  %vm7119_vm1 = vmmov %vm7076_vm0  ;;  %v5941_v8 = vld [vmem:[%s6754_s2] ss:$0 sm:$0xff] }
  0xfc   : > { %7101 = vst [vmem:[#allocation59_spill] sm:$0xff] %v5884_v16  ;;  %v2122_v10 = vrot.slane %v7105_v48, 1  ;;  %v5908_v13 = vor.u32 %v1233_v19, %v1230_v37  ;;  %v7112_v50 = vshrl.u32 %v5106_v4, 16  ;;  %v7114_v17 = vshll.u32 %v5426_v1, 16  ;;  %vm7122_vm6 = vmmov %vm7076_vm0 }
  0xfd   : > { %v1468_v26 = vor.u32 %v7108_v40, %v5443_v12  ;;  %v1725_v37 = vrot.slane %v6868_v52, 3  ;;  %v7118_v19 = vshll.u32 %v5774_v32, 16  ;;  %v2113_v4 = vrot.slane %v1231_v20, 1  ;;  %7121 = vst [vmem:[#allocation32_spill] sm:$0xff] %v5941_v8  ;;  %vm7123_vm0 = vmmov %vm7116_vm4 }
  0xfe   : > { %v5911_v3 = vsel %vm7110_vm8, %v2121_v6, %v2122_v10  ;;  %v5915_v59 = vor.u32 %v2122_v10, %v7112_v50  ;;  %v5919_v48 = vrot.slane %v7114_v17, 1  ;;  %v1208_v10 = vsel %vm7119_vm1, %v5744_v36, %v5658_v58  ;;  %vm7124_vm5 = vmmov %vm7123_vm0 }
  0xff   : > { %7111 = vst [vmem:[#allocation26_spill] sm:$0xff] %v5911_v3  ;;  %v5923_v12 = vsel %vm7116_vm4, %v1468_v26, %v5723_v39  ;;  %v1726_v6 = vrot.slane %v7118_v19, 4  ;;  %v7120_v46 = vshrl.u32 %v5426_v1, 16  ;;  %v476_v26 = vmul.f32 %v5941_v8, %v3982_v5  ;;  %1368 = vmatmul.bf16.gmra.mxu1 %v1208_v10  ;;  %v5964_v5 = vld [vmem:[%s6755_s3] ss:$0 sm:$0xff]  ;;  %vm7128_vm8 = vmmov %vm7119_vm1  ;;  %v7182_v3 = vld [vmem:[#allocation24_spill] sm:$0xff] }
 0x100   : > { %7113 = vst [vmem:[#allocation6_spill] sm:$0xff] %v5915_v59  ;;  %1621 = vmatmul.bf16.gmra.mxu2 %v5923_v12  ;;  %v5947_v20 = vsel %vm7122_vm6, %v5908_v13, %v5788_v21  ;;  %v5950_v50 = vsel %vm7123_vm0, %v2112_v29, %v2113_v4  ;;  %v2115_v58 = vor.u32 %v2113_v4, %v1228_v41  ;;  %v3904_v41 = vld [vmem:[%s6753_s1 + $0x1a0] sm:$0xff]  ;;  %v2132_v19 = vshll.u32 %v5554_v24, 16  ;;  %vm7129_vm1 = vmmov %vm7123_vm0 }
 0x101   : > { %7115 = vst [vmem:[#allocation60_spill] sm:$0xff] %v5919_v48  ;;  %v2130_v40 = vor.u32 %v5919_v48, %v7120_v46  ;;  %v1727_v1 = vor.u32 %v1726_v6, %v1725_v37  ;;  %v5955_v36 = vsel %vm7124_vm5, %v5540_v54, %v5693_v51  ;;  %v5959_v17 = vpack.c.bf16 %v5651_v34, %v5546_v56  ;;  %v3912_v54 = vld [vmem:[%s6753_s1 + $0x1e0] sm:$0xff]  ;;  %v5975_v51 = vpop.permute.xlu1 %923  ;;  %vm7135_vm6 = vmmov %vm7123_vm0 }
 0x102   : > { %7125 = vst [vmem:[#allocation61_spill] sm:$0xff] %v5964_v5  ;;  %v5967_v21 = vadd.f32 %v5964_v5, %v476_v26  ;;  %2405 = vmatpush.bf16.msra.mxu2 %v3904_v41  ;;  %2565 = vmatpush.bf16.msra.mxu3 %v3912_v54  ;;  %v3896_v29 = vld [vmem:[%s6753_s1 + $0x160] sm:$0xff]  ;;  %v2136_v6 = vshrl.u32 %v5554_v24, 16  ;;  %vm962_vm4 = vcmp.eq.s32.totalorder %v5975_v51, 1  ;;  %v7131_v4 = vshll.u32 %v5774_v32, 16  ;;  %vm7139_vm5 = vmmov %vm7123_vm0  ;;  %v7178_v5 = vld [vmem:[#allocation8_spill] sm:$0xff] }
 0x103   : > { %7127 = vst [vmem:[#allocation63_spill] sm:$0xff] %v5975_v51  ;;  %v1728_v34 = vsel %vm7128_vm8, %v5700_v55, %v1727_v1  ;;  %v6870_v57 = vshll.u32 %v5959_v17, 16  ;;  %2215 = vmatpush.bf16.msra.mxu1 %v3896_v29  ;;  %v5989_v55 = vsel %vm7129_vm1, %v2115_v58, %v5842_v22  ;;  %v3596_v46 = vpack.c.bf16 %v5445_v43, %v5190_v27  ;;  %v3920_v26 = vld [vmem:[%s6753_s1 + $0x220] sm:$0xff]  ;;  %vm7148_vm1 = vmmov %vm7123_vm0 }
 0x104   : > { %7126 = vst [vmem:[#allocation62_spill] sm:$0xff] %v5967_v21  ;;  %1854 = vmatmul.bf16.gmra.mxu3 %v1728_v34  ;;  %v6869_v37 = vmax.f32 %v5967_v21, 0.0  ;;  %v1480_v10 = vrot.slane %v7131_v4, 1  ;;  %v6871_v41 = vshrl.u32 %v5959_v17, 16  ;;  %v7133_v22 = vshrl.u32 %v5602_v30, 16  ;;  %2752 = vmatpush.bf16.msra.mxu0 %v3920_v26  ;;  %v7179_v8 = vld [vmem:[#allocation18_spill] sm:$0xff] }
 0x105   : > { %7130 = vst [vmem:[#allocation64_spill] sm:$0xff] %v5989_v55  ;;  %v7134_v54 = vshrl.u32 %v5438_v38, 16  ;;  %v2324_v43 = vrot.slane %v2136_v6, 3  ;;  %v2325_v34 = vrot.slane %v2132_v19, 4  ;;  %v2673_v29 = vrot.slane %v6870_v57, 1 }
 0x106   : > { %v6003_v24 = vsel %vm962_vm4, %v6869_v37, 0.0  ;;  %v1476_v58 = vor.u32 %v7133_v22, %v5723_v39  ;;  %v2134_v4 = vrot.slane %v2132_v19, 1  ;;  %v2140_v37 = vshll.u32 %v5667_v60, 16 }
 0x107   : > { %7132 = vst [vmem:[#allocation65_spill] sm:$0xff] %v6003_v24  ;;  %v6011_v27 = vor.u32 %v7134_v54, %v5854_v9  ;;  %v6022_v30 = vpack.c.bf16 %v6003_v24, %v5646_v0  ;;  %v2326_v38 = vor.u32 %v2325_v34, %v2324_v43  ;;  %v2675_v9 = vor.u32 %v2673_v29, %v6871_v41 }
 0x108   : > { %v6016_v52 = vsel %vm7135_vm6, %v1476_v58, %v1480_v10  ;;  %v6033_v19 = vsel %vm7139_vm5, %v2130_v40, %v2134_v4  ;;  %v2329_v54 = vrot.slane %v2140_v37, 4  ;;  %v6046_v34 = vrot.slane %v2140_v37, 1  ;;  %vm7150_vm6 = vmmov %vm7123_vm0  ;;  %2753 = vmatpush.bf16.msra.mxu0 %v3919_v63  ;;  %v3902_v63 = vld [vmem:[%s6753_s1 + $0x190] sm:$0xff] }
 0x109   : > { %7137 = vst [vmem:[#allocation29_spill] sm:$0xff] %v6022_v30  ;;  %v6027_v39 = vsel %vm7123_vm0, %v6011_v27, %v2673_v29  ;;  %v2677_v22 = vshll.u32 %v6022_v30, 16  ;;  %v1732_v40 = vsel %vm7128_vm8, %v1727_v1, %v5689_v45  ;;  %v2138_v29 = vor.u32 %v2136_v6, %v2134_v4  ;;  %vm7152_vm0 = vmmov %vm7128_vm8  ;;  %v3903_v4 = vld [vmem:[%s6753_s1 + $0x198] sm:$0xff] }
 0x10a   : > { %7138 = vst [vmem:[#allocation66_spill] sm:$0xff] %v6027_v39  ;;  %v7145_v57 = vshrl.u32 %v5663_v31, 16  ;;  %v7146_v51 = vshll.u32 %v5663_v31, 16  ;;  %v7154_v1 = vshrl.u32 %v5774_v32, 16  ;;  %v7155_v31 = vld [vmem:[#allocation11_spill] sm:$0xff]  ;;  %2406 = vmatpush.bf16.msra.mxu2 %v3903_v4  ;;  %vm7156_vm5 = vmmov %vm7148_vm1  ;;  %v3611_v59 = vpack.c.bf16 %v7179_v8, %v7178_v5 }
 0x10b   : > { %3597 = vmatmul.msk.bf16.gmra.mxu0 %vm5253_vm9, %v3596_v46  ;;  %7140 = vst [vmem:[#allocation67_spill] sm:$0xff] %v6033_v19  ;;  %v6875_v46 = vshrl.u32 %v5667_v60, 16  ;;  %vm7141_vm9 = vmmov %vm7128_vm8  ;;  %v6044_v43 = vrot.slane %v2677_v22, 1  ;;  %v6062_v37 = vsel %vm7150_vm6, %v2138_v29, %v6046_v34  ;;  %v7160_v22 = vld [vmem:[#allocation56_spill] sm:$0xff]  ;;  %v7162_v29 = vld [vmem:[#allocation10_spill] sm:$0xff]  ;;  %v6889_v8 = vshll.u32 %v7182_v3, 16 }
 0x10c   : > { %v6039_v26 = vsel %vm7141_vm9, %v5876_v23, %v2326_v38  ;;  %7144 = vst [vmem:[#allocation70_spill] sm:$0xff] %v6046_v34  ;;  %v1221_v41 = vrot.slane %v7145_v57, 3  ;;  %v1224_v21 = vrot.slane %v7146_v51, 4  ;;  %v1484_v57 = vor.u32 %v7154_v1, %v1480_v10  ;;  %vm7158_vm9 = vmmov %vm7152_vm0 }
 0x10d   : > { %7142 = vst [vmem:[#allocation68_spill] sm:$0xff] %v6039_v26  ;;  %v2328_v58 = vrot.slane %v6875_v46, 3  ;;  %v6058_v46 = vsel %vm7148_vm1, %v2675_v9, %v6044_v43  ;;  %v3599_v51 = vpack.c.bf16 %v7155_v31, %v5434_v7  ;;  %v3911_v9 = vld [vmem:[%s6753_s1 + $0x1d8] sm:$0xff]  ;;  %v7169_v31 = vld [vmem:[#allocation31_spill] sm:$0xff]  ;;  %v3900_v26 = vld [vmem:[%s6753_s1 + $0x180] sm:$0xff]  ;;  %v7186_v16 = vshrl.u32 %v5959_v17, 16 }
 0x10e   : > { %7143 = vst [vmem:[#allocation69_spill] sm:$0xff] %v6044_v43  ;;  %v1225_v6 = vor.u32 %v1224_v21, %v1221_v41  ;;  %2566 = vmatpush.bf16.msra.mxu3 %v3911_v9  ;;  %v7157_v7 = vld [vmem:[#allocation53_spill] sm:$0xff]  ;;  %v6100_v41 = vpop.f32.mrf.mxu1  ;;  %2407 = vmatpush.bf16.msra.mxu2 %v3902_v63  ;;  %v7175_v43 = vld [vmem:[#allocation7_spill] sm:$0xff]  ;;  %vm7198_vm8 = vmmov %vm7148_vm1 }
 0x10f   : > { %1373 = vmatmul.bf16.gmra.mxu1 %v5687_v47  ;;  %v6054_v30 = vor.u32 %v2329_v54, %v2328_v58  ;;  %7149 = vst [vmem:[#allocation72_spill] sm:$0xff] %v6058_v46  ;;  %v3895_v21 = vld [vmem:[%s6753_s1 + $0x158] sm:$0xff]  ;;  %vm7199_vm1 = vmmov %vm7152_vm0 }
 0x110   : > { %1626 = vmatmul.bf16.gmra.mxu2 %v6016_v52  ;;  %7151 = vst [vmem:[#allocation73_spill] sm:$0xff] %v6062_v37  ;;  %v6087_v32 = vsel %vm7158_vm9, %v7157_v7, %v1225_v6  ;;  %2216 = vmatpush.bf16.msra.mxu1 %v3895_v21  ;;  %v7174_v63 = vld [vmem:[#allocation17_spill] sm:$0xff]  ;;  %vm7200_vm6 = vmmov %vm7152_vm0 }
 0x111   : > { %7147 = vst [vmem:[#allocation71_spill] sm:$0xff] %v6054_v30  ;;  %v6066_v45 = vsel %vm7152_vm0, %v2326_v38, %v6054_v30  ;;  %v6080_v38 = vsel %vm7156_vm5, %v1484_v57, %v5671_v42  ;;  %v3608_v19 = vpack.c.bf16 %v7175_v43, %v7174_v63  ;;  %v3893_v43 = vld [vmem:[%s6753_s1 + $0x148] sm:$0xff] }
 0x112   : > { %7153 = vst [vmem:[#allocation74_spill] sm:$0xff] %v6066_v45 }
 0x114   : > { %1859 = vmatmul.bf16.gmra.mxu3 %v1732_v40  ;;  %v7161_v40 = vld [vmem:[#allocation9_spill] sm:$0xff] }
 0x115   : > { %v3602_v1 = vpack.c.bf16 %v7162_v29, %v7161_v40 }
 0x116   : > { %v6117_v9 = vpop.f32.mrf.mxu1 }
 0x117   : > { %v6098_v42 = vpop.f32.mrf.mxu3 }
 0x118   : > { %7159 = vst [vmem:[#allocation11_spill] sm:$0xff] %v6098_v42  ;;  %v7187_v42 = vshll.u32 %v5959_v17, 16 }
 0x119   : > { %v6093_v10 = vpop.f32.mrf.mxu2 }
 0x11b   : > { %3600 = vmatmul.msk.bf16.gmra.mxu0 %vm5530_vm2, %v3599_v51  ;;  %v1113_v58 = vpop.f32.mrf.mxu0  ;;  %v7165_v51 = vld [vmem:[#allocation55_spill] sm:$0xff]  ;;  %vm7166_vm2 = vmmov %vm7152_vm0 }
 0x11c   : > { %v6114_v4 = vsel %vm7166_vm2, %v1225_v6, %v5908_v13  ;;  %v3894_v13 = vld [vmem:[%s6753_s1 + $0x150] sm:$0xff] }
 0x11d   : > { %2217 = vmatpush.bf16.msra.mxu1 %v3894_v13 }
 0x11f   : > { %1378 = vmatmul.bf16.gmra.mxu1 %v6087_v32  ;;  %v6107_v57 = vpop.f32.mrf.mxu3 }
 0x120   : > { %1631 = vmatmul.bf16.gmra.mxu2 %v6080_v38  ;;  %7163 = vst [vmem:[#allocation53_spill] sm:$0xff] %v6107_v57 }
 0x121   : > { %v6103_v54 = vpop.f32.mrf.mxu2  ;;  %2218 = vmatpush.bf16.msra.mxu1 %v3893_v43 }
 0x123   : > { %v1115_v21 = vpop.f32.mrf.mxu0 }
 0x124   : > { %1864 = vmatmul.bf16.gmra.mxu3 %v7160_v22  ;;  %v3910_v22 = vld [vmem:[%s6753_s1 + $0x1d0] sm:$0xff] }
 0x125   : > { %2567 = vmatpush.bf16.msra.mxu3 %v3910_v22 }
 0x127   : > { %v6131_v6 = vpop.f32.mrf.mxu3 }
 0x128   : > { %7167 = vst [vmem:[#allocation56_spill] sm:$0xff] %v6131_v6  ;;  %v6888_v6 = vshrl.u32 %v7182_v3, 16  ;;  %v3916_v3 = vld [vmem:[%s6753_s1 + $0x200] sm:$0xff] }
 0x129   : > { %v6119_v7 = vpop.f32.mrf.mxu2 }
 0x12b   : > { %3603 = vmatmul.msk.bf16.gmra.mxu0 %vm5217_vm3, %v3602_v1  ;;  %v6133_v40 = vpop.f32.mrf.mxu1  ;;  %v7168_v1 = vld [vmem:[#allocation20_spill] sm:$0xff]  ;;  %vm7189_vm3 = vmmov %vm7152_vm0 }
 0x12c   : > { %v3605_v60 = vpack.c.bf16 %v7169_v31, %v7168_v1 }
 0x12f   : > { %1383 = vmatmul.bf16.gmra.mxu1 %v6114_v4  ;;  %v6150_v37 = vpop.f32.mrf.mxu3 }
 0x130   : > { %1636 = vmatmul.bf16.gmra.mxu2 %v7165_v51  ;;  %7171 = vst [vmem:[#allocation9_spill] sm:$0xff] %v6150_v37 }
 0x131   : > { %v6135_v29 = vpop.f32.mrf.mxu2 }
 0x133   : > { %v6139_v34 = vpop.f32.mrf.mxu0  ;;  %v6152_v13 = vpop.f32.mrf.mxu1 }
 0x134   : > { %1869 = vmatmul.bf16.gmra.mxu3 %v5786_v14  ;;  %v3918_v14 = vld [vmem:[%s6753_s1 + $0x210] sm:$0xff] }
 0x135   : > { %2754 = vmatpush.bf16.msra.mxu0 %v3918_v14  ;;  %v3901_v14 = vld [vmem:[%s6753_s1 + $0x188] sm:$0xff] }
 0x136   : > { %2408 = vmatpush.bf16.msra.mxu2 %v3901_v14 }
 0x139   : > { %v6148_v22 = vpop.f32.mrf.mxu2 }
 0x13a   : > { %2409 = vmatpush.bf16.msra.mxu2 %v3900_v26 }
 0x13b   : > { %3606 = vmatmul.msk.bf16.gmra.mxu0 %vm5578_vm15, %v3605_v60  ;;  %v6154_v1 = vpop.f32.mrf.mxu0 }
 0x13f   : > { %1388 = vmatmul.bf16.gmra.mxu1 %v5947_v20 }
 0x140   : > { %1641 = vmatmul.bf16.gmra.mxu2 %v5780_v61 }
 0x141   : > { %v6157_v60 = vpop.f32.mrf.mxu2 }
 0x142   : > { %7172 = vst [vmem:[#allocation10_spill] sm:$0xff] %v6157_v60  ;;  %v6159_v31 = vpop.f32.mrf.mxu3  ;;  %v1759_v60 = vrot.slane %v7187_v42, 4 }
 0x143   : > { %7173 = vst [vmem:[#allocation27_spill] sm:$0xff] %v6159_v31  ;;  %v6163_v46 = vpop.f32.mrf.mxu0  ;;  %v6165_v30 = vpop.f32.mrf.mxu1  ;;  %v7181_v31 = vld [vmem:[#allocation15_spill] sm:$0xff] }
 0x144   : > { %1874 = vmatmul.bf16.gmra.mxu3 %v5802_v35  ;;  %v3909_v35 = vld [vmem:[%s6753_s1 + $0x1c8] sm:$0xff] }
 0x145   : > { %2568 = vmatpush.bf16.msra.mxu3 %v3909_v35 }
 0x14a   : > { %v6180_v63 = vpop.f32.mrf.mxu3  ;;  %v1607_v45 = vpop.f32.mrf.mxu2 }
 0x14b   : > { %3609 = vmatmul.msk.bf16.gmra.mxu0 %vm5520_vm14, %v3608_v19  ;;  %7177 = vst [vmem:[#allocation55_spill] sm:$0xff] %v6180_v63  ;;  %v6182_v14 = vpop.f32.mrf.mxu0  ;;  %v6184_v48 = vpop.f32.mrf.mxu1  ;;  %v3917_v19 = vld [vmem:[%s6753_s1 + $0x208] sm:$0xff] }
 0x14c   : > { %2755 = vmatpush.bf16.msra.mxu0 %v3917_v19  ;;  %v1269_v19 = vrot.slane %v6889_v8, 4 }
 0x14f   : > { %1393 = vmatmul.bf16.gmra.mxu1 %v5819_v25 }
 0x150   : > { %1646 = vmatmul.bf16.gmra.mxu2 %v5810_v49  ;;  %v1756_v49 = vrot.slane %v7186_v16, 3  ;;  %v1419_v16 = vpack.c.bf16 %v5546_v56, %v5546_v56  ;;  %2756 = vmatpush.bf16.msra.mxu0 %v3916_v3  ;;  %v7192_v3 = vld [vmem:[#allocation35_spill] sm:$0xff] }
 0x152   : > { %v1609_v39 = vpop.f32.mrf.mxu2  ;;  %v6190_v24 = vpop.f32.mrf.mxu3  ;;  %v1760_v42 = vor.u32 %v1759_v60, %v1756_v49 }
 0x154   : > { %1879 = vmatmul.bf16.gmra.mxu3 %v5829_v44 }
 0x155   : > { %v6194_v63 = vpop.f32.mrf.mxu0 }
 0x158   : > { %v1359_v35 = vpop.f32.mrf.mxu1 }
 0x159   : > { %v1360_v43 = vadd.f32 %v1359_v35, %v1113_v58 }
 0x15a   : > { %v6202_v37 = vpop.f32.mrf.mxu3 }
 0x15b   : > { %3612 = vmatmul.msk.bf16.gmra.mxu0 %vm5612_vm7, %v3611_v59  ;;  %v6199_v44 = vadd.f32 %v1607_v45, %v1360_v43  ;;  %v1266_v45 = vrot.slane %v6888_v6, 3  ;;  %v3908_v43 = vld [vmem:[%s6753_s1 + $0x1c0] sm:$0xff]  ;;  %v7184_v6 = vld [vmem:[#allocation36_spill] sm:$0xff] }
 0x15c   : > { %2569 = vmatpush.bf16.msra.mxu3 %v3908_v43 }
 0x15d   : > { %v6206_v5 = vpop.f32.mrf.mxu0 }
 0x15e   : > { %v1612_v15 = vpop.f32.mrf.mxu2 }
 0x15f   : > { %1398 = vmatmul.bf16.gmra.mxu1 %v5848_v11 }
 0x160   : > { %1651 = vmatmul.bf16.gmra.mxu2 %v7181_v31  ;;  %v1361_v59 = vpop.f32.mrf.mxu1  ;;  %v3892_v31 = vld [vmem:[%s6753_s1 + $0x140] sm:$0xff] }
 0x161   : > { %v1362_v58 = vadd.f32 %v1361_v59, %v1115_v21  ;;  %v7183_v59 = vld [vmem:[#allocation19_spill] sm:$0xff]  ;;  %2219 = vmatpush.bf16.msra.mxu1 %v3892_v31 }
 0x162   : > { %v6224_v21 = vpop.f32.mrf.mxu3  ;;  %v3614_v57 = vpack.c.bf16 %v7184_v6, %v7183_v59  ;;  %v7188_v6 = vld [vmem:[#allocation57_spill] sm:$0xff] }
 0x163   : > { %v6216_v35 = vadd.f32 %v1609_v39, %v1362_v58 }
 0x164   : > { %1884 = vmatmul.bf16.gmra.mxu3 %v5893_v2  ;;  %v1270_v2 = vor.u32 %v1269_v19, %v1266_v45  ;;  %v1534_v19 = vshll.u32 %v1419_v16, 16 }
 0x165   : > { %v6228_v8 = vpop.f32.mrf.mxu0 }
 0x166   : > { %v1614_v26 = vpop.f32.mrf.mxu2  ;;  %v6240_v31 = vsel %vm7189_vm3, %v7188_v6, %v1270_v2  ;;  %v1536_v56 = vrot.slane %v1534_v19, 1 }
 0x167   : > { %7190 = vst [vmem:[#allocation20_spill] sm:$0xff] %v6240_v31 }
 0x168   : > { %v1364_v39 = vpop.f32.mrf.mxu1 }
 0x169   : > { %v1365_v58 = vadd.f32 %v1364_v39, %v6139_v34 }
 0x16a   : > { %v6250_v17 = vpop.f32.mrf.mxu3 }
 0x16b   : > { %3615 = vmatmul.msk.bf16.gmra.mxu0 %vm5417_vm11, %v3614_v57  ;;  %v6242_v43 = vadd.f32 %v1612_v15, %v1365_v58  ;;  %v1692_v15 = vpack.c.bf16 %v5646_v0, %v5646_v0  ;;  %vm7191_vm11 = vmmov %vm7152_vm0  ;;  %v7194_v0 = vld [vmem:[#allocation37_spill] sm:$0xff] }
 0x16c   : > { %v1761_v39 = vsel %vm7191_vm11, %v5868_v28, %v1760_v42  ;;  %vm7195_vm14 = vcmp.eq.s32.totalorder %v7194_v0, 1 }
 0x16d   : > { %v6252_v57 = vpop.f32.mrf.mxu0  ;;  %v1763_v6 = vshrl.u32 %v1692_v15, 16 }
 0x16e   : > { %v1617_v34 = vpop.f32.mrf.mxu2 }
 0x16f   : > { %1403 = vmatmul.bf16.gmra.mxu1 %v6240_v31  ;;  %v7193_v31 = vld [vmem:[#allocation43_spill] sm:$0xff] }
 0x170   : > { %1656 = vmatmul.bf16.gmra.mxu2 %v5872_v62  ;;  %v1366_v45 = vpop.f32.mrf.mxu1  ;;  %v1766_v62 = vshll.u32 %v1692_v15, 16  ;;  %v3617_v16 = vpack.c.bf16 %v7193_v31, %v7192_v3  ;;  %v1537_v15 = vsel %vm7198_vm8, %v6011_v27, %v1536_v56 }
 0x171   : > { %v1367_v59 = vadd.f32 %v1366_v45, %v6154_v1  ;;  %v7196_v1 = vld [vmem:[#allocation46_spill] sm:$0xff]  ;;  %v1765_v45 = vrot.slane %v1763_v6, 3 }
 0x172   : > { %v6261_v60 = vpop.f32.mrf.mxu3  ;;  %vm7197_vm15 = vcmp.eq.s32.totalorder %v7196_v1, 1 }
 0x173   : > { %v6259_v58 = vadd.f32 %v1614_v26, %v1367_v59  ;;  %vm3616_vm7 = vmpackc.low %vm7197_vm15, %vm7195_vm14  ;;  %v1768_v26 = vrot.slane %v1766_v62, 4  ;;  %v6276_v59 = vsel %vm7199_vm1, %v1270_v2, %v5876_v23 }
 0x174   : > { %1889 = vmatmul.bf16.gmra.mxu3 %v1761_v39  ;;  %vm7248_vm14 = vmmov %vm7198_vm8 }
 0x175   : > { %v1769_v6 = vor.u32 %v1768_v26, %v1765_v45 }
 0x176   : > { %v1619_v49 = vpop.f32.mrf.mxu2 }
 0x177   : > { %v1770_v27 = vsel %vm7200_vm6, %v1760_v42, %v1769_v6 }
 0x178   : > { %v6265_v55 = vpop.f32.mrf.mxu0 }
 0x17a   : > { %v6281_v0 = vpop.f32.mrf.mxu3 }
 0x17b   : > { %3618 = vmatmul.msk.bf16.gmra.mxu0 %vm3616_vm7, %v3617_v16  ;;  %v7202_v16 = vld [vmem:[#allocation50_spill] sm:$0xff] }
 0x17c   : > { %v1369_v28 = vpop.f32.mrf.mxu1 }
 0x17d   : > { %v1370_v19 = vadd.f32 %v1369_v28, %v6163_v46 }
 0x17f   : > { %v6278_v39 = vadd.f32 %v1617_v34, %v1370_v19  ;;  %1408 = vmatmul.bf16.gmra.mxu1 %v6276_v59  ;;  %v7201_v34 = vld [vmem:[#allocation49_spill] sm:$0xff] }
 0x180   : > { %1661 = vmatmul.bf16.gmra.mxu2 %v1537_v15  ;;  %v6283_v62 = vpop.f32.mrf.mxu0  ;;  %v3620_v28 = vpack.c.bf16 %v7202_v16, %v7201_v34  ;;  %v7203_v15 = vld [vmem:[#allocation44_spill] sm:$0xff] }
 0x181   : > { %vm7204_vm0 = vcmp.eq.s32.totalorder %v7203_v15, 1 }
 0x182   : > { %vm3619_vm5 = vmpackc.low %vm961_vm10, %vm7204_vm0 }
 0x183   : > { %v1622_v3 = vpop.f32.mrf.mxu2 }
 0x184   : > { %v1371_v46 = vpop.f32.mrf.mxu1  ;;  %1894 = vmatmul.bf16.gmra.mxu3 %v1770_v27 }
 0x185   : > { %v1372_v1 = vadd.f32 %v1371_v46, %v6182_v14 }
 0x187   : > { %v6287_v56 = vadd.f32 %v1619_v49, %v1372_v1  ;;  %v6289_v2 = vpop.f32.mrf.mxu3  ;;  %v1900_v1 = vadd.f32 %v6190_v24, %v6199_v44  ;;  %v1901_v24 = vadd.f32 %v6202_v37, %v6216_v35  ;;  %v1902_v37 = vadd.f32 %v6224_v21, %v6242_v43  ;;  %v7208_v35 = vld [vmem:[#allocation28_spill] sm:$0xff] }
 0x188   : > { %v6293_v19 = vpop.f32.mrf.mxu0  ;;  %v1903_v21 = vadd.f32 %v6250_v17, %v6259_v58  ;;  %v1904_v17 = vadd.f32 %v6261_v60, %v6278_v39  ;;  %v7210_v58 = vld [vmem:[#allocation41_spill] sm:$0xff] }
 0x189   : > { %v1905_v60 = vadd.f32 %v6281_v0, %v6287_v56  ;;  %v7213_v56 = vld [vmem:[#allocation13_spill] sm:$0xff] }
 0x18b   : > { %v1624_v23 = vpop.f32.mrf.mxu2  ;;  %3621 = vmatmul.msk.bf16.gmra.mxu0 %vm3619_vm5, %v3620_v28  ;;  %v7206_v28 = vld [vmem:[#allocation4_spill] sm:$0xff] }
 0x18c   : > { %v1374_v26 = vpop.f32.mrf.mxu1 }
 0x18d   : > { %v1375_v14 = vadd.f32 %v1374_v26, %v6100_v41  ;;  %v6312_v41 = vadd.f32 %v6194_v63, %v1900_v1  ;;  %v6328_v63 = vadd.f32 %v6206_v5, %v1901_v24  ;;  %v6342_v5 = vadd.f32 %v6228_v8, %v1902_v37 }
 0x18e   : > { %v6358_v8 = vadd.f32 %v6252_v57, %v1903_v21  ;;  %v6372_v57 = vadd.f32 %v6265_v55, %v1904_v17  ;;  %v6388_v55 = vadd.f32 %v6283_v62, %v1905_v60 }
 0x18f   : > { %v6301_v42 = vadd.f32 %v1622_v3, %v1375_v14  ;;  %1413 = vmatmul.bf16.gmra.mxu1 %v5905_v53  ;;  %v6304_v6 = vpop.f32.mrf.mxu3 }
 0x190   : > { %2410 = vmatmul.bf16.vlgmr.msra.gmra.mxu2 %v5687_v47  ;;  %v6306_v46 = vpop.f32.mrf.mxu0 }
 0x191   : > { %v1906_v0 = vadd.f32 %v6289_v2, %v6301_v42 }
 0x193   : > { %v1627_v49 = vpop.f32.mrf.mxu2  ;;  %v6402_v62 = vadd.f32 %v6293_v19, %v1906_v0 }
 0x194   : > { %v1376_v27 = vpop.f32.mrf.mxu1  ;;  %3768 = vmatmul.msk.bf16.vlgmr.msra.gmra.mxu3 %vm4814_vm13, %v7206_v28 }
 0x195   : > { %v1377_v15 = vadd.f32 %v1376_v27, %v6117_v9 }
 0x197   : > { %v6317_v3 = vadd.f32 %v1624_v23, %v1377_v15  ;;  %v6319_v26 = vpop.f32.mrf.mxu3 }
 0x198   : > { %v6321_v14 = vpop.f32.mrf.mxu0 }
 0x199   : > { %v1907_v2 = vadd.f32 %v6304_v6, %v6317_v3  ;;  %v7216_v3 = vld [vmem:[#allocation22_spill] sm:$0xff] }
 0x19b   : > { %v1629_v53 = vpop.f32.mrf.mxu2  ;;  %2757 = vmatmul.bf16.vlgmr.msra.gmra.mxu0 %v5923_v12  ;;  %v6418_v19 = vadd.f32 %v6306_v46, %v1907_v2  ;;  %v7224_v2 = vld [vmem:[#allocation11_spill] sm:$0xff] }
 0x19c   : > { %v1379_v44 = vpop.f32.mrf.mxu1 }
 0x19d   : > { %v1380_v9 = vadd.f32 %v1379_v44, %v6133_v40 }
 0x19f   : > { %v6331_v23 = vadd.f32 %v1627_v49, %v1380_v9  ;;  %2220 = vmatmul.bf16.vlgmr.msra.gmra.mxu1 %v5955_v36  ;;  %v6334_v27 = vpop.f32.mrf.mxu3 }
 0x1a0   : > { %2415 = vmatmul.bf16.gmra.mxu2 %v6087_v32  ;;  %v6336_v15 = vpop.f32.mrf.mxu0 }
 0x1a1   : > { %v1908_v6 = vadd.f32 %v6319_v26, %v6331_v23 }
 0x1a3   : > { %v1632_v1 = vpop.f32.mrf.mxu2  ;;  %v6432_v46 = vadd.f32 %v6321_v14, %v1908_v6 }
 0x1a4   : > { %v1381_v40 = vpop.f32.mrf.mxu1  ;;  %3771 = vmatmul.msk.bf16.gmra.mxu3 %vm5268_vm12, %v7208_v35 }
 0x1a5   : > { %v1382_v12 = vadd.f32 %v1381_v40, %v6152_v13 }
 0x1a7   : > { %v6347_v49 = vadd.f32 %v1629_v53, %v1382_v12  ;;  %v6349_v28 = vpop.f32.mrf.mxu3 }
 0x1a8   : > { %v6351_v47 = vpop.f32.mrf.mxu0 }
 0x1a9   : > { %v1909_v26 = vadd.f32 %v6334_v27, %v6347_v49  ;;  %v7220_v49 = vld [vmem:[#allocation10_spill] sm:$0xff] }
 0x1ab   : > { %v1634_v36 = vpop.f32.mrf.mxu2  ;;  %2762 = vmatmul.bf16.gmra.mxu0 %v6016_v52  ;;  %v6448_v14 = vadd.f32 %v6336_v15, %v1909_v26 }
 0x1ac   : > { %v1384_v43 = vpop.f32.mrf.mxu1 }
 0x1ad   : > { %v1385_v13 = vadd.f32 %v1384_v43, %v6165_v30 }
 0x1af   : > { %v6361_v53 = vadd.f32 %v1632_v1, %v1385_v13  ;;  %2225 = vmatmul.bf16.gmra.mxu1 %v5858_v33  ;;  %v6364_v44 = vpop.f32.mrf.mxu3 }
 0x1b0   : > { %2420 = vmatmul.bf16.gmra.mxu2 %v6114_v4  ;;  %v6366_v9 = vpop.f32.mrf.mxu0  ;;  %v7211_v4 = vld [vmem:[#allocation42_spill] sm:$0xff] }
 0x1b1   : > { %vm7212_vm13 = vnez %v7211_v4  ;;  %v1910_v27 = vadd.f32 %v6349_v28, %v6361_v53 }
 0x1b3   : > { %v1637_v24 = vpop.f32.mrf.mxu2  ;;  %v6462_v15 = vadd.f32 %v6351_v47, %v1910_v27 }
 0x1b4   : > { %v1386_v30 = vpop.f32.mrf.mxu1  ;;  %3774 = vmatmul.msk.bf16.gmra.mxu3 %vm7212_vm13, %v7210_v58  ;;  %vm7264_vm13 = vsmask.f32 4352 }
 0x1b5   : > { %v1387_v52 = vadd.f32 %v1386_v30, %v6184_v48 }
 0x1b7   : > { %v6377_v1 = vadd.f32 %v1634_v36, %v1387_v52  ;;  %v6379_v37 = vpop.f32.mrf.mxu3 }
 0x1b8   : > { %v6381_v40 = vpop.f32.mrf.mxu0 }
 0x1b9   : > { %v1911_v28 = vadd.f32 %v6364_v44, %v6377_v1 }
 0x1bb   : > { %v1639_v33 = vpop.f32.mrf.mxu2  ;;  %2767 = vmatmul.bf16.gmra.mxu0 %v6080_v38  ;;  %v6478_v47 = vadd.f32 %v6366_v9, %v1911_v28 }
 0x1bc   : > { %v1389_v39 = vpop.f32.mrf.mxu1 }
 0x1bd   : > { %v1390_v48 = vadd.f32 %v1389_v39, %v6093_v10  ;;  %v7219_v39 = vld [vmem:[#allocation64_spill] sm:$0xff] }
 0x1bf   : > { %v6391_v12 = vadd.f32 %v1637_v24, %v1390_v48  ;;  %2230 = vmatmul.bf16.gmra.mxu1 %v5881_v18  ;;  %v6394_v32 = vpop.f32.mrf.mxu3 }
 0x1c0   : > { %2425 = vmatmul.bf16.gmra.mxu2 %v5947_v20  ;;  %v6396_v36 = vpop.f32.mrf.mxu0  ;;  %v7214_v20 = vld [vmem:[#allocation16_spill] sm:$0xff] }
 0x1c1   : > { %vm7215_vm12 = vnez %v7214_v20  ;;  %v1912_v44 = vadd.f32 %v6379_v37, %v6391_v12 }
 0x1c3   : > { %v1642_v35 = vpop.f32.mrf.mxu2  ;;  %v6492_v9 = vadd.f32 %v6381_v40, %v1912_v44 }
 0x1c4   : > { %v1391_v10 = vpop.f32.mrf.mxu1  ;;  %3777 = vmatmul.msk.bf16.gmra.mxu3 %vm7215_vm12, %v7213_v56 }
 0x1c5   : > { %v1392_v38 = vadd.f32 %v1391_v10, %v6103_v54  ;;  %v7221_v10 = vld [vmem:[#allocation33_spill] sm:$0xff] }
 0x1c7   : > { %v6407_v21 = vadd.f32 %v1639_v33, %v1392_v38  ;;  %v6409_v43 = vpop.f32.mrf.mxu3 }
 0x1c8   : > { %v6411_v13 = vpop.f32.mrf.mxu0 }
 0x1c9   : > { %v1913_v37 = vadd.f32 %v6394_v32, %v6407_v21 }
 0x1cb   : > { %v1644_v18 = vpop.f32.mrf.mxu2  ;;  %2772 = vmatmul.bf16.gmra.mxu0 %v7165_v51  ;;  %v6508_v40 = vadd.f32 %v6396_v36, %v1913_v37  ;;  %v7243_v37 = vld [vmem:[#allocation27_spill] sm:$0xff] }
 0x1cc   : > { %v1394_v42 = vpop.f32.mrf.mxu1 }
 0x1cd   : > { %v1395_v54 = vadd.f32 %v1394_v42, %v6119_v7 }
 0x1cf   : > { %v6421_v24 = vadd.f32 %v1642_v35, %v1395_v54  ;;  %2235 = vmatmul.bf16.gmra.mxu1 %v5950_v50  ;;  %v6424_v30 = vpop.f32.mrf.mxu3  ;;  %v7225_v54 = vld [vmem:[#allocation2_spill] sm:$0xff] }
 0x1d0   : > { %2430 = vmatmul.bf16.gmra.mxu2 %v5819_v25  ;;  %v6426_v52 = vpop.f32.mrf.mxu0  ;;  %v7217_v25 = vld [vmem:[#allocation25_spill] sm:$0xff] }
 0x1d1   : > { %vm7218_vm9 = vnez %v7217_v25  ;;  %v1914_v32 = vadd.f32 %v6409_v43, %v6421_v24 }
 0x1d3   : > { %v1647_v17 = vpop.f32.mrf.mxu2  ;;  %v6522_v36 = vadd.f32 %v6411_v13, %v1914_v32 }
 0x1d4   : > { %v1396_v7 = vpop.f32.mrf.mxu1  ;;  %3780 = vmatmul.msk.bf16.gmra.mxu3 %vm7218_vm9, %v7216_v3  ;;  %vm3796_vm9 = vmpackc.low %vm962_vm4, %vm961_vm10 }
 0x1d5   : > { %v1397_v51 = vadd.f32 %v1396_v7, %v6135_v29  ;;  %v7227_v7 = vld [vmem:[#allocation59_spill] sm:$0xff]  ;;  %7236 = vst [vmem:[#allocation31_spill] sm:$0xff] %v6522_v36 }
 0x1d7   : > { %v6437_v58 = vadd.f32 %v1644_v18, %v1397_v51  ;;  %v6439_v4 = vpop.f32.mrf.mxu3 }
 0x1d8   : > { %v6441_v33 = vpop.f32.mrf.mxu0 }
 0x1d9   : > { %v1915_v24 = vadd.f32 %v6424_v30, %v6437_v58  ;;  %v7249_v30 = vld [vmem:[#allocation32_spill] sm:$0xff] }
 0x1db   : > { %v1649_v50 = vpop.f32.mrf.mxu2  ;;  %2777 = vmatmul.bf16.gmra.mxu0 %v5780_v61 }
 0x1dc   : > { %v1399_v23 = vpop.f32.mrf.mxu1 }
 0x1dd   : > { %v1400_v29 = vadd.f32 %v1399_v23, %v6148_v22  ;;  %v7229_v23 = vld [vmem:[#allocation12_spill] sm:$0xff] }
 0x1df   : > { %v6451_v60 = vadd.f32 %v1647_v17, %v1400_v29  ;;  %2240 = vmatmul.bf16.gmra.mxu1 %v7219_v39  ;;  %v6454_v35 = vpop.f32.mrf.mxu3  ;;  %v7226_v17 = vld [vmem:[#allocation20_spill] sm:$0xff]  ;;  %v7230_v29 = vld [vmem:[#allocation14_spill] sm:$0xff] }
 0x1e0   : > { %2435 = vmatmul.bf16.gmra.mxu2 %v5848_v11  ;;  %v6456_v0 = vpop.f32.mrf.mxu0  ;;  %v7222_v11 = vld [vmem:[#allocation34_spill] sm:$0xff]  ;;  %vm7231_vm3 = vnez %v7230_v29 }
 0x1e1   : > { %vm7223_vm2 = vnez %v7222_v11 }
 0x1e3   : > { %v1652_v48 = vpop.f32.mrf.mxu2 }
 0x1e4   : > { %v1401_v22 = vpop.f32.mrf.mxu1  ;;  %3783 = vmatmul.msk.bf16.gmra.mxu3 %vm7223_vm2, %v7221_v10  ;;  %v7233_v10 = vld [vmem:[#allocation15_spill] sm:$0xff]  ;;  %vm7273_vm2 = vmmov %vm7198_vm8 }
 0x1e5   : > { %v1402_v61 = vadd.f32 %v1401_v22, %v7220_v49  ;;  %v7232_v49 = vld [vmem:[#allocation56_spill] sm:$0xff] }
 0x1e7   : > { %v6467_v38 = vadd.f32 %v1649_v50, %v1402_v61  ;;  %v6469_v20 = vpop.f32.mrf.mxu3  ;;  %v7228_v50 = vld [vmem:[#allocation53_spill] sm:$0xff] }
 0x1e8   : > { %v6471_v18 = vpop.f32.mrf.mxu0 }
 0x1eb   : > { %v1654_v56 = vpop.f32.mrf.mxu2  ;;  %2782 = vmatmul.bf16.gmra.mxu0 %v7225_v54 }
 0x1ec   : > { %v1404_v53 = vpop.f32.mrf.mxu1 }
 0x1ed   : > { %v1405_v42 = vadd.f32 %v1404_v53, %v7224_v2 }
 0x1ef   : > { %v6481_v6 = vadd.f32 %v1652_v48, %v1405_v42  ;;  %2245 = vmatmul.bf16.gmra.mxu1 %v7227_v7  ;;  %v6484_v3 = vpop.f32.mrf.mxu3  ;;  %v7235_v42 = vld [vmem:[#allocation9_spill] sm:$0xff] }
 0x1f0   : > { %2440 = vmatmul.bf16.gmra.mxu2 %v7226_v17  ;;  %v6486_v25 = vpop.f32.mrf.mxu0  ;;  %v7237_v17 = vld [vmem:[#allocation21_spill] sm:$0xff] }
 0x1f3   : > { %v1657_v51 = vpop.f32.mrf.mxu2 }
 0x1f4   : > { %v1406_v1 = vpop.f32.mrf.mxu1  ;;  %3786 = vmatmul.msk.bf16.gmra.mxu3 %vm7231_vm3, %v7229_v23  ;;  %v7242_v23 = vld [vmem:[#allocation3_spill] sm:$0xff]  ;;  %vm7274_vm3 = vmmov %vm7264_vm13 }
 0x1f5   : > { %v1407_v26 = vadd.f32 %v1406_v1, %v7228_v50  ;;  %v7240_v50 = vld [vmem:[#allocation24_spill] sm:$0xff]  ;;  %v3983_v13 = vunpack.c.h.bf16 %v7242_v23 }
 0x1f7   : > { %v6497_v39 = vadd.f32 %v1654_v56, %v1407_v26  ;;  %v6499_v27 = vpop.f32.mrf.mxu3  ;;  %v7234_v56 = vld [vmem:[#allocation26_spill] sm:$0xff]  ;;  %v7241_v26 = vshll.u32 %v7240_v50, 16  ;;  %v477_v58 = vmul.f32 %v7249_v30, %v3983_v13 }
 0x1f8   : > { %v6501_v22 = vpop.f32.mrf.mxu0 }
 0x1f9   : > { %v2125_v43 = vrot.slane %v7241_v26, 1 }
 0x1fb   : > { %v1659_v48 = vpop.f32.mrf.mxu2  ;;  %2787 = vmatmul.bf16.gmra.mxu0 %v7233_v10  ;;  %v7247_v10 = vld [vmem:[#allocation6_spill] sm:$0xff] }
 0x1fc   : > { %v1409_v12 = vpop.f32.mrf.mxu1 }
 0x1fd   : > { %v1410_v61 = vadd.f32 %v1409_v12, %v7232_v49  ;;  %v7244_v49 = vld [vmem:[#allocation58_spill] sm:$0xff] }
 0x1ff   : > { %v6511_v11 = vadd.f32 %v1657_v51, %v1410_v61  ;;  %2250 = vmatmul.bf16.gmra.mxu1 %v7234_v56  ;;  %v6514_v53 = vpop.f32.mrf.mxu3  ;;  %v7246_v61 = vld [vmem:[#allocation68_spill] sm:$0xff]  ;;  %v2126_v56 = vsel %vm7248_vm14, %v7247_v10, %v2125_v43 }
 0x200   : > { %2445 = vmatmul.bf16.gmra.mxu2 %v6276_v59  ;;  %v6516_v2 = vpop.f32.mrf.mxu0  ;;  %v7238_v59 = vld [vmem:[#allocation23_spill] sm:$0xff] }
 0x201   : > { %vm7239_vm11 = vnez %v7238_v59 }
 0x203   : > { %v1662_v28 = vpop.f32.mrf.mxu2 }
 0x204   : > { %v1411_v21 = vpop.f32.mrf.mxu1  ;;  %3789 = vmatmul.msk.bf16.gmra.mxu3 %vm7239_vm11, %v7237_v17  ;;  %v1916_v17 = vadd.f32 %v6439_v4, %v6451_v60 }
 0x205   : > { %v1412_v54 = vadd.f32 %v1411_v21, %v7235_v42 }
 0x206   : > { %v6564_v13 = vadd.f32 %v6441_v33, %v1916_v17  ;;  %v1917_v33 = vadd.f32 %v6454_v35, %v6467_v38  ;;  %v6595_v38 = vpop.permute.xlu0 %929 }
 0x207   : > { %v6527_v7 = vadd.f32 %v1659_v48, %v1412_v54  ;;  %v6529_v44 = vpop.f32.mrf.mxu3  ;;  %v6541_v48 = vadd.f32 %v6426_v52, %v1915_v24  ;;  %v7250_v52 = vld [vmem:[#allocation61_spill] sm:$0xff]  ;;  %v6559_v24 = vld [vmem:[%s4726_s13 + $0x80] sm:$0xff]   ;;  %s348_s13 = sadd.s32 1, %s3319_s20  ;;  %vm964_vm1 = vcmp.eq.s32.totalorder %v6595_v38, 1 }
 0x208   : > { %v6531_v1 = vpop.f32.mrf.mxu0  ;;  %v6556_v59 = vadd.f32 %v7250_v52, %v477_v58  ;;  %7252 = vst [vmem:[#allocation17_spill] sm:$0xff] %v6564_v13  ;;  %s349_s21 = sadd.s32 %s4169_s27, %s348_s13  ;;  %v7258_v13 = vld [vmem:[#allocation66_spill] sm:$0xff]  ;;  %v6593_v35 = vadd.f32 %v6456_v0, %v1917_v33  ;;  %v3794_v0 = vpack.c.bf16 %v7201_v34, %v7193_v31  ;;  %v7261_v31 = vld [vmem:[#allocation47_spill] sm:$0xff]  ;;  %s363_s27 = scalar_lea.vmem %s6759_s7, %s7302_s14 }
 0x209   : > { %7245 = vst [vmem:[#allocation48_spill] sm:$0xff] %v6541_v48  ;;  %v7260_v48 = vld [vmem:[#allocation60_spill] sm:$0xff]  ;;  %s350_s22 = smul.u32 24, %s349_s21  ;;  %vm7262_vm6 = vnez %v7261_v31 }
 0x20a   : > { %v6894_v60 = vmax.f32 %v6556_v59, 0.0 }
 0x20b   : > { %v1664_v51 = vpop.f32.mrf.mxu2  ;;  %2792 = vmatmul.bf16.gmra.mxu0 %v7244_v49  ;;  %v3986_v49 = vunpack.c.l.bf16 %v6559_v24  ;;  %p351_p6 = scmp.lt.s32.totalorder %s350_s22, 191 }
 0x20c   : > { %v1414_v29 = vpop.f32.mrf.mxu1 }
 0x20d   : > { %v1415_v12 = vadd.f32 %v1414_v29, %v7243_v37  ;;  %v6566_v29 = vpop.permute.xlu2 %926  ;;  %v7253_v37 = vld [vmem:[#allocation38_spill] sm:$0xff]  ;;  %v478_v58 = vmul.f32 %v7249_v30, %v3986_v49  ;;  %s7300_s22 = smov (!%p351_p6, %s350_s22), 191 }
 0x20e   : > { %vm963_vm7 = vcmp.eq.s32.totalorder %v6566_v29, 1  ;;  %s3320_s12 = sshll.u32 %s7300_s22, 2 }
 0x20f   : > { %v6546_v32 = vadd.f32 %v1662_v28, %v1415_v12  ;;  %2255 = vmatmul.bf16.gmra.mxu1 %v2126_v56  ;;  %v6549_v42 = vpop.f32.mrf.mxu3  ;;  %v7251_v28 = vld [vmem:[#allocation55_spill] sm:$0xff]  ;;  %v7254_v12 = vld [vmem:[#allocation40_spill] sm:$0xff]  ;;  %s6628_s25 = scalar_lea.vmem %s6758_s6, %s3320_s12  ;;  %vm3799_vm14 = vmpackc.low %vm964_vm1, %vm963_vm7 }
 0x210   : > { %2450 = vmatmul.bf16.gmra.mxu2 %v7246_v61  ;;  %v6551_v54 = vpop.f32.mrf.mxu0  ;;  %vm7255_vm15 = vnez %v7254_v12 }
 0x213   : > { %v2411_v21 = vpop.f32.mrf.mxu2 }
 0x214   : > { %v1416_v26 = vpop.f32.mrf.mxu1  ;;  %3792 = vmatmul.msk.bf16.gmra.mxu3 %vm7255_vm15, %v7253_v37 }
 0x215   : > { %v1417_v23 = vadd.f32 %v1416_v26, %v7251_v28  ;;  %v7256_v26 = vshrl.u32 %v7240_v50, 16  ;;  %v2916_v34 = vpop.permute.xlu2 %2915 }
 0x216   : > { %vm2986_vm0 = vcmp.eq.s32.totalorder %v2916_v34, 1 }
 0x217   : > { %v6571_v4 = vadd.f32 %v1664_v51, %v1417_v23  ;;  %v2571_v10 = vpop.f32.mrf.mxu3  ;;  %v6583_v51 = vsel %vm963_vm7, %v6894_v60, 0.0  ;;  %v2127_v28 = vor.u32 %v2125_v43, %v7256_v26  ;;  %v7257_v23 = vld [vmem:[#allocation65_spill] sm:$0xff]  ;;  %v7259_v60 = vld [vmem:[#allocation74_spill] sm:$0xff]  ;;  %v6601_v43 = vadd.f32 %v7250_v52, %v478_v58  ;;  %vm7281_vm7 = vmmov %vm7273_vm2 }
 0x218   : > { %v2758_v56 = vpop.f32.mrf.mxu0  ;;  %v2305_v37 = vpack.c.bf16 %v6583_v51, %v7257_v23 }
 0x219   : > { %v2129_v49 = vsel %vm7198_vm8, %v2127_v28, %v7260_v48  ;;  %v6895_v48 = vmax.f32 %v6601_v43, 0.0  ;;  %vm7282_vm8 = vmmov %vm7273_vm2 }
 0x21a   : > { %v2333_v26 = vshrl.u32 %v2305_v37, 16 }
 0x21b   : > { %v2413_v61 = vpop.f32.mrf.mxu2  ;;  %2797 = vmatmul.bf16.gmra.mxu0 %v7258_v13 }
 0x21c   : > { %v2221_v17 = vpop.f32.mrf.mxu1  ;;  %v2335_v28 = vrot.slane %v2333_v26, 3 }
 0x21d   : > { %v2281_v12 = vadd.f32 %v2221_v17, %v6312_v41  ;;  %v2336_v41 = vshll.u32 %v2305_v37, 16 }
 0x21f   : > { %v2471_v50 = vadd.f32 %v2411_v21, %v2281_v12  ;;  %2260 = vmatmul.bf16.gmra.mxu1 %v2129_v49  ;;  %v2573_v13 = vpop.f32.mrf.mxu3  ;;  %v2338_v12 = vrot.slane %v2336_v41, 4  ;;  %v6612_v49 = vpop.permute.xlu1 %932 }
 0x220   : > { %2455 = vmatmul.bf16.gmra.mxu2 %v7259_v60  ;;  %v2760_v36 = vpop.f32.mrf.mxu0  ;;  %v1918_v60 = vadd.f32 %v6469_v20, %v6481_v6  ;;  %vm965_vm4 = vcmp.eq.s32.totalorder %v6612_v49, 1 }
 0x221   : > { %v2631_v33 = vadd.f32 %v2571_v10, %v2471_v50  ;;  %v2919_v10 = vpop.permute.xlu0 %2918  ;;  %v6621_v41 = vor.u32 %v2338_v12, %v2335_v28  ;;  %v7263_v28 = vld [vmem:[#allocation71_spill] sm:$0xff] }
 0x222   : > { %v6610_v37 = vadd.f32 %v6471_v18, %v1918_v60  ;;  %vm2987_vm5 = vcmp.eq.s32.totalorder %v2919_v10, 1 }
 0x223   : > { %v2416_v17 = vpop.f32.mrf.mxu2  ;;  %v2818_v20 = vadd.f32 %v2758_v56, %v2631_v33  ;;  %v1919_v56 = vadd.f32 %v6484_v3, %v6497_v39  ;;  %v2340_v12 = vsel %vm7264_vm13, %v7263_v28, %v6621_v41 }
 0x224   : > { %v2223_v21 = vpop.f32.mrf.mxu1  ;;  %3795 = vmatmul.msk.bf16.gmra.mxu3 %vm7262_vm6, %v3794_v0 }
 0x225   : > { %v2282_v58 = vadd.f32 %v2223_v21, %v6328_v63  ;;  %v996_v63 = vsel %vm964_vm1, %v6895_v48, 0.0  ;;  %v3010_v21 = vsel %vm2986_vm0, %v2818_v20, 0.0  ;;  %v6636_v3 = vadd.f32 %v6486_v25, %v1919_v56 }
 0x226   : > { %v3112_v39 = vmul.f32 %v3010_v21, %v3010_v21 }
 0x227   : > { %v2472_v6 = vadd.f32 %v2413_v61, %v2282_v58  ;;  %v2576_v26 = vpop.f32.mrf.mxu3  ;;  %v2306_v61 = vpack.c.bf16 %v996_v63, %v996_v63  ;;  %7266 = vst [vmem:[#allocation7_spill] sm:$0xff] %v6636_v3 }
 0x228   : > { %v2763_v60 = vpop.f32.mrf.mxu0 }
 0x229   : > { %v2632_v50 = vadd.f32 %v2573_v13, %v2472_v6  ;;  %v3987_v6 = vunpack.c.h.bf16 %v6559_v24 }
 0x22b   : > { %v2418_v18 = vpop.f32.mrf.mxu2  ;;  %v2819_v31 = vadd.f32 %v2760_v36, %v2632_v50  ;;  %v7265_v36 = vld [vmem:[#allocation72_spill] sm:$0xff]  ;;  %v7267_v50 = vld [vmem:[#allocation67_spill] sm:$0xff]  ;;  %v479_v24 = vmul.f32 %v7249_v30, %v3987_v6  ;;  %v2925_v6 = vpop.permute.xlu2 %2924 }
 0x22c   : > { %v2226_v0 = vpop.f32.mrf.mxu1  ;;  %2802 = vmatmul.bf16.gmra.mxu0 %v7265_v36  ;;  %v2345_v36 = vshll.u32 %v2306_v61, 16  ;;  %vm2989_vm10 = vcmp.eq.s32.totalorder %v2925_v6, 1 }
 0x22d   : > { %v3011_v13 = vsel %vm2987_vm5, %v2819_v31, 0.0  ;;  %v2283_v33 = vadd.f32 %v2226_v0, %v6342_v5  ;;  %v2342_v5 = vshrl.u32 %v2306_v61, 16  ;;  %v6641_v31 = vpack.c.bf16 %v996_v63, %v6583_v51  ;;  %v2922_v0 = vpop.permute.xlu1 %2921 }
 0x22e   : > { %v3991_v58 = vpack.c.bf16 %v3011_v13, %v3010_v21  ;;  %v3082_v34 = vadd.f32 %v3011_v13, %v3010_v21  ;;  %v3113_v20 = vmul.f32 %v3011_v13, %v3011_v13  ;;  %v7268_v21 = vld [vmem:[#allocation62_spill] sm:$0xff]  ;;  %vm2988_vm12 = vcmp.eq.s32.totalorder %v2922_v0, 1 }
 0x22f   : > { %v2473_v10 = vadd.f32 %v2416_v17, %v2283_v33  ;;  %2265 = vmatmul.bf16.gmra.mxu1 %v7267_v50  ;;  %v2578_v48 = vpop.f32.mrf.mxu3  ;;  %v7269_v13 = vmax.f32 %v7268_v21, 0.0  ;;  %v1920_v33 = vadd.f32 %v6499_v27, %v6511_v11  ;;  %v2344_v51 = vrot.slane %v2342_v5, 3 }
 0x230   : > { %2460 = vmatmul.bf16.gmra.mxu2 %v2340_v12  ;;  %3992 = vst [vmem:[%s6628_s25] sm:$0xff] %v3991_v58   ;;  %v3136_v28 = vadd.f32 %v3113_v20, %v3112_v39  ;;  %v2765_v3 = vpop.f32.mrf.mxu0  ;;  %v2685_v63 = vshll.u32 %v6641_v31, 16  ;;  %v2347_v61 = vrot.slane %v2345_v36, 4  ;;  %v515_v27 = vadd.f32 %v7250_v52, %v479_v24 }
 0x231   : > { %v2633_v25 = vadd.f32 %v2576_v26, %v2473_v10  ;;  %v3797_v12 = vpack.c.bf16 %v7269_v13, %v7202_v16  ;;  %v6657_v30 = vadd.f32 %v6501_v22, %v1920_v33  ;;  %v7271_v10 = vld [vmem:[#allocation29_spill] sm:$0xff] }
 0x232   : > { %v2681_v50 = vshrl.u32 %v7271_v10, 16  ;;  %v2687_v45 = vrot.slane %v2685_v63, 1  ;;  %v2348_v21 = vor.u32 %v2347_v61, %v2344_v51  ;;  %v547_v22 = vmax.f32 %v515_v27, 0.0  ;;  %v7275_v63 = vld [vmem:[#allocation73_spill] sm:$0xff] }
 0x233   : > { %v2421_v56 = vpop.f32.mrf.mxu2  ;;  %v2820_v17 = vadd.f32 %v2763_v60, %v2633_v25 }
 0x234   : > { %v2228_v39 = vpop.f32.mrf.mxu1  ;;  %3798 = vmatmul.msk.bf16.gmra.mxu3 %vm3796_vm9, %v3797_v12  ;;  %v2349_v12 = vsel %vm7274_vm3, %v6621_v41, %v2348_v21  ;;  %v7276_v41 = vmax.f32 %v6556_v59, 0.0 }
 0x235   : > { %v3012_v58 = vsel %vm2988_vm12, %v2820_v17, 0.0  ;;  %v2284_v16 = vadd.f32 %v2228_v39, %v6358_v8  ;;  %v7272_v8 = vld [vmem:[#allocation69_spill] sm:$0xff]  ;;  %v2928_v39 = vpop.permute.xlu0 %2927 }
 0x236   : > { %v3083_v60 = vadd.f32 %v3082_v34, %v3012_v58  ;;  %v3114_v20 = vmul.f32 %v3012_v58, %v3012_v58  ;;  %v2683_v17 = vor.u32 %v2681_v50, %v7272_v8  ;;  %v1921_v34 = vadd.f32 %v6514_v53, %v6527_v7 }
 0x237   : > { %v2474_v11 = vadd.f32 %v2418_v18, %v2284_v16  ;;  %v2581_v36 = vpop.f32.mrf.mxu3  ;;  %v997_v7 = vsel %vm965_vm4, %v547_v22, 0.0  ;;  %vm2990_vm11 = vcmp.eq.s32.totalorder %v2928_v39, 1 }
 0x238   : > { %v3137_v5 = vadd.f32 %v3136_v28, %v3114_v20  ;;  %v2768_v13 = vpop.f32.mrf.mxu0  ;;  %v2688_v18 = vsel %vm7273_vm2, %v2683_v17, %v2687_v45  ;;  %v6670_v24 = vadd.f32 %v6516_v2, %v1921_v34  ;;  %v2655_v20 = vpack.c.bf16 %v997_v7, %v997_v7 }
 0x239   : > { %v2634_v0 = vadd.f32 %v2578_v48, %v2474_v11  ;;  %v7277_v2 = vmax.f32 %v6601_v43, 0.0  ;;  %v1922_v11 = vadd.f32 %v6529_v44, %v6546_v32 }
 0x23a   : > { %v2693_v50 = vshll.u32 %v2655_v20, 16 }
 0x23b   : > { %v2423_v25 = vpop.f32.mrf.mxu2  ;;  %v2821_v33 = vadd.f32 %v2765_v3, %v2634_v0  ;;  %v3800_v27 = vpack.c.bf16 %v7277_v2, %v7276_v41  ;;  %v6688_v43 = vadd.f32 %v6531_v1, %v1922_v11 }
 0x23c   : > { %v2231_v52 = vpop.f32.mrf.mxu1  ;;  %2807 = vmatmul.bf16.gmra.mxu0 %v2688_v18  ;;  %v2695_v17 = vrot.slane %v2693_v50, 1 }
 0x23d   : > { %v3013_v28 = vsel %vm2989_vm10, %v2821_v33, 0.0  ;;  %v2285_v48 = vadd.f32 %v2231_v52, %v6372_v57  ;;  %v7279_v33 = vld [vmem:[#allocation54_spill] sm:$0xff] }
 0x23e   : > { %v3996_v3 = vpack.c.bf16 %v3013_v28, %v3012_v58  ;;  %v3084_v51 = vadd.f32 %v3083_v60, %v3013_v28  ;;  %v3115_v53 = vmul.f32 %v3013_v28, %v3013_v28  ;;  %v7280_v1 = vshrl.u32 %v7279_v33, 16 }
 0x23f   : > { %v2475_v49 = vadd.f32 %v2421_v56, %v2285_v48  ;;  %2270 = vmatmul.bf16.gmra.mxu1 %v7275_v63  ;;  %v2583_v16 = vpop.f32.mrf.mxu3  ;;  %v2084_v56 = vpack.c.bf16 %v7257_v23, %v7257_v23 }
 0x240   : > { %2465 = vmatmul.bf16.gmra.mxu2 %v2349_v12  ;;  %4064 = vst [vmem:[%s6628_s25 + $0x8] sm:$0xff] %v3996_v3   ;;  %v3138_v26 = vadd.f32 %v3137_v5, %v3115_v53  ;;  %v2770_v58 = vpop.f32.mrf.mxu0  ;;  %v2689_v5 = vshrl.u32 %v6641_v31, 16  ;;  %v1923_v31 = vadd.f32 %v6549_v42, %v6571_v4  ;;  %v2934_v42 = vpop.permute.xlu2 %2933 }
 0x241   : > { %v2635_v61 = vadd.f32 %v2581_v36, %v2475_v49  ;;  %v2148_v0 = vshll.u32 %v2084_v56, 16  ;;  %v2931_v36 = vpop.permute.xlu1 %2930  ;;  %vm2992_vm1 = vcmp.eq.s32.totalorder %v2934_v42, 1 }
 0x242   : > { %v2691_v29 = vor.u32 %v2689_v5, %v2687_v45  ;;  %vm2991_vm15 = vcmp.eq.s32.totalorder %v2931_v36, 1  ;;  %v6699_v12 = vadd.f32 %v6551_v54, %v1923_v31 }
 0x243   : > { %v2426_v57 = vpop.f32.mrf.mxu2  ;;  %v2822_v60 = vadd.f32 %v2768_v13, %v2635_v61  ;;  %v2150_v18 = vrot.slane %v2148_v0, 1 }
 0x244   : > { %v2233_v6 = vpop.f32.mrf.mxu1  ;;  %3801 = vmatmul.msk.bf16.gmra.mxu3 %vm3799_vm14, %v3800_v27  ;;  %v2696_v28 = vsel %vm7281_vm7, %v2691_v29, %v2695_v17 }
 0x245   : > { %v3014_v10 = vsel %vm2990_vm11, %v2822_v60, 0.0  ;;  %v2286_v59 = vadd.f32 %v2233_v6, %v6388_v55  ;;  %v7278_v55 = vld [vmem:[#allocation70_spill] sm:$0xff] }
 0x246   : > { %v3085_v44 = vadd.f32 %v3084_v51, %v3014_v10  ;;  %v3116_v32 = vmul.f32 %v3014_v10, %v3014_v10  ;;  %v2146_v34 = vor.u32 %v7280_v1, %v7278_v55 }
 0x247   : > { %v2476_v23 = vadd.f32 %v2423_v25, %v2286_v59  ;;  %v2586_v8 = vpop.f32.mrf.mxu3 }
 0x248   : > { %v3139_v21 = vadd.f32 %v3138_v26, %v3116_v32  ;;  %v2773_v22 = vpop.f32.mrf.mxu0  ;;  %v2151_v7 = vsel %vm7282_vm8, %v2146_v34, %v2150_v18  ;;  %v2943_v34 = vpop.permute.xlu2 %2942 }
 0x249   : > { %v2636_v13 = vadd.f32 %v2583_v16, %v2476_v23  ;;  %v2940_v0 = vpop.permute.xlu1 %2939  ;;  %vm2995_vm5 = vcmp.eq.s32.totalorder %v2943_v34, 1 }
 0x24a   : > { %vm2994_vm0 = vcmp.eq.s32.totalorder %v2940_v0, 1 }
 0x24b   : > { %v2428_v38 = vpop.f32.mrf.mxu2  ;;  %v2823_v52 = vadd.f32 %v2770_v58, %v2636_v13  ;;  %v2937_v58 = vpop.permute.xlu0 %2936 }
 0x24c   : > { %v2236_v25 = vpop.f32.mrf.mxu1  ;;  %2812 = vmatmul.bf16.gmra.mxu0 %v2696_v28  ;;  %vm2993_vm6 = vcmp.eq.s32.totalorder %v2937_v58, 1 }
 0x24d   : > { %v3015_v45 = vsel %vm2991_vm15, %v2823_v52, 0.0  ;;  %v2287_v48 = vadd.f32 %v2236_v25, %v6402_v62 }
 0x24e   : > { %v4001_v3 = vpack.c.bf16 %v3015_v45, %v3014_v10  ;;  %v3086_v51 = vadd.f32 %v3085_v44, %v3015_v45  ;;  %v3117_v53 = vmul.f32 %v3015_v45, %v3015_v45 }
 0x24f   : > { %v2477_v49 = vadd.f32 %v2426_v57, %v2287_v48  ;;  %2275 = vmatmul.bf16.gmra.mxu1 %v2151_v7  ;;  %v2588_v26 = vpop.f32.mrf.mxu3 }
 0x250   : > { %4065 = vst [vmem:[%s6628_s25 + $0x10] sm:$0xff] %v4001_v3   ;;  %v3140_v4 = vadd.f32 %v3139_v21, %v3117_v53  ;;  %v2775_v61 = vpop.f32.mrf.mxu0 }
 0x251   : > { %v2637_v63 = vadd.f32 %v2586_v8, %v2477_v49 }
 0x253   : > { %v2431_v39 = vpop.f32.mrf.mxu2  ;;  %v2824_v16 = vadd.f32 %v2773_v22, %v2637_v63  ;;  %v2946_v42 = vpop.permute.xlu0 %2945 }
 0x254   : > { %v2238_v62 = vpop.f32.mrf.mxu1  ;;  %vm2996_vm13 = vcmp.eq.s32.totalorder %v2946_v42, 1 }
 0x255   : > { %v3016_v20 = vsel %vm2992_vm1, %v2824_v16, 0.0  ;;  %v2288_v54 = vadd.f32 %v2238_v62, %v6418_v19 }
 0x256   : > { %v3087_v41 = vadd.f32 %v3086_v51, %v3016_v20  ;;  %v3118_v2 = vmul.f32 %v3016_v20, %v3016_v20 }
 0x257   : > { %v2478_v27 = vadd.f32 %v2428_v38, %v2288_v54  ;;  %v2591_v56 = vpop.f32.mrf.mxu3 }
 0x258   : > { %v3141_v57 = vadd.f32 %v3140_v4, %v3118_v2  ;;  %v2778_v6 = vpop.f32.mrf.mxu0 }
 0x259   : > { %v2638_v60 = vadd.f32 %v2588_v26, %v2478_v27  ;;  %v2949_v27 = vpop.permute.xlu1 %2948 }
 0x25a   : > { %vm2997_vm12 = vcmp.eq.s32.totalorder %v2949_v27, 1 }
 0x25b   : > { %v2433_v11 = vpop.f32.mrf.mxu2  ;;  %v2825_v10 = vadd.f32 %v2775_v61, %v2638_v60 }
 0x25c   : > { %v2241_v59 = vpop.f32.mrf.mxu1 }
 0x25d   : > { %v3017_v50 = vsel %vm2993_vm6, %v2825_v10, 0.0  ;;  %v2289_v5 = vadd.f32 %v2241_v59, %v6432_v46 }
 0x25e   : > { %v4006_v44 = vpack.c.bf16 %v3017_v50, %v3016_v20  ;;  %v3088_v32 = vadd.f32 %v3087_v41, %v3017_v50  ;;  %v3119_v23 = vmul.f32 %v3017_v50, %v3017_v50 }
 0x25f   : > { %v2479_v19 = vadd.f32 %v2431_v39, %v2289_v5  ;;  %v2593_v13 = vpop.f32.mrf.mxu3 }
 0x260   : > { %4066 = vst [vmem:[%s6628_s25 + $0x18] sm:$0xff] %v4006_v44   ;;  %v3142_v36 = vadd.f32 %v3141_v57, %v3119_v23  ;;  %v2780_v38 = vpop.f32.mrf.mxu0  ;;  %v2952_v23 = vpop.permute.xlu2 %2951 }
 0x261   : > { %v2639_v21 = vadd.f32 %v2591_v56, %v2479_v19  ;;  %vm2998_vm9 = vcmp.eq.s32.totalorder %v2952_v23, 1 }
 0x263   : > { %v2436_v29 = vpop.f32.mrf.mxu2  ;;  %v2826_v8 = vadd.f32 %v2778_v6, %v2639_v21 }
 0x264   : > { %v2243_v17 = vpop.f32.mrf.mxu1 }
 0x265   : > { %v3018_v22 = vsel %vm2994_vm0, %v2826_v8, 0.0  ;;  %v2290_v55 = vadd.f32 %v2243_v17, %v6448_v14 }
 0x266   : > { %v3089_v33 = vadd.f32 %v3088_v32, %v3018_v22  ;;  %v3120_v1 = vmul.f32 %v3018_v22, %v3018_v22 }
 0x267   : > { %v2480_v46 = vadd.f32 %v2433_v11, %v2290_v55  ;;  %v2596_v25 = vpop.f32.mrf.mxu3 }
 0x268   : > { %v3143_v52 = vadd.f32 %v3142_v36, %v3120_v1  ;;  %v2783_v28 = vpop.f32.mrf.mxu0 }
 0x269   : > { %v2640_v31 = vadd.f32 %v2593_v13, %v2480_v46 }
 0x26b   : > { %v2438_v18 = vpop.f32.mrf.mxu2  ;;  %v2827_v45 = vadd.f32 %v2780_v38, %v2640_v31 }
 0x26c   : > { %v2246_v48 = vpop.f32.mrf.mxu1 }
 0x26d   : > { %v3019_v3 = vsel %vm2995_vm5, %v2827_v45, 0.0  ;;  %v2291_v51 = vadd.f32 %v2246_v48, %v6462_v15  ;;  %v7283_v45 = vld [vmem:[#allocation31_spill] sm:$0xff] }
 0x26e   : > { %v4011_v53 = vpack.c.bf16 %v3019_v3, %v3018_v22  ;;  %v3090_v7 = vadd.f32 %v3089_v33, %v3019_v3  ;;  %v3121_v49 = vmul.f32 %v3019_v3, %v3019_v3  ;;  %v2955_v33 = vpop.permute.xlu0 %2954 }
 0x26f   : > { %v2481_v14 = vadd.f32 %v2436_v29, %v2291_v51  ;;  %v2598_v26 = vpop.f32.mrf.mxu3  ;;  %vm2999_vm10 = vcmp.eq.s32.totalorder %v2955_v33, 1 }
 0x270   : > { %4067 = vst [vmem:[%s6628_s25 + $0x20] sm:$0xff] %v4011_v53   ;;  %v3144_v4 = vadd.f32 %v3143_v52, %v3121_v49  ;;  %v2785_v61 = vpop.f32.mrf.mxu0 }
 0x271   : > { %v2641_v63 = vadd.f32 %v2596_v25, %v2481_v14 }
 0x273   : > { %v2441_v39 = vpop.f32.mrf.mxu2  ;;  %v2828_v16 = vadd.f32 %v2783_v28, %v2641_v63 }
 0x274   : > { %v2248_v62 = vpop.f32.mrf.mxu1 }
 0x275   : > { %v3020_v20 = vsel %vm2996_vm13, %v2828_v16, 0.0  ;;  %v2292_v54 = vadd.f32 %v2248_v62, %v6478_v47  ;;  %v7284_v16 = vld [vmem:[#allocation48_spill] sm:$0xff] }
 0x276   : > { %v3091_v41 = vadd.f32 %v3090_v7, %v3020_v20  ;;  %v3122_v2 = vmul.f32 %v3020_v20, %v3020_v20  ;;  %v2958_v7 = vpop.permute.xlu1 %2957  ;;  %v2964_v23 = vpop.permute.xlu0 %2963 }
 0x277   : > { %v2482_v15 = vadd.f32 %v2438_v18, %v2292_v54  ;;  %v2601_v11 = vpop.f32.mrf.mxu3  ;;  %vm3000_vm4 = vcmp.eq.s32.totalorder %v2958_v7, 1  ;;  %vm3002_vm3 = vcmp.eq.s32.totalorder %v2964_v23, 1 }
 0x278   : > { %v3145_v58 = vadd.f32 %v3144_v4, %v3122_v2  ;;  %v2788_v56 = vpop.f32.mrf.mxu0 }
 0x279   : > { %v2642_v57 = vadd.f32 %v2598_v26, %v2482_v15  ;;  %v2961_v15 = vpop.permute.xlu2 %2960 }
 0x27a   : > { %vm3001_vm2 = vcmp.eq.s32.totalorder %v2961_v15, 1 }
 0x27b   : > { %v2443_v60 = vpop.f32.mrf.mxu2  ;;  %v2829_v6 = vadd.f32 %v2785_v61, %v2642_v57 }
 0x27c   : > { %v2251_v10 = vpop.f32.mrf.mxu1 }
 0x27d   : > { %v3021_v59 = vsel %vm2997_vm12, %v2829_v6, 0.0  ;;  %v2293_v50 = vadd.f32 %v2251_v10, %v6492_v9  ;;  %v7285_v10 = vld [vmem:[#allocation17_spill] sm:$0xff] }
 0x27e   : > { %v4016_v5 = vpack.c.bf16 %v3021_v59, %v3020_v20  ;;  %v3092_v44 = vadd.f32 %v3091_v41, %v3021_v59  ;;  %v3123_v32 = vmul.f32 %v3021_v59, %v3021_v59  ;;  %v2967_v33 = vpop.permute.xlu1 %2966 }
 0x27f   : > { %v2483_v47 = vadd.f32 %v2441_v39, %v2293_v50  ;;  %v2603_v21 = vpop.f32.mrf.mxu3  ;;  %vm3003_vm11 = vcmp.eq.s32.totalorder %v2967_v33, 1 }
 0x280   : > { %4068 = vst [vmem:[%s6628_s25 + $0x28] sm:$0xff] %v4016_v5   ;;  %v3146_v19 = vadd.f32 %v3145_v58, %v3123_v32  ;;  %v2790_v29 = vpop.f32.mrf.mxu0 }
 0x281   : > { %v2643_v0 = vadd.f32 %v2601_v11, %v2483_v47 }
 0x283   : > { %v2446_v36 = vpop.f32.mrf.mxu2  ;;  %v2830_v13 = vadd.f32 %v2788_v56, %v2643_v0 }
 0x284   : > { %v2253_v38 = vpop.f32.mrf.mxu1 }
 0x285   : > { %v3022_v8 = vsel %vm2998_vm9, %v2830_v13, 0.0  ;;  %v2294_v17 = vadd.f32 %v2253_v38, %v6508_v40 }
 0x286   : > { %v3093_v22 = vadd.f32 %v3092_v44, %v3022_v8  ;;  %v3124_v55 = vmul.f32 %v3022_v8, %v3022_v8 }
 0x287   : > { %v2484_v9 = vadd.f32 %v2443_v60, %v2294_v17  ;;  %v2606_v52 = vpop.f32.mrf.mxu3 }
 0x288   : > { %v3147_v1 = vadd.f32 %v3146_v19, %v3124_v55  ;;  %v2793_v31 = vpop.f32.mrf.mxu0 }
 0x289   : > { %v2644_v46 = vadd.f32 %v2603_v21, %v2484_v9 }
 0x28b   : > { %v2448_v34 = vpop.f32.mrf.mxu2  ;;  %v2831_v18 = vadd.f32 %v2790_v29, %v2644_v46 }
 0x28c   : > { %v2256_v25 = vpop.f32.mrf.mxu1 }
 0x28d   : > { %v3023_v28 = vsel %vm2999_vm10, %v2831_v18, 0.0  ;;  %v2295_v48 = vadd.f32 %v2256_v25, %v7283_v45 }
 0x28e   : > { %v4021_v3 = vpack.c.bf16 %v3023_v28, %v3022_v8  ;;  %v3094_v51 = vadd.f32 %v3093_v22, %v3023_v28  ;;  %v3125_v53 = vmul.f32 %v3023_v28, %v3023_v28 }
 0x28f   : > { %v2485_v40 = vadd.f32 %v2446_v36, %v2295_v48  ;;  %v2608_v4 = vpop.f32.mrf.mxu3 }
 0x290   : > { %4069 = vst [vmem:[%s6628_s25 + $0x30] sm:$0xff] %v4021_v3   ;;  %v3148_v49 = vadd.f32 %v3147_v1, %v3125_v53  ;;  %v2795_v63 = vpop.f32.mrf.mxu0  ;;  %v2970_v53 = vpop.permute.xlu2 %2969 }
 0x291   : > { %v2645_v14 = vadd.f32 %v2606_v52, %v2485_v40  ;;  %vm3004_vm14 = vcmp.eq.s32.totalorder %v2970_v53, 1 }
 0x293   : > { %v2451_v42 = vpop.f32.mrf.mxu2  ;;  %v2832_v39 = vadd.f32 %v2793_v31, %v2645_v14 }
 0x294   : > { %v2258_v26 = vpop.f32.mrf.mxu1 }
 0x295   : > { %v3024_v61 = vsel %vm3000_vm4, %v2832_v39, 0.0  ;;  %v2296_v62 = vadd.f32 %v2258_v26, %v7284_v16 }
 0x296   : > { %v3095_v20 = vadd.f32 %v3094_v51, %v3024_v61  ;;  %v3126_v54 = vmul.f32 %v3024_v61, %v3024_v61 }
 0x297   : > { %v2486_v41 = vadd.f32 %v2448_v34, %v2296_v62  ;;  %v2611_v58 = vpop.f32.mrf.mxu3 }
 0x298   : > { %v3149_v2 = vadd.f32 %v3148_v49, %v3126_v54  ;;  %v2798_v60 = vpop.f32.mrf.mxu0 }
 0x299   : > { %v2646_v27 = vadd.f32 %v2608_v4, %v2486_v41 }
 0x29b   : > { %v2453_v57 = vpop.f32.mrf.mxu2  ;;  %v2833_v11 = vadd.f32 %v2795_v63, %v2646_v27  ;;  %v7286_v63 = vld [vmem:[#allocation7_spill] sm:$0xff] }
 0x29c   : > { %v2261_v56 = vpop.f32.mrf.mxu1 }
 0x29d   : > { %v3025_v6 = vsel %vm3001_vm2, %v2833_v11, 0.0  ;;  %v2297_v59 = vadd.f32 %v2261_v56, %v7285_v10 }
 0x29e   : > { %v4026_v50 = vpack.c.bf16 %v3025_v6, %v3024_v61  ;;  %v3096_v5 = vadd.f32 %v3095_v20, %v3025_v6  ;;  %v3127_v44 = vmul.f32 %v3025_v6, %v3025_v6  ;;  %v2973_v20 = vpop.permute.xlu0 %2972 }
 0x29f   : > { %v2487_v32 = vadd.f32 %v2451_v42, %v2297_v59  ;;  %v2613_v0 = vpop.f32.mrf.mxu3  ;;  %vm3005_vm15 = vcmp.eq.s32.totalorder %v2973_v20, 1  ;;  %v2976_v59 = vpop.permute.xlu1 %2975 }
 0x2a0   : > { %4070 = vst [vmem:[%s6628_s25 + $0x38] sm:$0xff] %v4026_v50   ;;  %v3150_v47 = vadd.f32 %v3149_v2, %v3127_v44  ;;  %v2800_v36 = vpop.f32.mrf.mxu0  ;;  %vm3006_vm7 = vcmp.eq.s32.totalorder %v2976_v59, 1 }
 0x2a1   : > { %v2647_v19 = vadd.f32 %v2611_v58, %v2487_v32 }
 0x2a3   : > { %v2834_v21 = vadd.f32 %v2798_v60, %v2647_v19  ;;  %v2456_v29 = vpop.f32.mrf.mxu2 }
 0x2a4   : > { %v2263_v13 = vpop.f32.mrf.mxu1 }
 0x2a5   : > { %v3026_v38 = vsel %vm3002_vm3, %v2834_v21, 0.0  ;;  %v2298_v8 = vadd.f32 %v2263_v13, %v6593_v35  ;;  %v2979_v13 = vpop.permute.xlu2 %2978 }
 0x2a6   : > { %v3097_v17 = vadd.f32 %v3096_v5, %v3026_v38  ;;  %v3128_v22 = vmul.f32 %v3026_v38, %v3026_v38  ;;  %vm3007_vm8 = vcmp.eq.s32.totalorder %v2979_v13, 1 }
 0x2a7   : > { %v2488_v55 = vadd.f32 %v2453_v57, %v2298_v8  ;;  %v2616_v46 = vpop.f32.mrf.mxu3 }
 0x2a8   : > { %v3151_v9 = vadd.f32 %v3150_v47, %v3128_v22 }
 0x2a9   : > { %v2648_v1 = vadd.f32 %v2613_v0, %v2488_v55  ;;  %v2803_v34 = vpop.f32.mrf.mxu0 }
 0x2ab   : > { %v2835_v52 = vadd.f32 %v2800_v36, %v2648_v1  ;;  %v2458_v3 = vpop.f32.mrf.mxu2 }
 0x2ac   : > { %v2266_v31 = vpop.f32.mrf.mxu1 }
 0x2ad   : > { %v3027_v18 = vsel %vm3003_vm11, %v2835_v52, 0.0  ;;  %v2299_v25 = vadd.f32 %v2266_v31, %v6610_v37 }
 0x2ae   : > { %v4031_v28 = vpack.c.bf16 %v3027_v18, %v3026_v38  ;;  %v3098_v45 = vadd.f32 %v3097_v17, %v3027_v18  ;;  %v3129_v48 = vmul.f32 %v3027_v18, %v3027_v18  ;;  %v2982_v18 = vpop.permute.xlu0 %2981 }
 0x2af   : > { %v2489_v35 = vadd.f32 %v2456_v29, %v2299_v25  ;;  %v2618_v7 = vpop.f32.mrf.mxu3  ;;  %vm3008_vm1 = vcmp.eq.s32.totalorder %v2982_v18, 1 }
 0x2b0   : > { %4071 = vst [vmem:[%s6628_s25 + $0x40] sm:$0xff] %v4031_v28   ;;  %v3152_v51 = vadd.f32 %v3151_v9, %v3129_v48 }
 0x2b1   : > { %v2649_v40 = vadd.f32 %v2616_v46, %v2489_v35  ;;  %v2805_v49 = vpop.f32.mrf.mxu0 }
 0x2b3   : > { %v2836_v14 = vadd.f32 %v2803_v34, %v2649_v40  ;;  %v2461_v62 = vpop.f32.mrf.mxu2 }
 0x2b4   : > { %v2268_v42 = vpop.f32.mrf.mxu1 }
 0x2b5   : > { %v3028_v4 = vsel %vm3004_vm14, %v2836_v14, 0.0  ;;  %v2300_v39 = vadd.f32 %v2268_v42, %v7286_v63 }
 0x2b6   : > { %v3099_v26 = vadd.f32 %v3098_v45, %v3028_v4  ;;  %v3130_v61 = vmul.f32 %v3028_v4, %v3028_v4 }
 0x2b7   : > { %v2490_v37 = vadd.f32 %v2458_v3, %v2300_v39  ;;  %v2621_v41 = vpop.f32.mrf.mxu3 }
 0x2b8   : > { %v3153_v16 = vadd.f32 %v3152_v51, %v3130_v61 }
 0x2b9   : > { %v2650_v54 = vadd.f32 %v2618_v7, %v2490_v37  ;;  %v2808_v15 = vpop.f32.mrf.mxu0 }
 0x2bb   : > { %v2837_v2 = vadd.f32 %v2805_v49, %v2650_v54  ;;  %v2463_v5 = vpop.f32.mrf.mxu2  ;;  %v2985_v49 = vpop.permute.xlu1 %2984 }
 0x2bc   : > { %v2271_v27 = vpop.f32.mrf.mxu1  ;;  %vm3009_vm6 = vcmp.eq.s32.totalorder %v2985_v49, 1 }
 0x2bd   : > { %v3029_v58 = vsel %vm3005_vm15, %v2837_v2, 0.0  ;;  %v2301_v57 = vadd.f32 %v2271_v27, %v6657_v30 }
 0x2be   : > { %v4036_v60 = vpack.c.bf16 %v3029_v58, %v3028_v4  ;;  %v3100_v11 = vadd.f32 %v3099_v26, %v3029_v58  ;;  %v3131_v56 = vmul.f32 %v3029_v58, %v3029_v58 }
 0x2bf   : > { %v2491_v6 = vadd.f32 %v2461_v62, %v2301_v57  ;;  %v2623_v32 = vpop.f32.mrf.mxu3 }
 0x2c0   : > { %4072 = vst [vmem:[%s6628_s25 + $0x48] sm:$0xff] %v4036_v60   ;;  %v3154_v10 = vadd.f32 %v3153_v16, %v3131_v56 }
 0x2c1   : > { %v2651_v50 = vadd.f32 %v2621_v41, %v2491_v6  ;;  %v2810_v21 = vpop.f32.mrf.mxu0 }
 0x2c3   : > { %v2838_v44 = vadd.f32 %v2808_v15, %v2651_v50  ;;  %v2466_v17 = vpop.f32.mrf.mxu2 }
 0x2c4   : > { %v2273_v47 = vpop.f32.mrf.mxu1 }
 0x2c5   : > { %v3030_v23 = vsel %vm3006_vm7, %v2838_v44, 0.0  ;;  %v2302_v19 = vadd.f32 %v2273_v47, %v6670_v24 }
 0x2c6   : > { %v3101_v0 = vadd.f32 %v3100_v11, %v3030_v23  ;;  %v3132_v36 = vmul.f32 %v3030_v23, %v3030_v23 }
 0x2c7   : > { %v2492_v30 = vadd.f32 %v2463_v5, %v2302_v19  ;;  %v2626_v34 = vpop.f32.mrf.mxu3 }
 0x2c8   : > { %v3155_v29 = vadd.f32 %v3154_v10, %v3132_v36 }
 0x2c9   : > { %v2652_v38 = vadd.f32 %v2623_v32, %v2492_v30  ;;  %v2813_v31 = vpop.f32.mrf.mxu0 }
 0x2cb   : > { %v2839_v8 = vadd.f32 %v2810_v21, %v2652_v38  ;;  %v2468_v35 = vpop.f32.mrf.mxu2 }
 0x2cc   : > { %v2276_v22 = vpop.f32.mrf.mxu1 }
 0x2cd   : > { %v3031_v55 = vsel %vm3007_vm8, %v2839_v8, 0.0  ;;  %v2303_v9 = vadd.f32 %v2276_v22, %v6688_v43 }
 0x2ce   : > { %v4041_v33 = vpack.c.bf16 %v3031_v55, %v3030_v23  ;;  %v3102_v1 = vadd.f32 %v3101_v0, %v3031_v55  ;;  %v3133_v46 = vmul.f32 %v3031_v55, %v3031_v55 }
 0x2cf   : > { %v2493_v24 = vadd.f32 %v2466_v17, %v2303_v9  ;;  %v2628_v7 = vpop.f32.mrf.mxu3 }
 0x2d0   : > { %4073 = vst [vmem:[%s6628_s25 + $0x50] sm:$0xff] %v4041_v33   ;;  %v3156_v52 = vadd.f32 %v3155_v29, %v3133_v46 }
 0x2d1   : > { %v2653_v25 = vadd.f32 %v2626_v34, %v2493_v24  ;;  %v2815_v42 = vpop.f32.mrf.mxu0 }
 0x2d3   : > { %v2840_v28 = vadd.f32 %v2813_v31, %v2653_v25 }
 0x2d4   : > { %v2278_v45 = vpop.f32.mrf.mxu1 }
 0x2d5   : > { %v3032_v48 = vsel %vm3008_vm1, %v2840_v28, 0.0  ;;  %v2304_v3 = vadd.f32 %v2278_v45, %v6699_v12 }
 0x2d6   : > { %v3103_v43 = vadd.f32 %v3102_v1, %v3032_v48  ;;  %v3134_v51 = vmul.f32 %v3032_v48, %v3032_v48 }
 0x2d7   : > { %v2494_v53 = vadd.f32 %v2468_v35, %v2304_v3 }
 0x2d8   : > { %v3157_v40 = vadd.f32 %v3156_v52, %v3134_v51 }
 0x2d9   : > { %v2654_v14 = vadd.f32 %v2628_v7, %v2494_v53 }
 0x2db   : > { %v2841_v4 = vadd.f32 %v2815_v42, %v2654_v14 }
 0x2dd   : > { %v3033_v63 = vsel %vm3009_vm6, %v2841_v4, 0.0 }
 0x2de   : > { %v4046_v39 = vpack.c.bf16 %v3033_v63, %v3032_v48  ;;  %v3104_v26 = vadd.f32 %v3103_v43, %v3033_v63  ;;  %v3135_v61 = vmul.f32 %v3033_v63, %v3033_v63 }
 0x2e0   : > { %4074 = vst [vmem:[%s6628_s25 + $0x58] sm:$0xff] %v4046_v39   ;;  %v3105_v12 = vrot.slane %v3104_v26, 4  ;;  %v3158_v37 = vadd.f32 %v3157_v40, %v3135_v61 }
 0x2e2   : > { %v3106_v16 = vadd.f32 %v3105_v12, %v3104_v26  ;;  %v3159_v62 = vrot.slane %v3158_v37, 4 }
 0x2e4   : > { %v3107_v20 = vrot.slane %v3106_v16, 2  ;;  %v3160_v54 = vadd.f32 %v3159_v62, %v3158_v37 }
 0x2e6   : > { %v3108_v41 = vadd.f32 %v3107_v20, %v3106_v16  ;;  %v3161_v2 = vrot.slane %v3160_v54, 2 }
 0x2e8   : > { %v3109_v15 = vrot.slane %v3108_v41, 1  ;;  %v3162_v27 = vadd.f32 %v3161_v2, %v3160_v54 }
 0x2ea   : > { %v3110_v58 = vadd.f32 %v3109_v15, %v3108_v41  ;;  %v3163_v57 = vrot.slane %v3162_v27, 1 }
 0x2ec   : > { %3111 = vst [vmem:[%s363_s27] sm:$0x1] %v3110_v58  ;;  %v3164_v60 = vadd.f32 %v3163_v57, %v3162_v27 }
 0x2ee   : > { %3165 = vst [vmem:[%s370_s18] sm:$0x1] %v3164_v60 }
 0x2ef PF: > { %s19_s9 = sadd.s32 1, %s4185_s9   ;;  %s7287_s27 = smov %s4177_s29 }
 0x2f0   : > { %p16_p8 = scmp.ge.s32.totalorder %s19_s9, 6   ;;  %s7288_s28 = smov %s4181_s30 }
 0x2f1   : > { %s7289_s29 = smov %s7292_s10  ;;  %s7290_s30 = smov %s7296_s11 }
 0x2f2   :  { %18 = sbr.rel (!%p16_p8) target bundleno = 3 (0x3), region = 107 }

</bundles_post_ra>
